<compile_context>
chip_gen: v7x
topology: tpu7x:2x2x1
jax: 0.10.0
libtpu: 0.0.40
codegen_flags: <defaults>
</compile_context>

<pallas_src>
import functools

import jax
import jax.numpy as jnp
from jax.experimental import pallas as pl
from jax.experimental.pallas import tpu as pltpu

_VMEM_SPEC = pl.BlockSpec(memory_space=pltpu.MemorySpace.VMEM)
_LN_EPS = 1e-5


# --------------------------------------------------------------------------
# In-kernel helpers (operate on traced values)
# --------------------------------------------------------------------------
def _layer_norm(x, gamma, beta):
    """LayerNorm over the last dim (eps=1e-5, PyTorch default). f32 math."""
    mean = jnp.mean(x, axis=-1, keepdims=True)
    var = jnp.mean(jnp.square(x - mean), axis=-1, keepdims=True)
    return (x - mean) * jax.lax.rsqrt(var + _LN_EPS) * gamma + beta


def _gru_cell(ip_t, hp, b_hn, h):
    """One GRU step (PyTorch semantics, gate order r,z,n).

    ip_t: (B, 3H) input projection with b_ih (+ b_hh for r/z) already folded in.
    hp:   (B, 3H) = h @ W_hh_cat (no bias).
    b_hn: (B, H)  hidden bias of the n gate (pre-broadcast).
    """
    H = h.shape[-1]
    r = jax.nn.sigmoid(ip_t[:, :H] + hp[:, :H])
    z = jax.nn.sigmoid(ip_t[:, H:2 * H] + hp[:, H:2 * H])
    n = jnp.tanh(ip_t[:, 2 * H:3 * H] + r * (hp[:, 2 * H:3 * H] + b_hn))
    return (1.0 - z) * n + z * h


def _input_proj(x2d, w_i_ref, b_ref):
    """(N, Din) @ (Din, 3H) + b — bf16 MXU operands, f32 accumulation."""
    return (jnp.dot(x2d.astype(jnp.bfloat16), w_i_ref[...],
                    preferred_element_type=jnp.float32) + b_ref[...])


def _hidden_proj(h, w_h):
    """(B, H) @ (H, 3H) — single concatenated-gate matmul on the recurrence path."""
    return jnp.dot(h.astype(jnp.bfloat16), w_h, preferred_element_type=jnp.float32)


# --------------------------------------------------------------------------
# Fused encoder kernel: GRU(nf->H1) -> LN(H1) -> GRU(H1->E) -> LN(E) -> latent
# --------------------------------------------------------------------------
def _encoder_kernel(x_ref,
                    w1i_ref, w1h_ref, b1_ref, b1n_ref, g1_ref, be1_ref,
                    w2i_ref, w2h_ref, b2_ref, b2n_ref, g2_ref, be2_ref,
                    lat_ref, seq_scr, *, T, B):
    H1 = w1h_ref.shape[0]
    E = w2h_ref.shape[0]

    # ---- rnn1: hoisted batched input projection, serial h-recurrence ----
    ip1 = _input_proj(x_ref[...], w1i_ref, b1_ref)               # (T*B, 3*H1)
    w1h = w1h_ref[...]
    b1n = jnp.broadcast_to(b1n_ref[...], (B, H1))                # hoisted broadcast
    h = jnp.zeros((B, H1), jnp.float32)                          # h0 = 0
    for t in range(T):                                           # static unroll
        hp = _hidden_proj(h, w1h)
        h = _gru_cell(ip1[t * B:(t + 1) * B], hp, b1n, h)
        seq_scr[t * B:(t + 1) * B, :] = h

    # ---- LayerNorm over the whole sequence, then rnn2 batched input projection ----
    s = _layer_norm(seq_scr[...], g1_ref[...], be1_ref[...])     # (T*B, H1)
    ip2 = _input_proj(s, w2i_ref, b2_ref)                        # (T*B, 3*E)

    # ---- rnn2: only the final hidden state is needed (== hidden_n) ----
    w2h = w2h_ref[...]
    b2n = jnp.broadcast_to(b2n_ref[...], (B, E))
    h2 = jnp.zeros((B, E), jnp.float32)
    for t in range(T):
        hp = _hidden_proj(h2, w2h)
        h2 = _gru_cell(ip2[t * B:(t + 1) * B], hp, b2n, h2)

    # ---- LayerNorm(E) epilogue on the final hidden state ----
    lat_ref[...] = _layer_norm(h2, g2_ref[...], be2_ref[...]).astype(lat_ref.dtype)


# --------------------------------------------------------------------------
# Fused decoder kernel:
#   repeat(latent) -> GRU_l0 -> GRU_l1 -> LN -> GRU_l0 -> GRU_l1 -> LN -> Linear
# --------------------------------------------------------------------------
def _decoder_kernel(lat_ref,
                    w10i_ref, w10h_ref, b10_ref, b10n_ref,
                    w11i_ref, w11h_ref, b11_ref, b11n_ref,
                    g1_ref, be1_ref,
                    w20i_ref, w20h_ref, b20_ref, b20n_ref,
                    w21i_ref, w21h_ref, b21_ref, b21n_ref,
                    g2_ref, be2_ref,
                    wo_ref, bo_ref,
                    out_ref, seq_a, seq_b, *, T, B):
    E = w10h_ref.shape[0]
    lat = lat_ref[...]                                           # (B, E)

    # ---- rnn1 layer 0: input is the repeated latent (same every step).
    # The nf-fold feature tiling is folded into w10i by the wrapper, so the
    # input projection is computed ONCE and reused for all T steps.
    ip0 = _input_proj(lat, w10i_ref, b10_ref)                    # (B, 3E)
    w10h = w10h_ref[...]
    b10n = jnp.broadcast_to(b10n_ref[...], (B, E))
    h = jnp.zeros((B, E), jnp.float32)
    for t in range(T):
        hp = _hidden_proj(h, w10h)
        h = _gru_cell(ip0, hp, b10n, h)
        seq_a[t * B:(t + 1) * B, :] = h

    # ---- rnn1 layer 1 ----
    ip1 = _input_proj(seq_a[...], w11i_ref, b11_ref)             # (T*B, 3E)
    w11h = w11h_ref[...]
    b11n = jnp.broadcast_to(b11n_ref[...], (B, E))
    h = jnp.zeros((B, E), jnp.float32)
    for t in range(T):
        hp = _hidden_proj(h, w11h)
        h = _gru_cell(ip1[t * B:(t + 1) * B], hp, b11n, h)
        seq_b[t * B:(t + 1) * B, :] = h

    # ---- norm1 ----
    s = _layer_norm(seq_b[...], g1_ref[...], be1_ref[...])

    # ---- rnn2 layer 0 ----
    ip2 = _input_proj(s, w20i_ref, b20_ref)
    w20h = w20h_ref[...]
    b20n = jnp.broadcast_to(b20n_ref[...], (B, E))
    h = jnp.zeros((B, E), jnp.float32)
    for t in range(T):
        hp = _hidden_proj(h, w20h)
        h = _gru_cell(ip2[t * B:(t + 1) * B], hp, b20n, h)
        seq_a[t * B:(t + 1) * B, :] = h

    # ---- rnn2 layer 1 ----
    ip3 = _input_proj(seq_a[...], w21i_ref, b21_ref)
    w21h = w21h_ref[...]
    b21n = jnp.broadcast_to(b21n_ref[...], (B, E))
    h = jnp.zeros((B, E), jnp.float32)
    for t in range(T):
        hp = _hidden_proj(h, w21h)
        h = _gru_cell(ip3[t * B:(t + 1) * B], hp, b21n, h)
        seq_b[t * B:(t + 1) * B, :] = h

    # ---- norm2 + output Linear fused epilogue (single full-block store) ----
    s = _layer_norm(seq_b[...], g2_ref[...], be2_ref[...])
    out_ref[...] = (jnp.dot(s.astype(jnp.bfloat16), wo_ref[...],
                            preferred_element_type=jnp.float32)
                    + bo_ref[...]).astype(out_ref.dtype)


# --------------------------------------------------------------------------
# Parameter init (deterministic, synthetic — PyTorch-like uniform(-1/sqrt(H), 1/sqrt(H)))
# Stored per-gate, stacked (3, Din, H) in gate order (r, z, n).
# Real PyTorch weights ((3H, Din)) must be split + transposed into this layout.
# --------------------------------------------------------------------------
def _gru_params(key, din, h):
    k1, k2, k3, k4 = jax.random.split(key, 4)
    s = 1.0 / jnp.sqrt(jnp.float32(h))
    wih = jax.random.uniform(k1, (3, din, h), jnp.float32, -s, s)
    whh = jax.random.uniform(k2, (3, h, h), jnp.float32, -s, s)
    bih = jax.random.uniform(k3, (3, 1, h), jnp.float32, -s, s)
    bhh = jax.random.uniform(k4, (3, 1, h), jnp.float32, -s, s)
    return (wih, whh, bih, bhh)


def _ln_params(d):
    return (jnp.ones((1, d), jnp.float32), jnp.zeros((1, d), jnp.float32))


def init_params(key, n_features, embedding_dim, enc_hidden=128):
    keys = jax.random.split(key, 8)
    E, nf = embedding_dim, n_features
    params = {
        # EncoderGRU
        "enc_rnn1": _gru_params(keys[0], nf, enc_hidden),        # GRU(nf -> 128), 1 layer
        "enc_norm1": _ln_params(enc_hidden),
        "enc_rnn2": _gru_params(keys[1], enc_hidden, E),         # GRU(128 -> E), 1 layer
        "enc_norm2": _ln_params(E),
        # DecoderGRU (hidden_dim is overwritten to input_dim = E in the PyTorch module)
        "dec_rnn1_l0": _gru_params(keys[2], E * nf, E),          # GRU(E*nf -> E), layer 0
        "dec_rnn1_l1": _gru_params(keys[3], E, E),               # GRU(E -> E),    layer 1
        "dec_norm1": _ln_params(E),
        "dec_rnn2_l0": _gru_params(keys[4], E, E),
        "dec_rnn2_l1": _gru_params(keys[5], E, E),
        "dec_norm2": _ln_params(E),
    }
    s = 1.0 / jnp.sqrt(jnp.float32(E))
    params["dec_out_wT"] = jax.random.uniform(keys[6], (E, nf), jnp.float32, -s, s)
    params["dec_out_b"] = jax.random.uniform(keys[7], (1, nf), jnp.float32, -s, s)
    return params


# --------------------------------------------------------------------------
# Weight prep: concatenate gates, fold biases, fold input-repeat, cast to bf16.
# --------------------------------------------------------------------------
def _prep_gru(p, fold_repeats=None):
    wih, whh, bih, bhh = p                                       # (3,Din,H),(3,H,H),(3,1,H),(3,1,H)
    if fold_repeats is not None and fold_repeats > 1:
        # Input = tile(v, fold_repeats)  =>  tile(v) @ W == v @ sum_of_row_blocks(W)
        g, din, h = wih.shape
        wih = wih.reshape(g, fold_repeats, din // fold_repeats, h).sum(axis=1)
    w_i = jnp.concatenate([wih[0], wih[1], wih[2]], axis=-1).astype(jnp.bfloat16)   # (Din, 3H)
    w_h = jnp.concatenate([whh[0], whh[1], whh[2]], axis=-1).astype(jnp.bfloat16)   # (H,   3H)
    # Fold b_ih fully, and b_hh for the r/z gates, into the hoisted input projection.
    b = jnp.concatenate([bih[0] + bhh[0], bih[1] + bhh[1], bih[2]], axis=-1)        # (1, 3H) f32
    b_hn = bhh[2]                                                                   # (1, H)  f32
    return w_i, w_h, b, b_hn


# --------------------------------------------------------------------------
# StoSAutoencoder forward
# --------------------------------------------------------------------------
def stos_autoencoder_forward(x_btf, params):
    """x_btf: (B, T, n_features) batch-first, like PyTorch. Returns (recon, latent)."""
    B, T, nf = x_btf.shape
    H1 = params["enc_rnn1"][1].shape[-1]
    E = params["enc_rnn2"][1].shape[-1]

    # time-major 2-D slab: row = t*B + b
    x2 = jnp.transpose(x_btf, (1, 0, 2)).reshape(T * B, nf)

    # ---- Encoder (single fused kernel) ----
    e1 = _prep_gru(params["enc_rnn1"])
    e2 = _prep_gru(params["enc_rnn2"])
    g1, be1 = params["enc_norm1"]
    g2, be2 = params["enc_norm2"]

    latent2d = pl.pallas_call(
        functools.partial(_encoder_kernel, T=T, B=B),
        out_shape=jax.ShapeDtypeStruct((B, E), jnp.float32),
        in_specs=[_VMEM_SPEC] * 13,
        out_specs=_VMEM_SPEC,
        scratch_shapes=[pltpu.VMEM((T * B, H1), jnp.float32)],
    )(x2, *e1, g1, be1, *e2, g2, be2)

    latent = latent2d.reshape(B, 1, E)                           # == torch.transpose(hidden_n,1,0)

    # ---- Decoder (single fused kernel) ----
    d10 = _prep_gru(params["dec_rnn1_l0"], fold_repeats=nf)      # folds the x.repeat(...,nf) tile
    d11 = _prep_gru(params["dec_rnn1_l1"])
    d20 = _prep_gru(params["dec_rnn2_l0"])
    d21 = _prep_gru(params["dec_rnn2_l1"])
    dg1, dbe1 = params["dec_norm1"]
    dg2, dbe2 = params["dec_norm2"]
    wo = params["dec_out_wT"].astype(jnp.bfloat16)
    bo = params["dec_out_b"]

    recon2 = pl.pallas_call(
        functools.partial(_decoder_kernel, T=T, B=B),
        out_shape=jax.ShapeDtypeStruct((T * B, nf), jnp.float32),
        in_specs=[_VMEM_SPEC] * 23,
        out_specs=_VMEM_SPEC,
        scratch_shapes=[pltpu.VMEM((T * B, E), jnp.float32),
                        pltpu.VMEM((T * B, E), jnp.float32)],
    )(latent2d, *d10, *d11, dg1, dbe1, *d20, *d21, dg2, dbe2, wo, bo)

    recon = jnp.transpose(recon2.reshape(T, B, nf), (1, 0, 2))   # (B, T, nf)
    return recon, latent
    # TODO(synk): if B or T scale up, add a batch grid axis (dimension_semantics="parallel")
    # to use the second TensorCore on v7x and tile T to respect the smaller 64 MiB VMEM.


# --------------------------------------------------------------------------
if __name__ == "__main__":
    # Small shapes: batch=2, seq_len=8, n_features=4, embedding_dim=32
    B, T, NF, E = 2, 8, 4, 32

    key = jax.random.PRNGKey(0)
    k_x, k_p = jax.random.split(key)
    x = jax.random.normal(k_x, (B, T, NF), jnp.float32)
    params = init_params(k_p, n_features=NF, embedding_dim=E, enc_hidden=128)

    recon, latent = jax.jit(stos_autoencoder_forward)(x, params)
    recon = jax.block_until_ready(recon)
    latent = jax.block_until_ready(latent)

    assert recon.shape == (B, T, NF), recon.shape
    assert latent.shape == (B, 1, E), latent.shape
    assert bool(jnp.all(jnp.isfinite(recon))) and bool(jnp.all(jnp.isfinite(latent)))

    print("KERNEL_OK")
</pallas_src>

<mosaic_0001>
module attributes {stable_mosaic.version = 11 : i64} {
  func.func @_encoder_kernel(%arg0: memref<16x4xf32, #tpu.memory_space<vmem>>, %arg1: memref<4x384xbf16, #tpu.memory_space<vmem>>, %arg2: memref<128x384xbf16, #tpu.memory_space<vmem>>, %arg3: memref<1x384xf32, #tpu.memory_space<vmem>>, %arg4: memref<1x128xf32, #tpu.memory_space<vmem>>, %arg5: memref<1x128xf32, #tpu.memory_space<vmem>>, %arg6: memref<1x128xf32, #tpu.memory_space<vmem>>, %arg7: memref<128x96xbf16, #tpu.memory_space<vmem>>, %arg8: memref<32x96xbf16, #tpu.memory_space<vmem>>, %arg9: memref<1x96xf32, #tpu.memory_space<vmem>>, %arg10: memref<1x32xf32, #tpu.memory_space<vmem>>, %arg11: memref<1x32xf32, #tpu.memory_space<vmem>>, %arg12: memref<1x32xf32, #tpu.memory_space<vmem>>, %arg13: memref<2x32xf32, #tpu.memory_space<vmem>>, %arg14: memref<16x128xf32, #tpu.memory_space<vmem>>) attributes {dimension_semantics = [], scalar_prefetch = 0 : i64, scratch_operands = 1 : i64, tpu.core_type = #tpu.core_type<tc>} {
    %c0 = arith.constant 0 : index
    %c0_0 = arith.constant 0 : index
    %0 = vector.load %arg0[%c0, %c0_0] : memref<16x4xf32, #tpu.memory_space<vmem>>, vector<16x4xf32>
    %1 = arith.truncf %0 : vector<16x4xf32> to vector<16x4xbf16>
    %c0_1 = arith.constant 0 : index
    %c0_2 = arith.constant 0 : index
    %2 = vector.load %arg1[%c0_1, %c0_2] : memref<4x384xbf16, #tpu.memory_space<vmem>>, vector<4x384xbf16>
    %cst = arith.constant dense<0.000000e+00> : vector<16x384xf32>
    %3 = tpu.matmul %1, %2, %cst {dimension_numbers = #tpu.dot_dimension_numbers<[1], [0], [0], [1], [0, 0, 1, 1], [], []>} : vector<16x4xbf16>, vector<4x384xbf16>, vector<16x384xf32> -> vector<16x384xf32>
    %c0_3 = arith.constant 0 : index
    %c0_4 = arith.constant 0 : index
    %4 = vector.load %arg3[%c0_3, %c0_4] : memref<1x384xf32, #tpu.memory_space<vmem>>, vector<1x384xf32>
    %5 = vector.broadcast %4 : vector<1x384xf32> to vector<16x384xf32>
    %6 = arith.addf %3, %5 : vector<16x384xf32>
    %c0_5 = arith.constant 0 : index
    %c0_6 = arith.constant 0 : index
    %7 = vector.load %arg2[%c0_5, %c0_6] : memref<128x384xbf16, #tpu.memory_space<vmem>>, vector<128x384xbf16>
    %c0_7 = arith.constant 0 : index
    %c0_8 = arith.constant 0 : index
    %8 = vector.load %arg4[%c0_7, %c0_8] : memref<1x128xf32, #tpu.memory_space<vmem>>, vector<1x128xf32>
    %9 = vector.shape_cast %8 : vector<1x128xf32> to vector<1x128xf32>
    %10 = vector.broadcast %9 : vector<1x128xf32> to vector<2x128xf32>
    %cst_9 = arith.constant 0.000000e+00 : f32
    %11 = vector.broadcast %cst_9 : f32 to vector<2x128xf32>
    %12 = arith.truncf %11 : vector<2x128xf32> to vector<2x128xbf16>
    %cst_10 = arith.constant dense<0.000000e+00> : vector<2x384xf32>
    %13 = tpu.matmul %12, %7, %cst_10 {dimension_numbers = #tpu.dot_dimension_numbers<[1], [0], [0], [1], [0, 0, 1, 1], [], []>} : vector<2x128xbf16>, vector<128x384xbf16>, vector<2x384xf32> -> vector<2x384xf32>
    %14 = vector.extract_strided_slice %6 {offsets = [0, 0], sizes = [2, 384], strides = [1, 1]} : vector<16x384xf32> to vector<2x384xf32>
    %15 = vector.extract_strided_slice %14 {offsets = [0, 0], sizes = [2, 128], strides = [1, 1]} : vector<2x384xf32> to vector<2x128xf32>
    %16 = vector.extract_strided_slice %13 {offsets = [0, 0], sizes = [2, 128], strides = [1, 1]} : vector<2x384xf32> to vector<2x128xf32>
    %17 = arith.addf %15, %16 : vector<2x128xf32>
    %18 = arith.negf %17 : vector<2x128xf32>
    %19 = math.exp %18 : vector<2x128xf32>
    %cst_11 = arith.constant 1.000000e+00 : f32
    %20 = vector.broadcast %cst_11 : f32 to vector<2x128xf32>
    %21 = arith.addf %20, %19 : vector<2x128xf32>
    %22 = arith.divf %20, %21 : vector<2x128xf32>
    %23 = vector.extract_strided_slice %14 {offsets = [0, 128], sizes = [2, 128], strides = [1, 1]} : vector<2x384xf32> to vector<2x128xf32>
    %24 = vector.extract_strided_slice %13 {offsets = [0, 128], sizes = [2, 128], strides = [1, 1]} : vector<2x384xf32> to vector<2x128xf32>
    %25 = arith.addf %23, %24 : vector<2x128xf32>
    %26 = arith.negf %25 : vector<2x128xf32>
    %27 = math.exp %26 : vector<2x128xf32>
    %cst_12 = arith.constant 1.000000e+00 : f32
    %28 = vector.broadcast %cst_12 : f32 to vector<2x128xf32>
    %29 = arith.addf %28, %27 : vector<2x128xf32>
    %30 = arith.divf %28, %29 : vector<2x128xf32>
    %31 = vector.extract_strided_slice %14 {offsets = [0, 256], sizes = [2, 128], strides = [1, 1]} : vector<2x384xf32> to vector<2x128xf32>
    %32 = vector.extract_strided_slice %13 {offsets = [0, 256], sizes = [2, 128], strides = [1, 1]} : vector<2x384xf32> to vector<2x128xf32>
    %33 = arith.addf %32, %10 : vector<2x128xf32>
    %34 = arith.mulf %22, %33 : vector<2x128xf32>
    %35 = arith.addf %31, %34 : vector<2x128xf32>
    %36 = math.tanh %35 : vector<2x128xf32>
    %cst_13 = arith.constant 1.000000e+00 : f32
    %37 = vector.broadcast %cst_13 : f32 to vector<2x128xf32>
    %38 = arith.subf %37, %30 : vector<2x128xf32>
    %39 = arith.mulf %38, %36 : vector<2x128xf32>
    %40 = arith.mulf %30, %11 : vector<2x128xf32>
    %41 = arith.addf %39, %40 : vector<2x128xf32>
    %c0_14 = arith.constant 0 : index
    %c0_15 = arith.constant 0 : index
    %42 = vector.load %arg14[%c0_14, %c0_15] : memref<16x128xf32, #tpu.memory_space<vmem>>, vector<2x128xf32>
    tpu.vector_store %arg14[%c0_14, %c0_15], %41 {strides = array<i32>} : memref<16x128xf32, #tpu.memory_space<vmem>>, vector<2x128xf32>,
    %43 = arith.truncf %41 : vector<2x128xf32> to vector<2x128xbf16>
    %cst_16 = arith.constant dense<0.000000e+00> : vector<2x384xf32>
    %44 = tpu.matmul %43, %7, %cst_16 {dimension_numbers = #tpu.dot_dimension_numbers<[1], [0], [0], [1], [0, 0, 1, 1], [], []>} : vector<2x128xbf16>, vector<128x384xbf16>, vector<2x384xf32> -> vector<2x384xf32>
    %45 = vector.extract_strided_slice %6 {offsets = [2, 0], sizes = [2, 384], strides = [1, 1]} : vector<16x384xf32> to vector<2x384xf32>
    %46 = vector.extract_strided_slice %45 {offsets = [0, 0], sizes = [2, 128], strides = [1, 1]} : vector<2x384xf32> to vector<2x128xf32>
    %47 = vector.extract_strided_slice %44 {offsets = [0, 0], sizes = [2, 128], strides = [1, 1]} : vector<2x384xf32> to vector<2x128xf32>
    %48 = arith.addf %46, %47 : vector<2x128xf32>
    %49 = arith.negf %48 : vector<2x128xf32>
    %50 = math.exp %49 : vector<2x128xf32>
    %cst_17 = arith.constant 1.000000e+00 : f32
    %51 = vector.broadcast %cst_17 : f32 to vector<2x128xf32>
    %52 = arith.addf %51, %50 : vector<2x128xf32>
    %53 = arith.divf %51, %52 : vector<2x128xf32>
    %54 = vector.extract_strided_slice %45 {offsets = [0, 128], sizes = [2, 128], strides = [1, 1]} : vector<2x384xf32> to vector<2x128xf32>
    %55 = vector.extract_strided_slice %44 {offsets = [0, 128], sizes = [2, 128], strides = [1, 1]} : vector<2x384xf32> to vector<2x128xf32>
    %56 = arith.addf %54, %55 : vector<2x128xf32>
    %57 = arith.negf %56 : vector<2x128xf32>
    %58 = math.exp %57 : vector<2x128xf32>
    %cst_18 = arith.constant 1.000000e+00 : f32
    %59 = vector.broadcast %cst_18 : f32 to vector<2x128xf32>
    %60 = arith.addf %59, %58 : vector<2x128xf32>
    %61 = arith.divf %59, %60 : vector<2x128xf32>
    %62 = vector.extract_strided_slice %45 {offsets = [0, 256], sizes = [2, 128], strides = [1, 1]} : vector<2x384xf32> to vector<2x128xf32>
    %63 = vector.extract_strided_slice %44 {offsets = [0, 256], sizes = [2, 128], strides = [1, 1]} : vector<2x384xf32> to vector<2x128xf32>
    %64 = arith.addf %63, %10 : vector<2x128xf32>
    %65 = arith.mulf %53, %64 : vector<2x128xf32>
    %66 = arith.addf %62, %65 : vector<2x128xf32>
    %67 = math.tanh %66 : vector<2x128xf32>
    %cst_19 = arith.constant 1.000000e+00 : f32
    %68 = vector.broadcast %cst_19 : f32 to vector<2x128xf32>
    %69 = arith.subf %68, %61 : vector<2x128xf32>
    %70 = arith.mulf %69, %67 : vector<2x128xf32>
    %71 = arith.mulf %61, %41 : vector<2x128xf32>
    %72 = arith.addf %70, %71 : vector<2x128xf32>
    %c2 = arith.constant 2 : index
    %c0_20 = arith.constant 0 : index
    %73 = vector.load %arg14[%c2, %c0_20] : memref<16x128xf32, #tpu.memory_space<vmem>>, vector<2x128xf32>
    tpu.vector_store %arg14[%c2, %c0_20], %72 {strides = array<i32>} : memref<16x128xf32, #tpu.memory_space<vmem>>, vector<2x128xf32>,
    %74 = arith.truncf %72 : vector<2x128xf32> to vector<2x128xbf16>
    %cst_21 = arith.constant dense<0.000000e+00> : vector<2x384xf32>
    %75 = tpu.matmul %74, %7, %cst_21 {dimension_numbers = #tpu.dot_dimension_numbers<[1], [0], [0], [1], [0, 0, 1, 1], [], []>} : vector<2x128xbf16>, vector<128x384xbf16>, vector<2x384xf32> -> vector<2x384xf32>
    %76 = vector.extract_strided_slice %6 {offsets = [4, 0], sizes = [2, 384], strides = [1, 1]} : vector<16x384xf32> to vector<2x384xf32>
    %77 = vector.extract_strided_slice %76 {offsets = [0, 0], sizes = [2, 128], strides = [1, 1]} : vector<2x384xf32> to vector<2x128xf32>
    %78 = vector.extract_strided_slice %75 {offsets = [0, 0], sizes = [2, 128], strides = [1, 1]} : vector<2x384xf32> to vector<2x128xf32>
    %79 = arith.addf %77, %78 : vector<2x128xf32>
    %80 = arith.negf %79 : vector<2x128xf32>
    %81 = math.exp %80 : vector<2x128xf32>
    %cst_22 = arith.constant 1.000000e+00 : f32
    %82 = vector.broadcast %cst_22 : f32 to vector<2x128xf32>
    %83 = arith.addf %82, %81 : vector<2x128xf32>
    %84 = arith.divf %82, %83 : vector<2x128xf32>
    %85 = vector.extract_strided_slice %76 {offsets = [0, 128], sizes = [2, 128], strides = [1, 1]} : vector<2x384xf32> to vector<2x128xf32>
    %86 = vector.extract_strided_slice %75 {offsets = [0, 128], sizes = [2, 128], strides = [1, 1]} : vector<2x384xf32> to vector<2x128xf32>
    %87 = arith.addf %85, %86 : vector<2x128xf32>
    %88 = arith.negf %87 : vector<2x128xf32>
    %89 = math.exp %88 : vector<2x128xf32>
    %cst_23 = arith.constant 1.000000e+00 : f32
    %90 = vector.broadcast %cst_23 : f32 to vector<2x128xf32>
    %91 = arith.addf %90, %89 : vector<2x128xf32>
    %92 = arith.divf %90, %91 : vector<2x128xf32>
    %93 = vector.extract_strided_slice %76 {offsets = [0, 256], sizes = [2, 128], strides = [1, 1]} : vector<2x384xf32> to vector<2x128xf32>
    %94 = vector.extract_strided_slice %75 {offsets = [0, 256], sizes = [2, 128], strides = [1, 1]} : vector<2x384xf32> to vector<2x128xf32>
    %95 = arith.addf %94, %10 : vector<2x128xf32>
    %96 = arith.mulf %84, %95 : vector<2x128xf32>
    %97 = arith.addf %93, %96 : vector<2x128xf32>
    %98 = math.tanh %97 : vector<2x128xf32>
    %cst_24 = arith.constant 1.000000e+00 : f32
    %99 = vector.broadcast %cst_24 : f32 to vector<2x128xf32>
    %100 = arith.subf %99, %92 : vector<2x128xf32>
    %101 = arith.mulf %100, %98 : vector<2x128xf32>
    %102 = arith.mulf %92, %72 : vector<2x128xf32>
    %103 = arith.addf %101, %102 : vector<2x128xf32>
    %c4 = arith.constant 4 : index
    %c0_25 = arith.constant 0 : index
    %104 = vector.load %arg14[%c4, %c0_25] : memref<16x128xf32, #tpu.memory_space<vmem>>, vector<2x128xf32>
    tpu.vector_store %arg14[%c4, %c0_25], %103 {strides = array<i32>} : memref<16x128xf32, #tpu.memory_space<vmem>>, vector<2x128xf32>,
    %105 = arith.truncf %103 : vector<2x128xf32> to vector<2x128xbf16>
    %cst_26 = arith.constant dense<0.000000e+00> : vector<2x384xf32>
    %106 = tpu.matmul %105, %7, %cst_26 {dimension_numbers = #tpu.dot_dimension_numbers<[1], [0], [0], [1], [0, 0, 1, 1], [], []>} : vector<2x128xbf16>, vector<128x384xbf16>, vector<2x384xf32> -> vector<2x384xf32>
    %107 = vector.extract_strided_slice %6 {offsets = [6, 0], sizes = [2, 384], strides = [1, 1]} : vector<16x384xf32> to vector<2x384xf32>
    %108 = vector.extract_strided_slice %107 {offsets = [0, 0], sizes = [2, 128], strides = [1, 1]} : vector<2x384xf32> to vector<2x128xf32>
    %109 = vector.extract_strided_slice %106 {offsets = [0, 0], sizes = [2, 128], strides = [1, 1]} : vector<2x384xf32> to vector<2x128xf32>
    %110 = arith.addf %108, %109 : vector<2x128xf32>
    %111 = arith.negf %110 : vector<2x128xf32>
    %112 = math.exp %111 : vector<2x128xf32>
    %cst_27 = arith.constant 1.000000e+00 : f32
    %113 = vector.broadcast %cst_27 : f32 to vector<2x128xf32>
    %114 = arith.addf %113, %112 : vector<2x128xf32>
    %115 = arith.divf %113, %114 : vector<2x128xf32>
    %116 = vector.extract_strided_slice %107 {offsets = [0, 128], sizes = [2, 128], strides = [1, 1]} : vector<2x384xf32> to vector<2x128xf32>
    %117 = vector.extract_strided_slice %106 {offsets = [0, 128], sizes = [2, 128], strides = [1, 1]} : vector<2x384xf32> to vector<2x128xf32>
    %118 = arith.addf %116, %117 : vector<2x128xf32>
    %119 = arith.negf %118 : vector<2x128xf32>
    %120 = math.exp %119 : vector<2x128xf32>
    %cst_28 = arith.constant 1.000000e+00 : f32
    %121 = vector.broadcast %cst_28 : f32 to vector<2x128xf32>
    %122 = arith.addf %121, %120 : vector<2x128xf32>
    %123 = arith.divf %121, %122 : vector<2x128xf32>
    %124 = vector.extract_strided_slice %107 {offsets = [0, 256], sizes = [2, 128], strides = [1, 1]} : vector<2x384xf32> to vector<2x128xf32>
    %125 = vector.extract_strided_slice %106 {offsets = [0, 256], sizes = [2, 128], strides = [1, 1]} : vector<2x384xf32> to vector<2x128xf32>
    %126 = arith.addf %125, %10 : vector<2x128xf32>
    %127 = arith.mulf %115, %126 : vector<2x128xf32>
    %128 = arith.addf %124, %127 : vector<2x128xf32>
    %129 = math.tanh %128 : vector<2x128xf32>
    %cst_29 = arith.constant 1.000000e+00 : f32
    %130 = vector.broadcast %cst_29 : f32 to vector<2x128xf32>
    %131 = arith.subf %130, %123 : vector<2x128xf32>
    %132 = arith.mulf %131, %129 : vector<2x128xf32>
    %133 = arith.mulf %123, %103 : vector<2x128xf32>
    %134 = arith.addf %132, %133 : vector<2x128xf32>
    %c6 = arith.constant 6 : index
    %c0_30 = arith.constant 0 : index
    %135 = vector.load %arg14[%c6, %c0_30] : memref<16x128xf32, #tpu.memory_space<vmem>>, vector<2x128xf32>
    tpu.vector_store %arg14[%c6, %c0_30], %134 {strides = array<i32>} : memref<16x128xf32, #tpu.memory_space<vmem>>, vector<2x128xf32>,
    %136 = arith.truncf %134 : vector<2x128xf32> to vector<2x128xbf16>
    %cst_31 = arith.constant dense<0.000000e+00> : vector<2x384xf32>
    %137 = tpu.matmul %136, %7, %cst_31 {dimension_numbers = #tpu.dot_dimension_numbers<[1], [0], [0], [1], [0, 0, 1, 1], [], []>} : vector<2x128xbf16>, vector<128x384xbf16>, vector<2x384xf32> -> vector<2x384xf32>
    %138 = vector.extract_strided_slice %6 {offsets = [8, 0], sizes = [2, 384], strides = [1, 1]} : vector<16x384xf32> to vector<2x384xf32>
    %139 = vector.extract_strided_slice %138 {offsets = [0, 0], sizes = [2, 128], strides = [1, 1]} : vector<2x384xf32> to vector<2x128xf32>
    %140 = vector.extract_strided_slice %137 {offsets = [0, 0], sizes = [2, 128], strides = [1, 1]} : vector<2x384xf32> to vector<2x128xf32>
    %141 = arith.addf %139, %140 : vector<2x128xf32>
    %142 = arith.negf %141 : vector<2x128xf32>
    %143 = math.exp %142 : vector<2x128xf32>
    %cst_32 = arith.constant 1.000000e+00 : f32
    %144 = vector.broadcast %cst_32 : f32 to vector<2x128xf32>
    %145 = arith.addf %144, %143 : vector<2x128xf32>
    %146 = arith.divf %144, %145 : vector<2x128xf32>
    %147 = vector.extract_strided_slice %138 {offsets = [0, 128], sizes = [2, 128], strides = [1, 1]} : vector<2x384xf32> to vector<2x128xf32>
    %148 = vector.extract_strided_slice %137 {offsets = [0, 128], sizes = [2, 128], strides = [1, 1]} : vector<2x384xf32> to vector<2x128xf32>
    %149 = arith.addf %147, %148 : vector<2x128xf32>
    %150 = arith.negf %149 : vector<2x128xf32>
    %151 = math.exp %150 : vector<2x128xf32>
    %cst_33 = arith.constant 1.000000e+00 : f32
    %152 = vector.broadcast %cst_33 : f32 to vector<2x128xf32>
    %153 = arith.addf %152, %151 : vector<2x128xf32>
    %154 = arith.divf %152, %153 : vector<2x128xf32>
    %155 = vector.extract_strided_slice %138 {offsets = [0, 256], sizes = [2, 128], strides = [1, 1]} : vector<2x384xf32> to vector<2x128xf32>
    %156 = vector.extract_strided_slice %137 {offsets = [0, 256], sizes = [2, 128], strides = [1, 1]} : vector<2x384xf32> to vector<2x128xf32>
    %157 = arith.addf %156, %10 : vector<2x128xf32>
    %158 = arith.mulf %146, %157 : vector<2x128xf32>
    %159 = arith.addf %155, %158 : vector<2x128xf32>
    %160 = math.tanh %159 : vector<2x128xf32>
    %cst_34 = arith.constant 1.000000e+00 : f32
    %161 = vector.broadcast %cst_34 : f32 to vector<2x128xf32>
    %162 = arith.subf %161, %154 : vector<2x128xf32>
    %163 = arith.mulf %162, %160 : vector<2x128xf32>
    %164 = arith.mulf %154, %134 : vector<2x128xf32>
    %165 = arith.addf %163, %164 : vector<2x128xf32>
    %c8 = arith.constant 8 : index
    %c0_35 = arith.constant 0 : index
    %166 = vector.load %arg14[%c8, %c0_35] : memref<16x128xf32, #tpu.memory_space<vmem>>, vector<2x128xf32>
    tpu.vector_store %arg14[%c8, %c0_35], %165 {strides = array<i32>} : memref<16x128xf32, #tpu.memory_space<vmem>>, vector<2x128xf32>,
    %167 = arith.truncf %165 : vector<2x128xf32> to vector<2x128xbf16>
    %cst_36 = arith.constant dense<0.000000e+00> : vector<2x384xf32>
    %168 = tpu.matmul %167, %7, %cst_36 {dimension_numbers = #tpu.dot_dimension_numbers<[1], [0], [0], [1], [0, 0, 1, 1], [], []>} : vector<2x128xbf16>, vector<128x384xbf16>, vector<2x384xf32> -> vector<2x384xf32>
    %169 = vector.extract_strided_slice %6 {offsets = [10, 0], sizes = [2, 384], strides = [1, 1]} : vector<16x384xf32> to vector<2x384xf32>
    %170 = vector.extract_strided_slice %169 {offsets = [0, 0], sizes = [2, 128], strides = [1, 1]} : vector<2x384xf32> to vector<2x128xf32>
    %171 = vector.extract_strided_slice %168 {offsets = [0, 0], sizes = [2, 128], strides = [1, 1]} : vector<2x384xf32> to vector<2x128xf32>
    %172 = arith.addf %170, %171 : vector<2x128xf32>
    %173 = arith.negf %172 : vector<2x128xf32>
    %174 = math.exp %173 : vector<2x128xf32>
    %cst_37 = arith.constant 1.000000e+00 : f32
    %175 = vector.broadcast %cst_37 : f32 to vector<2x128xf32>
    %176 = arith.addf %175, %174 : vector<2x128xf32>
    %177 = arith.divf %175, %176 : vector<2x128xf32>
    %178 = vector.extract_strided_slice %169 {offsets = [0, 128], sizes = [2, 128], strides = [1, 1]} : vector<2x384xf32> to vector<2x128xf32>
    %179 = vector.extract_strided_slice %168 {offsets = [0, 128], sizes = [2, 128], strides = [1, 1]} : vector<2x384xf32> to vector<2x128xf32>
    %180 = arith.addf %178, %179 : vector<2x128xf32>
    %181 = arith.negf %180 : vector<2x128xf32>
    %182 = math.exp %181 : vector<2x128xf32>
    %cst_38 = arith.constant 1.000000e+00 : f32
    %183 = vector.broadcast %cst_38 : f32 to vector<2x128xf32>
    %184 = arith.addf %183, %182 : vector<2x128xf32>
    %185 = arith.divf %183, %184 : vector<2x128xf32>
    %186 = vector.extract_strided_slice %169 {offsets = [0, 256], sizes = [2, 128], strides = [1, 1]} : vector<2x384xf32> to vector<2x128xf32>
    %187 = vector.extract_strided_slice %168 {offsets = [0, 256], sizes = [2, 128], strides = [1, 1]} : vector<2x384xf32> to vector<2x128xf32>
    %188 = arith.addf %187, %10 : vector<2x128xf32>
    %189 = arith.mulf %177, %188 : vector<2x128xf32>
    %190 = arith.addf %186, %189 : vector<2x128xf32>
    %191 = math.tanh %190 : vector<2x128xf32>
    %cst_39 = arith.constant 1.000000e+00 : f32
    %192 = vector.broadcast %cst_39 : f32 to vector<2x128xf32>
    %193 = arith.subf %192, %185 : vector<2x128xf32>
    %194 = arith.mulf %193, %191 : vector<2x128xf32>
    %195 = arith.mulf %185, %165 : vector<2x128xf32>
    %196 = arith.addf %194, %195 : vector<2x128xf32>
    %c10 = arith.constant 10 : index
    %c0_40 = arith.constant 0 : index
    %197 = vector.load %arg14[%c10, %c0_40] : memref<16x128xf32, #tpu.memory_space<vmem>>, vector<2x128xf32>
    tpu.vector_store %arg14[%c10, %c0_40], %196 {strides = array<i32>} : memref<16x128xf32, #tpu.memory_space<vmem>>, vector<2x128xf32>,
    %198 = arith.truncf %196 : vector<2x128xf32> to vector<2x128xbf16>
    %cst_41 = arith.constant dense<0.000000e+00> : vector<2x384xf32>
    %199 = tpu.matmul %198, %7, %cst_41 {dimension_numbers = #tpu.dot_dimension_numbers<[1], [0], [0], [1], [0, 0, 1, 1], [], []>} : vector<2x128xbf16>, vector<128x384xbf16>, vector<2x384xf32> -> vector<2x384xf32>
    %200 = vector.extract_strided_slice %6 {offsets = [12, 0], sizes = [2, 384], strides = [1, 1]} : vector<16x384xf32> to vector<2x384xf32>
    %201 = vector.extract_strided_slice %200 {offsets = [0, 0], sizes = [2, 128], strides = [1, 1]} : vector<2x384xf32> to vector<2x128xf32>
    %202 = vector.extract_strided_slice %199 {offsets = [0, 0], sizes = [2, 128], strides = [1, 1]} : vector<2x384xf32> to vector<2x128xf32>
    %203 = arith.addf %201, %202 : vector<2x128xf32>
    %204 = arith.negf %203 : vector<2x128xf32>
    %205 = math.exp %204 : vector<2x128xf32>
    %cst_42 = arith.constant 1.000000e+00 : f32
    %206 = vector.broadcast %cst_42 : f32 to vector<2x128xf32>
    %207 = arith.addf %206, %205 : vector<2x128xf32>
    %208 = arith.divf %206, %207 : vector<2x128xf32>
    %209 = vector.extract_strided_slice %200 {offsets = [0, 128], sizes = [2, 128], strides = [1, 1]} : vector<2x384xf32> to vector<2x128xf32>
    %210 = vector.extract_strided_slice %199 {offsets = [0, 128], sizes = [2, 128], strides = [1, 1]} : vector<2x384xf32> to vector<2x128xf32>
    %211 = arith.addf %209, %210 : vector<2x128xf32>
    %212 = arith.negf %211 : vector<2x128xf32>
    %213 = math.exp %212 : vector<2x128xf32>
    %cst_43 = arith.constant 1.000000e+00 : f32
    %214 = vector.broadcast %cst_43 : f32 to vector<2x128xf32>
    %215 = arith.addf %214, %213 : vector<2x128xf32>
    %216 = arith.divf %214, %215 : vector<2x128xf32>
    %217 = vector.extract_strided_slice %200 {offsets = [0, 256], sizes = [2, 128], strides = [1, 1]} : vector<2x384xf32> to vector<2x128xf32>
    %218 = vector.extract_strided_slice %199 {offsets = [0, 256], sizes = [2, 128], strides = [1, 1]} : vector<2x384xf32> to vector<2x128xf32>
    %219 = arith.addf %218, %10 : vector<2x128xf32>
    %220 = arith.mulf %208, %219 : vector<2x128xf32>
    %221 = arith.addf %217, %220 : vector<2x128xf32>
    %222 = math.tanh %221 : vector<2x128xf32>
    %cst_44 = arith.constant 1.000000e+00 : f32
    %223 = vector.broadcast %cst_44 : f32 to vector<2x128xf32>
    %224 = arith.subf %223, %216 : vector<2x128xf32>
    %225 = arith.mulf %224, %222 : vector<2x128xf32>
    %226 = arith.mulf %216, %196 : vector<2x128xf32>
    %227 = arith.addf %225, %226 : vector<2x128xf32>
    %c12 = arith.constant 12 : index
    %c0_45 = arith.constant 0 : index
    %228 = vector.load %arg14[%c12, %c0_45] : memref<16x128xf32, #tpu.memory_space<vmem>>, vector<2x128xf32>
    tpu.vector_store %arg14[%c12, %c0_45], %227 {strides = array<i32>} : memref<16x128xf32, #tpu.memory_space<vmem>>, vector<2x128xf32>,
    %229 = arith.truncf %227 : vector<2x128xf32> to vector<2x128xbf16>
    %cst_46 = arith.constant dense<0.000000e+00> : vector<2x384xf32>
    %230 = tpu.matmul %229, %7, %cst_46 {dimension_numbers = #tpu.dot_dimension_numbers<[1], [0], [0], [1], [0, 0, 1, 1], [], []>} : vector<2x128xbf16>, vector<128x384xbf16>, vector<2x384xf32> -> vector<2x384xf32>
    %231 = vector.extract_strided_slice %6 {offsets = [14, 0], sizes = [2, 384], strides = [1, 1]} : vector<16x384xf32> to vector<2x384xf32>
    %232 = vector.extract_strided_slice %231 {offsets = [0, 0], sizes = [2, 128], strides = [1, 1]} : vector<2x384xf32> to vector<2x128xf32>
    %233 = vector.extract_strided_slice %230 {offsets = [0, 0], sizes = [2, 128], strides = [1, 1]} : vector<2x384xf32> to vector<2x128xf32>
    %234 = arith.addf %232, %233 : vector<2x128xf32>
    %235 = arith.negf %234 : vector<2x128xf32>
    %236 = math.exp %235 : vector<2x128xf32>
    %cst_47 = arith.constant 1.000000e+00 : f32
    %237 = vector.broadcast %cst_47 : f32 to vector<2x128xf32>
    %238 = arith.addf %237, %236 : vector<2x128xf32>
    %239 = arith.divf %237, %238 : vector<2x128xf32>
    %240 = vector.extract_strided_slice %231 {offsets = [0, 128], sizes = [2, 128], strides = [1, 1]} : vector<2x384xf32> to vector<2x128xf32>
    %241 = vector.extract_strided_slice %230 {offsets = [0, 128], sizes = [2, 128], strides = [1, 1]} : vector<2x384xf32> to vector<2x128xf32>
    %242 = arith.addf %240, %241 : vector<2x128xf32>
    %243 = arith.negf %242 : vector<2x128xf32>
    %244 = math.exp %243 : vector<2x128xf32>
    %cst_48 = arith.constant 1.000000e+00 : f32
    %245 = vector.broadcast %cst_48 : f32 to vector<2x128xf32>
    %246 = arith.addf %245, %244 : vector<2x128xf32>
    %247 = arith.divf %245, %246 : vector<2x128xf32>
    %248 = vector.extract_strided_slice %231 {offsets = [0, 256], sizes = [2, 128], strides = [1, 1]} : vector<2x384xf32> to vector<2x128xf32>
    %249 = vector.extract_strided_slice %230 {offsets = [0, 256], sizes = [2, 128], strides = [1, 1]} : vector<2x384xf32> to vector<2x128xf32>
    %250 = arith.addf %249, %10 : vector<2x128xf32>
    %251 = arith.mulf %239, %250 : vector<2x128xf32>
    %252 = arith.addf %248, %251 : vector<2x128xf32>
    %253 = math.tanh %252 : vector<2x128xf32>
    %cst_49 = arith.constant 1.000000e+00 : f32
    %254 = vector.broadcast %cst_49 : f32 to vector<2x128xf32>
    %255 = arith.subf %254, %247 : vector<2x128xf32>
    %256 = arith.mulf %255, %253 : vector<2x128xf32>
    %257 = arith.mulf %247, %227 : vector<2x128xf32>
    %258 = arith.addf %256, %257 : vector<2x128xf32>
    %c14 = arith.constant 14 : index
    %c0_50 = arith.constant 0 : index
    %259 = vector.load %arg14[%c14, %c0_50] : memref<16x128xf32, #tpu.memory_space<vmem>>, vector<2x128xf32>
    tpu.vector_store %arg14[%c14, %c0_50], %258 {strides = array<i32>} : memref<16x128xf32, #tpu.memory_space<vmem>>, vector<2x128xf32>,
    %c0_51 = arith.constant 0 : index
    %c0_52 = arith.constant 0 : index
    %260 = vector.load %arg14[%c0_51, %c0_52] : memref<16x128xf32, #tpu.memory_space<vmem>>, vector<16x128xf32>
    %c0_53 = arith.constant 0 : index
    %c0_54 = arith.constant 0 : index
    %261 = vector.load %arg5[%c0_53, %c0_54] : memref<1x128xf32, #tpu.memory_space<vmem>>, vector<1x128xf32>
    %c0_55 = arith.constant 0 : index
    %c0_56 = arith.constant 0 : index
    %262 = vector.load %arg6[%c0_55, %c0_56] : memref<1x128xf32, #tpu.memory_space<vmem>>, vector<1x128xf32>
    %cst_57 = arith.constant dense<0.000000e+00> : vector<16xf32>
    %263 = vector.multi_reduction <add>, %260, %cst_57 [1] : vector<16x128xf32> to vector<16xf32>
    %264 = vector.shape_cast %263 : vector<16xf32> to vector<16x1xf32>
    %cst_58 = arith.constant 1.280000e+02 : f32
    %265 = vector.broadcast %cst_58 : f32 to vector<16x1xf32>
    %266 = arith.divf %264, %265 : vector<16x1xf32>
    %267 = vector.broadcast %266 : vector<16x1xf32> to vector<16x128xf32>
    %268 = arith.subf %260, %267 : vector<16x128xf32>
    %269 = arith.mulf %268, %268 : vector<16x128xf32>
    %cst_59 = arith.constant dense<0.000000e+00> : vector<16xf32>
    %270 = vector.multi_reduction <add>, %269, %cst_59 [1] : vector<16x128xf32> to vector<16xf32>
    %271 = vector.shape_cast %270 : vector<16xf32> to vector<16x1xf32>
    %cst_60 = arith.constant 1.280000e+02 : f32
    %272 = vector.broadcast %cst_60 : f32 to vector<16x1xf32>
    %273 = arith.divf %271, %272 : vector<16x1xf32>
    %274 = vector.broadcast %266 : vector<16x1xf32> to vector<16x128xf32>
    %275 = arith.subf %260, %274 : vector<16x128xf32>
    %cst_61 = arith.constant 9.99999974E-6 : f32
    %276 = vector.broadcast %cst_61 : f32 to vector<16x1xf32>
    %277 = arith.addf %273, %276 : vector<16x1xf32>
    %278 = math.rsqrt %277 : vector<16x1xf32>
    %279 = vector.broadcast %278 : vector<16x1xf32> to vector<16x128xf32>
    %280 = arith.mulf %275, %279 : vector<16x128xf32>
    %281 = vector.broadcast %261 : vector<1x128xf32> to vector<16x128xf32>
    %282 = arith.mulf %280, %281 : vector<16x128xf32>
    %283 = vector.broadcast %262 : vector<1x128xf32> to vector<16x128xf32>
    %284 = arith.addf %282, %283 : vector<16x128xf32>
    %285 = arith.truncf %284 : vector<16x128xf32> to vector<16x128xbf16>
    %c0_62 = arith.constant 0 : index
    %c0_63 = arith.constant 0 : index
    %286 = vector.load %arg7[%c0_62, %c0_63] : memref<128x96xbf16, #tpu.memory_space<vmem>>, vector<128x96xbf16>
    %cst_64 = arith.constant dense<0.000000e+00> : vector<16x96xf32>
    %287 = tpu.matmul %285, %286, %cst_64 {dimension_numbers = #tpu.dot_dimension_numbers<[1], [0], [0], [1], [0, 0, 1, 1], [], []>} : vector<16x128xbf16>, vector<128x96xbf16>, vector<16x96xf32> -> vector<16x96xf32>
    %c0_65 = arith.constant 0 : index
    %c0_66 = arith.constant 0 : index
    %288 = vector.load %arg9[%c0_65, %c0_66] : memref<1x96xf32, #tpu.memory_space<vmem>>, vector<1x96xf32>
    %289 = vector.broadcast %288 : vector<1x96xf32> to vector<16x96xf32>
    %290 = arith.addf %287, %289 : vector<16x96xf32>
    %c0_67 = arith.constant 0 : index
    %c0_68 = arith.constant 0 : index
    %291 = vector.load %arg8[%c0_67, %c0_68] : memref<32x96xbf16, #tpu.memory_space<vmem>>, vector<32x96xbf16>
    %c0_69 = arith.constant 0 : index
    %c0_70 = arith.constant 0 : index
    %292 = vector.load %arg10[%c0_69, %c0_70] : memref<1x32xf32, #tpu.memory_space<vmem>>, vector<1x32xf32>
    %293 = vector.shape_cast %292 : vector<1x32xf32> to vector<1x32xf32>
    %294 = vector.broadcast %293 : vector<1x32xf32> to vector<2x32xf32>
    %cst_71 = arith.constant 0.000000e+00 : f32
    %295 = vector.broadcast %cst_71 : f32 to vector<2x32xf32>
    %296 = arith.truncf %295 : vector<2x32xf32> to vector<2x32xbf16>
    %cst_72 = arith.constant dense<0.000000e+00> : vector<2x96xf32>
    %297 = tpu.matmul %296, %291, %cst_72 {dimension_numbers = #tpu.dot_dimension_numbers<[1], [0], [0], [1], [0, 0, 1, 1], [], []>} : vector<2x32xbf16>, vector<32x96xbf16>, vector<2x96xf32> -> vector<2x96xf32>
    %298 = vector.extract_strided_slice %290 {offsets = [0, 0], sizes = [2, 96], strides = [1, 1]} : vector<16x96xf32> to vector<2x96xf32>
    %299 = vector.extract_strided_slice %298 {offsets = [0, 0], sizes = [2, 32], strides = [1, 1]} : vector<2x96xf32> to vector<2x32xf32>
    %300 = vector.extract_strided_slice %297 {offsets = [0, 0], sizes = [2, 32], strides = [1, 1]} : vector<2x96xf32> to vector<2x32xf32>
    %301 = arith.addf %299, %300 : vector<2x32xf32>
    %302 = arith.negf %301 : vector<2x32xf32>
    %303 = math.exp %302 : vector<2x32xf32>
    %cst_73 = arith.constant 1.000000e+00 : f32
    %304 = vector.broadcast %cst_73 : f32 to vector<2x32xf32>
    %305 = arith.addf %304, %303 : vector<2x32xf32>
    %306 = arith.divf %304, %305 : vector<2x32xf32>
    %307 = vector.extract_strided_slice %298 {offsets = [0, 32], sizes = [2, 32], strides = [1, 1]} : vector<2x96xf32> to vector<2x32xf32>
    %308 = vector.extract_strided_slice %297 {offsets = [0, 32], sizes = [2, 32], strides = [1, 1]} : vector<2x96xf32> to vector<2x32xf32>
    %309 = arith.addf %307, %308 : vector<2x32xf32>
    %310 = arith.negf %309 : vector<2x32xf32>
    %311 = math.exp %310 : vector<2x32xf32>
    %cst_74 = arith.constant 1.000000e+00 : f32
    %312 = vector.broadcast %cst_74 : f32 to vector<2x32xf32>
    %313 = arith.addf %312, %311 : vector<2x32xf32>
    %314 = arith.divf %312, %313 : vector<2x32xf32>
    %315 = vector.extract_strided_slice %298 {offsets = [0, 64], sizes = [2, 32], strides = [1, 1]} : vector<2x96xf32> to vector<2x32xf32>
    %316 = vector.extract_strided_slice %297 {offsets = [0, 64], sizes = [2, 32], strides = [1, 1]} : vector<2x96xf32> to vector<2x32xf32>
    %317 = arith.addf %316, %294 : vector<2x32xf32>
    %318 = arith.mulf %306, %317 : vector<2x32xf32>
    %319 = arith.addf %315, %318 : vector<2x32xf32>
    %320 = math.tanh %319 : vector<2x32xf32>
    %cst_75 = arith.constant 1.000000e+00 : f32
    %321 = vector.broadcast %cst_75 : f32 to vector<2x32xf32>
    %322 = arith.subf %321, %314 : vector<2x32xf32>
    %323 = arith.mulf %322, %320 : vector<2x32xf32>
    %324 = arith.mulf %314, %295 : vector<2x32xf32>
    %325 = arith.addf %323, %324 : vector<2x32xf32>
    %326 = arith.truncf %325 : vector<2x32xf32> to vector<2x32xbf16>
    %cst_76 = arith.constant dense<0.000000e+00> : vector<2x96xf32>
    %327 = tpu.matmul %326, %291, %cst_76 {dimension_numbers = #tpu.dot_dimension_numbers<[1], [0], [0], [1], [0, 0, 1, 1], [], []>} : vector<2x32xbf16>, vector<32x96xbf16>, vector<2x96xf32> -> vector<2x96xf32>
    %328 = vector.extract_strided_slice %290 {offsets = [2, 0], sizes = [2, 96], strides = [1, 1]} : vector<16x96xf32> to vector<2x96xf32>
    %329 = vector.extract_strided_slice %328 {offsets = [0, 0], sizes = [2, 32], strides = [1, 1]} : vector<2x96xf32> to vector<2x32xf32>
    %330 = vector.extract_strided_slice %327 {offsets = [0, 0], sizes = [2, 32], strides = [1, 1]} : vector<2x96xf32> to vector<2x32xf32>
    %331 = arith.addf %329, %330 : vector<2x32xf32>
    %332 = arith.negf %331 : vector<2x32xf32>
    %333 = math.exp %332 : vector<2x32xf32>
    %cst_77 = arith.constant 1.000000e+00 : f32
    %334 = vector.broadcast %cst_77 : f32 to vector<2x32xf32>
    %335 = arith.addf %334, %333 : vector<2x32xf32>
    %336 = arith.divf %334, %335 : vector<2x32xf32>
    %337 = vector.extract_strided_slice %328 {offsets = [0, 32], sizes = [2, 32], strides = [1, 1]} : vector<2x96xf32> to vector<2x32xf32>
    %338 = vector.extract_strided_slice %327 {offsets = [0, 32], sizes = [2, 32], strides = [1, 1]} : vector<2x96xf32> to vector<2x32xf32>
    %339 = arith.addf %337, %338 : vector<2x32xf32>
    %340 = arith.negf %339 : vector<2x32xf32>
    %341 = math.exp %340 : vector<2x32xf32>
    %cst_78 = arith.constant 1.000000e+00 : f32
    %342 = vector.broadcast %cst_78 : f32 to vector<2x32xf32>
    %343 = arith.addf %342, %341 : vector<2x32xf32>
    %344 = arith.divf %342, %343 : vector<2x32xf32>
    %345 = vector.extract_strided_slice %328 {offsets = [0, 64], sizes = [2, 32], strides = [1, 1]} : vector<2x96xf32> to vector<2x32xf32>
    %346 = vector.extract_strided_slice %327 {offsets = [0, 64], sizes = [2, 32], strides = [1, 1]} : vector<2x96xf32> to vector<2x32xf32>
    %347 = arith.addf %346, %294 : vector<2x32xf32>
    %348 = arith.mulf %336, %347 : vector<2x32xf32>
    %349 = arith.addf %345, %348 : vector<2x32xf32>
    %350 = math.tanh %349 : vector<2x32xf32>
    %cst_79 = arith.constant 1.000000e+00 : f32
    %351 = vector.broadcast %cst_79 : f32 to vector<2x32xf32>
    %352 = arith.subf %351, %344 : vector<2x32xf32>
    %353 = arith.mulf %352, %350 : vector<2x32xf32>
    %354 = arith.mulf %344, %325 : vector<2x32xf32>
    %355 = arith.addf %353, %354 : vector<2x32xf32>
    %356 = arith.truncf %355 : vector<2x32xf32> to vector<2x32xbf16>
    %cst_80 = arith.constant dense<0.000000e+00> : vector<2x96xf32>
    %357 = tpu.matmul %356, %291, %cst_80 {dimension_numbers = #tpu.dot_dimension_numbers<[1], [0], [0], [1], [0, 0, 1, 1], [], []>} : vector<2x32xbf16>, vector<32x96xbf16>, vector<2x96xf32> -> vector<2x96xf32>
    %358 = vector.extract_strided_slice %290 {offsets = [4, 0], sizes = [2, 96], strides = [1, 1]} : vector<16x96xf32> to vector<2x96xf32>
    %359 = vector.extract_strided_slice %358 {offsets = [0, 0], sizes = [2, 32], strides = [1, 1]} : vector<2x96xf32> to vector<2x32xf32>
    %360 = vector.extract_strided_slice %357 {offsets = [0, 0], sizes = [2, 32], strides = [1, 1]} : vector<2x96xf32> to vector<2x32xf32>
    %361 = arith.addf %359, %360 : vector<2x32xf32>
    %362 = arith.negf %361 : vector<2x32xf32>
    %363 = math.exp %362 : vector<2x32xf32>
    %cst_81 = arith.constant 1.000000e+00 : f32
    %364 = vector.broadcast %cst_81 : f32 to vector<2x32xf32>
    %365 = arith.addf %364, %363 : vector<2x32xf32>
    %366 = arith.divf %364, %365 : vector<2x32xf32>
    %367 = vector.extract_strided_slice %358 {offsets = [0, 32], sizes = [2, 32], strides = [1, 1]} : vector<2x96xf32> to vector<2x32xf32>
    %368 = vector.extract_strided_slice %357 {offsets = [0, 32], sizes = [2, 32], strides = [1, 1]} : vector<2x96xf32> to vector<2x32xf32>
    %369 = arith.addf %367, %368 : vector<2x32xf32>
    %370 = arith.negf %369 : vector<2x32xf32>
    %371 = math.exp %370 : vector<2x32xf32>
    %cst_82 = arith.constant 1.000000e+00 : f32
    %372 = vector.broadcast %cst_82 : f32 to vector<2x32xf32>
    %373 = arith.addf %372, %371 : vector<2x32xf32>
    %374 = arith.divf %372, %373 : vector<2x32xf32>
    %375 = vector.extract_strided_slice %358 {offsets = [0, 64], sizes = [2, 32], strides = [1, 1]} : vector<2x96xf32> to vector<2x32xf32>
    %376 = vector.extract_strided_slice %357 {offsets = [0, 64], sizes = [2, 32], strides = [1, 1]} : vector<2x96xf32> to vector<2x32xf32>
    %377 = arith.addf %376, %294 : vector<2x32xf32>
    %378 = arith.mulf %366, %377 : vector<2x32xf32>
    %379 = arith.addf %375, %378 : vector<2x32xf32>
    %380 = math.tanh %379 : vector<2x32xf32>
    %cst_83 = arith.constant 1.000000e+00 : f32
    %381 = vector.broadcast %cst_83 : f32 to vector<2x32xf32>
    %382 = arith.subf %381, %374 : vector<2x32xf32>
    %383 = arith.mulf %382, %380 : vector<2x32xf32>
    %384 = arith.mulf %374, %355 : vector<2x32xf32>
    %385 = arith.addf %383, %384 : vector<2x32xf32>
    %386 = arith.truncf %385 : vector<2x32xf32> to vector<2x32xbf16>
    %cst_84 = arith.constant dense<0.000000e+00> : vector<2x96xf32>
    %387 = tpu.matmul %386, %291, %cst_84 {dimension_numbers = #tpu.dot_dimension_numbers<[1], [0], [0], [1], [0, 0, 1, 1], [], []>} : vector<2x32xbf16>, vector<32x96xbf16>, vector<2x96xf32> -> vector<2x96xf32>
    %388 = vector.extract_strided_slice %290 {offsets = [6, 0], sizes = [2, 96], strides = [1, 1]} : vector<16x96xf32> to vector<2x96xf32>
    %389 = vector.extract_strided_slice %388 {offsets = [0, 0], sizes = [2, 32], strides = [1, 1]} : vector<2x96xf32> to vector<2x32xf32>
    %390 = vector.extract_strided_slice %387 {offsets = [0, 0], sizes = [2, 32], strides = [1, 1]} : vector<2x96xf32> to vector<2x32xf32>
    %391 = arith.addf %389, %390 : vector<2x32xf32>
    %392 = arith.negf %391 : vector<2x32xf32>
    %393 = math.exp %392 : vector<2x32xf32>
    %cst_85 = arith.constant 1.000000e+00 : f32
    %394 = vector.broadcast %cst_85 : f32 to vector<2x32xf32>
    %395 = arith.addf %394, %393 : vector<2x32xf32>
    %396 = arith.divf %394, %395 : vector<2x32xf32>
    %397 = vector.extract_strided_slice %388 {offsets = [0, 32], sizes = [2, 32], strides = [1, 1]} : vector<2x96xf32> to vector<2x32xf32>
    %398 = vector.extract_strided_slice %387 {offsets = [0, 32], sizes = [2, 32], strides = [1, 1]} : vector<2x96xf32> to vector<2x32xf32>
    %399 = arith.addf %397, %398 : vector<2x32xf32>
    %400 = arith.negf %399 : vector<2x32xf32>
    %401 = math.exp %400 : vector<2x32xf32>
    %cst_86 = arith.constant 1.000000e+00 : f32
    %402 = vector.broadcast %cst_86 : f32 to vector<2x32xf32>
    %403 = arith.addf %402, %401 : vector<2x32xf32>
    %404 = arith.divf %402, %403 : vector<2x32xf32>
    %405 = vector.extract_strided_slice %388 {offsets = [0, 64], sizes = [2, 32], strides = [1, 1]} : vector<2x96xf32> to vector<2x32xf32>
    %406 = vector.extract_strided_slice %387 {offsets = [0, 64], sizes = [2, 32], strides = [1, 1]} : vector<2x96xf32> to vector<2x32xf32>
    %407 = arith.addf %406, %294 : vector<2x32xf32>
    %408 = arith.mulf %396, %407 : vector<2x32xf32>
    %409 = arith.addf %405, %408 : vector<2x32xf32>
    %410 = math.tanh %409 : vector<2x32xf32>
    %cst_87 = arith.constant 1.000000e+00 : f32
    %411 = vector.broadcast %cst_87 : f32 to vector<2x32xf32>
    %412 = arith.subf %411, %404 : vector<2x32xf32>
    %413 = arith.mulf %412, %410 : vector<2x32xf32>
    %414 = arith.mulf %404, %385 : vector<2x32xf32>
    %415 = arith.addf %413, %414 : vector<2x32xf32>
    %416 = arith.truncf %415 : vector<2x32xf32> to vector<2x32xbf16>
    %cst_88 = arith.constant dense<0.000000e+00> : vector<2x96xf32>
    %417 = tpu.matmul %416, %291, %cst_88 {dimension_numbers = #tpu.dot_dimension_numbers<[1], [0], [0], [1], [0, 0, 1, 1], [], []>} : vector<2x32xbf16>, vector<32x96xbf16>, vector<2x96xf32> -> vector<2x96xf32>
    %418 = vector.extract_strided_slice %290 {offsets = [8, 0], sizes = [2, 96], strides = [1, 1]} : vector<16x96xf32> to vector<2x96xf32>
    %419 = vector.extract_strided_slice %418 {offsets = [0, 0], sizes = [2, 32], strides = [1, 1]} : vector<2x96xf32> to vector<2x32xf32>
    %420 = vector.extract_strided_slice %417 {offsets = [0, 0], sizes = [2, 32], strides = [1, 1]} : vector<2x96xf32> to vector<2x32xf32>
    %421 = arith.addf %419, %420 : vector<2x32xf32>
    %422 = arith.negf %421 : vector<2x32xf32>
    %423 = math.exp %422 : vector<2x32xf32>
    %cst_89 = arith.constant 1.000000e+00 : f32
    %424 = vector.broadcast %cst_89 : f32 to vector<2x32xf32>
    %425 = arith.addf %424, %423 : vector<2x32xf32>
    %426 = arith.divf %424, %425 : vector<2x32xf32>
    %427 = vector.extract_strided_slice %418 {offsets = [0, 32], sizes = [2, 32], strides = [1, 1]} : vector<2x96xf32> to vector<2x32xf32>
    %428 = vector.extract_strided_slice %417 {offsets = [0, 32], sizes = [2, 32], strides = [1, 1]} : vector<2x96xf32> to vector<2x32xf32>
    %429 = arith.addf %427, %428 : vector<2x32xf32>
    %430 = arith.negf %429 : vector<2x32xf32>
    %431 = math.exp %430 : vector<2x32xf32>
    %cst_90 = arith.constant 1.000000e+00 : f32
    %432 = vector.broadcast %cst_90 : f32 to vector<2x32xf32>
    %433 = arith.addf %432, %431 : vector<2x32xf32>
    %434 = arith.divf %432, %433 : vector<2x32xf32>
    %435 = vector.extract_strided_slice %418 {offsets = [0, 64], sizes = [2, 32], strides = [1, 1]} : vector<2x96xf32> to vector<2x32xf32>
    %436 = vector.extract_strided_slice %417 {offsets = [0, 64], sizes = [2, 32], strides = [1, 1]} : vector<2x96xf32> to vector<2x32xf32>
    %437 = arith.addf %436, %294 : vector<2x32xf32>
    %438 = arith.mulf %426, %437 : vector<2x32xf32>
    %439 = arith.addf %435, %438 : vector<2x32xf32>
    %440 = math.tanh %439 : vector<2x32xf32>
    %cst_91 = arith.constant 1.000000e+00 : f32
    %441 = vector.broadcast %cst_91 : f32 to vector<2x32xf32>
    %442 = arith.subf %441, %434 : vector<2x32xf32>
    %443 = arith.mulf %442, %440 : vector<2x32xf32>
    %444 = arith.mulf %434, %415 : vector<2x32xf32>
    %445 = arith.addf %443, %444 : vector<2x32xf32>
    %446 = arith.truncf %445 : vector<2x32xf32> to vector<2x32xbf16>
    %cst_92 = arith.constant dense<0.000000e+00> : vector<2x96xf32>
    %447 = tpu.matmul %446, %291, %cst_92 {dimension_numbers = #tpu.dot_dimension_numbers<[1], [0], [0], [1], [0, 0, 1, 1], [], []>} : vector<2x32xbf16>, vector<32x96xbf16>, vector<2x96xf32> -> vector<2x96xf32>
    %448 = vector.extract_strided_slice %290 {offsets = [10, 0], sizes = [2, 96], strides = [1, 1]} : vector<16x96xf32> to vector<2x96xf32>
    %449 = vector.extract_strided_slice %448 {offsets = [0, 0], sizes = [2, 32], strides = [1, 1]} : vector<2x96xf32> to vector<2x32xf32>
    %450 = vector.extract_strided_slice %447 {offsets = [0, 0], sizes = [2, 32], strides = [1, 1]} : vector<2x96xf32> to vector<2x32xf32>
    %451 = arith.addf %449, %450 : vector<2x32xf32>
    %452 = arith.negf %451 : vector<2x32xf32>
    %453 = math.exp %452 : vector<2x32xf32>
    %cst_93 = arith.constant 1.000000e+00 : f32
    %454 = vector.broadcast %cst_93 : f32 to vector<2x32xf32>
    %455 = arith.addf %454, %453 : vector<2x32xf32>
    %456 = arith.divf %454, %455 : vector<2x32xf32>
    %457 = vector.extract_strided_slice %448 {offsets = [0, 32], sizes = [2, 32], strides = [1, 1]} : vector<2x96xf32> to vector<2x32xf32>
    %458 = vector.extract_strided_slice %447 {offsets = [0, 32], sizes = [2, 32], strides = [1, 1]} : vector<2x96xf32> to vector<2x32xf32>
    %459 = arith.addf %457, %458 : vector<2x32xf32>
    %460 = arith.negf %459 : vector<2x32xf32>
    %461 = math.exp %460 : vector<2x32xf32>
    %cst_94 = arith.constant 1.000000e+00 : f32
    %462 = vector.broadcast %cst_94 : f32 to vector<2x32xf32>
    %463 = arith.addf %462, %461 : vector<2x32xf32>
    %464 = arith.divf %462, %463 : vector<2x32xf32>
    %465 = vector.extract_strided_slice %448 {offsets = [0, 64], sizes = [2, 32], strides = [1, 1]} : vector<2x96xf32> to vector<2x32xf32>
    %466 = vector.extract_strided_slice %447 {offsets = [0, 64], sizes = [2, 32], strides = [1, 1]} : vector<2x96xf32> to vector<2x32xf32>
    %467 = arith.addf %466, %294 : vector<2x32xf32>
    %468 = arith.mulf %456, %467 : vector<2x32xf32>
    %469 = arith.addf %465, %468 : vector<2x32xf32>
    %470 = math.tanh %469 : vector<2x32xf32>
    %cst_95 = arith.constant 1.000000e+00 : f32
    %471 = vector.broadcast %cst_95 : f32 to vector<2x32xf32>
    %472 = arith.subf %471, %464 : vector<2x32xf32>
    %473 = arith.mulf %472, %470 : vector<2x32xf32>
    %474 = arith.mulf %464, %445 : vector<2x32xf32>
    %475 = arith.addf %473, %474 : vector<2x32xf32>
    %476 = arith.truncf %475 : vector<2x32xf32> to vector<2x32xbf16>
    %cst_96 = arith.constant dense<0.000000e+00> : vector<2x96xf32>
    %477 = tpu.matmul %476, %291, %cst_96 {dimension_numbers = #tpu.dot_dimension_numbers<[1], [0], [0], [1], [0, 0, 1, 1], [], []>} : vector<2x32xbf16>, vector<32x96xbf16>, vector<2x96xf32> -> vector<2x96xf32>
    %478 = vector.extract_strided_slice %290 {offsets = [12, 0], sizes = [2, 96], strides = [1, 1]} : vector<16x96xf32> to vector<2x96xf32>
    %479 = vector.extract_strided_slice %478 {offsets = [0, 0], sizes = [2, 32], strides = [1, 1]} : vector<2x96xf32> to vector<2x32xf32>
    %480 = vector.extract_strided_slice %477 {offsets = [0, 0], sizes = [2, 32], strides = [1, 1]} : vector<2x96xf32> to vector<2x32xf32>
    %481 = arith.addf %479, %480 : vector<2x32xf32>
    %482 = arith.negf %481 : vector<2x32xf32>
    %483 = math.exp %482 : vector<2x32xf32>
    %cst_97 = arith.constant 1.000000e+00 : f32
    %484 = vector.broadcast %cst_97 : f32 to vector<2x32xf32>
    %485 = arith.addf %484, %483 : vector<2x32xf32>
    %486 = arith.divf %484, %485 : vector<2x32xf32>
    %487 = vector.extract_strided_slice %478 {offsets = [0, 32], sizes = [2, 32], strides = [1, 1]} : vector<2x96xf32> to vector<2x32xf32>
    %488 = vector.extract_strided_slice %477 {offsets = [0, 32], sizes = [2, 32], strides = [1, 1]} : vector<2x96xf32> to vector<2x32xf32>
    %489 = arith.addf %487, %488 : vector<2x32xf32>
    %490 = arith.negf %489 : vector<2x32xf32>
    %491 = math.exp %490 : vector<2x32xf32>
    %cst_98 = arith.constant 1.000000e+00 : f32
    %492 = vector.broadcast %cst_98 : f32 to vector<2x32xf32>
    %493 = arith.addf %492, %491 : vector<2x32xf32>
    %494 = arith.divf %492, %493 : vector<2x32xf32>
    %495 = vector.extract_strided_slice %478 {offsets = [0, 64], sizes = [2, 32], strides = [1, 1]} : vector<2x96xf32> to vector<2x32xf32>
    %496 = vector.extract_strided_slice %477 {offsets = [0, 64], sizes = [2, 32], strides = [1, 1]} : vector<2x96xf32> to vector<2x32xf32>
    %497 = arith.addf %496, %294 : vector<2x32xf32>
    %498 = arith.mulf %486, %497 : vector<2x32xf32>
    %499 = arith.addf %495, %498 : vector<2x32xf32>
    %500 = math.tanh %499 : vector<2x32xf32>
    %cst_99 = arith.constant 1.000000e+00 : f32
    %501 = vector.broadcast %cst_99 : f32 to vector<2x32xf32>
    %502 = arith.subf %501, %494 : vector<2x32xf32>
    %503 = arith.mulf %502, %500 : vector<2x32xf32>
    %504 = arith.mulf %494, %475 : vector<2x32xf32>
    %505 = arith.addf %503, %504 : vector<2x32xf32>
    %506 = arith.truncf %505 : vector<2x32xf32> to vector<2x32xbf16>
    %cst_100 = arith.constant dense<0.000000e+00> : vector<2x96xf32>
    %507 = tpu.matmul %506, %291, %cst_100 {dimension_numbers = #tpu.dot_dimension_numbers<[1], [0], [0], [1], [0, 0, 1, 1], [], []>} : vector<2x32xbf16>, vector<32x96xbf16>, vector<2x96xf32> -> vector<2x96xf32>
    %508 = vector.extract_strided_slice %290 {offsets = [14, 0], sizes = [2, 96], strides = [1, 1]} : vector<16x96xf32> to vector<2x96xf32>
    %509 = vector.extract_strided_slice %508 {offsets = [0, 0], sizes = [2, 32], strides = [1, 1]} : vector<2x96xf32> to vector<2x32xf32>
    %510 = vector.extract_strided_slice %507 {offsets = [0, 0], sizes = [2, 32], strides = [1, 1]} : vector<2x96xf32> to vector<2x32xf32>
    %511 = arith.addf %509, %510 : vector<2x32xf32>
    %512 = arith.negf %511 : vector<2x32xf32>
    %513 = math.exp %512 : vector<2x32xf32>
    %cst_101 = arith.constant 1.000000e+00 : f32
    %514 = vector.broadcast %cst_101 : f32 to vector<2x32xf32>
    %515 = arith.addf %514, %513 : vector<2x32xf32>
    %516 = arith.divf %514, %515 : vector<2x32xf32>
    %517 = vector.extract_strided_slice %508 {offsets = [0, 32], sizes = [2, 32], strides = [1, 1]} : vector<2x96xf32> to vector<2x32xf32>
    %518 = vector.extract_strided_slice %507 {offsets = [0, 32], sizes = [2, 32], strides = [1, 1]} : vector<2x96xf32> to vector<2x32xf32>
    %519 = arith.addf %517, %518 : vector<2x32xf32>
    %520 = arith.negf %519 : vector<2x32xf32>
    %521 = math.exp %520 : vector<2x32xf32>
    %cst_102 = arith.constant 1.000000e+00 : f32
    %522 = vector.broadcast %cst_102 : f32 to vector<2x32xf32>
    %523 = arith.addf %522, %521 : vector<2x32xf32>
    %524 = arith.divf %522, %523 : vector<2x32xf32>
    %525 = vector.extract_strided_slice %508 {offsets = [0, 64], sizes = [2, 32], strides = [1, 1]} : vector<2x96xf32> to vector<2x32xf32>
    %526 = vector.extract_strided_slice %507 {offsets = [0, 64], sizes = [2, 32], strides = [1, 1]} : vector<2x96xf32> to vector<2x32xf32>
    %527 = arith.addf %526, %294 : vector<2x32xf32>
    %528 = arith.mulf %516, %527 : vector<2x32xf32>
    %529 = arith.addf %525, %528 : vector<2x32xf32>
    %530 = math.tanh %529 : vector<2x32xf32>
    %cst_103 = arith.constant 1.000000e+00 : f32
    %531 = vector.broadcast %cst_103 : f32 to vector<2x32xf32>
    %532 = arith.subf %531, %524 : vector<2x32xf32>
    %533 = arith.mulf %532, %530 : vector<2x32xf32>
    %534 = arith.mulf %524, %505 : vector<2x32xf32>
    %535 = arith.addf %533, %534 : vector<2x32xf32>
    %c0_104 = arith.constant 0 : index
    %c0_105 = arith.constant 0 : index
    %536 = vector.load %arg11[%c0_104, %c0_105] : memref<1x32xf32, #tpu.memory_space<vmem>>, vector<1x32xf32>
    %c0_106 = arith.constant 0 : index
    %c0_107 = arith.constant 0 : index
    %537 = vector.load %arg12[%c0_106, %c0_107] : memref<1x32xf32, #tpu.memory_space<vmem>>, vector<1x32xf32>
    %cst_108 = arith.constant dense<0.000000e+00> : vector<2xf32>
    %538 = vector.multi_reduction <add>, %535, %cst_108 [1] : vector<2x32xf32> to vector<2xf32>
    %539 = vector.shape_cast %538 : vector<2xf32> to vector<2x1xf32>
    %cst_109 = arith.constant 3.200000e+01 : f32
    %540 = vector.broadcast %cst_109 : f32 to vector<2x1xf32>
    %541 = arith.divf %539, %540 : vector<2x1xf32>
    %542 = vector.broadcast %541 : vector<2x1xf32> to vector<2x32xf32>
    %543 = arith.subf %535, %542 : vector<2x32xf32>
    %544 = arith.mulf %543, %543 : vector<2x32xf32>
    %cst_110 = arith.constant dense<0.000000e+00> : vector<2xf32>
    %545 = vector.multi_reduction <add>, %544, %cst_110 [1] : vector<2x32xf32> to vector<2xf32>
    %546 = vector.shape_cast %545 : vector<2xf32> to vector<2x1xf32>
    %cst_111 = arith.constant 3.200000e+01 : f32
    %547 = vector.broadcast %cst_111 : f32 to vector<2x1xf32>
    %548 = arith.divf %546, %547 : vector<2x1xf32>
    %549 = vector.broadcast %541 : vector<2x1xf32> to vector<2x32xf32>
    %550 = arith.subf %535, %549 : vector<2x32xf32>
    %cst_112 = arith.constant 9.99999974E-6 : f32
    %551 = vector.broadcast %cst_112 : f32 to vector<2x1xf32>
    %552 = arith.addf %548, %551 : vector<2x1xf32>
    %553 = math.rsqrt %552 : vector<2x1xf32>
    %554 = vector.broadcast %553 : vector<2x1xf32> to vector<2x32xf32>
    %555 = arith.mulf %550, %554 : vector<2x32xf32>
    %556 = vector.broadcast %536 : vector<1x32xf32> to vector<2x32xf32>
    %557 = arith.mulf %555, %556 : vector<2x32xf32>
    %558 = vector.broadcast %537 : vector<1x32xf32> to vector<2x32xf32>
    %559 = arith.addf %557, %558 : vector<2x32xf32>
    %c0_113 = arith.constant 0 : index
    %c0_114 = arith.constant 0 : index
    %560 = vector.load %arg13[%c0_113, %c0_114] : memref<2x32xf32, #tpu.memory_space<vmem>>, vector<2x32xf32>
    tpu.vector_store %arg13[%c0_113, %c0_114], %559 {strides = array<i32>} : memref<2x32xf32, #tpu.memory_space<vmem>>, vector<2x32xf32>,
    return
  }
}

module attributes {stable_mosaic.version = 11 : i64} {
  func.func @_decoder_kernel(%arg0: memref<2x32xf32, #tpu.memory_space<vmem>>, %arg1: memref<32x96xbf16, #tpu.memory_space<vmem>>, %arg2: memref<32x96xbf16, #tpu.memory_space<vmem>>, %arg3: memref<1x96xf32, #tpu.memory_space<vmem>>, %arg4: memref<1x32xf32, #tpu.memory_space<vmem>>, %arg5: memref<32x96xbf16, #tpu.memory_space<vmem>>, %arg6: memref<32x96xbf16, #tpu.memory_space<vmem>>, %arg7: memref<1x96xf32, #tpu.memory_space<vmem>>, %arg8: memref<1x32xf32, #tpu.memory_space<vmem>>, %arg9: memref<1x32xf32, #tpu.memory_space<vmem>>, %arg10: memref<1x32xf32, #tpu.memory_space<vmem>>, %arg11: memref<32x96xbf16, #tpu.memory_space<vmem>>, %arg12: memref<32x96xbf16, #tpu.memory_space<vmem>>, %arg13: memref<1x96xf32, #tpu.memory_space<vmem>>, %arg14: memref<1x32xf32, #tpu.memory_space<vmem>>, %arg15: memref<32x96xbf16, #tpu.memory_space<vmem>>, %arg16: memref<32x96xbf16, #tpu.memory_space<vmem>>, %arg17: memref<1x96xf32, #tpu.memory_space<vmem>>, %arg18: memref<1x32xf32, #tpu.memory_space<vmem>>, %arg19: memref<1x32xf32, #tpu.memory_space<vmem>>, %arg20: memref<1x32xf32, #tpu.memory_space<vmem>>, %arg21: memref<32x4xbf16, #tpu.memory_space<vmem>>, %arg22: memref<1x4xf32, #tpu.memory_space<vmem>>, %arg23: memref<16x4xf32, #tpu.memory_space<vmem>>, %arg24: memref<16x32xf32, #tpu.memory_space<vmem>>, %arg25: memref<16x32xf32, #tpu.memory_space<vmem>>) attributes {dimension_semantics = [], scalar_prefetch = 0 : i64, scratch_operands = 2 : i64, tpu.core_type = #tpu.core_type<tc>} {
    %c0 = arith.constant 0 : index
    %c0_0 = arith.constant 0 : index
    %0 = vector.load %arg0[%c0, %c0_0] : memref<2x32xf32, #tpu.memory_space<vmem>>, vector<2x32xf32>
    %1 = arith.truncf %0 : vector<2x32xf32> to vector<2x32xbf16>
    %c0_1 = arith.constant 0 : index
    %c0_2 = arith.constant 0 : index
    %2 = vector.load %arg1[%c0_1, %c0_2] : memref<32x96xbf16, #tpu.memory_space<vmem>>, vector<32x96xbf16>
    %cst = arith.constant dense<0.000000e+00> : vector<2x96xf32>
    %3 = tpu.matmul %1, %2, %cst {dimension_numbers = #tpu.dot_dimension_numbers<[1], [0], [0], [1], [0, 0, 1, 1], [], []>} : vector<2x32xbf16>, vector<32x96xbf16>, vector<2x96xf32> -> vector<2x96xf32>
    %c0_3 = arith.constant 0 : index
    %c0_4 = arith.constant 0 : index
    %4 = vector.load %arg3[%c0_3, %c0_4] : memref<1x96xf32, #tpu.memory_space<vmem>>, vector<1x96xf32>
    %5 = vector.broadcast %4 : vector<1x96xf32> to vector<2x96xf32>
    %6 = arith.addf %3, %5 : vector<2x96xf32>
    %c0_5 = arith.constant 0 : index
    %c0_6 = arith.constant 0 : index
    %7 = vector.load %arg2[%c0_5, %c0_6] : memref<32x96xbf16, #tpu.memory_space<vmem>>, vector<32x96xbf16>
    %c0_7 = arith.constant 0 : index
    %c0_8 = arith.constant 0 : index
    %8 = vector.load %arg4[%c0_7, %c0_8] : memref<1x32xf32, #tpu.memory_space<vmem>>, vector<1x32xf32>
    %9 = vector.shape_cast %8 : vector<1x32xf32> to vector<1x32xf32>
    %10 = vector.broadcast %9 : vector<1x32xf32> to vector<2x32xf32>
    %cst_9 = arith.constant 0.000000e+00 : f32
    %11 = vector.broadcast %cst_9 : f32 to vector<2x32xf32>
    %12 = arith.truncf %11 : vector<2x32xf32> to vector<2x32xbf16>
    %cst_10 = arith.constant dense<0.000000e+00> : vector<2x96xf32>
    %13 = tpu.matmul %12, %7, %cst_10 {dimension_numbers = #tpu.dot_dimension_numbers<[1], [0], [0], [1], [0, 0, 1, 1], [], []>} : vector<2x32xbf16>, vector<32x96xbf16>, vector<2x96xf32> -> vector<2x96xf32>
    %14 = vector.extract_strided_slice %6 {offsets = [0, 0], sizes = [2, 32], strides = [1, 1]} : vector<2x96xf32> to vector<2x32xf32>
    %15 = vector.extract_strided_slice %13 {offsets = [0, 0], sizes = [2, 32], strides = [1, 1]} : vector<2x96xf32> to vector<2x32xf32>
    %16 = arith.addf %14, %15 : vector<2x32xf32>
    %17 = arith.negf %16 : vector<2x32xf32>
    %18 = math.exp %17 : vector<2x32xf32>
    %cst_11 = arith.constant 1.000000e+00 : f32
    %19 = vector.broadcast %cst_11 : f32 to vector<2x32xf32>
    %20 = arith.addf %19, %18 : vector<2x32xf32>
    %21 = arith.divf %19, %20 : vector<2x32xf32>
    %22 = vector.extract_strided_slice %6 {offsets = [0, 32], sizes = [2, 32], strides = [1, 1]} : vector<2x96xf32> to vector<2x32xf32>
    %23 = vector.extract_strided_slice %13 {offsets = [0, 32], sizes = [2, 32], strides = [1, 1]} : vector<2x96xf32> to vector<2x32xf32>
    %24 = arith.addf %22, %23 : vector<2x32xf32>
    %25 = arith.negf %24 : vector<2x32xf32>
    %26 = math.exp %25 : vector<2x32xf32>
    %cst_12 = arith.constant 1.000000e+00 : f32
    %27 = vector.broadcast %cst_12 : f32 to vector<2x32xf32>
    %28 = arith.addf %27, %26 : vector<2x32xf32>
    %29 = arith.divf %27, %28 : vector<2x32xf32>
    %30 = vector.extract_strided_slice %6 {offsets = [0, 64], sizes = [2, 32], strides = [1, 1]} : vector<2x96xf32> to vector<2x32xf32>
    %31 = vector.extract_strided_slice %13 {offsets = [0, 64], sizes = [2, 32], strides = [1, 1]} : vector<2x96xf32> to vector<2x32xf32>
    %32 = arith.addf %31, %10 : vector<2x32xf32>
    %33 = arith.mulf %21, %32 : vector<2x32xf32>
    %34 = arith.addf %30, %33 : vector<2x32xf32>
    %35 = math.tanh %34 : vector<2x32xf32>
    %cst_13 = arith.constant 1.000000e+00 : f32
    %36 = vector.broadcast %cst_13 : f32 to vector<2x32xf32>
    %37 = arith.subf %36, %29 : vector<2x32xf32>
    %38 = arith.mulf %37, %35 : vector<2x32xf32>
    %39 = arith.mulf %29, %11 : vector<2x32xf32>
    %40 = arith.addf %38, %39 : vector<2x32xf32>
    %c0_14 = arith.constant 0 : index
    %c0_15 = arith.constant 0 : index
    %41 = vector.load %arg24[%c0_14, %c0_15] : memref<16x32xf32, #tpu.memory_space<vmem>>, vector<2x32xf32>
    tpu.vector_store %arg24[%c0_14, %c0_15], %40 {strides = array<i32>} : memref<16x32xf32, #tpu.memory_space<vmem>>, vector<2x32xf32>,
    %42 = arith.truncf %40 : vector<2x32xf32> to vector<2x32xbf16>
    %cst_16 = arith.constant dense<0.000000e+00> : vector<2x96xf32>
    %43 = tpu.matmul %42, %7, %cst_16 {dimension_numbers = #tpu.dot_dimension_numbers<[1], [0], [0], [1], [0, 0, 1, 1], [], []>} : vector<2x32xbf16>, vector<32x96xbf16>, vector<2x96xf32> -> vector<2x96xf32>
    %44 = vector.extract_strided_slice %6 {offsets = [0, 0], sizes = [2, 32], strides = [1, 1]} : vector<2x96xf32> to vector<2x32xf32>
    %45 = vector.extract_strided_slice %43 {offsets = [0, 0], sizes = [2, 32], strides = [1, 1]} : vector<2x96xf32> to vector<2x32xf32>
    %46 = arith.addf %44, %45 : vector<2x32xf32>
    %47 = arith.negf %46 : vector<2x32xf32>
    %48 = math.exp %47 : vector<2x32xf32>
    %cst_17 = arith.constant 1.000000e+00 : f32
    %49 = vector.broadcast %cst_17 : f32 to vector<2x32xf32>
    %50 = arith.addf %49, %48 : vector<2x32xf32>
    %51 = arith.divf %49, %50 : vector<2x32xf32>
    %52 = vector.extract_strided_slice %6 {offsets = [0, 32], sizes = [2, 32], strides = [1, 1]} : vector<2x96xf32> to vector<2x32xf32>
    %53 = vector.extract_strided_slice %43 {offsets = [0, 32], sizes = [2, 32], strides = [1, 1]} : vector<2x96xf32> to vector<2x32xf32>
    %54 = arith.addf %52, %53 : vector<2x32xf32>
    %55 = arith.negf %54 : vector<2x32xf32>
    %56 = math.exp %55 : vector<2x32xf32>
    %cst_18 = arith.constant 1.000000e+00 : f32
    %57 = vector.broadcast %cst_18 : f32 to vector<2x32xf32>
    %58 = arith.addf %57, %56 : vector<2x32xf32>
    %59 = arith.divf %57, %58 : vector<2x32xf32>
    %60 = vector.extract_strided_slice %6 {offsets = [0, 64], sizes = [2, 32], strides = [1, 1]} : vector<2x96xf32> to vector<2x32xf32>
    %61 = vector.extract_strided_slice %43 {offsets = [0, 64], sizes = [2, 32], strides = [1, 1]} : vector<2x96xf32> to vector<2x32xf32>
    %62 = arith.addf %61, %10 : vector<2x32xf32>
    %63 = arith.mulf %51, %62 : vector<2x32xf32>
    %64 = arith.addf %60, %63 : vector<2x32xf32>
    %65 = math.tanh %64 : vector<2x32xf32>
    %cst_19 = arith.constant 1.000000e+00 : f32
    %66 = vector.broadcast %cst_19 : f32 to vector<2x32xf32>
    %67 = arith.subf %66, %59 : vector<2x32xf32>
    %68 = arith.mulf %67, %65 : vector<2x32xf32>
    %69 = arith.mulf %59, %40 : vector<2x32xf32>
    %70 = arith.addf %68, %69 : vector<2x32xf32>
    %c2 = arith.constant 2 : index
    %c0_20 = arith.constant 0 : index
    %71 = vector.load %arg24[%c2, %c0_20] : memref<16x32xf32, #tpu.memory_space<vmem>>, vector<2x32xf32>
    tpu.vector_store %arg24[%c2, %c0_20], %70 {strides = array<i32>} : memref<16x32xf32, #tpu.memory_space<vmem>>, vector<2x32xf32>,
    %72 = arith.truncf %70 : vector<2x32xf32> to vector<2x32xbf16>
    %cst_21 = arith.constant dense<0.000000e+00> : vector<2x96xf32>
    %73 = tpu.matmul %72, %7, %cst_21 {dimension_numbers = #tpu.dot_dimension_numbers<[1], [0], [0], [1], [0, 0, 1, 1], [], []>} : vector<2x32xbf16>, vector<32x96xbf16>, vector<2x96xf32> -> vector<2x96xf32>
    %74 = vector.extract_strided_slice %6 {offsets = [0, 0], sizes = [2, 32], strides = [1, 1]} : vector<2x96xf32> to vector<2x32xf32>
    %75 = vector.extract_strided_slice %73 {offsets = [0, 0], sizes = [2, 32], strides = [1, 1]} : vector<2x96xf32> to vector<2x32xf32>
    %76 = arith.addf %74, %75 : vector<2x32xf32>
    %77 = arith.negf %76 : vector<2x32xf32>
    %78 = math.exp %77 : vector<2x32xf32>
    %cst_22 = arith.constant 1.000000e+00 : f32
    %79 = vector.broadcast %cst_22 : f32 to vector<2x32xf32>
    %80 = arith.addf %79, %78 : vector<2x32xf32>
    %81 = arith.divf %79, %80 : vector<2x32xf32>
    %82 = vector.extract_strided_slice %6 {offsets = [0, 32], sizes = [2, 32], strides = [1, 1]} : vector<2x96xf32> to vector<2x32xf32>
    %83 = vector.extract_strided_slice %73 {offsets = [0, 32], sizes = [2, 32], strides = [1, 1]} : vector<2x96xf32> to vector<2x32xf32>
    %84 = arith.addf %82, %83 : vector<2x32xf32>
    %85 = arith.negf %84 : vector<2x32xf32>
    %86 = math.exp %85 : vector<2x32xf32>
    %cst_23 = arith.constant 1.000000e+00 : f32
    %87 = vector.broadcast %cst_23 : f32 to vector<2x32xf32>
    %88 = arith.addf %87, %86 : vector<2x32xf32>
    %89 = arith.divf %87, %88 : vector<2x32xf32>
    %90 = vector.extract_strided_slice %6 {offsets = [0, 64], sizes = [2, 32], strides = [1, 1]} : vector<2x96xf32> to vector<2x32xf32>
    %91 = vector.extract_strided_slice %73 {offsets = [0, 64], sizes = [2, 32], strides = [1, 1]} : vector<2x96xf32> to vector<2x32xf32>
    %92 = arith.addf %91, %10 : vector<2x32xf32>
    %93 = arith.mulf %81, %92 : vector<2x32xf32>
    %94 = arith.addf %90, %93 : vector<2x32xf32>
    %95 = math.tanh %94 : vector<2x32xf32>
    %cst_24 = arith.constant 1.000000e+00 : f32
    %96 = vector.broadcast %cst_24 : f32 to vector<2x32xf32>
    %97 = arith.subf %96, %89 : vector<2x32xf32>
    %98 = arith.mulf %97, %95 : vector<2x32xf32>
    %99 = arith.mulf %89, %70 : vector<2x32xf32>
    %100 = arith.addf %98, %99 : vector<2x32xf32>
    %c4 = arith.constant 4 : index
    %c0_25 = arith.constant 0 : index
    %101 = vector.load %arg24[%c4, %c0_25] : memref<16x32xf32, #tpu.memory_space<vmem>>, vector<2x32xf32>
    tpu.vector_store %arg24[%c4, %c0_25], %100 {strides = array<i32>} : memref<16x32xf32, #tpu.memory_space<vmem>>, vector<2x32xf32>,
    %102 = arith.truncf %100 : vector<2x32xf32> to vector<2x32xbf16>
    %cst_26 = arith.constant dense<0.000000e+00> : vector<2x96xf32>
    %103 = tpu.matmul %102, %7, %cst_26 {dimension_numbers = #tpu.dot_dimension_numbers<[1], [0], [0], [1], [0, 0, 1, 1], [], []>} : vector<2x32xbf16>, vector<32x96xbf16>, vector<2x96xf32> -> vector<2x96xf32>
    %104 = vector.extract_strided_slice %6 {offsets = [0, 0], sizes = [2, 32], strides = [1, 1]} : vector<2x96xf32> to vector<2x32xf32>
    %105 = vector.extract_strided_slice %103 {offsets = [0, 0], sizes = [2, 32], strides = [1, 1]} : vector<2x96xf32> to vector<2x32xf32>
    %106 = arith.addf %104, %105 : vector<2x32xf32>
    %107 = arith.negf %106 : vector<2x32xf32>
    %108 = math.exp %107 : vector<2x32xf32>
    %cst_27 = arith.constant 1.000000e+00 : f32
    %109 = vector.broadcast %cst_27 : f32 to vector<2x32xf32>
    %110 = arith.addf %109, %108 : vector<2x32xf32>
    %111 = arith.divf %109, %110 : vector<2x32xf32>
    %112 = vector.extract_strided_slice %6 {offsets = [0, 32], sizes = [2, 32], strides = [1, 1]} : vector<2x96xf32> to vector<2x32xf32>
    %113 = vector.extract_strided_slice %103 {offsets = [0, 32], sizes = [2, 32], strides = [1, 1]} : vector<2x96xf32> to vector<2x32xf32>
    %114 = arith.addf %112, %113 : vector<2x32xf32>
    %115 = arith.negf %114 : vector<2x32xf32>
    %116 = math.exp %115 : vector<2x32xf32>
    %cst_28 = arith.constant 1.000000e+00 : f32
    %117 = vector.broadcast %cst_28 : f32 to vector<2x32xf32>
    %118 = arith.addf %117, %116 : vector<2x32xf32>
    %119 = arith.divf %117, %118 : vector<2x32xf32>
    %120 = vector.extract_strided_slice %6 {offsets = [0, 64], sizes = [2, 32], strides = [1, 1]} : vector<2x96xf32> to vector<2x32xf32>
    %121 = vector.extract_strided_slice %103 {offsets = [0, 64], sizes = [2, 32], strides = [1, 1]} : vector<2x96xf32> to vector<2x32xf32>
    %122 = arith.addf %121, %10 : vector<2x32xf32>
    %123 = arith.mulf %111, %122 : vector<2x32xf32>
    %124 = arith.addf %120, %123 : vector<2x32xf32>
    %125 = math.tanh %124 : vector<2x32xf32>
    %cst_29 = arith.constant 1.000000e+00 : f32
    %126 = vector.broadcast %cst_29 : f32 to vector<2x32xf32>
    %127 = arith.subf %126, %119 : vector<2x32xf32>
    %128 = arith.mulf %127, %125 : vector<2x32xf32>
    %129 = arith.mulf %119, %100 : vector<2x32xf32>
    %130 = arith.addf %128, %129 : vector<2x32xf32>
    %c6 = arith.constant 6 : index
    %c0_30 = arith.constant 0 : index
    %131 = vector.load %arg24[%c6, %c0_30] : memref<16x32xf32, #tpu.memory_space<vmem>>, vector<2x32xf32>
    tpu.vector_store %arg24[%c6, %c0_30], %130 {strides = array<i32>} : memref<16x32xf32, #tpu.memory_space<vmem>>, vector<2x32xf32>,
    %132 = arith.truncf %130 : vector<2x32xf32> to vector<2x32xbf16>
    %cst_31 = arith.constant dense<0.000000e+00> : vector<2x96xf32>
    %133 = tpu.matmul %132, %7, %cst_31 {dimension_numbers = #tpu.dot_dimension_numbers<[1], [0], [0], [1], [0, 0, 1, 1], [], []>} : vector<2x32xbf16>, vector<32x96xbf16>, vector<2x96xf32> -> vector<2x96xf32>
    %134 = vector.extract_strided_slice %6 {offsets = [0, 0], sizes = [2, 32], strides = [1, 1]} : vector<2x96xf32> to vector<2x32xf32>
    %135 = vector.extract_strided_slice %133 {offsets = [0, 0], sizes = [2, 32], strides = [1, 1]} : vector<2x96xf32> to vector<2x32xf32>
    %136 = arith.addf %134, %135 : vector<2x32xf32>
    %137 = arith.negf %136 : vector<2x32xf32>
    %138 = math.exp %137 : vector<2x32xf32>
    %cst_32 = arith.constant 1.000000e+00 : f32
    %139 = vector.broadcast %cst_32 : f32 to vector<2x32xf32>
    %140 = arith.addf %139, %138 : vector<2x32xf32>
    %141 = arith.divf %139, %140 : vector<2x32xf32>
    %142 = vector.extract_strided_slice %6 {offsets = [0, 32], sizes = [2, 32], strides = [1, 1]} : vector<2x96xf32> to vector<2x32xf32>
    %143 = vector.extract_strided_slice %133 {offsets = [0, 32], sizes = [2, 32], strides = [1, 1]} : vector<2x96xf32> to vector<2x32xf32>
    %144 = arith.addf %142, %143 : vector<2x32xf32>
    %145 = arith.negf %144 : vector<2x32xf32>
    %146 = math.exp %145 : vector<2x32xf32>
    %cst_33 = arith.constant 1.000000e+00 : f32
    %147 = vector.broadcast %cst_33 : f32 to vector<2x32xf32>
    %148 = arith.addf %147, %146 : vector<2x32xf32>
    %149 = arith.divf %147, %148 : vector<2x32xf32>
    %150 = vector.extract_strided_slice %6 {offsets = [0, 64], sizes = [2, 32], strides = [1, 1]} : vector<2x96xf32> to vector<2x32xf32>
    %151 = vector.extract_strided_slice %133 {offsets = [0, 64], sizes = [2, 32], strides = [1, 1]} : vector<2x96xf32> to vector<2x32xf32>
    %152 = arith.addf %151, %10 : vector<2x32xf32>
    %153 = arith.mulf %141, %152 : vector<2x32xf32>
    %154 = arith.addf %150, %153 : vector<2x32xf32>
    %155 = math.tanh %154 : vector<2x32xf32>
    %cst_34 = arith.constant 1.000000e+00 : f32
    %156 = vector.broadcast %cst_34 : f32 to vector<2x32xf32>
    %157 = arith.subf %156, %149 : vector<2x32xf32>
    %158 = arith.mulf %157, %155 : vector<2x32xf32>
    %159 = arith.mulf %149, %130 : vector<2x32xf32>
    %160 = arith.addf %158, %159 : vector<2x32xf32>
    %c8 = arith.constant 8 : index
    %c0_35 = arith.constant 0 : index
    %161 = vector.load %arg24[%c8, %c0_35] : memref<16x32xf32, #tpu.memory_space<vmem>>, vector<2x32xf32>
    tpu.vector_store %arg24[%c8, %c0_35], %160 {strides = array<i32>} : memref<16x32xf32, #tpu.memory_space<vmem>>, vector<2x32xf32>,
    %162 = arith.truncf %160 : vector<2x32xf32> to vector<2x32xbf16>
    %cst_36 = arith.constant dense<0.000000e+00> : vector<2x96xf32>
    %163 = tpu.matmul %162, %7, %cst_36 {dimension_numbers = #tpu.dot_dimension_numbers<[1], [0], [0], [1], [0, 0, 1, 1], [], []>} : vector<2x32xbf16>, vector<32x96xbf16>, vector<2x96xf32> -> vector<2x96xf32>
    %164 = vector.extract_strided_slice %6 {offsets = [0, 0], sizes = [2, 32], strides = [1, 1]} : vector<2x96xf32> to vector<2x32xf32>
    %165 = vector.extract_strided_slice %163 {offsets = [0, 0], sizes = [2, 32], strides = [1, 1]} : vector<2x96xf32> to vector<2x32xf32>
    %166 = arith.addf %164, %165 : vector<2x32xf32>
    %167 = arith.negf %166 : vector<2x32xf32>
    %168 = math.exp %167 : vector<2x32xf32>
    %cst_37 = arith.constant 1.000000e+00 : f32
    %169 = vector.broadcast %cst_37 : f32 to vector<2x32xf32>
    %170 = arith.addf %169, %168 : vector<2x32xf32>
    %171 = arith.divf %169, %170 : vector<2x32xf32>
    %172 = vector.extract_strided_slice %6 {offsets = [0, 32], sizes = [2, 32], strides = [1, 1]} : vector<2x96xf32> to vector<2x32xf32>
    %173 = vector.extract_strided_slice %163 {offsets = [0, 32], sizes = [2, 32], strides = [1, 1]} : vector<2x96xf32> to vector<2x32xf32>
    %174 = arith.addf %172, %173 : vector<2x32xf32>
    %175 = arith.negf %174 : vector<2x32xf32>
    %176 = math.exp %175 : vector<2x32xf32>
    %cst_38 = arith.constant 1.000000e+00 : f32
    %177 = vector.broadcast %cst_38 : f32 to vector<2x32xf32>
    %178 = arith.addf %177, %176 : vector<2x32xf32>
    %179 = arith.divf %177, %178 : vector<2x32xf32>
    %180 = vector.extract_strided_slice %6 {offsets = [0, 64], sizes = [2, 32], strides = [1, 1]} : vector<2x96xf32> to vector<2x32xf32>
    %181 = vector.extract_strided_slice %163 {offsets = [0, 64], sizes = [2, 32], strides = [1, 1]} : vector<2x96xf32> to vector<2x32xf32>
    %182 = arith.addf %181, %10 : vector<2x32xf32>
    %183 = arith.mulf %171, %182 : vector<2x32xf32>
    %184 = arith.addf %180, %183 : vector<2x32xf32>
    %185 = math.tanh %184 : vector<2x32xf32>
    %cst_39 = arith.constant 1.000000e+00 : f32
    %186 = vector.broadcast %cst_39 : f32 to vector<2x32xf32>
    %187 = arith.subf %186, %179 : vector<2x32xf32>
    %188 = arith.mulf %187, %185 : vector<2x32xf32>
    %189 = arith.mulf %179, %160 : vector<2x32xf32>
    %190 = arith.addf %188, %189 : vector<2x32xf32>
    %c10 = arith.constant 10 : index
    %c0_40 = arith.constant 0 : index
    %191 = vector.load %arg24[%c10, %c0_40] : memref<16x32xf32, #tpu.memory_space<vmem>>, vector<2x32xf32>
    tpu.vector_store %arg24[%c10, %c0_40], %190 {strides = array<i32>} : memref<16x32xf32, #tpu.memory_space<vmem>>, vector<2x32xf32>,
    %192 = arith.truncf %190 : vector<2x32xf32> to vector<2x32xbf16>
    %cst_41 = arith.constant dense<0.000000e+00> : vector<2x96xf32>
    %193 = tpu.matmul %192, %7, %cst_41 {dimension_numbers = #tpu.dot_dimension_numbers<[1], [0], [0], [1], [0, 0, 1, 1], [], []>} : vector<2x32xbf16>, vector<32x96xbf16>, vector<2x96xf32> -> vector<2x96xf32>
    %194 = vector.extract_strided_slice %6 {offsets = [0, 0], sizes = [2, 32], strides = [1, 1]} : vector<2x96xf32> to vector<2x32xf32>
    %195 = vector.extract_strided_slice %193 {offsets = [0, 0], sizes = [2, 32], strides = [1, 1]} : vector<2x96xf32> to vector<2x32xf32>
    %196 = arith.addf %194, %195 : vector<2x32xf32>
    %197 = arith.negf %196 : vector<2x32xf32>
    %198 = math.exp %197 : vector<2x32xf32>
    %cst_42 = arith.constant 1.000000e+00 : f32
    %199 = vector.broadcast %cst_42 : f32 to vector<2x32xf32>
    %200 = arith.addf %199, %198 : vector<2x32xf32>
    %201 = arith.divf %199, %200 : vector<2x32xf32>
    %202 = vector.extract_strided_slice %6 {offsets = [0, 32], sizes = [2, 32], strides = [1, 1]} : vector<2x96xf32> to vector<2x32xf32>
    %203 = vector.extract_strided_slice %193 {offsets = [0, 32], sizes = [2, 32], strides = [1, 1]} : vector<2x96xf32> to vector<2x32xf32>
    %204 = arith.addf %202, %203 : vector<2x32xf32>
    %205 = arith.negf %204 : vector<2x32xf32>
    %206 = math.exp %205 : vector<2x32xf32>
    %cst_43 = arith.constant 1.000000e+00 : f32
    %207 = vector.broadcast %cst_43 : f32 to vector<2x32xf32>
    %208 = arith.addf %207, %206 : vector<2x32xf32>
    %209 = arith.divf %207, %208 : vector<2x32xf32>
    %210 = vector.extract_strided_slice %6 {offsets = [0, 64], sizes = [2, 32], strides = [1, 1]} : vector<2x96xf32> to vector<2x32xf32>
    %211 = vector.extract_strided_slice %193 {offsets = [0, 64], sizes = [2, 32], strides = [1, 1]} : vector<2x96xf32> to vector<2x32xf32>
    %212 = arith.addf %211, %10 : vector<2x32xf32>
    %213 = arith.mulf %201, %212 : vector<2x32xf32>
    %214 = arith.addf %210, %213 : vector<2x32xf32>
    %215 = math.tanh %214 : vector<2x32xf32>
    %cst_44 = arith.constant 1.000000e+00 : f32
    %216 = vector.broadcast %cst_44 : f32 to vector<2x32xf32>
    %217 = arith.subf %216, %209 : vector<2x32xf32>
    %218 = arith.mulf %217, %215 : vector<2x32xf32>
    %219 = arith.mulf %209, %190 : vector<2x32xf32>
    %220 = arith.addf %218, %219 : vector<2x32xf32>
    %c12 = arith.constant 12 : index
    %c0_45 = arith.constant 0 : index
    %221 = vector.load %arg24[%c12, %c0_45] : memref<16x32xf32, #tpu.memory_space<vmem>>, vector<2x32xf32>
    tpu.vector_store %arg24[%c12, %c0_45], %220 {strides = array<i32>} : memref<16x32xf32, #tpu.memory_space<vmem>>, vector<2x32xf32>,
    %222 = arith.truncf %220 : vector<2x32xf32> to vector<2x32xbf16>
    %cst_46 = arith.constant dense<0.000000e+00> : vector<2x96xf32>
    %223 = tpu.matmul %222, %7, %cst_46 {dimension_numbers = #tpu.dot_dimension_numbers<[1], [0], [0], [1], [0, 0, 1, 1], [], []>} : vector<2x32xbf16>, vector<32x96xbf16>, vector<2x96xf32> -> vector<2x96xf32>
    %224 = vector.extract_strided_slice %6 {offsets = [0, 0], sizes = [2, 32], strides = [1, 1]} : vector<2x96xf32> to vector<2x32xf32>
    %225 = vector.extract_strided_slice %223 {offsets = [0, 0], sizes = [2, 32], strides = [1, 1]} : vector<2x96xf32> to vector<2x32xf32>
    %226 = arith.addf %224, %225 : vector<2x32xf32>
    %227 = arith.negf %226 : vector<2x32xf32>
    %228 = math.exp %227 : vector<2x32xf32>
    %cst_47 = arith.constant 1.000000e+00 : f32
    %229 = vector.broadcast %cst_47 : f32 to vector<2x32xf32>
    %230 = arith.addf %229, %228 : vector<2x32xf32>
    %231 = arith.divf %229, %230 : vector<2x32xf32>
    %232 = vector.extract_strided_slice %6 {offsets = [0, 32], sizes = [2, 32], strides = [1, 1]} : vector<2x96xf32> to vector<2x32xf32>
    %233 = vector.extract_strided_slice %223 {offsets = [0, 32], sizes = [2, 32], strides = [1, 1]} : vector<2x96xf32> to vector<2x32xf32>
    %234 = arith.addf %232, %233 : vector<2x32xf32>
    %235 = arith.negf %234 : vector<2x32xf32>
    %236 = math.exp %235 : vector<2x32xf32>
    %cst_48 = arith.constant 1.000000e+00 : f32
    %237 = vector.broadcast %cst_48 : f32 to vector<2x32xf32>
    %238 = arith.addf %237, %236 : vector<2x32xf32>
    %239 = arith.divf %237, %238 : vector<2x32xf32>
    %240 = vector.extract_strided_slice %6 {offsets = [0, 64], sizes = [2, 32], strides = [1, 1]} : vector<2x96xf32> to vector<2x32xf32>
    %241 = vector.extract_strided_slice %223 {offsets = [0, 64], sizes = [2, 32], strides = [1, 1]} : vector<2x96xf32> to vector<2x32xf32>
    %242 = arith.addf %241, %10 : vector<2x32xf32>
    %243 = arith.mulf %231, %242 : vector<2x32xf32>
    %244 = arith.addf %240, %243 : vector<2x32xf32>
    %245 = math.tanh %244 : vector<2x32xf32>
    %cst_49 = arith.constant 1.000000e+00 : f32
    %246 = vector.broadcast %cst_49 : f32 to vector<2x32xf32>
    %247 = arith.subf %246, %239 : vector<2x32xf32>
    %248 = arith.mulf %247, %245 : vector<2x32xf32>
    %249 = arith.mulf %239, %220 : vector<2x32xf32>
    %250 = arith.addf %248, %249 : vector<2x32xf32>
    %c14 = arith.constant 14 : index
    %c0_50 = arith.constant 0 : index
    %251 = vector.load %arg24[%c14, %c0_50] : memref<16x32xf32, #tpu.memory_space<vmem>>, vector<2x32xf32>
    tpu.vector_store %arg24[%c14, %c0_50], %250 {strides = array<i32>} : memref<16x32xf32, #tpu.memory_space<vmem>>, vector<2x32xf32>,
    %c0_51 = arith.constant 0 : index
    %c0_52 = arith.constant 0 : index
    %252 = vector.load %arg24[%c0_51, %c0_52] : memref<16x32xf32, #tpu.memory_space<vmem>>, vector<16x32xf32>
    %253 = arith.truncf %252 : vector<16x32xf32> to vector<16x32xbf16>
    %c0_53 = arith.constant 0 : index
    %c0_54 = arith.constant 0 : index
    %254 = vector.load %arg5[%c0_53, %c0_54] : memref<32x96xbf16, #tpu.memory_space<vmem>>, vector<32x96xbf16>
    %cst_55 = arith.constant dense<0.000000e+00> : vector<16x96xf32>
    %255 = tpu.matmul %253, %254, %cst_55 {dimension_numbers = #tpu.dot_dimension_numbers<[1], [0], [0], [1], [0, 0, 1, 1], [], []>} : vector<16x32xbf16>, vector<32x96xbf16>, vector<16x96xf32> -> vector<16x96xf32>
    %c0_56 = arith.constant 0 : index
    %c0_57 = arith.constant 0 : index
    %256 = vector.load %arg7[%c0_56, %c0_57] : memref<1x96xf32, #tpu.memory_space<vmem>>, vector<1x96xf32>
    %257 = vector.broadcast %256 : vector<1x96xf32> to vector<16x96xf32>
    %258 = arith.addf %255, %257 : vector<16x96xf32>
    %c0_58 = arith.constant 0 : index
    %c0_59 = arith.constant 0 : index
    %259 = vector.load %arg6[%c0_58, %c0_59] : memref<32x96xbf16, #tpu.memory_space<vmem>>, vector<32x96xbf16>
    %c0_60 = arith.constant 0 : index
    %c0_61 = arith.constant 0 : index
    %260 = vector.load %arg8[%c0_60, %c0_61] : memref<1x32xf32, #tpu.memory_space<vmem>>, vector<1x32xf32>
    %261 = vector.shape_cast %260 : vector<1x32xf32> to vector<1x32xf32>
    %262 = vector.broadcast %261 : vector<1x32xf32> to vector<2x32xf32>
    %cst_62 = arith.constant 0.000000e+00 : f32
    %263 = vector.broadcast %cst_62 : f32 to vector<2x32xf32>
    %264 = arith.truncf %263 : vector<2x32xf32> to vector<2x32xbf16>
    %cst_63 = arith.constant dense<0.000000e+00> : vector<2x96xf32>
    %265 = tpu.matmul %264, %259, %cst_63 {dimension_numbers = #tpu.dot_dimension_numbers<[1], [0], [0], [1], [0, 0, 1, 1], [], []>} : vector<2x32xbf16>, vector<32x96xbf16>, vector<2x96xf32> -> vector<2x96xf32>
    %266 = vector.extract_strided_slice %258 {offsets = [0, 0], sizes = [2, 96], strides = [1, 1]} : vector<16x96xf32> to vector<2x96xf32>
    %267 = vector.extract_strided_slice %266 {offsets = [0, 0], sizes = [2, 32], strides = [1, 1]} : vector<2x96xf32> to vector<2x32xf32>
    %268 = vector.extract_strided_slice %265 {offsets = [0, 0], sizes = [2, 32], strides = [1, 1]} : vector<2x96xf32> to vector<2x32xf32>
    %269 = arith.addf %267, %268 : vector<2x32xf32>
    %270 = arith.negf %269 : vector<2x32xf32>
    %271 = math.exp %270 : vector<2x32xf32>
    %cst_64 = arith.constant 1.000000e+00 : f32
    %272 = vector.broadcast %cst_64 : f32 to vector<2x32xf32>
    %273 = arith.addf %272, %271 : vector<2x32xf32>
    %274 = arith.divf %272, %273 : vector<2x32xf32>
    %275 = vector.extract_strided_slice %266 {offsets = [0, 32], sizes = [2, 32], strides = [1, 1]} : vector<2x96xf32> to vector<2x32xf32>
    %276 = vector.extract_strided_slice %265 {offsets = [0, 32], sizes = [2, 32], strides = [1, 1]} : vector<2x96xf32> to vector<2x32xf32>
    %277 = arith.addf %275, %276 : vector<2x32xf32>
    %278 = arith.negf %277 : vector<2x32xf32>
    %279 = math.exp %278 : vector<2x32xf32>
    %cst_65 = arith.constant 1.000000e+00 : f32
    %280 = vector.broadcast %cst_65 : f32 to vector<2x32xf32>
    %281 = arith.addf %280, %279 : vector<2x32xf32>
    %282 = arith.divf %280, %281 : vector<2x32xf32>
    %283 = vector.extract_strided_slice %266 {offsets = [0, 64], sizes = [2, 32], strides = [1, 1]} : vector<2x96xf32> to vector<2x32xf32>
    %284 = vector.extract_strided_slice %265 {offsets = [0, 64], sizes = [2, 32], strides = [1, 1]} : vector<2x96xf32> to vector<2x32xf32>
    %285 = arith.addf %284, %262 : vector<2x32xf32>
    %286 = arith.mulf %274, %285 : vector<2x32xf32>
    %287 = arith.addf %283, %286 : vector<2x32xf32>
    %288 = math.tanh %287 : vector<2x32xf32>
    %cst_66 = arith.constant 1.000000e+00 : f32
    %289 = vector.broadcast %cst_66 : f32 to vector<2x32xf32>
    %290 = arith.subf %289, %282 : vector<2x32xf32>
    %291 = arith.mulf %290, %288 : vector<2x32xf32>
    %292 = arith.mulf %282, %263 : vector<2x32xf32>
    %293 = arith.addf %291, %292 : vector<2x32xf32>
    %c0_67 = arith.constant 0 : index
    %c0_68 = arith.constant 0 : index
    %294 = vector.load %arg25[%c0_67, %c0_68] : memref<16x32xf32, #tpu.memory_space<vmem>>, vector<2x32xf32>
    tpu.vector_store %arg25[%c0_67, %c0_68], %293 {strides = array<i32>} : memref<16x32xf32, #tpu.memory_space<vmem>>, vector<2x32xf32>,
    %295 = arith.truncf %293 : vector<2x32xf32> to vector<2x32xbf16>
    %cst_69 = arith.constant dense<0.000000e+00> : vector<2x96xf32>
    %296 = tpu.matmul %295, %259, %cst_69 {dimension_numbers = #tpu.dot_dimension_numbers<[1], [0], [0], [1], [0, 0, 1, 1], [], []>} : vector<2x32xbf16>, vector<32x96xbf16>, vector<2x96xf32> -> vector<2x96xf32>
    %297 = vector.extract_strided_slice %258 {offsets = [2, 0], sizes = [2, 96], strides = [1, 1]} : vector<16x96xf32> to vector<2x96xf32>
    %298 = vector.extract_strided_slice %297 {offsets = [0, 0], sizes = [2, 32], strides = [1, 1]} : vector<2x96xf32> to vector<2x32xf32>
    %299 = vector.extract_strided_slice %296 {offsets = [0, 0], sizes = [2, 32], strides = [1, 1]} : vector<2x96xf32> to vector<2x32xf32>
    %300 = arith.addf %298, %299 : vector<2x32xf32>
    %301 = arith.negf %300 : vector<2x32xf32>
    %302 = math.exp %301 : vector<2x32xf32>
    %cst_70 = arith.constant 1.000000e+00 : f32
    %303 = vector.broadcast %cst_70 : f32 to vector<2x32xf32>
    %304 = arith.addf %303, %302 : vector<2x32xf32>
    %305 = arith.divf %303, %304 : vector<2x32xf32>
    %306 = vector.extract_strided_slice %297 {offsets = [0, 32], sizes = [2, 32], strides = [1, 1]} : vector<2x96xf32> to vector<2x32xf32>
    %307 = vector.extract_strided_slice %296 {offsets = [0, 32], sizes = [2, 32], strides = [1, 1]} : vector<2x96xf32> to vector<2x32xf32>
    %308 = arith.addf %306, %307 : vector<2x32xf32>
    %309 = arith.negf %308 : vector<2x32xf32>
    %310 = math.exp %309 : vector<2x32xf32>
    %cst_71 = arith.constant 1.000000e+00 : f32
    %311 = vector.broadcast %cst_71 : f32 to vector<2x32xf32>
    %312 = arith.addf %311, %310 : vector<2x32xf32>
    %313 = arith.divf %311, %312 : vector<2x32xf32>
    %314 = vector.extract_strided_slice %297 {offsets = [0, 64], sizes = [2, 32], strides = [1, 1]} : vector<2x96xf32> to vector<2x32xf32>
    %315 = vector.extract_strided_slice %296 {offsets = [0, 64], sizes = [2, 32], strides = [1, 1]} : vector<2x96xf32> to vector<2x32xf32>
    %316 = arith.addf %315, %262 : vector<2x32xf32>
    %317 = arith.mulf %305, %316 : vector<2x32xf32>
    %318 = arith.addf %314, %317 : vector<2x32xf32>
    %319 = math.tanh %318 : vector<2x32xf32>
    %cst_72 = arith.constant 1.000000e+00 : f32
    %320 = vector.broadcast %cst_72 : f32 to vector<2x32xf32>
    %321 = arith.subf %320, %313 : vector<2x32xf32>
    %322 = arith.mulf %321, %319 : vector<2x32xf32>
    %323 = arith.mulf %313, %293 : vector<2x32xf32>
    %324 = arith.addf %322, %323 : vector<2x32xf32>
    %c2_73 = arith.constant 2 : index
    %c0_74 = arith.constant 0 : index
    %325 = vector.load %arg25[%c2_73, %c0_74] : memref<16x32xf32, #tpu.memory_space<vmem>>, vector<2x32xf32>
    tpu.vector_store %arg25[%c2_73, %c0_74], %324 {strides = array<i32>} : memref<16x32xf32, #tpu.memory_space<vmem>>, vector<2x32xf32>,
    %326 = arith.truncf %324 : vector<2x32xf32> to vector<2x32xbf16>
    %cst_75 = arith.constant dense<0.000000e+00> : vector<2x96xf32>
    %327 = tpu.matmul %326, %259, %cst_75 {dimension_numbers = #tpu.dot_dimension_numbers<[1], [0], [0], [1], [0, 0, 1, 1], [], []>} : vector<2x32xbf16>, vector<32x96xbf16>, vector<2x96xf32> -> vector<2x96xf32>
    %328 = vector.extract_strided_slice %258 {offsets = [4, 0], sizes = [2, 96], strides = [1, 1]} : vector<16x96xf32> to vector<2x96xf32>
    %329 = vector.extract_strided_slice %328 {offsets = [0, 0], sizes = [2, 32], strides = [1, 1]} : vector<2x96xf32> to vector<2x32xf32>
    %330 = vector.extract_strided_slice %327 {offsets = [0, 0], sizes = [2, 32], strides = [1, 1]} : vector<2x96xf32> to vector<2x32xf32>
    %331 = arith.addf %329, %330 : vector<2x32xf32>
    %332 = arith.negf %331 : vector<2x32xf32>
    %333 = math.exp %332 : vector<2x32xf32>
    %cst_76 = arith.constant 1.000000e+00 : f32
    %334 = vector.broadcast %cst_76 : f32 to vector<2x32xf32>
    %335 = arith.addf %334, %333 : vector<2x32xf32>
    %336 = arith.divf %334, %335 : vector<2x32xf32>
    %337 = vector.extract_strided_slice %328 {offsets = [0, 32], sizes = [2, 32], strides = [1, 1]} : vector<2x96xf32> to vector<2x32xf32>
    %338 = vector.extract_strided_slice %327 {offsets = [0, 32], sizes = [2, 32], strides = [1, 1]} : vector<2x96xf32> to vector<2x32xf32>
    %339 = arith.addf %337, %338 : vector<2x32xf32>
    %340 = arith.negf %339 : vector<2x32xf32>
    %341 = math.exp %340 : vector<2x32xf32>
    %cst_77 = arith.constant 1.000000e+00 : f32
    %342 = vector.broadcast %cst_77 : f32 to vector<2x32xf32>
    %343 = arith.addf %342, %341 : vector<2x32xf32>
    %344 = arith.divf %342, %343 : vector<2x32xf32>
    %345 = vector.extract_strided_slice %328 {offsets = [0, 64], sizes = [2, 32], strides = [1, 1]} : vector<2x96xf32> to vector<2x32xf32>
    %346 = vector.extract_strided_slice %327 {offsets = [0, 64], sizes = [2, 32], strides = [1, 1]} : vector<2x96xf32> to vector<2x32xf32>
    %347 = arith.addf %346, %262 : vector<2x32xf32>
    %348 = arith.mulf %336, %347 : vector<2x32xf32>
    %349 = arith.addf %345, %348 : vector<2x32xf32>
    %350 = math.tanh %349 : vector<2x32xf32>
    %cst_78 = arith.constant 1.000000e+00 : f32
    %351 = vector.broadcast %cst_78 : f32 to vector<2x32xf32>
    %352 = arith.subf %351, %344 : vector<2x32xf32>
    %353 = arith.mulf %352, %350 : vector<2x32xf32>
    %354 = arith.mulf %344, %324 : vector<2x32xf32>
    %355 = arith.addf %353, %354 : vector<2x32xf32>
    %c4_79 = arith.constant 4 : index
    %c0_80 = arith.constant 0 : index
    %356 = vector.load %arg25[%c4_79, %c0_80] : memref<16x32xf32, #tpu.memory_space<vmem>>, vector<2x32xf32>
    tpu.vector_store %arg25[%c4_79, %c0_80], %355 {strides = array<i32>} : memref<16x32xf32, #tpu.memory_space<vmem>>, vector<2x32xf32>,
    %357 = arith.truncf %355 : vector<2x32xf32> to vector<2x32xbf16>
    %cst_81 = arith.constant dense<0.000000e+00> : vector<2x96xf32>
    %358 = tpu.matmul %357, %259, %cst_81 {dimension_numbers = #tpu.dot_dimension_numbers<[1], [0], [0], [1], [0, 0, 1, 1], [], []>} : vector<2x32xbf16>, vector<32x96xbf16>, vector<2x96xf32> -> vector<2x96xf32>
    %359 = vector.extract_strided_slice %258 {offsets = [6, 0], sizes = [2, 96], strides = [1, 1]} : vector<16x96xf32> to vector<2x96xf32>
    %360 = vector.extract_strided_slice %359 {offsets = [0, 0], sizes = [2, 32], strides = [1, 1]} : vector<2x96xf32> to vector<2x32xf32>
    %361 = vector.extract_strided_slice %358 {offsets = [0, 0], sizes = [2, 32], strides = [1, 1]} : vector<2x96xf32> to vector<2x32xf32>
    %362 = arith.addf %360, %361 : vector<2x32xf32>
    %363 = arith.negf %362 : vector<2x32xf32>
    %364 = math.exp %363 : vector<2x32xf32>
    %cst_82 = arith.constant 1.000000e+00 : f32
    %365 = vector.broadcast %cst_82 : f32 to vector<2x32xf32>
    %366 = arith.addf %365, %364 : vector<2x32xf32>
    %367 = arith.divf %365, %366 : vector<2x32xf32>
    %368 = vector.extract_strided_slice %359 {offsets = [0, 32], sizes = [2, 32], strides = [1, 1]} : vector<2x96xf32> to vector<2x32xf32>
    %369 = vector.extract_strided_slice %358 {offsets = [0, 32], sizes = [2, 32], strides = [1, 1]} : vector<2x96xf32> to vector<2x32xf32>
    %370 = arith.addf %368, %369 : vector<2x32xf32>
    %371 = arith.negf %370 : vector<2x32xf32>
    %372 = math.exp %371 : vector<2x32xf32>
    %cst_83 = arith.constant 1.000000e+00 : f32
    %373 = vector.broadcast %cst_83 : f32 to vector<2x32xf32>
    %374 = arith.addf %373, %372 : vector<2x32xf32>
    %375 = arith.divf %373, %374 : vector<2x32xf32>
    %376 = vector.extract_strided_slice %359 {offsets = [0, 64], sizes = [2, 32], strides = [1, 1]} : vector<2x96xf32> to vector<2x32xf32>
    %377 = vector.extract_strided_slice %358 {offsets = [0, 64], sizes = [2, 32], strides = [1, 1]} : vector<2x96xf32> to vector<2x32xf32>
    %378 = arith.addf %377, %262 : vector<2x32xf32>
    %379 = arith.mulf %367, %378 : vector<2x32xf32>
    %380 = arith.addf %376, %379 : vector<2x32xf32>
    %381 = math.tanh %380 : vector<2x32xf32>
    %cst_84 = arith.constant 1.000000e+00 : f32
    %382 = vector.broadcast %cst_84 : f32 to vector<2x32xf32>
    %383 = arith.subf %382, %375 : vector<2x32xf32>
    %384 = arith.mulf %383, %381 : vector<2x32xf32>
    %385 = arith.mulf %375, %355 : vector<2x32xf32>
    %386 = arith.addf %384, %385 : vector<2x32xf32>
    %c6_85 = arith.constant 6 : index
    %c0_86 = arith.constant 0 : index
    %387 = vector.load %arg25[%c6_85, %c0_86] : memref<16x32xf32, #tpu.memory_space<vmem>>, vector<2x32xf32>
    tpu.vector_store %arg25[%c6_85, %c0_86], %386 {strides = array<i32>} : memref<16x32xf32, #tpu.memory_space<vmem>>, vector<2x32xf32>,
    %388 = arith.truncf %386 : vector<2x32xf32> to vector<2x32xbf16>
    %cst_87 = arith.constant dense<0.000000e+00> : vector<2x96xf32>
    %389 = tpu.matmul %388, %259, %cst_87 {dimension_numbers = #tpu.dot_dimension_numbers<[1], [0], [0], [1], [0, 0, 1, 1], [], []>} : vector<2x32xbf16>, vector<32x96xbf16>, vector<2x96xf32> -> vector<2x96xf32>
    %390 = vector.extract_strided_slice %258 {offsets = [8, 0], sizes = [2, 96], strides = [1, 1]} : vector<16x96xf32> to vector<2x96xf32>
    %391 = vector.extract_strided_slice %390 {offsets = [0, 0], sizes = [2, 32], strides = [1, 1]} : vector<2x96xf32> to vector<2x32xf32>
    %392 = vector.extract_strided_slice %389 {offsets = [0, 0], sizes = [2, 32], strides = [1, 1]} : vector<2x96xf32> to vector<2x32xf32>
    %393 = arith.addf %391, %392 : vector<2x32xf32>
    %394 = arith.negf %393 : vector<2x32xf32>
    %395 = math.exp %394 : vector<2x32xf32>
    %cst_88 = arith.constant 1.000000e+00 : f32
    %396 = vector.broadcast %cst_88 : f32 to vector<2x32xf32>
    %397 = arith.addf %396, %395 : vector<2x32xf32>
    %398 = arith.divf %396, %397 : vector<2x32xf32>
    %399 = vector.extract_strided_slice %390 {offsets = [0, 32], sizes = [2, 32], strides = [1, 1]} : vector<2x96xf32> to vector<2x32xf32>
    %400 = vector.extract_strided_slice %389 {offsets = [0, 32], sizes = [2, 32], strides = [1, 1]} : vector<2x96xf32> to vector<2x32xf32>
    %401 = arith.addf %399, %400 : vector<2x32xf32>
    %402 = arith.negf %401 : vector<2x32xf32>
    %403 = math.exp %402 : vector<2x32xf32>
    %cst_89 = arith.constant 1.000000e+00 : f32
    %404 = vector.broadcast %cst_89 : f32 to vector<2x32xf32>
    %405 = arith.addf %404, %403 : vector<2x32xf32>
    %406 = arith.divf %404, %405 : vector<2x32xf32>
    %407 = vector.extract_strided_slice %390 {offsets = [0, 64], sizes = [2, 32], strides = [1, 1]} : vector<2x96xf32> to vector<2x32xf32>
    %408 = vector.extract_strided_slice %389 {offsets = [0, 64], sizes = [2, 32], strides = [1, 1]} : vector<2x96xf32> to vector<2x32xf32>
    %409 = arith.addf %408, %262 : vector<2x32xf32>
    %410 = arith.mulf %398, %409 : vector<2x32xf32>
    %411 = arith.addf %407, %410 : vector<2x32xf32>
    %412 = math.tanh %411 : vector<2x32xf32>
    %cst_90 = arith.constant 1.000000e+00 : f32
    %413 = vector.broadcast %cst_90 : f32 to vector<2x32xf32>
    %414 = arith.subf %413, %406 : vector<2x32xf32>
    %415 = arith.mulf %414, %412 : vector<2x32xf32>
    %416 = arith.mulf %406, %386 : vector<2x32xf32>
    %417 = arith.addf %415, %416 : vector<2x32xf32>
    %c8_91 = arith.constant 8 : index
    %c0_92 = arith.constant 0 : index
    %418 = vector.load %arg25[%c8_91, %c0_92] : memref<16x32xf32, #tpu.memory_space<vmem>>, vector<2x32xf32>
    tpu.vector_store %arg25[%c8_91, %c0_92], %417 {strides = array<i32>} : memref<16x32xf32, #tpu.memory_space<vmem>>, vector<2x32xf32>,
    %419 = arith.truncf %417 : vector<2x32xf32> to vector<2x32xbf16>
    %cst_93 = arith.constant dense<0.000000e+00> : vector<2x96xf32>
    %420 = tpu.matmul %419, %259, %cst_93 {dimension_numbers = #tpu.dot_dimension_numbers<[1], [0], [0], [1], [0, 0, 1, 1], [], []>} : vector<2x32xbf16>, vector<32x96xbf16>, vector<2x96xf32> -> vector<2x96xf32>
    %421 = vector.extract_strided_slice %258 {offsets = [10, 0], sizes = [2, 96], strides = [1, 1]} : vector<16x96xf32> to vector<2x96xf32>
    %422 = vector.extract_strided_slice %421 {offsets = [0, 0], sizes = [2, 32], strides = [1, 1]} : vector<2x96xf32> to vector<2x32xf32>
    %423 = vector.extract_strided_slice %420 {offsets = [0, 0], sizes = [2, 32], strides = [1, 1]} : vector<2x96xf32> to vector<2x32xf32>
    %424 = arith.addf %422, %423 : vector<2x32xf32>
    %425 = arith.negf %424 : vector<2x32xf32>
    %426 = math.exp %425 : vector<2x32xf32>
    %cst_94 = arith.constant 1.000000e+00 : f32
    %427 = vector.broadcast %cst_94 : f32 to vector<2x32xf32>
    %428 = arith.addf %427, %426 : vector<2x32xf32>
    %429 = arith.divf %427, %428 : vector<2x32xf32>
    %430 = vector.extract_strided_slice %421 {offsets = [0, 32], sizes = [2, 32], strides = [1, 1]} : vector<2x96xf32> to vector<2x32xf32>
    %431 = vector.extract_strided_slice %420 {offsets = [0, 32], sizes = [2, 32], strides = [1, 1]} : vector<2x96xf32> to vector<2x32xf32>
    %432 = arith.addf %430, %431 : vector<2x32xf32>
    %433 = arith.negf %432 : vector<2x32xf32>
    %434 = math.exp %433 : vector<2x32xf32>
    %cst_95 = arith.constant 1.000000e+00 : f32
    %435 = vector.broadcast %cst_95 : f32 to vector<2x32xf32>
    %436 = arith.addf %435, %434 : vector<2x32xf32>
    %437 = arith.divf %435, %436 : vector<2x32xf32>
    %438 = vector.extract_strided_slice %421 {offsets = [0, 64], sizes = [2, 32], strides = [1, 1]} : vector<2x96xf32> to vector<2x32xf32>
    %439 = vector.extract_strided_slice %420 {offsets = [0, 64], sizes = [2, 32], strides = [1, 1]} : vector<2x96xf32> to vector<2x32xf32>
    %440 = arith.addf %439, %262 : vector<2x32xf32>
    %441 = arith.mulf %429, %440 : vector<2x32xf32>
    %442 = arith.addf %438, %441 : vector<2x32xf32>
    %443 = math.tanh %442 : vector<2x32xf32>
    %cst_96 = arith.constant 1.000000e+00 : f32
    %444 = vector.broadcast %cst_96 : f32 to vector<2x32xf32>
    %445 = arith.subf %444, %437 : vector<2x32xf32>
    %446 = arith.mulf %445, %443 : vector<2x32xf32>
    %447 = arith.mulf %437, %417 : vector<2x32xf32>
    %448 = arith.addf %446, %447 : vector<2x32xf32>
    %c10_97 = arith.constant 10 : index
    %c0_98 = arith.constant 0 : index
    %449 = vector.load %arg25[%c10_97, %c0_98] : memref<16x32xf32, #tpu.memory_space<vmem>>, vector<2x32xf32>
    tpu.vector_store %arg25[%c10_97, %c0_98], %448 {strides = array<i32>} : memref<16x32xf32, #tpu.memory_space<vmem>>, vector<2x32xf32>,
    %450 = arith.truncf %448 : vector<2x32xf32> to vector<2x32xbf16>
    %cst_99 = arith.constant dense<0.000000e+00> : vector<2x96xf32>
    %451 = tpu.matmul %450, %259, %cst_99 {dimension_numbers = #tpu.dot_dimension_numbers<[1], [0], [0], [1], [0, 0, 1, 1], [], []>} : vector<2x32xbf16>, vector<32x96xbf16>, vector<2x96xf32> -> vector<2x96xf32>
    %452 = vector.extract_strided_slice %258 {offsets = [12, 0], sizes = [2, 96], strides = [1, 1]} : vector<16x96xf32> to vector<2x96xf32>
    %453 = vector.extract_strided_slice %452 {offsets = [0, 0], sizes = [2, 32], strides = [1, 1]} : vector<2x96xf32> to vector<2x32xf32>
    %454 = vector.extract_strided_slice %451 {offsets = [0, 0], sizes = [2, 32], strides = [1, 1]} : vector<2x96xf32> to vector<2x32xf32>
    %455 = arith.addf %453, %454 : vector<2x32xf32>
    %456 = arith.negf %455 : vector<2x32xf32>
    %457 = math.exp %456 : vector<2x32xf32>
    %cst_100 = arith.constant 1.000000e+00 : f32
    %458 = vector.broadcast %cst_100 : f32 to vector<2x32xf32>
    %459 = arith.addf %458, %457 : vector<2x32xf32>
    %460 = arith.divf %458, %459 : vector<2x32xf32>
    %461 = vector.extract_strided_slice %452 {offsets = [0, 32], sizes = [2, 32], strides = [1, 1]} : vector<2x96xf32> to vector<2x32xf32>
    %462 = vector.extract_strided_slice %451 {offsets = [0, 32], sizes = [2, 32], strides = [1, 1]} : vector<2x96xf32> to vector<2x32xf32>
    %463 = arith.addf %461, %462 : vector<2x32xf32>
    %464 = arith.negf %463 : vector<2x32xf32>
    %465 = math.exp %464 : vector<2x32xf32>
    %cst_101 = arith.constant 1.000000e+00 : f32
    %466 = vector.broadcast %cst_101 : f32 to vector<2x32xf32>
    %467 = arith.addf %466, %465 : vector<2x32xf32>
    %468 = arith.divf %466, %467 : vector<2x32xf32>
    %469 = vector.extract_strided_slice %452 {offsets = [0, 64], sizes = [2, 32], strides = [1, 1]} : vector<2x96xf32> to vector<2x32xf32>
    %470 = vector.extract_strided_slice %451 {offsets = [0, 64], sizes = [2, 32], strides = [1, 1]} : vector<2x96xf32> to vector<2x32xf32>
    %471 = arith.addf %470, %262 : vector<2x32xf32>
    %472 = arith.mulf %460, %471 : vector<2x32xf32>
    %473 = arith.addf %469, %472 : vector<2x32xf32>
    %474 = math.tanh %473 : vector<2x32xf32>
    %cst_102 = arith.constant 1.000000e+00 : f32
    %475 = vector.broadcast %cst_102 : f32 to vector<2x32xf32>
    %476 = arith.subf %475, %468 : vector<2x32xf32>
    %477 = arith.mulf %476, %474 : vector<2x32xf32>
    %478 = arith.mulf %468, %448 : vector<2x32xf32>
    %479 = arith.addf %477, %478 : vector<2x32xf32>
    %c12_103 = arith.constant 12 : index
    %c0_104 = arith.constant 0 : index
    %480 = vector.load %arg25[%c12_103, %c0_104] : memref<16x32xf32, #tpu.memory_space<vmem>>, vector<2x32xf32>
    tpu.vector_store %arg25[%c12_103, %c0_104], %479 {strides = array<i32>} : memref<16x32xf32, #tpu.memory_space<vmem>>, vector<2x32xf32>,
    %481 = arith.truncf %479 : vector<2x32xf32> to vector<2x32xbf16>
    %cst_105 = arith.constant dense<0.000000e+00> : vector<2x96xf32>
    %482 = tpu.matmul %481, %259, %cst_105 {dimension_numbers = #tpu.dot_dimension_numbers<[1], [0], [0], [1], [0, 0, 1, 1], [], []>} : vector<2x32xbf16>, vector<32x96xbf16>, vector<2x96xf32> -> vector<2x96xf32>
    %483 = vector.extract_strided_slice %258 {offsets = [14, 0], sizes = [2, 96], strides = [1, 1]} : vector<16x96xf32> to vector<2x96xf32>
    %484 = vector.extract_strided_slice %483 {offsets = [0, 0], sizes = [2, 32], strides = [1, 1]} : vector<2x96xf32> to vector<2x32xf32>
    %485 = vector.extract_strided_slice %482 {offsets = [0, 0], sizes = [2, 32], strides = [1, 1]} : vector<2x96xf32> to vector<2x32xf32>
    %486 = arith.addf %484, %485 : vector<2x32xf32>
    %487 = arith.negf %486 : vector<2x32xf32>
    %488 = math.exp %487 : vector<2x32xf32>
    %cst_106 = arith.constant 1.000000e+00 : f32
    %489 = vector.broadcast %cst_106 : f32 to vector<2x32xf32>
    %490 = arith.addf %489, %488 : vector<2x32xf32>
    %491 = arith.divf %489, %490 : vector<2x32xf32>
    %492 = vector.extract_strided_slice %483 {offsets = [0, 32], sizes = [2, 32], strides = [1, 1]} : vector<2x96xf32> to vector<2x32xf32>
    %493 = vector.extract_strided_slice %482 {offsets = [0, 32], sizes = [2, 32], strides = [1, 1]} : vector<2x96xf32> to vector<2x32xf32>
    %494 = arith.addf %492, %493 : vector<2x32xf32>
    %495 = arith.negf %494 : vector<2x32xf32>
    %496 = math.exp %495 : vector<2x32xf32>
    %cst_107 = arith.constant 1.000000e+00 : f32
    %497 = vector.broadcast %cst_107 : f32 to vector<2x32xf32>
    %498 = arith.addf %497, %496 : vector<2x32xf32>
    %499 = arith.divf %497, %498 : vector<2x32xf32>
    %500 = vector.extract_strided_slice %483 {offsets = [0, 64], sizes = [2, 32], strides = [1, 1]} : vector<2x96xf32> to vector<2x32xf32>
    %501 = vector.extract_strided_slice %482 {offsets = [0, 64], sizes = [2, 32], strides = [1, 1]} : vector<2x96xf32> to vector<2x32xf32>
    %502 = arith.addf %501, %262 : vector<2x32xf32>
    %503 = arith.mulf %491, %502 : vector<2x32xf32>
    %504 = arith.addf %500, %503 : vector<2x32xf32>
    %505 = math.tanh %504 : vector<2x32xf32>
    %cst_108 = arith.constant 1.000000e+00 : f32
    %506 = vector.broadcast %cst_108 : f32 to vector<2x32xf32>
    %507 = arith.subf %506, %499 : vector<2x32xf32>
    %508 = arith.mulf %507, %505 : vector<2x32xf32>
    %509 = arith.mulf %499, %479 : vector<2x32xf32>
    %510 = arith.addf %508, %509 : vector<2x32xf32>
    %c14_109 = arith.constant 14 : index
    %c0_110 = arith.constant 0 : index
    %511 = vector.load %arg25[%c14_109, %c0_110] : memref<16x32xf32, #tpu.memory_space<vmem>>, vector<2x32xf32>
    tpu.vector_store %arg25[%c14_109, %c0_110], %510 {strides = array<i32>} : memref<16x32xf32, #tpu.memory_space<vmem>>, vector<2x32xf32>,
    %c0_111 = arith.constant 0 : index
    %c0_112 = arith.constant 0 : index
    %512 = vector.load %arg25[%c0_111, %c0_112] : memref<16x32xf32, #tpu.memory_space<vmem>>, vector<16x32xf32>
    %c0_113 = arith.constant 0 : index
    %c0_114 = arith.constant 0 : index
    %513 = vector.load %arg9[%c0_113, %c0_114] : memref<1x32xf32, #tpu.memory_space<vmem>>, vector<1x32xf32>
    %c0_115 = arith.constant 0 : index
    %c0_116 = arith.constant 0 : index
    %514 = vector.load %arg10[%c0_115, %c0_116] : memref<1x32xf32, #tpu.memory_space<vmem>>, vector<1x32xf32>
    %cst_117 = arith.constant dense<0.000000e+00> : vector<16xf32>
    %515 = vector.multi_reduction <add>, %512, %cst_117 [1] : vector<16x32xf32> to vector<16xf32>
    %516 = vector.shape_cast %515 : vector<16xf32> to vector<16x1xf32>
    %cst_118 = arith.constant 3.200000e+01 : f32
    %517 = vector.broadcast %cst_118 : f32 to vector<16x1xf32>
    %518 = arith.divf %516, %517 : vector<16x1xf32>
    %519 = vector.broadcast %518 : vector<16x1xf32> to vector<16x32xf32>
    %520 = arith.subf %512, %519 : vector<16x32xf32>
    %521 = arith.mulf %520, %520 : vector<16x32xf32>
    %cst_119 = arith.constant dense<0.000000e+00> : vector<16xf32>
    %522 = vector.multi_reduction <add>, %521, %cst_119 [1] : vector<16x32xf32> to vector<16xf32>
    %523 = vector.shape_cast %522 : vector<16xf32> to vector<16x1xf32>
    %cst_120 = arith.constant 3.200000e+01 : f32
    %524 = vector.broadcast %cst_120 : f32 to vector<16x1xf32>
    %525 = arith.divf %523, %524 : vector<16x1xf32>
    %526 = vector.broadcast %518 : vector<16x1xf32> to vector<16x32xf32>
    %527 = arith.subf %512, %526 : vector<16x32xf32>
    %cst_121 = arith.constant 9.99999974E-6 : f32
    %528 = vector.broadcast %cst_121 : f32 to vector<16x1xf32>
    %529 = arith.addf %525, %528 : vector<16x1xf32>
    %530 = math.rsqrt %529 : vector<16x1xf32>
    %531 = vector.broadcast %530 : vector<16x1xf32> to vector<16x32xf32>
    %532 = arith.mulf %527, %531 : vector<16x32xf32>
    %533 = vector.broadcast %513 : vector<1x32xf32> to vector<16x32xf32>
    %534 = arith.mulf %532, %533 : vector<16x32xf32>
    %535 = vector.broadcast %514 : vector<1x32xf32> to vector<16x32xf32>
    %536 = arith.addf %534, %535 : vector<16x32xf32>
    %537 = arith.truncf %536 : vector<16x32xf32> to vector<16x32xbf16>
    %c0_122 = arith.constant 0 : index
    %c0_123 = arith.constant 0 : index
    %538 = vector.load %arg11[%c0_122, %c0_123] : memref<32x96xbf16, #tpu.memory_space<vmem>>, vector<32x96xbf16>
    %cst_124 = arith.constant dense<0.000000e+00> : vector<16x96xf32>
    %539 = tpu.matmul %537, %538, %cst_124 {dimension_numbers = #tpu.dot_dimension_numbers<[1], [0], [0], [1], [0, 0, 1, 1], [], []>} : vector<16x32xbf16>, vector<32x96xbf16>, vector<16x96xf32> -> vector<16x96xf32>
    %c0_125 = arith.constant 0 : index
    %c0_126 = arith.constant 0 : index
    %540 = vector.load %arg13[%c0_125, %c0_126] : memref<1x96xf32, #tpu.memory_space<vmem>>, vector<1x96xf32>
    %541 = vector.broadcast %540 : vector<1x96xf32> to vector<16x96xf32>
    %542 = arith.addf %539, %541 : vector<16x96xf32>
    %c0_127 = arith.constant 0 : index
    %c0_128 = arith.constant 0 : index
    %543 = vector.load %arg12[%c0_127, %c0_128] : memref<32x96xbf16, #tpu.memory_space<vmem>>, vector<32x96xbf16>
    %c0_129 = arith.constant 0 : index
    %c0_130 = arith.constant 0 : index
    %544 = vector.load %arg14[%c0_129, %c0_130] : memref<1x32xf32, #tpu.memory_space<vmem>>, vector<1x32xf32>
    %545 = vector.shape_cast %544 : vector<1x32xf32> to vector<1x32xf32>
    %546 = vector.broadcast %545 : vector<1x32xf32> to vector<2x32xf32>
    %cst_131 = arith.constant 0.000000e+00 : f32
    %547 = vector.broadcast %cst_131 : f32 to vector<2x32xf32>
    %548 = arith.truncf %547 : vector<2x32xf32> to vector<2x32xbf16>
    %cst_132 = arith.constant dense<0.000000e+00> : vector<2x96xf32>
    %549 = tpu.matmul %548, %543, %cst_132 {dimension_numbers = #tpu.dot_dimension_numbers<[1], [0], [0], [1], [0, 0, 1, 1], [], []>} : vector<2x32xbf16>, vector<32x96xbf16>, vector<2x96xf32> -> vector<2x96xf32>
    %550 = vector.extract_strided_slice %542 {offsets = [0, 0], sizes = [2, 96], strides = [1, 1]} : vector<16x96xf32> to vector<2x96xf32>
    %551 = vector.extract_strided_slice %550 {offsets = [0, 0], sizes = [2, 32], strides = [1, 1]} : vector<2x96xf32> to vector<2x32xf32>
    %552 = vector.extract_strided_slice %549 {offsets = [0, 0], sizes = [2, 32], strides = [1, 1]} : vector<2x96xf32> to vector<2x32xf32>
    %553 = arith.addf %551, %552 : vector<2x32xf32>
    %554 = arith.negf %553 : vector<2x32xf32>
    %555 = math.exp %554 : vector<2x32xf32>
    %cst_133 = arith.constant 1.000000e+00 : f32
    %556 = vector.broadcast %cst_133 : f32 to vector<2x32xf32>
    %557 = arith.addf %556, %555 : vector<2x32xf32>
    %558 = arith.divf %556, %557 : vector<2x32xf32>
    %559 = vector.extract_strided_slice %550 {offsets = [0, 32], sizes = [2, 32], strides = [1, 1]} : vector<2x96xf32> to vector<2x32xf32>
    %560 = vector.extract_strided_slice %549 {offsets = [0, 32], sizes = [2, 32], strides = [1, 1]} : vector<2x96xf32> to vector<2x32xf32>
    %561 = arith.addf %559, %560 : vector<2x32xf32>
    %562 = arith.negf %561 : vector<2x32xf32>
    %563 = math.exp %562 : vector<2x32xf32>
    %cst_134 = arith.constant 1.000000e+00 : f32
    %564 = vector.broadcast %cst_134 : f32 to vector<2x32xf32>
    %565 = arith.addf %564, %563 : vector<2x32xf32>
    %566 = arith.divf %564, %565 : vector<2x32xf32>
    %567 = vector.extract_strided_slice %550 {offsets = [0, 64], sizes = [2, 32], strides = [1, 1]} : vector<2x96xf32> to vector<2x32xf32>
    %568 = vector.extract_strided_slice %549 {offsets = [0, 64], sizes = [2, 32], strides = [1, 1]} : vector<2x96xf32> to vector<2x32xf32>
    %569 = arith.addf %568, %546 : vector<2x32xf32>
    %570 = arith.mulf %558, %569 : vector<2x32xf32>
    %571 = arith.addf %567, %570 : vector<2x32xf32>
    %572 = math.tanh %571 : vector<2x32xf32>
    %cst_135 = arith.constant 1.000000e+00 : f32
    %573 = vector.broadcast %cst_135 : f32 to vector<2x32xf32>
    %574 = arith.subf %573, %566 : vector<2x32xf32>
    %575 = arith.mulf %574, %572 : vector<2x32xf32>
    %576 = arith.mulf %566, %547 : vector<2x32xf32>
    %577 = arith.addf %575, %576 : vector<2x32xf32>
    %c0_136 = arith.constant 0 : index
    %c0_137 = arith.constant 0 : index
    %578 = vector.load %arg24[%c0_136, %c0_137] : memref<16x32xf32, #tpu.memory_space<vmem>>, vector<2x32xf32>
    tpu.vector_store %arg24[%c0_136, %c0_137], %577 {strides = array<i32>} : memref<16x32xf32, #tpu.memory_space<vmem>>, vector<2x32xf32>,
    %579 = arith.truncf %577 : vector<2x32xf32> to vector<2x32xbf16>
    %cst_138 = arith.constant dense<0.000000e+00> : vector<2x96xf32>
    %580 = tpu.matmul %579, %543, %cst_138 {dimension_numbers = #tpu.dot_dimension_numbers<[1], [0], [0], [1], [0, 0, 1, 1], [], []>} : vector<2x32xbf16>, vector<32x96xbf16>, vector<2x96xf32> -> vector<2x96xf32>
    %581 = vector.extract_strided_slice %542 {offsets = [2, 0], sizes = [2, 96], strides = [1, 1]} : vector<16x96xf32> to vector<2x96xf32>
    %582 = vector.extract_strided_slice %581 {offsets = [0, 0], sizes = [2, 32], strides = [1, 1]} : vector<2x96xf32> to vector<2x32xf32>
    %583 = vector.extract_strided_slice %580 {offsets = [0, 0], sizes = [2, 32], strides = [1, 1]} : vector<2x96xf32> to vector<2x32xf32>
    %584 = arith.addf %582, %583 : vector<2x32xf32>
    %585 = arith.negf %584 : vector<2x32xf32>
    %586 = math.exp %585 : vector<2x32xf32>
    %cst_139 = arith.constant 1.000000e+00 : f32
    %587 = vector.broadcast %cst_139 : f32 to vector<2x32xf32>
    %588 = arith.addf %587, %586 : vector<2x32xf32>
    %589 = arith.divf %587, %588 : vector<2x32xf32>
    %590 = vector.extract_strided_slice %581 {offsets = [0, 32], sizes = [2, 32], strides = [1, 1]} : vector<2x96xf32> to vector<2x32xf32>
    %591 = vector.extract_strided_slice %580 {offsets = [0, 32], sizes = [2, 32], strides = [1, 1]} : vector<2x96xf32> to vector<2x32xf32>
    %592 = arith.addf %590, %591 : vector<2x32xf32>
    %593 = arith.negf %592 : vector<2x32xf32>
    %594 = math.exp %593 : vector<2x32xf32>
    %cst_140 = arith.constant 1.000000e+00 : f32
    %595 = vector.broadcast %cst_140 : f32 to vector<2x32xf32>
    %596 = arith.addf %595, %594 : vector<2x32xf32>
    %597 = arith.divf %595, %596 : vector<2x32xf32>
    %598 = vector.extract_strided_slice %581 {offsets = [0, 64], sizes = [2, 32], strides = [1, 1]} : vector<2x96xf32> to vector<2x32xf32>
    %599 = vector.extract_strided_slice %580 {offsets = [0, 64], sizes = [2, 32], strides = [1, 1]} : vector<2x96xf32> to vector<2x32xf32>
    %600 = arith.addf %599, %546 : vector<2x32xf32>
    %601 = arith.mulf %589, %600 : vector<2x32xf32>
    %602 = arith.addf %598, %601 : vector<2x32xf32>
    %603 = math.tanh %602 : vector<2x32xf32>
    %cst_141 = arith.constant 1.000000e+00 : f32
    %604 = vector.broadcast %cst_141 : f32 to vector<2x32xf32>
    %605 = arith.subf %604, %597 : vector<2x32xf32>
    %606 = arith.mulf %605, %603 : vector<2x32xf32>
    %607 = arith.mulf %597, %577 : vector<2x32xf32>
    %608 = arith.addf %606, %607 : vector<2x32xf32>
    %c2_142 = arith.constant 2 : index
    %c0_143 = arith.constant 0 : index
    %609 = vector.load %arg24[%c2_142, %c0_143] : memref<16x32xf32, #tpu.memory_space<vmem>>, vector<2x32xf32>
    tpu.vector_store %arg24[%c2_142, %c0_143], %608 {strides = array<i32>} : memref<16x32xf32, #tpu.memory_space<vmem>>, vector<2x32xf32>,
    %610 = arith.truncf %608 : vector<2x32xf32> to vector<2x32xbf16>
    %cst_144 = arith.constant dense<0.000000e+00> : vector<2x96xf32>
    %611 = tpu.matmul %610, %543, %cst_144 {dimension_numbers = #tpu.dot_dimension_numbers<[1], [0], [0], [1], [0, 0, 1, 1], [], []>} : vector<2x32xbf16>, vector<32x96xbf16>, vector<2x96xf32> -> vector<2x96xf32>
    %612 = vector.extract_strided_slice %542 {offsets = [4, 0], sizes = [2, 96], strides = [1, 1]} : vector<16x96xf32> to vector<2x96xf32>
    %613 = vector.extract_strided_slice %612 {offsets = [0, 0], sizes = [2, 32], strides = [1, 1]} : vector<2x96xf32> to vector<2x32xf32>
    %614 = vector.extract_strided_slice %611 {offsets = [0, 0], sizes = [2, 32], strides = [1, 1]} : vector<2x96xf32> to vector<2x32xf32>
    %615 = arith.addf %613, %614 : vector<2x32xf32>
    %616 = arith.negf %615 : vector<2x32xf32>
    %617 = math.exp %616 : vector<2x32xf32>
    %cst_145 = arith.constant 1.000000e+00 : f32
    %618 = vector.broadcast %cst_145 : f32 to vector<2x32xf32>
    %619 = arith.addf %618, %617 : vector<2x32xf32>
    %620 = arith.divf %618, %619 : vector<2x32xf32>
    %621 = vector.extract_strided_slice %612 {offsets = [0, 32], sizes = [2, 32], strides = [1, 1]} : vector<2x96xf32> to vector<2x32xf32>
    %622 = vector.extract_strided_slice %611 {offsets = [0, 32], sizes = [2, 32], strides = [1, 1]} : vector<2x96xf32> to vector<2x32xf32>
    %623 = arith.addf %621, %622 : vector<2x32xf32>
    %624 = arith.negf %623 : vector<2x32xf32>
    %625 = math.exp %624 : vector<2x32xf32>
    %cst_146 = arith.constant 1.000000e+00 : f32
    %626 = vector.broadcast %cst_146 : f32 to vector<2x32xf32>
    %627 = arith.addf %626, %625 : vector<2x32xf32>
    %628 = arith.divf %626, %627 : vector<2x32xf32>
    %629 = vector.extract_strided_slice %612 {offsets = [0, 64], sizes = [2, 32], strides = [1, 1]} : vector<2x96xf32> to vector<2x32xf32>
    %630 = vector.extract_strided_slice %611 {offsets = [0, 64], sizes = [2, 32], strides = [1, 1]} : vector<2x96xf32> to vector<2x32xf32>
    %631 = arith.addf %630, %546 : vector<2x32xf32>
    %632 = arith.mulf %620, %631 : vector<2x32xf32>
    %633 = arith.addf %629, %632 : vector<2x32xf32>
    %634 = math.tanh %633 : vector<2x32xf32>
    %cst_147 = arith.constant 1.000000e+00 : f32
    %635 = vector.broadcast %cst_147 : f32 to vector<2x32xf32>
    %636 = arith.subf %635, %628 : vector<2x32xf32>
    %637 = arith.mulf %636, %634 : vector<2x32xf32>
    %638 = arith.mulf %628, %608 : vector<2x32xf32>
    %639 = arith.addf %637, %638 : vector<2x32xf32>
    %c4_148 = arith.constant 4 : index
    %c0_149 = arith.constant 0 : index
    %640 = vector.load %arg24[%c4_148, %c0_149] : memref<16x32xf32, #tpu.memory_space<vmem>>, vector<2x32xf32>
    tpu.vector_store %arg24[%c4_148, %c0_149], %639 {strides = array<i32>} : memref<16x32xf32, #tpu.memory_space<vmem>>, vector<2x32xf32>,
    %641 = arith.truncf %639 : vector<2x32xf32> to vector<2x32xbf16>
    %cst_150 = arith.constant dense<0.000000e+00> : vector<2x96xf32>
    %642 = tpu.matmul %641, %543, %cst_150 {dimension_numbers = #tpu.dot_dimension_numbers<[1], [0], [0], [1], [0, 0, 1, 1], [], []>} : vector<2x32xbf16>, vector<32x96xbf16>, vector<2x96xf32> -> vector<2x96xf32>
    %643 = vector.extract_strided_slice %542 {offsets = [6, 0], sizes = [2, 96], strides = [1, 1]} : vector<16x96xf32> to vector<2x96xf32>
    %644 = vector.extract_strided_slice %643 {offsets = [0, 0], sizes = [2, 32], strides = [1, 1]} : vector<2x96xf32> to vector<2x32xf32>
    %645 = vector.extract_strided_slice %642 {offsets = [0, 0], sizes = [2, 32], strides = [1, 1]} : vector<2x96xf32> to vector<2x32xf32>
    %646 = arith.addf %644, %645 : vector<2x32xf32>
    %647 = arith.negf %646 : vector<2x32xf32>
    %648 = math.exp %647 : vector<2x32xf32>
    %cst_151 = arith.constant 1.000000e+00 : f32
    %649 = vector.broadcast %cst_151 : f32 to vector<2x32xf32>
    %650 = arith.addf %649, %648 : vector<2x32xf32>
    %651 = arith.divf %649, %650 : vector<2x32xf32>
    %652 = vector.extract_strided_slice %643 {offsets = [0, 32], sizes = [2, 32], strides = [1, 1]} : vector<2x96xf32> to vector<2x32xf32>
    %653 = vector.extract_strided_slice %642 {offsets = [0, 32], sizes = [2, 32], strides = [1, 1]} : vector<2x96xf32> to vector<2x32xf32>
    %654 = arith.addf %652, %653 : vector<2x32xf32>
    %655 = arith.negf %654 : vector<2x32xf32>
    %656 = math.exp %655 : vector<2x32xf32>
    %cst_152 = arith.constant 1.000000e+00 : f32
    %657 = vector.broadcast %cst_152 : f32 to vector<2x32xf32>
    %658 = arith.addf %657, %656 : vector<2x32xf32>
    %659 = arith.divf %657, %658 : vector<2x32xf32>
    %660 = vector.extract_strided_slice %643 {offsets = [0, 64], sizes = [2, 32], strides = [1, 1]} : vector<2x96xf32> to vector<2x32xf32>
    %661 = vector.extract_strided_slice %642 {offsets = [0, 64], sizes = [2, 32], strides = [1, 1]} : vector<2x96xf32> to vector<2x32xf32>
    %662 = arith.addf %661, %546 : vector<2x32xf32>
    %663 = arith.mulf %651, %662 : vector<2x32xf32>
    %664 = arith.addf %660, %663 : vector<2x32xf32>
    %665 = math.tanh %664 : vector<2x32xf32>
    %cst_153 = arith.constant 1.000000e+00 : f32
    %666 = vector.broadcast %cst_153 : f32 to vector<2x32xf32>
    %667 = arith.subf %666, %659 : vector<2x32xf32>
    %668 = arith.mulf %667, %665 : vector<2x32xf32>
    %669 = arith.mulf %659, %639 : vector<2x32xf32>
    %670 = arith.addf %668, %669 : vector<2x32xf32>
    %c6_154 = arith.constant 6 : index
    %c0_155 = arith.constant 0 : index
    %671 = vector.load %arg24[%c6_154, %c0_155] : memref<16x32xf32, #tpu.memory_space<vmem>>, vector<2x32xf32>
    tpu.vector_store %arg24[%c6_154, %c0_155], %670 {strides = array<i32>} : memref<16x32xf32, #tpu.memory_space<vmem>>, vector<2x32xf32>,
    %672 = arith.truncf %670 : vector<2x32xf32> to vector<2x32xbf16>
    %cst_156 = arith.constant dense<0.000000e+00> : vector<2x96xf32>
    %673 = tpu.matmul %672, %543, %cst_156 {dimension_numbers = #tpu.dot_dimension_numbers<[1], [0], [0], [1], [0, 0, 1, 1], [], []>} : vector<2x32xbf16>, vector<32x96xbf16>, vector<2x96xf32> -> vector<2x96xf32>
    %674 = vector.extract_strided_slice %542 {offsets = [8, 0], sizes = [2, 96], strides = [1, 1]} : vector<16x96xf32> to vector<2x96xf32>
    %675 = vector.extract_strided_slice %674 {offsets = [0, 0], sizes = [2, 32], strides = [1, 1]} : vector<2x96xf32> to vector<2x32xf32>
    %676 = vector.extract_strided_slice %673 {offsets = [0, 0], sizes = [2, 32], strides = [1, 1]} : vector<2x96xf32> to vector<2x32xf32>
    %677 = arith.addf %675, %676 : vector<2x32xf32>
    %678 = arith.negf %677 : vector<2x32xf32>
    %679 = math.exp %678 : vector<2x32xf32>
    %cst_157 = arith.constant 1.000000e+00 : f32
    %680 = vector.broadcast %cst_157 : f32 to vector<2x32xf32>
    %681 = arith.addf %680, %679 : vector<2x32xf32>
    %682 = arith.divf %680, %681 : vector<2x32xf32>
    %683 = vector.extract_strided_slice %674 {offsets = [0, 32], sizes = [2, 32], strides = [1, 1]} : vector<2x96xf32> to vector<2x32xf32>
    %684 = vector.extract_strided_slice %673 {offsets = [0, 32], sizes = [2, 32], strides = [1, 1]} : vector<2x96xf32> to vector<2x32xf32>
    %685 = arith.addf %683, %684 : vector<2x32xf32>
    %686 = arith.negf %685 : vector<2x32xf32>
    %687 = math.exp %686 : vector<2x32xf32>
    %cst_158 = arith.constant 1.000000e+00 : f32
    %688 = vector.broadcast %cst_158 : f32 to vector<2x32xf32>
    %689 = arith.addf %688, %687 : vector<2x32xf32>
    %690 = arith.divf %688, %689 : vector<2x32xf32>
    %691 = vector.extract_strided_slice %674 {offsets = [0, 64], sizes = [2, 32], strides = [1, 1]} : vector<2x96xf32> to vector<2x32xf32>
    %692 = vector.extract_strided_slice %673 {offsets = [0, 64], sizes = [2, 32], strides = [1, 1]} : vector<2x96xf32> to vector<2x32xf32>
    %693 = arith.addf %692, %546 : vector<2x32xf32>
    %694 = arith.mulf %682, %693 : vector<2x32xf32>
    %695 = arith.addf %691, %694 : vector<2x32xf32>
    %696 = math.tanh %695 : vector<2x32xf32>
    %cst_159 = arith.constant 1.000000e+00 : f32
    %697 = vector.broadcast %cst_159 : f32 to vector<2x32xf32>
    %698 = arith.subf %697, %690 : vector<2x32xf32>
    %699 = arith.mulf %698, %696 : vector<2x32xf32>
    %700 = arith.mulf %690, %670 : vector<2x32xf32>
    %701 = arith.addf %699, %700 : vector<2x32xf32>
    %c8_160 = arith.constant 8 : index
    %c0_161 = arith.constant 0 : index
    %702 = vector.load %arg24[%c8_160, %c0_161] : memref<16x32xf32, #tpu.memory_space<vmem>>, vector<2x32xf32>
    tpu.vector_store %arg24[%c8_160, %c0_161], %701 {strides = array<i32>} : memref<16x32xf32, #tpu.memory_space<vmem>>, vector<2x32xf32>,
    %703 = arith.truncf %701 : vector<2x32xf32> to vector<2x32xbf16>
    %cst_162 = arith.constant dense<0.000000e+00> : vector<2x96xf32>
    %704 = tpu.matmul %703, %543, %cst_162 {dimension_numbers = #tpu.dot_dimension_numbers<[1], [0], [0], [1], [0, 0, 1, 1], [], []>} : vector<2x32xbf16>, vector<32x96xbf16>, vector<2x96xf32> -> vector<2x96xf32>
    %705 = vector.extract_strided_slice %542 {offsets = [10, 0], sizes = [2, 96], strides = [1, 1]} : vector<16x96xf32> to vector<2x96xf32>
    %706 = vector.extract_strided_slice %705 {offsets = [0, 0], sizes = [2, 32], strides = [1, 1]} : vector<2x96xf32> to vector<2x32xf32>
    %707 = vector.extract_strided_slice %704 {offsets = [0, 0], sizes = [2, 32], strides = [1, 1]} : vector<2x96xf32> to vector<2x32xf32>
    %708 = arith.addf %706, %707 : vector<2x32xf32>
    %709 = arith.negf %708 : vector<2x32xf32>
    %710 = math.exp %709 : vector<2x32xf32>
    %cst_163 = arith.constant 1.000000e+00 : f32
    %711 = vector.broadcast %cst_163 : f32 to vector<2x32xf32>
    %712 = arith.addf %711, %710 : vector<2x32xf32>
    %713 = arith.divf %711, %712 : vector<2x32xf32>
    %714 = vector.extract_strided_slice %705 {offsets = [0, 32], sizes = [2, 32], strides = [1, 1]} : vector<2x96xf32> to vector<2x32xf32>
    %715 = vector.extract_strided_slice %704 {offsets = [0, 32], sizes = [2, 32], strides = [1, 1]} : vector<2x96xf32> to vector<2x32xf32>
    %716 = arith.addf %714, %715 : vector<2x32xf32>
    %717 = arith.negf %716 : vector<2x32xf32>
    %718 = math.exp %717 : vector<2x32xf32>
    %cst_164 = arith.constant 1.000000e+00 : f32
    %719 = vector.broadcast %cst_164 : f32 to vector<2x32xf32>
    %720 = arith.addf %719, %718 : vector<2x32xf32>
    %721 = arith.divf %719, %720 : vector<2x32xf32>
    %722 = vector.extract_strided_slice %705 {offsets = [0, 64], sizes = [2, 32], strides = [1, 1]} : vector<2x96xf32> to vector<2x32xf32>
    %723 = vector.extract_strided_slice %704 {offsets = [0, 64], sizes = [2, 32], strides = [1, 1]} : vector<2x96xf32> to vector<2x32xf32>
    %724 = arith.addf %723, %546 : vector<2x32xf32>
    %725 = arith.mulf %713, %724 : vector<2x32xf32>
    %726 = arith.addf %722, %725 : vector<2x32xf32>
    %727 = math.tanh %726 : vector<2x32xf32>
    %cst_165 = arith.constant 1.000000e+00 : f32
    %728 = vector.broadcast %cst_165 : f32 to vector<2x32xf32>
    %729 = arith.subf %728, %721 : vector<2x32xf32>
    %730 = arith.mulf %729, %727 : vector<2x32xf32>
    %731 = arith.mulf %721, %701 : vector<2x32xf32>
    %732 = arith.addf %730, %731 : vector<2x32xf32>
    %c10_166 = arith.constant 10 : index
    %c0_167 = arith.constant 0 : index
    %733 = vector.load %arg24[%c10_166, %c0_167] : memref<16x32xf32, #tpu.memory_space<vmem>>, vector<2x32xf32>
    tpu.vector_store %arg24[%c10_166, %c0_167], %732 {strides = array<i32>} : memref<16x32xf32, #tpu.memory_space<vmem>>, vector<2x32xf32>,
    %734 = arith.truncf %732 : vector<2x32xf32> to vector<2x32xbf16>
    %cst_168 = arith.constant dense<0.000000e+00> : vector<2x96xf32>
    %735 = tpu.matmul %734, %543, %cst_168 {dimension_numbers = #tpu.dot_dimension_numbers<[1], [0], [0], [1], [0, 0, 1, 1], [], []>} : vector<2x32xbf16>, vector<32x96xbf16>, vector<2x96xf32> -> vector<2x96xf32>
    %736 = vector.extract_strided_slice %542 {offsets = [12, 0], sizes = [2, 96], strides = [1, 1]} : vector<16x96xf32> to vector<2x96xf32>
    %737 = vector.extract_strided_slice %736 {offsets = [0, 0], sizes = [2, 32], strides = [1, 1]} : vector<2x96xf32> to vector<2x32xf32>
    %738 = vector.extract_strided_slice %735 {offsets = [0, 0], sizes = [2, 32], strides = [1, 1]} : vector<2x96xf32> to vector<2x32xf32>
    %739 = arith.addf %737, %738 : vector<2x32xf32>
    %740 = arith.negf %739 : vector<2x32xf32>
    %741 = math.exp %740 : vector<2x32xf32>
    %cst_169 = arith.constant 1.000000e+00 : f32
    %742 = vector.broadcast %cst_169 : f32 to vector<2x32xf32>
    %743 = arith.addf %742, %741 : vector<2x32xf32>
    %744 = arith.divf %742, %743 : vector<2x32xf32>
    %745 = vector.extract_strided_slice %736 {offsets = [0, 32], sizes = [2, 32], strides = [1, 1]} : vector<2x96xf32> to vector<2x32xf32>
    %746 = vector.extract_strided_slice %735 {offsets = [0, 32], sizes = [2, 32], strides = [1, 1]} : vector<2x96xf32> to vector<2x32xf32>
    %747 = arith.addf %745, %746 : vector<2x32xf32>
    %748 = arith.negf %747 : vector<2x32xf32>
    %749 = math.exp %748 : vector<2x32xf32>
    %cst_170 = arith.constant 1.000000e+00 : f32
    %750 = vector.broadcast %cst_170 : f32 to vector<2x32xf32>
    %751 = arith.addf %750, %749 : vector<2x32xf32>
    %752 = arith.divf %750, %751 : vector<2x32xf32>
    %753 = vector.extract_strided_slice %736 {offsets = [0, 64], sizes = [2, 32], strides = [1, 1]} : vector<2x96xf32> to vector<2x32xf32>
    %754 = vector.extract_strided_slice %735 {offsets = [0, 64], sizes = [2, 32], strides = [1, 1]} : vector<2x96xf32> to vector<2x32xf32>
    %755 = arith.addf %754, %546 : vector<2x32xf32>
    %756 = arith.mulf %744, %755 : vector<2x32xf32>
    %757 = arith.addf %753, %756 : vector<2x32xf32>
    %758 = math.tanh %757 : vector<2x32xf32>
    %cst_171 = arith.constant 1.000000e+00 : f32
    %759 = vector.broadcast %cst_171 : f32 to vector<2x32xf32>
    %760 = arith.subf %759, %752 : vector<2x32xf32>
    %761 = arith.mulf %760, %758 : vector<2x32xf32>
    %762 = arith.mulf %752, %732 : vector<2x32xf32>
    %763 = arith.addf %761, %762 : vector<2x32xf32>
    %c12_172 = arith.constant 12 : index
    %c0_173 = arith.constant 0 : index
    %764 = vector.load %arg24[%c12_172, %c0_173] : memref<16x32xf32, #tpu.memory_space<vmem>>, vector<2x32xf32>
    tpu.vector_store %arg24[%c12_172, %c0_173], %763 {strides = array<i32>} : memref<16x32xf32, #tpu.memory_space<vmem>>, vector<2x32xf32>,
    %765 = arith.truncf %763 : vector<2x32xf32> to vector<2x32xbf16>
    %cst_174 = arith.constant dense<0.000000e+00> : vector<2x96xf32>
    %766 = tpu.matmul %765, %543, %cst_174 {dimension_numbers = #tpu.dot_dimension_numbers<[1], [0], [0], [1], [0, 0, 1, 1], [], []>} : vector<2x32xbf16>, vector<32x96xbf16>, vector<2x96xf32> -> vector<2x96xf32>
    %767 = vector.extract_strided_slice %542 {offsets = [14, 0], sizes = [2, 96], strides = [1, 1]} : vector<16x96xf32> to vector<2x96xf32>
    %768 = vector.extract_strided_slice %767 {offsets = [0, 0], sizes = [2, 32], strides = [1, 1]} : vector<2x96xf32> to vector<2x32xf32>
    %769 = vector.extract_strided_slice %766 {offsets = [0, 0], sizes = [2, 32], strides = [1, 1]} : vector<2x96xf32> to vector<2x32xf32>
    %770 = arith.addf %768, %769 : vector<2x32xf32>
    %771 = arith.negf %770 : vector<2x32xf32>
    %772 = math.exp %771 : vector<2x32xf32>
    %cst_175 = arith.constant 1.000000e+00 : f32
    %773 = vector.broadcast %cst_175 : f32 to vector<2x32xf32>
    %774 = arith.addf %773, %772 : vector<2x32xf32>
    %775 = arith.divf %773, %774 : vector<2x32xf32>
    %776 = vector.extract_strided_slice %767 {offsets = [0, 32], sizes = [2, 32], strides = [1, 1]} : vector<2x96xf32> to vector<2x32xf32>
    %777 = vector.extract_strided_slice %766 {offsets = [0, 32], sizes = [2, 32], strides = [1, 1]} : vector<2x96xf32> to vector<2x32xf32>
    %778 = arith.addf %776, %777 : vector<2x32xf32>
    %779 = arith.negf %778 : vector<2x32xf32>
    %780 = math.exp %779 : vector<2x32xf32>
    %cst_176 = arith.constant 1.000000e+00 : f32
    %781 = vector.broadcast %cst_176 : f32 to vector<2x32xf32>
    %782 = arith.addf %781, %780 : vector<2x32xf32>
    %783 = arith.divf %781, %782 : vector<2x32xf32>
    %784 = vector.extract_strided_slice %767 {offsets = [0, 64], sizes = [2, 32], strides = [1, 1]} : vector<2x96xf32> to vector<2x32xf32>
    %785 = vector.extract_strided_slice %766 {offsets = [0, 64], sizes = [2, 32], strides = [1, 1]} : vector<2x96xf32> to vector<2x32xf32>
    %786 = arith.addf %785, %546 : vector<2x32xf32>
    %787 = arith.mulf %775, %786 : vector<2x32xf32>
    %788 = arith.addf %784, %787 : vector<2x32xf32>
    %789 = math.tanh %788 : vector<2x32xf32>
    %cst_177 = arith.constant 1.000000e+00 : f32
    %790 = vector.broadcast %cst_177 : f32 to vector<2x32xf32>
    %791 = arith.subf %790, %783 : vector<2x32xf32>
    %792 = arith.mulf %791, %789 : vector<2x32xf32>
    %793 = arith.mulf %783, %763 : vector<2x32xf32>
    %794 = arith.addf %792, %793 : vector<2x32xf32>
    %c14_178 = arith.constant 14 : index
    %c0_179 = arith.constant 0 : index
    %795 = vector.load %arg24[%c14_178, %c0_179] : memref<16x32xf32, #tpu.memory_space<vmem>>, vector<2x32xf32>
    tpu.vector_store %arg24[%c14_178, %c0_179], %794 {strides = array<i32>} : memref<16x32xf32, #tpu.memory_space<vmem>>, vector<2x32xf32>,
    %c0_180 = arith.constant 0 : index
    %c0_181 = arith.constant 0 : index
    %796 = vector.load %arg24[%c0_180, %c0_181] : memref<16x32xf32, #tpu.memory_space<vmem>>, vector<16x32xf32>
    %797 = arith.truncf %796 : vector<16x32xf32> to vector<16x32xbf16>
    %c0_182 = arith.constant 0 : index
    %c0_183 = arith.constant 0 : index
    %798 = vector.load %arg15[%c0_182, %c0_183] : memref<32x96xbf16, #tpu.memory_space<vmem>>, vector<32x96xbf16>
    %cst_184 = arith.constant dense<0.000000e+00> : vector<16x96xf32>
    %799 = tpu.matmul %797, %798, %cst_184 {dimension_numbers = #tpu.dot_dimension_numbers<[1], [0], [0], [1], [0, 0, 1, 1], [], []>} : vector<16x32xbf16>, vector<32x96xbf16>, vector<16x96xf32> -> vector<16x96xf32>
    %c0_185 = arith.constant 0 : index
    %c0_186 = arith.constant 0 : index
    %800 = vector.load %arg17[%c0_185, %c0_186] : memref<1x96xf32, #tpu.memory_space<vmem>>, vector<1x96xf32>
    %801 = vector.broadcast %800 : vector<1x96xf32> to vector<16x96xf32>
    %802 = arith.addf %799, %801 : vector<16x96xf32>
    %c0_187 = arith.constant 0 : index
    %c0_188 = arith.constant 0 : index
    %803 = vector.load %arg16[%c0_187, %c0_188] : memref<32x96xbf16, #tpu.memory_space<vmem>>, vector<32x96xbf16>
    %c0_189 = arith.constant 0 : index
    %c0_190 = arith.constant 0 : index
    %804 = vector.load %arg18[%c0_189, %c0_190] : memref<1x32xf32, #tpu.memory_space<vmem>>, vector<1x32xf32>
    %805 = vector.shape_cast %804 : vector<1x32xf32> to vector<1x32xf32>
    %806 = vector.broadcast %805 : vector<1x32xf32> to vector<2x32xf32>
    %cst_191 = arith.constant 0.000000e+00 : f32
    %807 = vector.broadcast %cst_191 : f32 to vector<2x32xf32>
    %808 = arith.truncf %807 : vector<2x32xf32> to vector<2x32xbf16>
    %cst_192 = arith.constant dense<0.000000e+00> : vector<2x96xf32>
    %809 = tpu.matmul %808, %803, %cst_192 {dimension_numbers = #tpu.dot_dimension_numbers<[1], [0], [0], [1], [0, 0, 1, 1], [], []>} : vector<2x32xbf16>, vector<32x96xbf16>, vector<2x96xf32> -> vector<2x96xf32>
    %810 = vector.extract_strided_slice %802 {offsets = [0, 0], sizes = [2, 96], strides = [1, 1]} : vector<16x96xf32> to vector<2x96xf32>
    %811 = vector.extract_strided_slice %810 {offsets = [0, 0], sizes = [2, 32], strides = [1, 1]} : vector<2x96xf32> to vector<2x32xf32>
    %812 = vector.extract_strided_slice %809 {offsets = [0, 0], sizes = [2, 32], strides = [1, 1]} : vector<2x96xf32> to vector<2x32xf32>
    %813 = arith.addf %811, %812 : vector<2x32xf32>
    %814 = arith.negf %813 : vector<2x32xf32>
    %815 = math.exp %814 : vector<2x32xf32>
    %cst_193 = arith.constant 1.000000e+00 : f32
    %816 = vector.broadcast %cst_193 : f32 to vector<2x32xf32>
    %817 = arith.addf %816, %815 : vector<2x32xf32>
    %818 = arith.divf %816, %817 : vector<2x32xf32>
    %819 = vector.extract_strided_slice %810 {offsets = [0, 32], sizes = [2, 32], strides = [1, 1]} : vector<2x96xf32> to vector<2x32xf32>
    %820 = vector.extract_strided_slice %809 {offsets = [0, 32], sizes = [2, 32], strides = [1, 1]} : vector<2x96xf32> to vector<2x32xf32>
    %821 = arith.addf %819, %820 : vector<2x32xf32>
    %822 = arith.negf %821 : vector<2x32xf32>
    %823 = math.exp %822 : vector<2x32xf32>
    %cst_194 = arith.constant 1.000000e+00 : f32
    %824 = vector.broadcast %cst_194 : f32 to vector<2x32xf32>
    %825 = arith.addf %824, %823 : vector<2x32xf32>
    %826 = arith.divf %824, %825 : vector<2x32xf32>
    %827 = vector.extract_strided_slice %810 {offsets = [0, 64], sizes = [2, 32], strides = [1, 1]} : vector<2x96xf32> to vector<2x32xf32>
    %828 = vector.extract_strided_slice %809 {offsets = [0, 64], sizes = [2, 32], strides = [1, 1]} : vector<2x96xf32> to vector<2x32xf32>
    %829 = arith.addf %828, %806 : vector<2x32xf32>
    %830 = arith.mulf %818, %829 : vector<2x32xf32>
    %831 = arith.addf %827, %830 : vector<2x32xf32>
    %832 = math.tanh %831 : vector<2x32xf32>
    %cst_195 = arith.constant 1.000000e+00 : f32
    %833 = vector.broadcast %cst_195 : f32 to vector<2x32xf32>
    %834 = arith.subf %833, %826 : vector<2x32xf32>
    %835 = arith.mulf %834, %832 : vector<2x32xf32>
    %836 = arith.mulf %826, %807 : vector<2x32xf32>
    %837 = arith.addf %835, %836 : vector<2x32xf32>
    %c0_196 = arith.constant 0 : index
    %c0_197 = arith.constant 0 : index
    %838 = vector.load %arg25[%c0_196, %c0_197] : memref<16x32xf32, #tpu.memory_space<vmem>>, vector<2x32xf32>
    tpu.vector_store %arg25[%c0_196, %c0_197], %837 {strides = array<i32>} : memref<16x32xf32, #tpu.memory_space<vmem>>, vector<2x32xf32>,
    %839 = arith.truncf %837 : vector<2x32xf32> to vector<2x32xbf16>
    %cst_198 = arith.constant dense<0.000000e+00> : vector<2x96xf32>
    %840 = tpu.matmul %839, %803, %cst_198 {dimension_numbers = #tpu.dot_dimension_numbers<[1], [0], [0], [1], [0, 0, 1, 1], [], []>} : vector<2x32xbf16>, vector<32x96xbf16>, vector<2x96xf32> -> vector<2x96xf32>
    %841 = vector.extract_strided_slice %802 {offsets = [2, 0], sizes = [2, 96], strides = [1, 1]} : vector<16x96xf32> to vector<2x96xf32>
    %842 = vector.extract_strided_slice %841 {offsets = [0, 0], sizes = [2, 32], strides = [1, 1]} : vector<2x96xf32> to vector<2x32xf32>
    %843 = vector.extract_strided_slice %840 {offsets = [0, 0], sizes = [2, 32], strides = [1, 1]} : vector<2x96xf32> to vector<2x32xf32>
    %844 = arith.addf %842, %843 : vector<2x32xf32>
    %845 = arith.negf %844 : vector<2x32xf32>
    %846 = math.exp %845 : vector<2x32xf32>
    %cst_199 = arith.constant 1.000000e+00 : f32
    %847 = vector.broadcast %cst_199 : f32 to vector<2x32xf32>
    %848 = arith.addf %847, %846 : vector<2x32xf32>
    %849 = arith.divf %847, %848 : vector<2x32xf32>
    %850 = vector.extract_strided_slice %841 {offsets = [0, 32], sizes = [2, 32], strides = [1, 1]} : vector<2x96xf32> to vector<2x32xf32>
    %851 = vector.extract_strided_slice %840 {offsets = [0, 32], sizes = [2, 32], strides = [1, 1]} : vector<2x96xf32> to vector<2x32xf32>
    %852 = arith.addf %850, %851 : vector<2x32xf32>
    %853 = arith.negf %852 : vector<2x32xf32>
    %854 = math.exp %853 : vector<2x32xf32>
    %cst_200 = arith.constant 1.000000e+00 : f32
    %855 = vector.broadcast %cst_200 : f32 to vector<2x32xf32>
    %856 = arith.addf %855, %854 : vector<2x32xf32>
    %857 = arith.divf %855, %856 : vector<2x32xf32>
    %858 = vector.extract_strided_slice %841 {offsets = [0, 64], sizes = [2, 32], strides = [1, 1]} : vector<2x96xf32> to vector<2x32xf32>
    %859 = vector.extract_strided_slice %840 {offsets = [0, 64], sizes = [2, 32], strides = [1, 1]} : vector<2x96xf32> to vector<2x32xf32>
    %860 = arith.addf %859, %806 : vector<2x32xf32>
    %861 = arith.mulf %849, %860 : vector<2x32xf32>
    %862 = arith.addf %858, %861 : vector<2x32xf32>
    %863 = math.tanh %862 : vector<2x32xf32>
    %cst_201 = arith.constant 1.000000e+00 : f32
    %864 = vector.broadcast %cst_201 : f32 to vector<2x32xf32>
    %865 = arith.subf %864, %857 : vector<2x32xf32>
    %866 = arith.mulf %865, %863 : vector<2x32xf32>
    %867 = arith.mulf %857, %837 : vector<2x32xf32>
    %868 = arith.addf %866, %867 : vector<2x32xf32>
    %c2_202 = arith.constant 2 : index
    %c0_203 = arith.constant 0 : index
    %869 = vector.load %arg25[%c2_202, %c0_203] : memref<16x32xf32, #tpu.memory_space<vmem>>, vector<2x32xf32>
    tpu.vector_store %arg25[%c2_202, %c0_203], %868 {strides = array<i32>} : memref<16x32xf32, #tpu.memory_space<vmem>>, vector<2x32xf32>,
    %870 = arith.truncf %868 : vector<2x32xf32> to vector<2x32xbf16>
    %cst_204 = arith.constant dense<0.000000e+00> : vector<2x96xf32>
    %871 = tpu.matmul %870, %803, %cst_204 {dimension_numbers = #tpu.dot_dimension_numbers<[1], [0], [0], [1], [0, 0, 1, 1], [], []>} : vector<2x32xbf16>, vector<32x96xbf16>, vector<2x96xf32> -> vector<2x96xf32>
    %872 = vector.extract_strided_slice %802 {offsets = [4, 0], sizes = [2, 96], strides = [1, 1]} : vector<16x96xf32> to vector<2x96xf32>
    %873 = vector.extract_strided_slice %872 {offsets = [0, 0], sizes = [2, 32], strides = [1, 1]} : vector<2x96xf32> to vector<2x32xf32>
    %874 = vector.extract_strided_slice %871 {offsets = [0, 0], sizes = [2, 32], strides = [1, 1]} : vector<2x96xf32> to vector<2x32xf32>
    %875 = arith.addf %873, %874 : vector<2x32xf32>
    %876 = arith.negf %875 : vector<2x32xf32>
    %877 = math.exp %876 : vector<2x32xf32>
    %cst_205 = arith.constant 1.000000e+00 : f32
    %878 = vector.broadcast %cst_205 : f32 to vector<2x32xf32>
    %879 = arith.addf %878, %877 : vector<2x32xf32>
    %880 = arith.divf %878, %879 : vector<2x32xf32>
    %881 = vector.extract_strided_slice %872 {offsets = [0, 32], sizes = [2, 32], strides = [1, 1]} : vector<2x96xf32> to vector<2x32xf32>
    %882 = vector.extract_strided_slice %871 {offsets = [0, 32], sizes = [2, 32], strides = [1, 1]} : vector<2x96xf32> to vector<2x32xf32>
    %883 = arith.addf %881, %882 : vector<2x32xf32>
    %884 = arith.negf %883 : vector<2x32xf32>
    %885 = math.exp %884 : vector<2x32xf32>
    %cst_206 = arith.constant 1.000000e+00 : f32
    %886 = vector.broadcast %cst_206 : f32 to vector<2x32xf32>
    %887 = arith.addf %886, %885 : vector<2x32xf32>
    %888 = arith.divf %886, %887 : vector<2x32xf32>
    %889 = vector.extract_strided_slice %872 {offsets = [0, 64], sizes = [2, 32], strides = [1, 1]} : vector<2x96xf32> to vector<2x32xf32>
    %890 = vector.extract_strided_slice %871 {offsets = [0, 64], sizes = [2, 32], strides = [1, 1]} : vector<2x96xf32> to vector<2x32xf32>
    %891 = arith.addf %890, %806 : vector<2x32xf32>
    %892 = arith.mulf %880, %891 : vector<2x32xf32>
    %893 = arith.addf %889, %892 : vector<2x32xf32>
    %894 = math.tanh %893 : vector<2x32xf32>
    %cst_207 = arith.constant 1.000000e+00 : f32
    %895 = vector.broadcast %cst_207 : f32 to vector<2x32xf32>
    %896 = arith.subf %895, %888 : vector<2x32xf32>
    %897 = arith.mulf %896, %894 : vector<2x32xf32>
    %898 = arith.mulf %888, %868 : vector<2x32xf32>
    %899 = arith.addf %897, %898 : vector<2x32xf32>
    %c4_208 = arith.constant 4 : index
    %c0_209 = arith.constant 0 : index
    %900 = vector.load %arg25[%c4_208, %c0_209] : memref<16x32xf32, #tpu.memory_space<vmem>>, vector<2x32xf32>
    tpu.vector_store %arg25[%c4_208, %c0_209], %899 {strides = array<i32>} : memref<16x32xf32, #tpu.memory_space<vmem>>, vector<2x32xf32>,
    %901 = arith.truncf %899 : vector<2x32xf32> to vector<2x32xbf16>
    %cst_210 = arith.constant dense<0.000000e+00> : vector<2x96xf32>
    %902 = tpu.matmul %901, %803, %cst_210 {dimension_numbers = #tpu.dot_dimension_numbers<[1], [0], [0], [1], [0, 0, 1, 1], [], []>} : vector<2x32xbf16>, vector<32x96xbf16>, vector<2x96xf32> -> vector<2x96xf32>
    %903 = vector.extract_strided_slice %802 {offsets = [6, 0], sizes = [2, 96], strides = [1, 1]} : vector<16x96xf32> to vector<2x96xf32>
    %904 = vector.extract_strided_slice %903 {offsets = [0, 0], sizes = [2, 32], strides = [1, 1]} : vector<2x96xf32> to vector<2x32xf32>
    %905 = vector.extract_strided_slice %902 {offsets = [0, 0], sizes = [2, 32], strides = [1, 1]} : vector<2x96xf32> to vector<2x32xf32>
    %906 = arith.addf %904, %905 : vector<2x32xf32>
    %907 = arith.negf %906 : vector<2x32xf32>
    %908 = math.exp %907 : vector<2x32xf32>
    %cst_211 = arith.constant 1.000000e+00 : f32
    %909 = vector.broadcast %cst_211 : f32 to vector<2x32xf32>
    %910 = arith.addf %909, %908 : vector<2x32xf32>
    %911 = arith.divf %909, %910 : vector<2x32xf32>
    %912 = vector.extract_strided_slice %903 {offsets = [0, 32], sizes = [2, 32], strides = [1, 1]} : vector<2x96xf32> to vector<2x32xf32>
    %913 = vector.extract_strided_slice %902 {offsets = [0, 32], sizes = [2, 32], strides = [1, 1]} : vector<2x96xf32> to vector<2x32xf32>
    %914 = arith.addf %912, %913 : vector<2x32xf32>
    %915 = arith.negf %914 : vector<2x32xf32>
    %916 = math.exp %915 : vector<2x32xf32>
    %cst_212 = arith.constant 1.000000e+00 : f32
    %917 = vector.broadcast %cst_212 : f32 to vector<2x32xf32>
    %918 = arith.addf %917, %916 : vector<2x32xf32>
    %919 = arith.divf %917, %918 : vector<2x32xf32>
    %920 = vector.extract_strided_slice %903 {offsets = [0, 64], sizes = [2, 32], strides = [1, 1]} : vector<2x96xf32> to vector<2x32xf32>
    %921 = vector.extract_strided_slice %902 {offsets = [0, 64], sizes = [2, 32], strides = [1, 1]} : vector<2x96xf32> to vector<2x32xf32>
    %922 = arith.addf %921, %806 : vector<2x32xf32>
    %923 = arith.mulf %911, %922 : vector<2x32xf32>
    %924 = arith.addf %920, %923 : vector<2x32xf32>
    %925 = math.tanh %924 : vector<2x32xf32>
    %cst_213 = arith.constant 1.000000e+00 : f32
    %926 = vector.broadcast %cst_213 : f32 to vector<2x32xf32>
    %927 = arith.subf %926, %919 : vector<2x32xf32>
    %928 = arith.mulf %927, %925 : vector<2x32xf32>
    %929 = arith.mulf %919, %899 : vector<2x32xf32>
    %930 = arith.addf %928, %929 : vector<2x32xf32>
    %c6_214 = arith.constant 6 : index
    %c0_215 = arith.constant 0 : index
    %931 = vector.load %arg25[%c6_214, %c0_215] : memref<16x32xf32, #tpu.memory_space<vmem>>, vector<2x32xf32>
    tpu.vector_store %arg25[%c6_214, %c0_215], %930 {strides = array<i32>} : memref<16x32xf32, #tpu.memory_space<vmem>>, vector<2x32xf32>,
    %932 = arith.truncf %930 : vector<2x32xf32> to vector<2x32xbf16>
    %cst_216 = arith.constant dense<0.000000e+00> : vector<2x96xf32>
    %933 = tpu.matmul %932, %803, %cst_216 {dimension_numbers = #tpu.dot_dimension_numbers<[1], [0], [0], [1], [0, 0, 1, 1], [], []>} : vector<2x32xbf16>, vector<32x96xbf16>, vector<2x96xf32> -> vector<2x96xf32>
    %934 = vector.extract_strided_slice %802 {offsets = [8, 0], sizes = [2, 96], strides = [1, 1]} : vector<16x96xf32> to vector<2x96xf32>
    %935 = vector.extract_strided_slice %934 {offsets = [0, 0], sizes = [2, 32], strides = [1, 1]} : vector<2x96xf32> to vector<2x32xf32>
    %936 = vector.extract_strided_slice %933 {offsets = [0, 0], sizes = [2, 32], strides = [1, 1]} : vector<2x96xf32> to vector<2x32xf32>
    %937 = arith.addf %935, %936 : vector<2x32xf32>
    %938 = arith.negf %937 : vector<2x32xf32>
    %939 = math.exp %938 : vector<2x32xf32>
    %cst_217 = arith.constant 1.000000e+00 : f32
    %940 = vector.broadcast %cst_217 : f32 to vector<2x32xf32>
    %941 = arith.addf %940, %939 : vector<2x32xf32>
    %942 = arith.divf %940, %941 : vector<2x32xf32>
    %943 = vector.extract_strided_slice %934 {offsets = [0, 32], sizes = [2, 32], strides = [1, 1]} : vector<2x96xf32> to vector<2x32xf32>
    %944 = vector.extract_strided_slice %933 {offsets = [0, 32], sizes = [2, 32], strides = [1, 1]} : vector<2x96xf32> to vector<2x32xf32>
    %945 = arith.addf %943, %944 : vector<2x32xf32>
    %946 = arith.negf %945 : vector<2x32xf32>
    %947 = math.exp %946 : vector<2x32xf32>
    %cst_218 = arith.constant 1.000000e+00 : f32
    %948 = vector.broadcast %cst_218 : f32 to vector<2x32xf32>
    %949 = arith.addf %948, %947 : vector<2x32xf32>
    %950 = arith.divf %948, %949 : vector<2x32xf32>
    %951 = vector.extract_strided_slice %934 {offsets = [0, 64], sizes = [2, 32], strides = [1, 1]} : vector<2x96xf32> to vector<2x32xf32>
    %952 = vector.extract_strided_slice %933 {offsets = [0, 64], sizes = [2, 32], strides = [1, 1]} : vector<2x96xf32> to vector<2x32xf32>
    %953 = arith.addf %952, %806 : vector<2x32xf32>
    %954 = arith.mulf %942, %953 : vector<2x32xf32>
    %955 = arith.addf %951, %954 : vector<2x32xf32>
    %956 = math.tanh %955 : vector<2x32xf32>
    %cst_219 = arith.constant 1.000000e+00 : f32
    %957 = vector.broadcast %cst_219 : f32 to vector<2x32xf32>
    %958 = arith.subf %957, %950 : vector<2x32xf32>
    %959 = arith.mulf %958, %956 : vector<2x32xf32>
    %960 = arith.mulf %950, %930 : vector<2x32xf32>
    %961 = arith.addf %959, %960 : vector<2x32xf32>
    %c8_220 = arith.constant 8 : index
    %c0_221 = arith.constant 0 : index
    %962 = vector.load %arg25[%c8_220, %c0_221] : memref<16x32xf32, #tpu.memory_space<vmem>>, vector<2x32xf32>
    tpu.vector_store %arg25[%c8_220, %c0_221], %961 {strides = array<i32>} : memref<16x32xf32, #tpu.memory_space<vmem>>, vector<2x32xf32>,
    %963 = arith.truncf %961 : vector<2x32xf32> to vector<2x32xbf16>
    %cst_222 = arith.constant dense<0.000000e+00> : vector<2x96xf32>
    %964 = tpu.matmul %963, %803, %cst_222 {dimension_numbers = #tpu.dot_dimension_numbers<[1], [0], [0], [1], [0, 0, 1, 1], [], []>} : vector<2x32xbf16>, vector<32x96xbf16>, vector<2x96xf32> -> vector<2x96xf32>
    %965 = vector.extract_strided_slice %802 {offsets = [10, 0], sizes = [2, 96], strides = [1, 1]} : vector<16x96xf32> to vector<2x96xf32>
    %966 = vector.extract_strided_slice %965 {offsets = [0, 0], sizes = [2, 32], strides = [1, 1]} : vector<2x96xf32> to vector<2x32xf32>
    %967 = vector.extract_strided_slice %964 {offsets = [0, 0], sizes = [2, 32], strides = [1, 1]} : vector<2x96xf32> to vector<2x32xf32>
    %968 = arith.addf %966, %967 : vector<2x32xf32>
    %969 = arith.negf %968 : vector<2x32xf32>
    %970 = math.exp %969 : vector<2x32xf32>
    %cst_223 = arith.constant 1.000000e+00 : f32
    %971 = vector.broadcast %cst_223 : f32 to vector<2x32xf32>
    %972 = arith.addf %971, %970 : vector<2x32xf32>
    %973 = arith.divf %971, %972 : vector<2x32xf32>
    %974 = vector.extract_strided_slice %965 {offsets = [0, 32], sizes = [2, 32], strides = [1, 1]} : vector<2x96xf32> to vector<2x32xf32>
    %975 = vector.extract_strided_slice %964 {offsets = [0, 32], sizes = [2, 32], strides = [1, 1]} : vector<2x96xf32> to vector<2x32xf32>
    %976 = arith.addf %974, %975 : vector<2x32xf32>
    %977 = arith.negf %976 : vector<2x32xf32>
    %978 = math.exp %977 : vector<2x32xf32>
    %cst_224 = arith.constant 1.000000e+00 : f32
    %979 = vector.broadcast %cst_224 : f32 to vector<2x32xf32>
    %980 = arith.addf %979, %978 : vector<2x32xf32>
    %981 = arith.divf %979, %980 : vector<2x32xf32>
    %982 = vector.extract_strided_slice %965 {offsets = [0, 64], sizes = [2, 32], strides = [1, 1]} : vector<2x96xf32> to vector<2x32xf32>
    %983 = vector.extract_strided_slice %964 {offsets = [0, 64], sizes = [2, 32], strides = [1, 1]} : vector<2x96xf32> to vector<2x32xf32>
    %984 = arith.addf %983, %806 : vector<2x32xf32>
    %985 = arith.mulf %973, %984 : vector<2x32xf32>
    %986 = arith.addf %982, %985 : vector<2x32xf32>
    %987 = math.tanh %986 : vector<2x32xf32>
    %cst_225 = arith.constant 1.000000e+00 : f32
    %988 = vector.broadcast %cst_225 : f32 to vector<2x32xf32>
    %989 = arith.subf %988, %981 : vector<2x32xf32>
    %990 = arith.mulf %989, %987 : vector<2x32xf32>
    %991 = arith.mulf %981, %961 : vector<2x32xf32>
    %992 = arith.addf %990, %991 : vector<2x32xf32>
    %c10_226 = arith.constant 10 : index
    %c0_227 = arith.constant 0 : index
    %993 = vector.load %arg25[%c10_226, %c0_227] : memref<16x32xf32, #tpu.memory_space<vmem>>, vector<2x32xf32>
    tpu.vector_store %arg25[%c10_226, %c0_227], %992 {strides = array<i32>} : memref<16x32xf32, #tpu.memory_space<vmem>>, vector<2x32xf32>,
    %994 = arith.truncf %992 : vector<2x32xf32> to vector<2x32xbf16>
    %cst_228 = arith.constant dense<0.000000e+00> : vector<2x96xf32>
    %995 = tpu.matmul %994, %803, %cst_228 {dimension_numbers = #tpu.dot_dimension_numbers<[1], [0], [0], [1], [0, 0, 1, 1], [], []>} : vector<2x32xbf16>, vector<32x96xbf16>, vector<2x96xf32> -> vector<2x96xf32>
    %996 = vector.extract_strided_slice %802 {offsets = [12, 0], sizes = [2, 96], strides = [1, 1]} : vector<16x96xf32> to vector<2x96xf32>
    %997 = vector.extract_strided_slice %996 {offsets = [0, 0], sizes = [2, 32], strides = [1, 1]} : vector<2x96xf32> to vector<2x32xf32>
    %998 = vector.extract_strided_slice %995 {offsets = [0, 0], sizes = [2, 32], strides = [1, 1]} : vector<2x96xf32> to vector<2x32xf32>
    %999 = arith.addf %997, %998 : vector<2x32xf32>
    %1000 = arith.negf %999 : vector<2x32xf32>
    %1001 = math.exp %1000 : vector<2x32xf32>
    %cst_229 = arith.constant 1.000000e+00 : f32
    %1002 = vector.broadcast %cst_229 : f32 to vector<2x32xf32>
    %1003 = arith.addf %1002, %1001 : vector<2x32xf32>
    %1004 = arith.divf %1002, %1003 : vector<2x32xf32>
    %1005 = vector.extract_strided_slice %996 {offsets = [0, 32], sizes = [2, 32], strides = [1, 1]} : vector<2x96xf32> to vector<2x32xf32>
    %1006 = vector.extract_strided_slice %995 {offsets = [0, 32], sizes = [2, 32], strides = [1, 1]} : vector<2x96xf32> to vector<2x32xf32>
    %1007 = arith.addf %1005, %1006 : vector<2x32xf32>
    %1008 = arith.negf %1007 : vector<2x32xf32>
    %1009 = math.exp %1008 : vector<2x32xf32>
    %cst_230 = arith.constant 1.000000e+00 : f32
    %1010 = vector.broadcast %cst_230 : f32 to vector<2x32xf32>
    %1011 = arith.addf %1010, %1009 : vector<2x32xf32>
    %1012 = arith.divf %1010, %1011 : vector<2x32xf32>
    %1013 = vector.extract_strided_slice %996 {offsets = [0, 64], sizes = [2, 32], strides = [1, 1]} : vector<2x96xf32> to vector<2x32xf32>
    %1014 = vector.extract_strided_slice %995 {offsets = [0, 64], sizes = [2, 32], strides = [1, 1]} : vector<2x96xf32> to vector<2x32xf32>
    %1015 = arith.addf %1014, %806 : vector<2x32xf32>
    %1016 = arith.mulf %1004, %1015 : vector<2x32xf32>
    %1017 = arith.addf %1013, %1016 : vector<2x32xf32>
    %1018 = math.tanh %1017 : vector<2x32xf32>
    %cst_231 = arith.constant 1.000000e+00 : f32
    %1019 = vector.broadcast %cst_231 : f32 to vector<2x32xf32>
    %1020 = arith.subf %1019, %1012 : vector<2x32xf32>
    %1021 = arith.mulf %1020, %1018 : vector<2x32xf32>
    %1022 = arith.mulf %1012, %992 : vector<2x32xf32>
    %1023 = arith.addf %1021, %1022 : vector<2x32xf32>
    %c12_232 = arith.constant 12 : index
    %c0_233 = arith.constant 0 : index
    %1024 = vector.load %arg25[%c12_232, %c0_233] : memref<16x32xf32, #tpu.memory_space<vmem>>, vector<2x32xf32>
    tpu.vector_store %arg25[%c12_232, %c0_233], %1023 {strides = array<i32>} : memref<16x32xf32, #tpu.memory_space<vmem>>, vector<2x32xf32>,
    %1025 = arith.truncf %1023 : vector<2x32xf32> to vector<2x32xbf16>
    %cst_234 = arith.constant dense<0.000000e+00> : vector<2x96xf32>
    %1026 = tpu.matmul %1025, %803, %cst_234 {dimension_numbers = #tpu.dot_dimension_numbers<[1], [0], [0], [1], [0, 0, 1, 1], [], []>} : vector<2x32xbf16>, vector<32x96xbf16>, vector<2x96xf32> -> vector<2x96xf32>
    %1027 = vector.extract_strided_slice %802 {offsets = [14, 0], sizes = [2, 96], strides = [1, 1]} : vector<16x96xf32> to vector<2x96xf32>
    %1028 = vector.extract_strided_slice %1027 {offsets = [0, 0], sizes = [2, 32], strides = [1, 1]} : vector<2x96xf32> to vector<2x32xf32>
    %1029 = vector.extract_strided_slice %1026 {offsets = [0, 0], sizes = [2, 32], strides = [1, 1]} : vector<2x96xf32> to vector<2x32xf32>
    %1030 = arith.addf %1028, %1029 : vector<2x32xf32>
    %1031 = arith.negf %1030 : vector<2x32xf32>
    %1032 = math.exp %1031 : vector<2x32xf32>
    %cst_235 = arith.constant 1.000000e+00 : f32
    %1033 = vector.broadcast %cst_235 : f32 to vector<2x32xf32>
    %1034 = arith.addf %1033, %1032 : vector<2x32xf32>
    %1035 = arith.divf %1033, %1034 : vector<2x32xf32>
    %1036 = vector.extract_strided_slice %1027 {offsets = [0, 32], sizes = [2, 32], strides = [1, 1]} : vector<2x96xf32> to vector<2x32xf32>
    %1037 = vector.extract_strided_slice %1026 {offsets = [0, 32], sizes = [2, 32], strides = [1, 1]} : vector<2x96xf32> to vector<2x32xf32>
    %1038 = arith.addf %1036, %1037 : vector<2x32xf32>
    %1039 = arith.negf %1038 : vector<2x32xf32>
    %1040 = math.exp %1039 : vector<2x32xf32>
    %cst_236 = arith.constant 1.000000e+00 : f32
    %1041 = vector.broadcast %cst_236 : f32 to vector<2x32xf32>
    %1042 = arith.addf %1041, %1040 : vector<2x32xf32>
    %1043 = arith.divf %1041, %1042 : vector<2x32xf32>
    %1044 = vector.extract_strided_slice %1027 {offsets = [0, 64], sizes = [2, 32], strides = [1, 1]} : vector<2x96xf32> to vector<2x32xf32>
    %1045 = vector.extract_strided_slice %1026 {offsets = [0, 64], sizes = [2, 32], strides = [1, 1]} : vector<2x96xf32> to vector<2x32xf32>
    %1046 = arith.addf %1045, %806 : vector<2x32xf32>
    %1047 = arith.mulf %1035, %1046 : vector<2x32xf32>
    %1048 = arith.addf %1044, %1047 : vector<2x32xf32>
    %1049 = math.tanh %1048 : vector<2x32xf32>
    %cst_237 = arith.constant 1.000000e+00 : f32
    %1050 = vector.broadcast %cst_237 : f32 to vector<2x32xf32>
    %1051 = arith.subf %1050, %1043 : vector<2x32xf32>
    %1052 = arith.mulf %1051, %1049 : vector<2x32xf32>
    %1053 = arith.mulf %1043, %1023 : vector<2x32xf32>
    %1054 = arith.addf %1052, %1053 : vector<2x32xf32>
    %c14_238 = arith.constant 14 : index
    %c0_239 = arith.constant 0 : index
    %1055 = vector.load %arg25[%c14_238, %c0_239] : memref<16x32xf32, #tpu.memory_space<vmem>>, vector<2x32xf32>
    tpu.vector_store %arg25[%c14_238, %c0_239], %1054 {strides = array<i32>} : memref<16x32xf32, #tpu.memory_space<vmem>>, vector<2x32xf32>,
    %c0_240 = arith.constant 0 : index
    %c0_241 = arith.constant 0 : index
    %1056 = vector.load %arg25[%c0_240, %c0_241] : memref<16x32xf32, #tpu.memory_space<vmem>>, vector<16x32xf32>
    %c0_242 = arith.constant 0 : index
    %c0_243 = arith.constant 0 : index
    %1057 = vector.load %arg19[%c0_242, %c0_243] : memref<1x32xf32, #tpu.memory_space<vmem>>, vector<1x32xf32>
    %c0_244 = arith.constant 0 : index
    %c0_245 = arith.constant 0 : index
    %1058 = vector.load %arg20[%c0_244, %c0_245] : memref<1x32xf32, #tpu.memory_space<vmem>>, vector<1x32xf32>
    %cst_246 = arith.constant dense<0.000000e+00> : vector<16xf32>
    %1059 = vector.multi_reduction <add>, %1056, %cst_246 [1] : vector<16x32xf32> to vector<16xf32>
    %1060 = vector.shape_cast %1059 : vector<16xf32> to vector<16x1xf32>
    %cst_247 = arith.constant 3.200000e+01 : f32
    %1061 = vector.broadcast %cst_247 : f32 to vector<16x1xf32>
    %1062 = arith.divf %1060, %1061 : vector<16x1xf32>
    %1063 = vector.broadcast %1062 : vector<16x1xf32> to vector<16x32xf32>
    %1064 = arith.subf %1056, %1063 : vector<16x32xf32>
    %1065 = arith.mulf %1064, %1064 : vector<16x32xf32>
    %cst_248 = arith.constant dense<0.000000e+00> : vector<16xf32>
    %1066 = vector.multi_reduction <add>, %1065, %cst_248 [1] : vector<16x32xf32> to vector<16xf32>
    %1067 = vector.shape_cast %1066 : vector<16xf32> to vector<16x1xf32>
    %cst_249 = arith.constant 3.200000e+01 : f32
    %1068 = vector.broadcast %cst_249 : f32 to vector<16x1xf32>
    %1069 = arith.divf %1067, %1068 : vector<16x1xf32>
    %1070 = vector.broadcast %1062 : vector<16x1xf32> to vector<16x32xf32>
    %1071 = arith.subf %1056, %1070 : vector<16x32xf32>
    %cst_250 = arith.constant 9.99999974E-6 : f32
    %1072 = vector.broadcast %cst_250 : f32 to vector<16x1xf32>
    %1073 = arith.addf %1069, %1072 : vector<16x1xf32>
    %1074 = math.rsqrt %1073 : vector<16x1xf32>
    %1075 = vector.broadcast %1074 : vector<16x1xf32> to vector<16x32xf32>
    %1076 = arith.mulf %1071, %1075 : vector<16x32xf32>
    %1077 = vector.broadcast %1057 : vector<1x32xf32> to vector<16x32xf32>
    %1078 = arith.mulf %1076, %1077 : vector<16x32xf32>
    %1079 = vector.broadcast %1058 : vector<1x32xf32> to vector<16x32xf32>
    %1080 = arith.addf %1078, %1079 : vector<16x32xf32>
    %1081 = arith.truncf %1080 : vector<16x32xf32> to vector<16x32xbf16>
    %c0_251 = arith.constant 0 : index
    %c0_252 = arith.constant 0 : index
    %1082 = vector.load %arg21[%c0_251, %c0_252] : memref<32x4xbf16, #tpu.memory_space<vmem>>, vector<32x4xbf16>
    %cst_253 = arith.constant dense<0.000000e+00> : vector<16x4xf32>
    %1083 = tpu.matmul %1081, %1082, %cst_253 {dimension_numbers = #tpu.dot_dimension_numbers<[1], [0], [0], [1], [0, 0, 1, 1], [], []>} : vector<16x32xbf16>, vector<32x4xbf16>, vector<16x4xf32> -> vector<16x4xf32>
    %c0_254 = arith.constant 0 : index
    %c0_255 = arith.constant 0 : index
    %1084 = vector.load %arg22[%c0_254, %c0_255] : memref<1x4xf32, #tpu.memory_space<vmem>>, vector<1x4xf32>
    %1085 = vector.broadcast %1084 : vector<1x4xf32> to vector<16x4xf32>
    %1086 = arith.addf %1083, %1085 : vector<16x4xf32>
    %c0_256 = arith.constant 0 : index
    %c0_257 = arith.constant 0 : index
    %1087 = vector.load %arg23[%c0_256, %c0_257] : memref<16x4xf32, #tpu.memory_space<vmem>>, vector<16x4xf32>
    tpu.vector_store %arg23[%c0_256, %c0_257], %1086 {strides = array<i32>} : memref<16x4xf32, #tpu.memory_space<vmem>>, vector<16x4xf32>,
    return
  }
}

</mosaic_0001>

<bundles_post_ra>
// kernel: stos_autoencoder_forward.2
= control target key start
LH: loop header
LB: loop body
LE: loop exit
PB: predicated region body
PF: predicated region fallthrough
CT: control target
= control target key end

     0   :  { %v51_v0 = vlaneseq  ;;  %v2782_v1 = vmov 1983009808   ;;  %v2783_v3 = vmov 0   ;;  %v2784_v6 = vmov 0.0   ;;  %s2786_s17 = smov 64   ;;  %s2788_s21 = smov 32   ;;  %s3596_s1 = inlined_call_operand.vmem [shape: bf16[4,384], index: 1, kind: input, shape index: {}]   ;;  %s3597_s2 = inlined_call_operand.vmem [shape: bf16[128,384], index: 2, kind: input, shape index: {}]   ;;  %s3598_s0 = inlined_call_operand.vmem [shape: f32[16,4], index: 0, kind: input, shape index: {}]   ;;  %s3599_s3 = inlined_call_operand.vmem [shape: f32[1,384], index: 3, kind: input, shape index: {}]   ;;  %s3600_s4 = inlined_call_operand.vmem [shape: f32[1,128], index: 4, kind: input, shape index: {}]   ;;  %s3601_s8 = inlined_call_operand.vmem [shape: bf16[32,96], index: 8, kind: input, shape index: {}]   ;;  %s3602_s7 = inlined_call_operand.vmem [shape: bf16[128,96], index: 7, kind: input, shape index: {}]   ;;  %s3603_s10 = inlined_call_operand.vmem [shape: f32[1,32], index: 10, kind: input, shape index: {}]   ;;  %s3604_s5 = inlined_call_operand.vmem [shape: f32[1,128], index: 5, kind: input, shape index: {}]   ;;  %s3605_s6 = inlined_call_operand.vmem [shape: f32[1,128], index: 6, kind: input, shape index: {}]   ;;  %s3606_s9 = inlined_call_operand.vmem [shape: f32[1,96], index: 9, kind: input, shape index: {}]   ;;  %s3607_s12 = inlined_call_operand.vmem [shape: f32[1,32], index: 12, kind: input, shape index: {}]   ;;  %s3608_s11 = inlined_call_operand.vmem [shape: f32[1,32], index: 11, kind: input, shape index: {}]   ;;  %s3609_s13 = inlined_call_operand.vmem [shape: f32[2,32], index: 13, kind: output, shape index: {}]  }
   0x1   :  { %v69_v2 = vunpack.c.l.s4 %v2782_v1  ;;  %129 = vmatprep.mubr.bf16.mxu0 %v2783_v3  ;;  %v48_v4 = vld [vmem:[%s3596_s1] sm:$0x3f]  ;;  %2331 = vmatprep.subr.bf16.mxu1 %v2784_v6  ;;  %vm2785_vm0 = vmmov 0   ;;  %vm87_vm1 = vcmask 1041408   ;;  %v46_v13 = vld [vmem:[%s3598_s0 + $0x8] sm:$0xff]  ;;  %vm83_vm2 = vcmask 31744  }
   0x2   :  { %v2863_v5 = vshrl.u32 %v51_v0, 7  ;;  %v67_v8 = vcombine.high %v48_v4, %v48_v4  ;;  %2333 = vmatprep.mubr.msk.bf16.mxu1 %vm2785_vm0, %v2784_v6  ;;  %v45_v12 = vld [vmem:[%s3598_s0] sm:$0xff]  ;;  %v2884_v19 = vld [vmem:[%s3597_s2 + $0x8] ss:$12 sps:$4 sm:$0xff]   ;;  %v2930_v26 = vld [vmem:[%s3597_s2 + $0x30] ss:$12 sps:$4 sm:$0xff]  }
   0x3   :  { %v70_v7 = vunpack.c.0.s8 %v69_v2  ;;  %v2878_v16 = vld [vmem:[%s3597_s2 + $0x4] ss:$12 sps:$4 sm:$0xff]   ;;  %v47_v18 = vpack.c.bf16 %v46_v13, %v45_v12  ;;  %v2889_v20 = vld [vmem:[%s3597_s2] ss:$12 sps:$4 sm:$0xff]   ;;  %v2895_v21 = vld [vmem:[%s3597_s2 + $0x1c] ss:$12 sps:$4 sm:$0xff]  }
   0x4   :  { %v2901_v22 = vld [vmem:[%s3597_s2 + $0x20] ss:$12 sps:$4 sm:$0xff]   ;;  %v2910_v23 = vld [vmem:[%s3597_s2 + $0x18] ss:$12 sps:$4 sm:$0xff]   ;;  %v2942_v28 = vld [vmem:[%s3597_s2 + $0x50] ss:$12 sps:$4 sm:$0xff]  }
   0x5   :  { %v73_v9 = vsub.s32 %v70_v7, %v2863_v5  ;;  %v2917_v24 = vld [vmem:[%s3597_s2 + $0x34] ss:$12 sps:$4 sm:$0xff]   ;;  %v2923_v25 = vld [vmem:[%s3597_s2 + $0x38] ss:$12 sps:$4 sm:$0xff]   ;;  %v2974_v33 = vld [vmem:[%s3597_s2 + $0x7c] ss:$12 sps:$4 sm:$0xff]  }
   0x6   :  { %v2936_v27 = vld [vmem:[%s3597_s2 + $0x4c] ss:$12 sps:$4 sm:$0xff]   ;;  %v2949_v29 = vld [vmem:[%s3597_s2 + $0x48] ss:$12 sps:$4 sm:$0xff]   ;;  %v2955_v30 = vld [vmem:[%s3597_s2 + $0x64] ss:$12 sps:$4 sm:$0xff]  }
   0x7   :  { %v74_v10 = vrot.slane %v48_v4, %v73_v9  ;;  %v81_v11 = vrot.slane %v67_v8, %v73_v9  ;;  %v2961_v31 = vld [vmem:[%s3597_s2 + $0x68] ss:$12 sps:$4 sm:$0xff]   ;;  %v2968_v32 = vld [vmem:[%s3597_s2 + $0x60] ss:$12 sps:$4 sm:$0xff]   ;;  %v2987_v35 = vld [vmem:[%s3597_s2 + $0x78] ss:$12 sps:$4 sm:$0xff]  }
   0x8   :  { %v2980_v34 = vld [vmem:[%s3597_s2 + $0x80] ss:$12 sps:$4 sm:$0xff]   ;;  %v2999_v37 = vld [vmem:[%s3597_s2 + $0x98] ss:$12 sps:$4 sm:$0xff]   ;;  %v3006_v38 = vld [vmem:[%s3597_s2 + $0x90] ss:$12 sps:$4 sm:$0xff]  }
   0x9   :  { %v82_v14 = vcombine.high %v74_v10, %v74_v10  ;;  %v89_v15 = vsel %vm87_vm1, %v74_v10, 0  ;;  %v95_v17 = vsel %vm87_vm1, %v81_v11, 0  ;;  %v2993_v36 = vld [vmem:[%s3597_s2 + $0x94] ss:$12 sps:$4 sm:$0xff]   ;;  %v3012_v39 = vld [vmem:[%s3597_s2 + $0xac] ss:$12 sps:$4 sm:$0xff]  }
   0xa   :  { %2332 = vmatpush3.bf16.msra.mxu1 %v95_v17  ;;  %v3018_v40 = vld [vmem:[%s3597_s2 + $0xb0] ss:$12 sps:$4 sm:$0xff]   ;;  %v3025_v41 = vld [vmem:[%s3597_s2 + $0xa8] ss:$12 sps:$4 sm:$0xff]   ;;  %v61_v42 = vsub.s32 2, %v2863_v5  ;;  %v53_v43 = vsub.s32 0, %v2863_v5 }
   0xb   :  { %2149 = vmatprep.subr.msk.bf16.mxu0 %vm87_vm1, %v82_v14  ;;  %2337 = vmatprep.subr.bf16.mxu1 %v2784_v6  ;;  %v49_v44 = vld [vmem:[%s3599_s3] sm:$0x7]  ;;  %v57_v46 = vsub.s32 1, %v2863_v5  ;;  %vm1455_vm3 = vcmask 261120   ;;  %vm2103_vm4 = vcmask 261126  }
   0xc   :  { %98 = vmatpush1.bf16.msra.mxu0 %v89_v15  ;;  %v62_v45 = vrot.slane %v49_v44, %v61_v42  ;;  %v54_v48 = vrot.slane %v49_v44, %v53_v43  ;;  %v3090_v15 = vld [vmem:[%s3600_s4] ss:$0 sm:$0xff] }
   0xd   :  { %348 = vmatprep.subr.bf16.mxu0 %v2878_v16  ;;  %2334 = vmatmul.mubr.msk.bf16.vlgmr.msra.gmra.mrb[0].mxu1 %vm83_vm2, %v47_v18  ;;  %v58_v55 = vrot.slane %v49_v44, %v57_v46 }
   0xe   :  { %2338 = vmatpush3.bf16.msra.mxu1 %v2884_v19  ;;  %2353 = vmatprep.mubr.msk.bf16.mxu1 %vm2785_vm0, %v2784_v6 }
   0xf   :  { %2150 = vmatmul.mubr.msk.bf16.vlgmr.msra.gmra.mrb[0].mxu0 %vm83_vm2, %v47_v18  ;;  %2339 = vmatprep.subr.bf16.mxu1 %v2784_v6 }
  0x10   :  { %349 = vmatpush1.bf16.msra.mxu0 %v2889_v20  ;;  %380 = vmatprep.mubr.bf16.mxu0 %v2783_v3 }
  0x11   :  { %350 = vmatprep.subr.bf16.mxu0 %v2895_v21 }
  0x12   :  { %2340 = vmatpush3.bf16.msra.mxu1 %v2901_v22 }
  0x13   :  { %2341 = vmatprep.subr.bf16.mxu1 %v2784_v6 }
  0x14   :  { %351 = vmatpush1.bf16.msra.mxu0 %v2910_v23 }
  0x15   :  { %352 = vmatprep.subr.bf16.mxu0 %v2917_v24 }
  0x16   :  { %2342 = vmatpush3.bf16.msra.mxu1 %v2923_v25 }
  0x17   :  { %2343 = vmatprep.subr.bf16.mxu1 %v2784_v6 }
  0x18   :  { %353 = vmatpush1.bf16.msra.mxu0 %v2930_v26 }
  0x19   :  { %354 = vmatprep.subr.bf16.mxu0 %v2936_v27 }
  0x1a   :  { %2344 = vmatpush3.bf16.msra.mxu1 %v2942_v28 }
  0x1b   :  { %2345 = vmatprep.subr.bf16.mxu1 %v2784_v6 }
  0x1c   :  { %355 = vmatpush1.bf16.msra.mxu0 %v2949_v29 }
  0x1d   :  { %356 = vmatprep.subr.bf16.mxu0 %v2955_v30 }
  0x1e   :  { %2346 = vmatpush3.bf16.msra.mxu1 %v2961_v31 }
  0x1f   :  { %2347 = vmatprep.subr.bf16.mxu1 %v2784_v6 }
  0x20   :  { %357 = vmatpush1.bf16.msra.mxu0 %v2968_v32 }
  0x21   :  { %358 = vmatprep.subr.bf16.mxu0 %v2974_v33 }
  0x22   :  { %2348 = vmatpush3.bf16.msra.mxu1 %v2980_v34 }
  0x23   :  { %2349 = vmatprep.subr.bf16.mxu1 %v2784_v6 }
  0x24   :  { %359 = vmatpush1.bf16.msra.mxu0 %v2987_v35 }
  0x25   :  { %360 = vmatprep.subr.bf16.mxu0 %v2993_v36 }
  0x26   :  { %2350 = vmatpush3.bf16.msra.mxu1 %v2999_v37 }
  0x27   :  { %2351 = vmatprep.subr.bf16.mxu1 %v2784_v6 }
  0x28   :  { %361 = vmatpush1.bf16.msra.mxu0 %v3006_v38 }
  0x29   :  { %362 = vmatprep.subr.bf16.mxu0 %v3012_v39 }
  0x2a   :  { %2352 = vmatpush3.bf16.msra.mxu1 %v3018_v40 }
  0x2b   :  { %2357 = vmatprep.subr.bf16.mxu1 %v2784_v6 }
  0x2c   :  { %363 = vmatpush1.bf16.msra.mxu0 %v3025_v41 }
  0x2d   :  { %2354 = vmatmul.mubr.bf16.vlgmr.msra.gmra.mrb[4].mxu1 %v2783_v3  ;;  %453 = vmatprep.subr.bf16.mxu0 %v2878_v16 }
  0x2e   :  { %2358 = vmatpush3.bf16.msra.mxu1 %v2884_v19  ;;  %2373 = vmatprep.mubr.msk.bf16.mxu1 %vm2785_vm0, %v2784_v6 }
  0x2f   :  { %381 = vmatmul.mubr.bf16.vlgmr.msra.gmra.mrb[4].mxu0 %v2783_v3  ;;  %2359 = vmatprep.subr.bf16.mxu1 %v2784_v6 }
  0x30   :  { %454 = vmatpush1.bf16.msra.mxu0 %v2889_v20  ;;  %485 = vmatprep.mubr.bf16.mxu0 %v2783_v3 }
  0x31   :  { %455 = vmatprep.subr.bf16.mxu0 %v2895_v21 }
  0x32   :  { %2360 = vmatpush3.bf16.msra.mxu1 %v2901_v22 }
  0x33   :  { %2361 = vmatprep.subr.bf16.mxu1 %v2784_v6 }
  0x34   :  { %456 = vmatpush1.bf16.msra.mxu0 %v2910_v23 }
  0x35   :  { %457 = vmatprep.subr.bf16.mxu0 %v2917_v24 }
  0x36   :  { %2362 = vmatpush3.bf16.msra.mxu1 %v2923_v25 }
  0x37   :  { %2363 = vmatprep.subr.bf16.mxu1 %v2784_v6 }
  0x38   :  { %458 = vmatpush1.bf16.msra.mxu0 %v2930_v26 }
  0x39   :  { %459 = vmatprep.subr.bf16.mxu0 %v2936_v27 }
  0x3a   :  { %2364 = vmatpush3.bf16.msra.mxu1 %v2942_v28 }
  0x3b   :  { %2365 = vmatprep.subr.bf16.mxu1 %v2784_v6 }
  0x3c   :  { %460 = vmatpush1.bf16.msra.mxu0 %v2949_v29 }
  0x3d   :  { %461 = vmatprep.subr.bf16.mxu0 %v2955_v30 }
  0x3e   :  { %2366 = vmatpush3.bf16.msra.mxu1 %v2961_v31 }
  0x3f   :  { %2367 = vmatprep.subr.bf16.mxu1 %v2784_v6 }
  0x40   :  { %462 = vmatpush1.bf16.msra.mxu0 %v2968_v32 }
  0x41   :  { %463 = vmatprep.subr.bf16.mxu0 %v2974_v33 }
  0x42   :  { %2368 = vmatpush3.bf16.msra.mxu1 %v2980_v34 }
  0x43   :  { %2369 = vmatprep.subr.bf16.mxu1 %v2784_v6 }
  0x44   :  { %464 = vmatpush1.bf16.msra.mxu0 %v2987_v35 }
  0x45   :  { %465 = vmatprep.subr.bf16.mxu0 %v2993_v36 }
  0x46   :  { %2370 = vmatpush3.bf16.msra.mxu1 %v2999_v37 }
  0x47   :  { %2371 = vmatprep.subr.bf16.mxu1 %v2784_v6 }
  0x48   :  { %466 = vmatpush1.bf16.msra.mxu0 %v3006_v38 }
  0x49   :  { %467 = vmatprep.subr.bf16.mxu0 %v3012_v39 }
  0x4a   :  { %2372 = vmatpush3.bf16.msra.mxu1 %v3018_v40 }
  0x4b   :  { %2377 = vmatprep.subr.bf16.mxu1 %v2784_v6 }
  0x4c   :  { %468 = vmatpush1.bf16.msra.mxu0 %v3025_v41 }
  0x4d   :  { %573 = vmatprep.subr.bf16.mxu0 %v2878_v16 }
  0xe0   :  { %v174_v47 = vpop.f32.mrb[0].mxu1 }
  0xe1   :  { %v2335_v49 = vpop.f32.mrb[1].mxu1  ;;  %v3093_v43 = vadd.f32 %v174_v47, %v62_v45 }
  0xe2   :  { %v131_v50 = vpop.f32.mrb[0].mxu0  ;;  %v177_v51 = vpop.f32.mrb[2].mxu1 }
  0xe3   :  { %v133_v52 = vpop.f32.mrb[1].mxu0  ;;  %v3075_v53 = vadd.f32 %v177_v51, %v62_v45  ;;  %v2336_v54 = vpop.f32.mrb[3].mxu1  ;;  %v3081_v61 = vadd.f32 %v131_v50, %v54_v48 }
  0xe4   :  { %v135_v56 = vpop.f32.mrb[2].mxu0  ;;  %v3084_v5 = vadd.f32 %v133_v52, %v58_v55 }
  0xe5   :  { %v3077_v57 = vadd.f32 %v135_v56, %v54_v48  ;;  %v137_v58 = vpop.f32.mrb[3].mxu0 }
  0xe6   :  { %v3079_v59 = vadd.f32 %v137_v58, %v58_v55 }
 0x100   :  { %v423_v60 = vpop.f32.mrb[4].mxu1 }
 0x101   :  { %v2355_v62 = vpop.f32.mrb[5].mxu1  ;;  %v443_v18 = vadd.f32 %v3090_v15, %v423_v60 }
 0x102   :  { %v382_v63 = vpop.f32.mrb[4].mxu0  ;;  %v426_v0 = vpop.f32.mrb[6].mxu1 }
 0x103   :  { %v429_v1 = vadd.f32 %v382_v63, %v3081_v61  ;;  %v384_v2 = vpop.f32.mrb[5].mxu0  ;;  %v2356_v4 = vpop.f32.mrb[7].mxu1 }
 0x104   :  { %v386_v7 = vpop.f32.mrb[6].mxu0  ;;  %v436_v10 = vadd.f32 %v384_v2, %v3084_v5 }
 0x105   :  { %v2177_v8 = vmul.f32 -1.442695, %v429_v1  ;;  %v387_v9 = vpop.f32.mrb[7].mxu0 }
 0x106   :  { %v2178_v11 = vmul.f32 -1.442695, %v436_v10 }
 0x107   :  { %2631 = vpow2.f32 %v2177_v8 }
 0x108   :  { %2633 = vpow2.f32 %v2178_v11 }
 0x111   :  { %v2632_v12 = vpop.eup %2631 }
 0x112   :  { %v433_v13 = vadd.f32 1.0, %v2632_v12  ;;  %v2634_v14 = vpop.eup %2633 }
 0x113   :  { %v440_v17 = vadd.f32 1.0, %v2634_v14 }
 0x114   :  { %2635 = vrcp.f32 %v433_v13 }
 0x115   :  { %2637 = vrcp.f32 %v440_v17 }
 0x11e   :  { %v2636_v42 = vpop.eup %2635 }
 0x11f   :  { %v444_v44 = vmul.f32 %v2636_v42, %v443_v18  ;;  %v2638_v48 = vpop.eup %2637 }
 0x120   :  { %v447_v49 = vsub.f32 1.0, %v2638_v48  ;;  %v449_v52 = vmul.f32 0.0, %v2638_v48 }
 0x121   :  { %v445_v46 = vadd.f32 %v444_v44, %v3093_v43 }
 0x123   :  { %2639 = vtanh.f32 %v445_v46 }
 0x12d   :  { %v2640_v50 = vpop.eup %2639 }
 0x12e   :  { %v448_v51 = vmul.f32 %v2640_v50, %v447_v49 }
 0x130   :  { %v3096_v54 = vadd.f32 %v449_v52, %v448_v51 }
 0x132   :  { %451 = vst [vmem:[#allocation2] sm:$0x3] %v3096_v54  ;;  %v452_v55 = vpack.c.bf16 %v3096_v54, %v3096_v54  ;;  %v564_v42 = vrot.slane %v3096_v54, 6 }
 0x134   :  { %486 = vmatmul.mubr.bf16.vlgmr.msra.gmra.mrb[8].mxu0 %v452_v55  ;;  %2374 = vmatmul.mubr.bf16.vlgmr.msra.gmra.mrb[8].mxu1 %v452_v55 }
 0x135   :  { %574 = vmatpush1.bf16.msra.mxu0 %v2889_v20  ;;  %2378 = vmatpush3.bf16.msra.mxu1 %v2884_v19 }
 0x136   :  { %575 = vmatprep.subr.bf16.mxu0 %v2895_v21  ;;  %2379 = vmatprep.subr.bf16.mxu1 %v2784_v6 }
 0x137   :  { %605 = vmatprep.mubr.bf16.mxu0 %v2783_v3  ;;  %2393 = vmatprep.mubr.msk.bf16.mxu1 %vm2785_vm0, %v2784_v6 }
 0x139   :  { %576 = vmatpush1.bf16.msra.mxu0 %v2910_v23  ;;  %2380 = vmatpush3.bf16.msra.mxu1 %v2901_v22 }
 0x13a   :  { %577 = vmatprep.subr.bf16.mxu0 %v2917_v24  ;;  %2381 = vmatprep.subr.bf16.mxu1 %v2784_v6 }
 0x13d   :  { %578 = vmatpush1.bf16.msra.mxu0 %v2930_v26  ;;  %2382 = vmatpush3.bf16.msra.mxu1 %v2923_v25 }
 0x13e   :  { %579 = vmatprep.subr.bf16.mxu0 %v2936_v27  ;;  %2383 = vmatprep.subr.bf16.mxu1 %v2784_v6 }
 0x141   :  { %580 = vmatpush1.bf16.msra.mxu0 %v2949_v29  ;;  %2384 = vmatpush3.bf16.msra.mxu1 %v2942_v28 }
 0x142   :  { %581 = vmatprep.subr.bf16.mxu0 %v2955_v30  ;;  %2385 = vmatprep.subr.bf16.mxu1 %v2784_v6 }
 0x145   :  { %582 = vmatpush1.bf16.msra.mxu0 %v2968_v32  ;;  %2386 = vmatpush3.bf16.msra.mxu1 %v2961_v31 }
 0x146   :  { %583 = vmatprep.subr.bf16.mxu0 %v2974_v33  ;;  %2387 = vmatprep.subr.bf16.mxu1 %v2784_v6 }
 0x149   :  { %584 = vmatpush1.bf16.msra.mxu0 %v2987_v35  ;;  %2388 = vmatpush3.bf16.msra.mxu1 %v2980_v34 }
 0x14a   :  { %585 = vmatprep.subr.bf16.mxu0 %v2993_v36  ;;  %2389 = vmatprep.subr.bf16.mxu1 %v2784_v6 }
 0x14d   :  { %586 = vmatpush1.bf16.msra.mxu0 %v3006_v38  ;;  %2390 = vmatpush3.bf16.msra.mxu1 %v2999_v37 }
 0x14e   :  { %587 = vmatprep.subr.bf16.mxu0 %v3012_v39  ;;  %2391 = vmatprep.subr.bf16.mxu1 %v2784_v6 }
 0x151   :  { %588 = vmatpush1.bf16.msra.mxu0 %v3025_v41  ;;  %2392 = vmatpush3.bf16.msra.mxu1 %v3018_v40 }
 0x152   :  { %693 = vmatprep.subr.bf16.mxu0 %v2878_v16  ;;  %2397 = vmatprep.subr.bf16.mxu1 %v2784_v6 }
 0x207   :  { %v487_v45 = vpop.f32.mrb[8].mxu0  ;;  %v528_v47 = vpop.f32.mrb[8].mxu1 }
 0x208   :  { %v535_v56 = vrot.slane %v487_v45, 6  ;;  %v489_v58 = vpop.f32.mrb[9].mxu0  ;;  %v2375_v60 = vpop.f32.mrb[9].mxu1  ;;  %v554_v14 = vadd.f32 %v3090_v15, %v528_v47 }
 0x209   :  { %v545_v62 = vrot.slane %v489_v58, 6  ;;  %v491_v63 = vpop.f32.mrb[10].mxu0  ;;  %v531_v0 = vpop.f32.mrb[10].mxu1 }
 0x20a   :  { %v537_v1 = vadd.f32 %v535_v56, %v3081_v61  ;;  %v492_v2 = vpop.f32.mrb[11].mxu0  ;;  %v2376_v4 = vpop.f32.mrb[11].mxu1  ;;  %v556_v17 = vrot.slane %v554_v14, 6 }
 0x20b   :  { %v547_v7 = vadd.f32 %v545_v62, %v3084_v5 }
 0x20c   :  { %v2179_v8 = vmul.f32 -1.442695, %v537_v1 }
 0x20d   :  { %v2180_v9 = vmul.f32 -1.442695, %v547_v7 }
 0x20e   :  { %2641 = vpow2.f32 %v2179_v8 }
 0x20f   :  { %2643 = vpow2.f32 %v2180_v9 }
 0x218   :  { %v2642_v10 = vpop.eup %2641 }
 0x219   :  { %v2644_v11 = vpop.eup %2643  ;;  %v541_v12 = vadd.f32 1.0, %v2642_v10 }
 0x21a   :  { %v551_v13 = vadd.f32 1.0, %v2644_v11 }
 0x21b   :  { %2645 = vrcp.f32 %v541_v12 }
 0x21c   :  { %2647 = vrcp.f32 %v551_v13 }
 0x225   :  { %v2646_v18 = vpop.eup %2645 }
 0x226   :  { %v2648_v44 = vpop.eup %2647  ;;  %v558_v46 = vmul.f32 %v2646_v18, %v556_v17 }
 0x227   :  { %v566_v48 = vmul.f32 %v2648_v44, %v564_v42  ;;  %v561_v50 = vsub.f32 1.0, %v2648_v44 }
 0x228   :  { %v559_v49 = vadd.f32 %v558_v46, %v3093_v43 }
 0x22a   :  { %2649 = vtanh.f32 %v559_v49 }
 0x234   :  { %v2650_v51 = vpop.eup %2649 }
 0x235   :  { %v562_v52 = vmul.f32 %v2650_v51, %v561_v50 }
 0x237   :  { %v3141_v55 = vadd.f32 %v566_v48, %v562_v52 }
 0x239   :  { %568 = vst [vmem:[#allocation2] sm:$0xc] %v3141_v55  ;;  %v569_v45 = vpack.c.bf16 %v3141_v55, %v3141_v55  ;;  %v684_v44 = vrot.slane %v3141_v55, 6 }
 0x23b   :  { %v571_v47 = vrot.slane %v569_v45, 1 }
 0x23d   :  { %606 = vmatmul.mubr.bf16.vlgmr.msra.gmra.mrb[12].mxu0 %v571_v47  ;;  %2394 = vmatmul.mubr.bf16.vlgmr.msra.gmra.mrb[12].mxu1 %v571_v47 }
 0x23e   :  { %694 = vmatpush1.bf16.msra.mxu0 %v2889_v20  ;;  %2398 = vmatpush3.bf16.msra.mxu1 %v2884_v19 }
 0x23f   :  { %695 = vmatprep.subr.bf16.mxu0 %v2895_v21  ;;  %2399 = vmatprep.subr.bf16.mxu1 %v2784_v6 }
 0x240   :  { %725 = vmatprep.mubr.bf16.mxu0 %v2783_v3  ;;  %2413 = vmatprep.mubr.msk.bf16.mxu1 %vm2785_vm0, %v2784_v6 }
 0x242   :  { %696 = vmatpush1.bf16.msra.mxu0 %v2910_v23  ;;  %2400 = vmatpush3.bf16.msra.mxu1 %v2901_v22 }
 0x243   :  { %697 = vmatprep.subr.bf16.mxu0 %v2917_v24  ;;  %2401 = vmatprep.subr.bf16.mxu1 %v2784_v6 }
 0x246   :  { %698 = vmatpush1.bf16.msra.mxu0 %v2930_v26  ;;  %2402 = vmatpush3.bf16.msra.mxu1 %v2923_v25 }
 0x247   :  { %699 = vmatprep.subr.bf16.mxu0 %v2936_v27  ;;  %2403 = vmatprep.subr.bf16.mxu1 %v2784_v6 }
 0x24a   :  { %700 = vmatpush1.bf16.msra.mxu0 %v2949_v29  ;;  %2404 = vmatpush3.bf16.msra.mxu1 %v2942_v28 }
 0x24b   :  { %701 = vmatprep.subr.bf16.mxu0 %v2955_v30  ;;  %2405 = vmatprep.subr.bf16.mxu1 %v2784_v6 }
 0x24e   :  { %702 = vmatpush1.bf16.msra.mxu0 %v2968_v32  ;;  %2406 = vmatpush3.bf16.msra.mxu1 %v2961_v31 }
 0x24f   :  { %703 = vmatprep.subr.bf16.mxu0 %v2974_v33  ;;  %2407 = vmatprep.subr.bf16.mxu1 %v2784_v6 }
 0x252   :  { %704 = vmatpush1.bf16.msra.mxu0 %v2987_v35  ;;  %2408 = vmatpush3.bf16.msra.mxu1 %v2980_v34 }
 0x253   :  { %705 = vmatprep.subr.bf16.mxu0 %v2993_v36  ;;  %2409 = vmatprep.subr.bf16.mxu1 %v2784_v6 }
 0x256   :  { %706 = vmatpush1.bf16.msra.mxu0 %v3006_v38  ;;  %2410 = vmatpush3.bf16.msra.mxu1 %v2999_v37 }
 0x257   :  { %707 = vmatprep.subr.bf16.mxu0 %v3012_v39  ;;  %2411 = vmatprep.subr.bf16.mxu1 %v2784_v6 }
 0x25a   :  { %708 = vmatpush1.bf16.msra.mxu0 %v3025_v41  ;;  %2412 = vmatpush3.bf16.msra.mxu1 %v3018_v40 }
 0x25b   :  { %813 = vmatprep.subr.bf16.mxu0 %v2878_v16  ;;  %2417 = vmatprep.subr.bf16.mxu1 %v2784_v6 }
 0x310   :  { %v607_v54 = vpop.f32.mrb[12].mxu0  ;;  %v648_v56 = vpop.f32.mrb[12].mxu1 }
 0x311   :  { %v655_v58 = vrot.slane %v607_v54, 4  ;;  %v609_v60 = vpop.f32.mrb[13].mxu0  ;;  %v2395_v62 = vpop.f32.mrb[13].mxu1  ;;  %v674_v17 = vadd.f32 %v3090_v15, %v648_v56 }
 0x312   :  { %v665_v63 = vrot.slane %v609_v60, 4  ;;  %v611_v0 = vpop.f32.mrb[14].mxu0  ;;  %v651_v1 = vpop.f32.mrb[14].mxu1 }
 0x313   :  { %v657_v2 = vadd.f32 %v655_v58, %v3081_v61  ;;  %v612_v4 = vpop.f32.mrb[15].mxu0  ;;  %v2396_v7 = vpop.f32.mrb[15].mxu1  ;;  %v676_v18 = vrot.slane %v674_v17, 4 }
 0x314   :  { %v667_v8 = vadd.f32 %v665_v63, %v3084_v5 }
 0x315   :  { %v2181_v9 = vmul.f32 -1.442695, %v657_v2 }
 0x316   :  { %v2182_v10 = vmul.f32 -1.442695, %v667_v8 }
 0x317   :  { %2651 = vpow2.f32 %v2181_v9 }
 0x318   :  { %2653 = vpow2.f32 %v2182_v10 }
 0x321   :  { %v2652_v11 = vpop.eup %2651 }
 0x322   :  { %v2654_v12 = vpop.eup %2653  ;;  %v661_v13 = vadd.f32 1.0, %v2652_v11 }
 0x323   :  { %v671_v14 = vadd.f32 1.0, %v2654_v12 }
 0x324   :  { %2655 = vrcp.f32 %v661_v13 }
 0x325   :  { %2657 = vrcp.f32 %v671_v14 }
 0x32e   :  { %v2656_v42 = vpop.eup %2655 }
 0x32f   :  { %v2658_v46 = vpop.eup %2657  ;;  %v678_v48 = vmul.f32 %v2656_v42, %v676_v18 }
 0x330   :  { %v686_v49 = vmul.f32 %v2658_v46, %v684_v44  ;;  %v681_v51 = vsub.f32 1.0, %v2658_v46 }
 0x331   :  { %v679_v50 = vadd.f32 %v678_v48, %v3093_v43 }
 0x333   :  { %2659 = vtanh.f32 %v679_v50 }
 0x33d   :  { %v2660_v52 = vpop.eup %2659 }
 0x33e   :  { %v682_v45 = vmul.f32 %v2660_v52, %v681_v51 }
 0x340   :  { %v3186_v47 = vadd.f32 %v686_v49, %v682_v45 }
 0x342   :  { %688 = vst [vmem:[#allocation2] sm:$0x30] %v3186_v47  ;;  %v689_v54 = vpack.c.bf16 %v3186_v47, %v3186_v47 }
 0x344   :  { %v691_v56 = vrot.slane %v689_v54, 2 }
 0x346   :  { %726 = vmatmul.mubr.bf16.vlgmr.msra.gmra.mrb[16].mxu0 %v691_v56  ;;  %2414 = vmatmul.mubr.bf16.vlgmr.msra.gmra.mrb[16].mxu1 %v691_v56 }
 0x347   :  { %814 = vmatpush1.bf16.msra.mxu0 %v2889_v20  ;;  %2418 = vmatpush3.bf16.msra.mxu1 %v2884_v19 }
 0x348   :  { %815 = vmatprep.subr.bf16.mxu0 %v2895_v21  ;;  %2419 = vmatprep.subr.bf16.mxu1 %v2784_v6 }
 0x349   :  { %845 = vmatprep.mubr.bf16.mxu0 %v2783_v3  ;;  %2433 = vmatprep.mubr.msk.bf16.mxu1 %vm2785_vm0, %v2784_v6 }
 0x34b   :  { %816 = vmatpush1.bf16.msra.mxu0 %v2910_v23  ;;  %2420 = vmatpush3.bf16.msra.mxu1 %v2901_v22 }
 0x34c   :  { %817 = vmatprep.subr.bf16.mxu0 %v2917_v24  ;;  %2421 = vmatprep.subr.bf16.mxu1 %v2784_v6 }
 0x34f   :  { %818 = vmatpush1.bf16.msra.mxu0 %v2930_v26  ;;  %2422 = vmatpush3.bf16.msra.mxu1 %v2923_v25 }
 0x350   :  { %819 = vmatprep.subr.bf16.mxu0 %v2936_v27  ;;  %2423 = vmatprep.subr.bf16.mxu1 %v2784_v6 }
 0x353   :  { %820 = vmatpush1.bf16.msra.mxu0 %v2949_v29  ;;  %2424 = vmatpush3.bf16.msra.mxu1 %v2942_v28 }
 0x354   :  { %821 = vmatprep.subr.bf16.mxu0 %v2955_v30  ;;  %2425 = vmatprep.subr.bf16.mxu1 %v2784_v6 }
 0x357   :  { %822 = vmatpush1.bf16.msra.mxu0 %v2968_v32  ;;  %2426 = vmatpush3.bf16.msra.mxu1 %v2961_v31 }
 0x358   :  { %823 = vmatprep.subr.bf16.mxu0 %v2974_v33  ;;  %2427 = vmatprep.subr.bf16.mxu1 %v2784_v6 }
 0x35b   :  { %824 = vmatpush1.bf16.msra.mxu0 %v2987_v35  ;;  %2428 = vmatpush3.bf16.msra.mxu1 %v2980_v34 }
 0x35c   :  { %825 = vmatprep.subr.bf16.mxu0 %v2993_v36  ;;  %2429 = vmatprep.subr.bf16.mxu1 %v2784_v6 }
 0x35f   :  { %826 = vmatpush1.bf16.msra.mxu0 %v3006_v38  ;;  %2430 = vmatpush3.bf16.msra.mxu1 %v2999_v37 }
 0x360   :  { %827 = vmatprep.subr.bf16.mxu0 %v3012_v39  ;;  %2431 = vmatprep.subr.bf16.mxu1 %v2784_v6 }
 0x363   :  { %828 = vmatpush1.bf16.msra.mxu0 %v3025_v41  ;;  %2432 = vmatpush3.bf16.msra.mxu1 %v3018_v40 }
 0x364   :  { %921 = vmatprep.subr.bf16.mxu0 %v2878_v16  ;;  %2437 = vmatprep.subr.bf16.mxu1 %v2784_v6 }
 0x419   :  { %v727_v55 = vpop.f32.mrb[16].mxu0  ;;  %v768_v58 = vpop.f32.mrb[16].mxu1 }
 0x41a   :  { %v775_v60 = vrot.slane %v727_v55, 2  ;;  %v729_v62 = vpop.f32.mrb[17].mxu0  ;;  %v2415_v63 = vpop.f32.mrb[17].mxu1  ;;  %v794_v18 = vadd.f32 %v3090_v15, %v768_v58 }
 0x41b   :  { %v785_v0 = vrot.slane %v729_v62, 2  ;;  %v731_v1 = vpop.f32.mrb[18].mxu0  ;;  %v771_v2 = vpop.f32.mrb[18].mxu1 }
 0x41c   :  { %v777_v4 = vadd.f32 %v775_v60, %v3081_v61  ;;  %v732_v7 = vpop.f32.mrb[19].mxu0  ;;  %v2416_v8 = vpop.f32.mrb[19].mxu1  ;;  %v796_v42 = vrot.slane %v794_v18, 2  ;;  %v804_v61 = vrot.slane %v3186_v47, 6 }
 0x41d   :  { %v787_v9 = vadd.f32 %v785_v0, %v3084_v5 }
 0x41e   :  { %v2183_v10 = vmul.f32 -1.442695, %v777_v4 }
 0x41f   :  { %v2184_v11 = vmul.f32 -1.442695, %v787_v9 }
 0x420   :  { %2661 = vpow2.f32 %v2183_v10 }
 0x421   :  { %2663 = vpow2.f32 %v2184_v11 }
 0x42a   :  { %v2662_v12 = vpop.eup %2661 }
 0x42b   :  { %v2664_v13 = vpop.eup %2663  ;;  %v781_v14 = vadd.f32 1.0, %v2662_v12 }
 0x42c   :  { %v791_v17 = vadd.f32 1.0, %v2664_v13 }
 0x42d   :  { %2665 = vrcp.f32 %v781_v14 }
 0x42e   :  { %2667 = vrcp.f32 %v791_v17 }
 0x437   :  { %v2666_v44 = vpop.eup %2665 }
 0x438   :  { %v2668_v46 = vpop.eup %2667  ;;  %v798_v48 = vmul.f32 %v2666_v44, %v796_v42 }
 0x439   :  { %v806_v49 = vmul.f32 %v2668_v46, %v804_v61  ;;  %v801_v50 = vsub.f32 1.0, %v2668_v46 }
 0x43a   :  { %v799_v5 = vadd.f32 %v798_v48, %v3093_v43 }
 0x43c   :  { %2669 = vtanh.f32 %v799_v5 }
 0x446   :  { %v2670_v51 = vpop.eup %2669 }
 0x447   :  { %v802_v52 = vmul.f32 %v2670_v51, %v801_v50 }
 0x449   :  { %v3231_v45 = vadd.f32 %v806_v49, %v802_v52 }
 0x44b   :  { %808 = vst [vmem:[#allocation2] sm:$0xc0] %v3231_v45  ;;  %v809_v54 = vpack.c.bf16 %v3231_v45, %v3231_v45  ;;  %v915_v44 = vrot.slane %v3231_v45, 6 }
 0x44d   :  { %v811_v56 = vrot.slane %v809_v54, 3 }
 0x44f   :  { %846 = vmatmul.mubr.bf16.vlgmr.msra.gmra.mrb[20].mxu0 %v811_v56  ;;  %2434 = vmatmul.mubr.bf16.vlgmr.msra.gmra.mrb[20].mxu1 %v811_v56 }
 0x450   :  { %922 = vmatpush1.bf16.msra.mxu0 %v2889_v20  ;;  %2438 = vmatpush3.bf16.msra.mxu1 %v2884_v19 }
 0x451   :  { %923 = vmatprep.subr.bf16.mxu0 %v2895_v21  ;;  %2439 = vmatprep.subr.bf16.mxu1 %v2784_v6 }
 0x452   :  { %v1277_v43 = vld [vmem:[#allocation2] sm:$0xff]  ;;  %953 = vmatprep.mubr.bf16.mxu0 %v2783_v3  ;;  %2453 = vmatprep.mubr.msk.bf16.mxu1 %vm2785_vm0, %v2784_v6 }
 0x453   :  { %1281 = vadd.xlane.f32.xlu0 %v1277_v43 }
 0x454   :  { %924 = vmatpush1.bf16.msra.mxu0 %v2910_v23  ;;  %2440 = vmatpush3.bf16.msra.mxu1 %v2901_v22 }
 0x455   :  { %925 = vmatprep.subr.bf16.mxu0 %v2917_v24  ;;  %2441 = vmatprep.subr.bf16.mxu1 %v2784_v6 }
 0x458   :  { %926 = vmatpush1.bf16.msra.mxu0 %v2930_v26  ;;  %2442 = vmatpush3.bf16.msra.mxu1 %v2923_v25 }
 0x459   :  { %927 = vmatprep.subr.bf16.mxu0 %v2936_v27  ;;  %2443 = vmatprep.subr.bf16.mxu1 %v2784_v6 }
 0x45c   :  { %928 = vmatpush1.bf16.msra.mxu0 %v2949_v29  ;;  %2444 = vmatpush3.bf16.msra.mxu1 %v2942_v28 }
 0x45d   :  { %929 = vmatprep.subr.bf16.mxu0 %v2955_v30  ;;  %2445 = vmatprep.subr.bf16.mxu1 %v2784_v6 }
 0x460   :  { %930 = vmatpush1.bf16.msra.mxu0 %v2968_v32  ;;  %2446 = vmatpush3.bf16.msra.mxu1 %v2961_v31 }
 0x461   :  { %931 = vmatprep.subr.bf16.mxu0 %v2974_v33  ;;  %2447 = vmatprep.subr.bf16.mxu1 %v2784_v6 }
 0x464   :  { %932 = vmatpush1.bf16.msra.mxu0 %v2987_v35  ;;  %2448 = vmatpush3.bf16.msra.mxu1 %v2980_v34 }
 0x465   :  { %933 = vmatprep.subr.bf16.mxu0 %v2993_v36  ;;  %2449 = vmatprep.subr.bf16.mxu1 %v2784_v6 }
 0x468   :  { %934 = vmatpush1.bf16.msra.mxu0 %v3006_v38  ;;  %2450 = vmatpush3.bf16.msra.mxu1 %v2999_v37 }
 0x469   :  { %935 = vmatprep.subr.bf16.mxu0 %v3012_v39  ;;  %2451 = vmatprep.subr.bf16.mxu1 %v2784_v6 }
 0x46c   :  { %936 = vmatpush1.bf16.msra.mxu0 %v3025_v41  ;;  %2452 = vmatpush3.bf16.msra.mxu1 %v3018_v40 }
 0x46d   :  { %1041 = vmatprep.subr.bf16.mxu0 %v2878_v16  ;;  %2457 = vmatprep.subr.bf16.mxu1 %v2784_v6 }
 0x4e0   :  { %v1282_v47 = vpop.xlane.xlu0 %1281 }
 0x4e1   :  { %v1286_v55 = vmul.f32 0.0078125, %v1282_v47 }
 0x4e3   :  { %v3271_v58 = vsub.f32 %v1277_v43, %v1286_v55 }
 0x4e5   :  { %v1290_v60 = vmul.f32 %v3271_v58, %v3271_v58 }
 0x4e7   :  { %1292 = vadd.xlane.f32.xlu1 %v1290_v60 }
 0x522   :  { %v847_v62 = vpop.f32.mrb[20].mxu0  ;;  %v888_v63 = vpop.f32.mrb[20].mxu1 }
 0x523   :  { %v894_v0 = vadd.f32 %v847_v62, %v3077_v57  ;;  %v849_v1 = vpop.f32.mrb[21].mxu0  ;;  %v2435_v2 = vpop.f32.mrb[21].mxu1  ;;  %v908_v18 = vadd.f32 %v3090_v15, %v888_v63 }
 0x524   :  { %v901_v4 = vadd.f32 %v849_v1, %v3079_v59  ;;  %v851_v7 = vpop.f32.mrb[22].mxu0  ;;  %v891_v16 = vpop.f32.mrb[22].mxu1 }
 0x525   :  { %v2185_v8 = vmul.f32 -1.442695, %v894_v0  ;;  %v852_v9 = vpop.f32.mrb[23].mxu0  ;;  %v2436_v10 = vpop.f32.mrb[23].mxu1 }
 0x526   :  { %v2186_v11 = vmul.f32 -1.442695, %v901_v4 }
 0x527   :  { %2671 = vpow2.f32 %v2185_v8 }
 0x528   :  { %2673 = vpow2.f32 %v2186_v11  ;;  %v2766_v11 = vld [vmem:[%s3597_s2] ss:$12 sps:$4 sm:$0xff]  }
 0x531   :  { %v2672_v12 = vpop.eup %2671 }
 0x532   :  { %v2674_v13 = vpop.eup %2673  ;;  %v898_v14 = vadd.f32 1.0, %v2672_v12  ;;  %v2767_v12 = vld [vmem:[%s3597_s2 + $0x8] ss:$12 sps:$4 sm:$0xff]  }
 0x533   :  { %v905_v17 = vadd.f32 1.0, %v2674_v13  ;;  %v2768_v13 = vld [vmem:[%s3597_s2 + $0x1c] ss:$12 sps:$4 sm:$0xff]  }
 0x534   :  { %2675 = vrcp.f32 %v898_v14  ;;  %v2769_v14 = vld [vmem:[%s3597_s2 + $0x18] ss:$12 sps:$4 sm:$0xff]  }
 0x535   :  { %2677 = vrcp.f32 %v905_v17  ;;  %v2770_v17 = vld [vmem:[%s3597_s2 + $0x20] ss:$12 sps:$4 sm:$0xff]  }
 0x53e   :  { %v2676_v42 = vpop.eup %2675 }
 0x53f   :  { %v2678_v61 = vpop.eup %2677  ;;  %v909_v46 = vmul.f32 %v2676_v42, %v908_v18  ;;  %v2771_v18 = vld [vmem:[%s3597_s2 + $0x34] ss:$12 sps:$4 sm:$0xff]   ;;  %v2772_v42 = vld [vmem:[%s3597_s2 + $0x30] ss:$12 sps:$4 sm:$0xff]  }
 0x540   :  { %v917_v48 = vmul.f32 %v2678_v61, %v915_v44  ;;  %v912_v5 = vsub.f32 1.0, %v2678_v61  ;;  %v2773_v44 = vld [vmem:[%s3597_s2 + $0x38] ss:$12 sps:$4 sm:$0xff]  }
 0x541   :  { %v910_v49 = vadd.f32 %v909_v46, %v3075_v53  ;;  %v2774_v61 = vld [vmem:[%s3597_s2 + $0x4c] ss:$12 sps:$4 sm:$0xff]   ;;  %v2775_v46 = vld [vmem:[%s3597_s2 + $0x48] ss:$12 sps:$4 sm:$0xff]  }
 0x543   :  { %2679 = vtanh.f32 %v910_v49  ;;  %v2777_v49 = vld [vmem:[%s3597_s2 + $0x64] ss:$12 sps:$4 sm:$0xff]  }
 0x54d   :  { %v2680_v50 = vpop.eup %2679 }
 0x54e   :  { %v913_v51 = vmul.f32 %v2680_v50, %v912_v5  ;;  %v2778_v5 = vld [vmem:[%s3597_s2 + $0x60] ss:$12 sps:$4 sm:$0xff]   ;;  %v2779_v50 = vld [vmem:[%s3597_s2 + $0x68] ss:$12 sps:$4 sm:$0xff]  }
 0x550   :  { %v3280_v52 = vadd.f32 %v917_v48, %v913_v51  ;;  %v2776_v48 = vld [vmem:[%s3597_s2 + $0x50] ss:$12 sps:$4 sm:$0xff]  }
 0x551   :  { %v2780_v51 = vld [vmem:[%s3597_s2 + $0x7c] ss:$12 sps:$4 sm:$0xff]  }
 0x552   :  { %919 = vst [vmem:[#allocation2 + $0x8] sm:$0x3] %v3280_v52  ;;  %v920_v54 = vpack.c.bf16 %v3280_v52, %v3280_v52  ;;  %v1032_v62 = vrot.slane %v3280_v52, 6  ;;  %v2781_v52 = vld [vmem:[%s3597_s2 + $0x80] ss:$12 sps:$4 sm:$0xff]  }
 0x554   :  { %954 = vmatmul.mubr.bf16.vlgmr.msra.gmra.mrb[24].mxu0 %v920_v54  ;;  %2454 = vmatmul.mubr.bf16.vlgmr.msra.gmra.mrb[24].mxu1 %v920_v54 }
 0x555   :  { %1042 = vmatpush1.bf16.msra.mxu0 %v2889_v20  ;;  %2458 = vmatpush3.bf16.msra.mxu1 %v2884_v19  ;;  %v2765_v19 = vld [vmem:[%s3597_s2 + $0x4] ss:$12 sps:$4 sm:$0xff]  }
 0x556   :  { %1043 = vmatprep.subr.bf16.mxu0 %v2895_v21  ;;  %2459 = vmatprep.subr.bf16.mxu1 %v2784_v6 }
 0x557   :  { %1073 = vmatprep.mubr.bf16.mxu0 %v2783_v3  ;;  %2473 = vmatprep.mubr.msk.bf16.mxu1 %vm2785_vm0, %v2784_v6 }
 0x559   :  { %1044 = vmatpush1.bf16.msra.mxu0 %v2910_v23  ;;  %2460 = vmatpush3.bf16.msra.mxu1 %v2901_v22 }
 0x55a   :  { %1045 = vmatprep.subr.bf16.mxu0 %v2917_v24  ;;  %2461 = vmatprep.subr.bf16.mxu1 %v2784_v6 }
 0x55d   :  { %1046 = vmatpush1.bf16.msra.mxu0 %v2930_v26  ;;  %2462 = vmatpush3.bf16.msra.mxu1 %v2923_v25 }
 0x55e   :  { %1047 = vmatprep.subr.bf16.mxu0 %v2936_v27  ;;  %2463 = vmatprep.subr.bf16.mxu1 %v2784_v6 }
 0x561   :  { %1048 = vmatpush1.bf16.msra.mxu0 %v2949_v29  ;;  %2464 = vmatpush3.bf16.msra.mxu1 %v2942_v28 }
 0x562   :  { %1049 = vmatprep.subr.bf16.mxu0 %v2955_v30  ;;  %2465 = vmatprep.subr.bf16.mxu1 %v2784_v6 }
 0x565   :  { %1050 = vmatpush1.bf16.msra.mxu0 %v2968_v32  ;;  %2466 = vmatpush3.bf16.msra.mxu1 %v2961_v31 }
 0x566   :  { %1051 = vmatprep.subr.bf16.mxu0 %v2974_v33  ;;  %2467 = vmatprep.subr.bf16.mxu1 %v2784_v6 }
 0x569   :  { %1052 = vmatpush1.bf16.msra.mxu0 %v2987_v35  ;;  %2468 = vmatpush3.bf16.msra.mxu1 %v2980_v34 }
 0x56a   :  { %1053 = vmatprep.subr.bf16.mxu0 %v2993_v36  ;;  %2469 = vmatprep.subr.bf16.mxu1 %v2784_v6 }
 0x56d   :  { %1054 = vmatpush1.bf16.msra.mxu0 %v3006_v38  ;;  %2470 = vmatpush3.bf16.msra.mxu1 %v2999_v37 }
 0x56e   :  { %1055 = vmatprep.subr.bf16.mxu0 %v3012_v39  ;;  %2471 = vmatprep.subr.bf16.mxu1 %v2784_v6 }
 0x571   :  { %1056 = vmatpush1.bf16.msra.mxu0 %v3025_v41  ;;  %2472 = vmatpush3.bf16.msra.mxu1 %v3018_v40 }
 0x572   :  { %1161 = vmatprep.subr.bf16.mxu0 %v2765_v19  ;;  %2477 = vmatprep.subr.bf16.mxu1 %v2784_v6 }
 0x627   :  { %v955_v20 = vpop.f32.mrb[24].mxu0  ;;  %v996_v21 = vpop.f32.mrb[24].mxu1 }
 0x628   :  { %v1003_v22 = vrot.slane %v955_v20, 6  ;;  %v957_v23 = vpop.f32.mrb[25].mxu0  ;;  %v2455_v24 = vpop.f32.mrb[25].mxu1  ;;  %v1022_v47 = vadd.f32 %v3090_v15, %v996_v21 }
 0x629   :  { %v1013_v25 = vrot.slane %v957_v23, 6  ;;  %v959_v26 = vpop.f32.mrb[26].mxu0  ;;  %v999_v27 = vpop.f32.mrb[26].mxu1 }
 0x62a   :  { %v1005_v28 = vadd.f32 %v1003_v22, %v3077_v57  ;;  %v960_v29 = vpop.f32.mrb[27].mxu0  ;;  %v2456_v30 = vpop.f32.mrb[27].mxu1  ;;  %v1024_v55 = vrot.slane %v1022_v47, 6 }
 0x62b   :  { %v1015_v31 = vadd.f32 %v1013_v25, %v3079_v59 }
 0x62c   :  { %v2187_v32 = vmul.f32 -1.442695, %v1005_v28 }
 0x62d   :  { %v2188_v33 = vmul.f32 -1.442695, %v1015_v31 }
 0x62e   :  { %2681 = vpow2.f32 %v2187_v32 }
 0x62f   :  { %2683 = vpow2.f32 %v2188_v33 }
 0x638   :  { %v2682_v34 = vpop.eup %2681 }
 0x639   :  { %v2684_v45 = vpop.eup %2683  ;;  %v1009_v56 = vadd.f32 1.0, %v2682_v34 }
 0x63a   :  { %v1019_v43 = vadd.f32 1.0, %v2684_v45 }
 0x63b   :  { %2685 = vrcp.f32 %v1009_v56 }
 0x63c   :  { %2687 = vrcp.f32 %v1019_v43 }
 0x645   :  { %v2686_v60 = vpop.eup %2685 }
 0x646   :  { %v2688_v63 = vpop.eup %2687  ;;  %v1026_v0 = vmul.f32 %v2686_v60, %v1024_v55 }
 0x647   :  { %v1034_v1 = vmul.f32 %v2688_v63, %v1032_v62  ;;  %v1029_v4 = vsub.f32 1.0, %v2688_v63 }
 0x648   :  { %v1027_v2 = vadd.f32 %v1026_v0, %v3075_v53 }
 0x64a   :  { %2689 = vtanh.f32 %v1027_v2 }
 0x654   :  { %v2690_v7 = vpop.eup %2689 }
 0x655   :  { %v1030_v16 = vmul.f32 %v2690_v7, %v1029_v4 }
 0x657   :  { %v3327_v8 = vadd.f32 %v1034_v1, %v1030_v16 }
 0x659   :  { %1036 = vst [vmem:[#allocation2 + $0x8] sm:$0xc] %v3327_v8  ;;  %v1037_v9 = vpack.c.bf16 %v3327_v8, %v3327_v8  ;;  %v1152_v32 = vrot.slane %v3327_v8, 6 }
 0x65b   :  { %v1039_v10 = vrot.slane %v1037_v9, 1 }
 0x65d   :  { %1074 = vmatmul.mubr.bf16.vlgmr.msra.gmra.mrb[28].mxu0 %v1039_v10  ;;  %2474 = vmatmul.mubr.bf16.vlgmr.msra.gmra.mrb[28].mxu1 %v1039_v10 }
 0x65e   :  { %1162 = vmatpush1.bf16.msra.mxu0 %v2766_v11  ;;  %2478 = vmatpush3.bf16.msra.mxu1 %v2767_v12 }
 0x65f   :  { %1163 = vmatprep.subr.bf16.mxu0 %v2768_v13  ;;  %2479 = vmatprep.subr.bf16.mxu1 %v2784_v6 }
 0x660   :  { %1193 = vmatprep.mubr.bf16.mxu0 %v2783_v3  ;;  %2493 = vmatprep.mubr.msk.bf16.mxu1 %vm2785_vm0, %v2784_v6 }
 0x662   :  { %1164 = vmatpush1.bf16.msra.mxu0 %v2769_v14  ;;  %2480 = vmatpush3.bf16.msra.mxu1 %v2770_v17 }
 0x663   :  { %1165 = vmatprep.subr.bf16.mxu0 %v2771_v18  ;;  %2481 = vmatprep.subr.bf16.mxu1 %v2784_v6 }
 0x666   :  { %1166 = vmatpush1.bf16.msra.mxu0 %v2772_v42  ;;  %2482 = vmatpush3.bf16.msra.mxu1 %v2773_v44 }
 0x667   :  { %1167 = vmatprep.subr.bf16.mxu0 %v2774_v61  ;;  %2483 = vmatprep.subr.bf16.mxu1 %v2784_v6 }
 0x66a   :  { %1168 = vmatpush1.bf16.msra.mxu0 %v2775_v46  ;;  %2484 = vmatpush3.bf16.msra.mxu1 %v2776_v48 }
 0x66b   :  { %1169 = vmatprep.subr.bf16.mxu0 %v2777_v49  ;;  %2485 = vmatprep.subr.bf16.mxu1 %v2784_v6 }
 0x66e   :  { %1170 = vmatpush1.bf16.msra.mxu0 %v2778_v5  ;;  %2486 = vmatpush3.bf16.msra.mxu1 %v2779_v50 }
 0x66f   :  { %1171 = vmatprep.subr.bf16.mxu0 %v2780_v51  ;;  %2487 = vmatprep.subr.bf16.mxu1 %v2784_v6 }
 0x672   :  { %1172 = vmatpush1.bf16.msra.mxu0 %v2987_v35  ;;  %2488 = vmatpush3.bf16.msra.mxu1 %v2781_v52 }
 0x673   :  { %1173 = vmatprep.subr.bf16.mxu0 %v2993_v36  ;;  %2489 = vmatprep.subr.bf16.mxu1 %v2784_v6 }
 0x676   :  { %1174 = vmatpush1.bf16.msra.mxu0 %v3006_v38  ;;  %2490 = vmatpush3.bf16.msra.mxu1 %v2999_v37 }
 0x677   :  { %1175 = vmatprep.subr.bf16.mxu0 %v3012_v39  ;;  %2491 = vmatprep.subr.bf16.mxu1 %v2784_v6 }
 0x67a   :  { %1176 = vmatpush1.bf16.msra.mxu0 %v3025_v41  ;;  %2492 = vmatpush3.bf16.msra.mxu1 %v3018_v40 }
 0x67b   :  { %2517 = vmatprep.subr.bf16.mxu1 %v2784_v6  ;;  %2497 = vmatprep.subr.bf16.mxu0 %v2784_v6 }
 0x730   :  { %v1075_v35 = vpop.f32.mrb[28].mxu0  ;;  %v1116_v36 = vpop.f32.mrb[28].mxu1 }
 0x731   :  { %v1123_v54 = vrot.slane %v1075_v35, 4  ;;  %v1077_v19 = vpop.f32.mrb[29].mxu0  ;;  %v2475_v20 = vpop.f32.mrb[29].mxu1  ;;  %v1142_v29 = vadd.f32 %v3090_v15, %v1116_v36 }
 0x732   :  { %v1133_v38 = vrot.slane %v1077_v19, 4  ;;  %v1079_v21 = vpop.f32.mrb[30].mxu0  ;;  %v1119_v37 = vpop.f32.mrb[30].mxu1  ;;  %v3420_v20 = vld [vmem:[%s3601_s8 + $0x8] sm:$0xff]  }
 0x733   :  { %v1125_v39 = vadd.f32 %v1123_v54, %v3077_v57  ;;  %v1080_v22 = vpop.f32.mrb[31].mxu0  ;;  %v2476_v23 = vpop.f32.mrb[31].mxu1  ;;  %v1144_v30 = vrot.slane %v1142_v29, 4 }
 0x734   :  { %v1135_v41 = vadd.f32 %v1133_v38, %v3079_v59  ;;  %v2624_v38 = vld [vmem:[%s3602_s7 + $0x8] sm:$0xff]   ;;  %v2626_v23 = vld [vmem:[%s3602_s7 + $0x18] sm:$0xff]  }
 0x735   :  { %v2189_v24 = vmul.f32 -1.442695, %v1125_v39 }
 0x736   :  { %v2190_v40 = vmul.f32 -1.442695, %v1135_v41  ;;  %v2627_v41 = vld [vmem:[%s3602_s7 + $0x20] sm:$0xff]  }
 0x737   :  { %2691 = vpow2.f32 %v2189_v24  ;;  %v2628_v24 = vld [vmem:[%s3602_s7 + $0x28] sm:$0xff]  }
 0x738   :  { %2693 = vpow2.f32 %v2190_v40  ;;  %v2629_v40 = vld [vmem:[%s3602_s7 + $0x30] sm:$0xff]  }
 0x741   :  { %v2692_v25 = vpop.eup %2691 }
 0x742   :  { %v2694_v26 = vpop.eup %2693  ;;  %v1129_v27 = vadd.f32 1.0, %v2692_v25  ;;  %v2630_v25 = vld [vmem:[%s3602_s7 + $0x38] sm:$0xff]  }
 0x743   :  { %v1139_v28 = vadd.f32 1.0, %v2694_v26  ;;  %v2204_v26 = vld [vmem:[%s3603_s10] ss:$0 sm:$0xff] }
 0x744   :  { %2695 = vrcp.f32 %v1129_v27 }
 0x745   :  { %2697 = vrcp.f32 %v1139_v28 }
 0x74e   :  { %v2696_v31 = vpop.eup %2695 }
 0x74f   :  { %v2698_v33 = vpop.eup %2697  ;;  %v1146_v34 = vmul.f32 %v2696_v31, %v1144_v30  ;;  %v1293_v31 = vpop.xlane.xlu1 %1292 }
 0x750   :  { %v1154_v45 = vmul.f32 %v2698_v33, %v1152_v32  ;;  %v1149_v43 = vsub.f32 1.0, %v2698_v33  ;;  %v1296_v32 = vmul.f32 0.0078125, %v1293_v31 }
 0x751   :  { %v1147_v56 = vadd.f32 %v1146_v34, %v3075_v53 }
 0x752   :  { %v1298_v33 = vadd.f32 1e-05, %v1296_v32 }
 0x753   :  { %2699 = vtanh.f32 %v1147_v56 }
 0x75d   :  { %v2700_v47 = vpop.eup %2699 }
 0x75e   :  { %v1150_v55 = vmul.f32 %v2700_v47, %v1149_v43 }
 0x760   :  { %v1155_v60 = vadd.f32 %v1154_v45, %v1150_v55 }
 0x762   :  { %1156 = vst [vmem:[#allocation2 + $0x8] sm:$0x30] %v1155_v60  ;;  %v1157_v62 = vpack.c.bf16 %v1155_v60, %v1155_v60  ;;  %v1272_v5 = vrot.slane %v1155_v60, 6  ;;  %v2193_v60 = vld [vmem:[%s3604_s5] ss:$0 sm:$0xff] }
 0x764   :  { %v1159_v63 = vrot.slane %v1157_v62, 2 }
 0x766   :  { %1194 = vmatmul.mubr.bf16.vlgmr.msra.gmra.mrb[32].mxu0 %v1159_v63  ;;  %2494 = vmatmul.mubr.bf16.vlgmr.msra.gmra.mrb[32].mxu1 %v1159_v63 }
 0x767   :  { %2521 = vmatprep.mubr.msk.bf16.mxu1 %vm2785_vm0, %v2784_v6  ;;  %2513 = vmatprep.mubr.msk.bf16.mxu0 %vm2785_vm0, %v2784_v6 }
 0x839   :  { %v1195_v0 = vpop.f32.mrb[32].mxu0  ;;  %v1236_v1 = vpop.f32.mrb[32].mxu1 }
 0x83a   :  { %v1243_v2 = vrot.slane %v1195_v0, 2  ;;  %v1197_v4 = vpop.f32.mrb[33].mxu0  ;;  %v2495_v7 = vpop.f32.mrb[33].mxu1  ;;  %v1262_v46 = vadd.f32 %v3090_v15, %v1236_v1  ;;  %v3415_v15 = vld [vmem:[%s3601_s8] sm:$0xff]  }
 0x83b   :  { %v1253_v16 = vrot.slane %v1197_v4, 2  ;;  %v1199_v8 = vpop.f32.mrb[34].mxu0  ;;  %v1239_v9 = vpop.f32.mrb[34].mxu1  ;;  %2518 = vmatpush3.bf16.msra.mxu1 %v3415_v15 }
 0x83c   :  { %v1245_v10 = vadd.f32 %v1243_v2, %v3077_v57  ;;  %v1200_v11 = vpop.f32.mrb[35].mxu0  ;;  %v2496_v12 = vpop.f32.mrb[35].mxu1  ;;  %v1264_v48 = vrot.slane %v1262_v46, 2  ;;  %2519 = vmatprep.subr.bf16.mxu1 %v2784_v6  ;;  %v2194_v2 = vld [vmem:[%s3605_s6] ss:$0 sm:$0xff]  ;;  %s2787_s6 = smov 96  }
 0x83d   :  { %v1255_v13 = vadd.f32 %v1253_v16, %v3079_v59  ;;  %v2195_v8 = vld [vmem:[%s3606_s9] ss:$0 sm:$0xff] }
 0x83e   :  { %v2191_v14 = vmul.f32 -1.442695, %v1245_v10 }
 0x83f   :  { %v2192_v17 = vmul.f32 -1.442695, %v1255_v13  ;;  %2520 = vmatpush3.bf16.msra.mxu1 %v3420_v20 }
 0x840   :  { %2701 = vpow2.f32 %v2191_v14  ;;  %2525 = vmatprep.subr.bf16.mxu1 %v2784_v6 }
 0x841   :  { %2703 = vpow2.f32 %v2192_v17 }
 0x842   :  { %2522 = vmatmul.mubr.bf16.vlgmr.msra.gmra.mrb[36].mxu1 %v2783_v3  ;;  %v2625_v3 = vld [vmem:[%s3602_s7 + $0x10] sm:$0xff]  }
 0x843   :  { %2526 = vmatpush3.bf16.msra.mxu1 %v3415_v15  ;;  %2529 = vmatprep.mubr.msk.bf16.mxu1 %vm2785_vm0, %v2784_v6 }
 0x844   :  { %2527 = vmatprep.subr.bf16.mxu1 %v2784_v6 }
 0x847   :  { %2528 = vmatpush3.bf16.msra.mxu1 %v3420_v20 }
 0x848   :  { %2533 = vmatprep.subr.bf16.mxu1 %v2784_v6 }
 0x84a   :  { %v2702_v18 = vpop.eup %2701 }
 0x84b   :  { %v2704_v42 = vpop.eup %2703  ;;  %v1249_v44 = vadd.f32 1.0, %v2702_v18 }
 0x84c   :  { %v1259_v61 = vadd.f32 1.0, %v2704_v42 }
 0x84d   :  { %2705 = vrcp.f32 %v1249_v44 }
 0x84e   :  { %2707 = vrcp.f32 %v1259_v61 }
 0x857   :  { %v2706_v49 = vpop.eup %2705 }
 0x858   :  { %v2708_v57 = vpop.eup %2707  ;;  %v1266_v50 = vmul.f32 %v2706_v49, %v1264_v48 }
 0x859   :  { %v1274_v51 = vmul.f32 %v2708_v57, %v1272_v5  ;;  %v1269_v52 = vsub.f32 1.0, %v2708_v57 }
 0x85a   :  { %v1267_v59 = vadd.f32 %v1266_v50, %v3075_v53  ;;  %v2623_v53 = vld [vmem:[%s3602_s7] sm:$0xff]  }
 0x85b   :  { %2498 = vmatpush3.bf16.msra.mxu0 %v2623_v53 }
 0x85c   :  { %2709 = vtanh.f32 %v1267_v59  ;;  %2499 = vmatprep.subr.bf16.mxu0 %v2784_v6 }
 0x85d   :  { %2711 = vrsqrt.f32 %v1298_v33 }
 0x85f   :  { %2500 = vmatpush3.bf16.msra.mxu0 %v2624_v38 }
 0x860   :  { %2501 = vmatprep.subr.bf16.mxu0 %v2784_v6 }
 0x863   :  { %2502 = vmatpush3.bf16.msra.mxu0 %v2625_v3 }
 0x864   :  { %2503 = vmatprep.subr.bf16.mxu0 %v2784_v6 }
 0x866   :  { %v2710_v35 = vpop.eup %2709 }
 0x867   :  { %v1270_v36 = vmul.f32 %v2710_v35, %v1269_v52  ;;  %2504 = vmatpush3.bf16.msra.mxu0 %v2626_v23  ;;  %v2712_v43 = vpop.eup %2711 }
 0x868   :  { %2505 = vmatprep.subr.bf16.mxu0 %v2784_v6  ;;  %v1302_v47 = vmul.f32 %v2712_v43, %v3271_v58 }
 0x869   :  { %v1275_v54 = vadd.f32 %v1274_v51, %v1270_v36 }
 0x86a   :  { %v1310_v1 = vmul.f32 %v2193_v60, %v1302_v47 }
 0x86b   :  { %1276 = vst [vmem:[#allocation2 + $0x8] sm:$0xc0] %v1275_v54  ;;  %2506 = vmatpush3.bf16.msra.mxu0 %v2627_v41 }
 0x86c   :  { %2507 = vmatprep.subr.bf16.mxu0 %v2784_v6  ;;  %v1318_v7 = vadd.f32 %v2194_v2, %v1310_v1 }
 0x86f   :  { %2508 = vmatpush3.bf16.msra.mxu0 %v2628_v24 }
 0x870   :  { %2509 = vmatprep.subr.bf16.mxu0 %v2784_v6 }
 0x872   :  { %v1278_v19 = vld [vmem:[#allocation2 + $0x8] sm:$0xff] }
 0x873   :  { %1283 = vadd.xlane.f32.xlu0 %v1278_v19  ;;  %2510 = vmatpush3.bf16.msra.mxu0 %v2629_v40 }
 0x874   :  { %2511 = vmatprep.subr.bf16.mxu0 %v2784_v6 }
 0x877   :  { %2512 = vmatpush3.bf16.msra.mxu0 %v2630_v25 }
 0x878   :  { %2549 = vmatprep.subr.bf16.mxu0 %v2784_v6 }
 0x889   :  { %1506 = vrot.lane.b32.xlu0 %v2204_v26, %s2786_s17 }
 0x900   :  { %v1284_v21 = vpop.xlane.xlu0 %1283 }
 0x901   :  { %v1287_v37 = vmul.f32 0.0078125, %v1284_v21 }
 0x903   :  { %v1289_v39 = vsub.f32 %v1278_v19, %v1287_v37 }
 0x904   :  { %v3470_v55 = vpop.permute.xlu0 %1506 }
 0x905   :  { %v1291_v22 = vmul.f32 %v1289_v39, %v1289_v39 }
 0x907   :  { %1294 = vadd.xlane.f32.xlu1 %v1291_v22 }
 0x915   :  { %v1493_v27 = vpop.f32.mrb[36].mxu1 }
 0x916   :  { %v2523_v28 = vpop.f32.mrb[37].mxu1  ;;  %v1509_v62 = vadd.f32 %v3470_v55, %v1493_v27 }
 0x917   :  { %v1496_v29 = vpop.f32.mrb[38].mxu1 }
 0x918   :  { %v2524_v30 = vpop.f32.mrb[39].mxu1  ;;  %1511 = vrot.lane.b32.xlu1 %v1509_v62, %s2786_s17 }
 0x994   :  { %v1295_v34 = vpop.xlane.xlu1 %1294 }
 0x995   :  { %v1297_v45 = vmul.f32 0.0078125, %v1295_v34 }
 0x997   :  { %v1299_v56 = vadd.f32 1e-05, %v1297_v45 }
 0x998   :  { %v1512_v61 = vpop.permute.xlu1 %1511 }
 0x999   :  { %2713 = vrsqrt.f32 %v1299_v56 }
 0x9a3   :  { %v2714_v63 = vpop.eup %2713 }
 0x9a4   :  { %v1303_v0 = vmul.f32 %v2714_v63, %v1289_v39 }
 0x9a6   :  { %v1311_v4 = vmul.f32 %v2193_v60, %v1303_v0 }
 0x9a8   :  { %v1319_v58 = vadd.f32 %v2194_v2, %v1311_v4 }
 0x9aa   :  { %v1320_v16 = vpack.c.bf16 %v1319_v58, %v1318_v7 }
 0x9ac   :  { %2514 = vmatmul.mubr.bf16.vlgmr.msra.gmra.mrb[36].mxu0 %v1320_v16 }
 0x9ad   :  { %2550 = vmatpush3.bf16.msra.mxu0 %v3415_v15  ;;  %2553 = vmatprep.mubr.msk.bf16.mxu0 %vm2785_vm0, %v2784_v6 }
 0x9ae   :  { %2551 = vmatprep.subr.bf16.mxu0 %v2784_v6 }
 0x9b1   :  { %2552 = vmatpush3.bf16.msra.mxu0 %v3420_v20 }
 0x9b2   :  { %2565 = vmatprep.subr.bf16.mxu0 %v2784_v6 }
 0xa7f   :  { %v1426_v9 = vpop.f32.mrb[36].mxu0 }
 0xa80   :  { %v3489_v10 = vadd.f32 %v2195_v8, %v1426_v9  ;;  %v2515_v11 = vpop.f32.mrb[37].mxu0 }
 0xa81   :  { %v1429_v12 = vpop.f32.mrb[38].mxu0 }
 0xa82   :  { %v3491_v13 = vadd.f32 %v2195_v8, %v1429_v12  ;;  %v2516_v14 = vpop.f32.mrb[39].mxu0  ;;  %v1499_v17 = vadd.f32 %v1493_v27, %v3489_v10 }
 0xa84   :  { %v2207_v18 = vmul.f32 -1.442695, %v1499_v17 }
 0xa86   :  { %2715 = vpow2.f32 %v2207_v18 }
 0xa90   :  { %v2716_v42 = vpop.eup %2715 }
 0xa91   :  { %v1503_v44 = vadd.f32 1.0, %v2716_v42 }
 0xa93   :  { %2717 = vrcp.f32 %v1503_v44 }
 0xa9d   :  { %v2718_v46 = vpop.eup %2717 }
 0xa9e   :  { %v1514_v48 = vmul.f32 %v2718_v46, %v1512_v61  ;;  %v1521_v50 = vsub.f32 1.0, %v2718_v46  ;;  %v1527_v59 = vmul.f32 0.0, %v2718_v46 }
 0xaa0   :  { %1516 = vrot.lane.b32.xlu1 %v1514_v48, %s2786_s17 }
 0xb12   :  { %v1517_v49 = vpop.permute.xlu1 %1516 }
 0xb13   :  { %v1519_v5 = vadd.f32 %v1517_v49, %v3489_v10 }
 0xb15   :  { %2719 = vtanh.f32 %v1519_v5 }
 0xb1f   :  { %v2720_v57 = vpop.eup %2719 }
 0xb20   :  { %1523 = vrot.lane.b32.xlu1 %v2720_v57, %s2787_s6 }
 0xb92   :  { %v1524_v51 = vpop.permute.xlu1 %1523 }
 0xb93   :  { %v1526_v52 = vmul.f32 %v1524_v51, %v1521_v50 }
 0xb95   :  { %v1528_v35 = vadd.f32 %v1527_v59, %v1526_v52 }
 0xb97   :  { %v1529_v36 = vpack.c.bf16 %v1528_v35, %v1528_v35  ;;  %v1606_v30 = vrot.slane %v1528_v35, 6 }
 0xb99   :  { %1531 = vrot.lane.b32.xlu0 %v1529_v36, %s2787_s6 }
 0xc0b   :  { %v1532_v54 = vpop.permute.xlu0 %1531 }
 0xc0c   :  { %2530 = vmatmul.mubr.msk.bf16.vlgmr.msra.gmra.mrb[40].mxu1 %vm1455_vm3, %v1532_v54 }
 0xc0d   :  { %2534 = vmatpush3.bf16.msra.mxu1 %v3415_v15  ;;  %2537 = vmatprep.mubr.msk.bf16.mxu1 %vm2785_vm0, %v2784_v6 }
 0xc0e   :  { %2535 = vmatprep.subr.bf16.mxu1 %v2784_v6 }
 0xc11   :  { %2536 = vmatpush3.bf16.msra.mxu1 %v3420_v20 }
 0xc12   :  { %2541 = vmatprep.subr.bf16.mxu1 %v2784_v6 }
 0xcdf   :  { %v1570_v19 = vpop.f32.mrb[40].mxu1 }
 0xce0   :  { %v1586_v53 = vadd.f32 %v1570_v19, %v3470_v55  ;;  %v2531_v38 = vpop.f32.mrb[41].mxu1  ;;  %v1577_v22 = vrot.slane %v1570_v19, 6 }
 0xce1   :  { %v1573_v21 = vpop.f32.mrb[42].mxu1 }
 0xce2   :  { %v1588_v37 = vrot.slane %v1586_v53, 6  ;;  %v2532_v39 = vpop.f32.mrb[43].mxu1  ;;  %v1579_v3 = vadd.f32 %v1577_v22, %v3489_v10 }
 0xce4   :  { %1589 = vrot.lane.b32.xlu1 %v1588_v37, %s2786_s17  ;;  %v2209_v23 = vmul.f32 -1.442695, %v1579_v3 }
 0xce6   :  { %2721 = vpow2.f32 %v2209_v23 }
 0xcf0   :  { %v2722_v41 = vpop.eup %2721 }
 0xcf1   :  { %v1583_v24 = vadd.f32 1.0, %v2722_v41 }
 0xcf3   :  { %2723 = vrcp.f32 %v1583_v24 }
 0xcfd   :  { %v2724_v40 = vpop.eup %2723 }
 0xcfe   :  { %v1599_v31 = vsub.f32 1.0, %v2724_v40  ;;  %v1608_v33 = vmul.f32 %v2724_v40, %v1606_v30 }
 0xd56   :  { %v1590_v25 = vpop.permute.xlu1 %1589 }
 0xd57   :  { %v1592_v26 = vmul.f32 %v2724_v40, %v1590_v25 }
 0xd59   :  { %1594 = vrot.lane.b32.xlu0 %v1592_v26, %s2786_s17 }
 0xdcb   :  { %v1595_v27 = vpop.permute.xlu0 %1594 }
 0xdcc   :  { %v1597_v28 = vadd.f32 %v1595_v27, %v3489_v10 }
 0xdce   :  { %2725 = vtanh.f32 %v1597_v28 }
 0xdd8   :  { %v2726_v29 = vpop.eup %2725 }
 0xdd9   :  { %1601 = vrot.lane.b32.xlu1 %v2726_v29, %s2787_s6 }
 0xe4b   :  { %v1602_v32 = vpop.permute.xlu1 %1601 }
 0xe4c   :  { %v1604_v34 = vmul.f32 %v1602_v32, %v1599_v31 }
 0xe4e   :  { %v1609_v45 = vadd.f32 %v1608_v33, %v1604_v34 }
 0xe50   :  { %v1610_v56 = vpack.c.bf16 %v1609_v45, %v1609_v45  ;;  %v1688_v42 = vrot.slane %v1609_v45, 6 }
 0xe52   :  { %v1612_v43 = vrot.slane %v1610_v56, 1 }
 0xe54   :  { %1613 = vrot.lane.b32.xlu0 %v1612_v43, %s2787_s6 }
 0xec6   :  { %v1614_v47 = vpop.permute.xlu0 %1613 }
 0xec7   :  { %2538 = vmatmul.mubr.msk.bf16.vlgmr.msra.gmra.mrb[44].mxu1 %vm1455_vm3, %v1614_v47 }
 0xec8   :  { %2542 = vmatpush3.bf16.msra.mxu1 %v3415_v15  ;;  %2545 = vmatprep.mubr.msk.bf16.mxu1 %vm2785_vm0, %v2784_v6 }
 0xec9   :  { %2543 = vmatprep.subr.bf16.mxu1 %v2784_v6 }
 0xecc   :  { %2544 = vmatpush3.bf16.msra.mxu1 %v3420_v20 }
 0xecd   :  { %2557 = vmatprep.subr.bf16.mxu1 %v2784_v6 }
 0xf9a   :  { %v1652_v60 = vpop.f32.mrb[44].mxu1 }
 0xf9b   :  { %v1668_v62 = vadd.f32 %v1652_v60, %v3470_v55  ;;  %v2539_v63 = vpop.f32.mrb[45].mxu1  ;;  %v1659_v4 = vrot.slane %v1652_v60, 4 }
 0xf9c   :  { %v1655_v0 = vpop.f32.mrb[46].mxu1 }
 0xf9d   :  { %v1670_v1 = vrot.slane %v1668_v62, 4  ;;  %v2540_v2 = vpop.f32.mrb[47].mxu1  ;;  %v1661_v7 = vadd.f32 %v1659_v4, %v3489_v10 }
 0xf9f   :  { %1671 = vrot.lane.b32.xlu1 %v1670_v1, %s2786_s17  ;;  %v2211_v58 = vmul.f32 -1.442695, %v1661_v7 }
 0xfa1   :  { %2727 = vpow2.f32 %v2211_v58 }
 0xfab   :  { %v2728_v16 = vpop.eup %2727 }
 0xfac   :  { %v1665_v8 = vadd.f32 1.0, %v2728_v16 }
 0xfae   :  { %2729 = vrcp.f32 %v1665_v8 }
 0xfb8   :  { %v2730_v9 = vpop.eup %2729 }
 0xfb9   :  { %v1681_v44 = vsub.f32 1.0, %v2730_v9  ;;  %v1690_v46 = vmul.f32 %v2730_v9, %v1688_v42 }
0x1011   :  { %v1672_v11 = vpop.permute.xlu1 %1671 }
0x1012   :  { %v1674_v12 = vmul.f32 %v2730_v9, %v1672_v11 }
0x1014   :  { %1676 = vrot.lane.b32.xlu0 %v1674_v12, %s2786_s17 }
0x1086   :  { %v1677_v14 = vpop.permute.xlu0 %1676 }
0x1087   :  { %v1679_v17 = vadd.f32 %v1677_v14, %v3489_v10 }
0x1089   :  { %2731 = vtanh.f32 %v1679_v17 }
0x1093   :  { %v2732_v18 = vpop.eup %2731 }
0x1094   :  { %1683 = vrot.lane.b32.xlu1 %v2732_v18, %s2787_s6 }
0x1106   :  { %v1684_v61 = vpop.permute.xlu1 %1683 }
0x1107   :  { %v1686_v48 = vmul.f32 %v1684_v61, %v1681_v44 }
0x1109   :  { %v1691_v49 = vadd.f32 %v1690_v46, %v1686_v48 }
0x110b   :  { %v1692_v5 = vpack.c.bf16 %v1691_v49, %v1691_v49  ;;  %v1770_v40 = vrot.slane %v1691_v49, 6 }
0x110d   :  { %v1694_v57 = vrot.slane %v1692_v5, 2 }
0x110f   :  { %1695 = vrot.lane.b32.xlu0 %v1694_v57, %s2787_s6 }
0x1181   :  { %v1696_v50 = vpop.permute.xlu0 %1695 }
0x1182   :  { %2546 = vmatmul.mubr.msk.bf16.vlgmr.msra.gmra.mrb[48].mxu1 %vm1455_vm3, %v1696_v50 }
0x1183   :  { %2558 = vmatpush3.bf16.msra.mxu1 %v3415_v15  ;;  %2561 = vmatprep.mubr.msk.bf16.mxu1 %vm2785_vm0, %v2784_v6 }
0x1184   :  { %2559 = vmatprep.subr.bf16.mxu1 %v2784_v6 }
0x1187   :  { %2560 = vmatpush3.bf16.msra.mxu1 %v3420_v20 }
0x1188   :  { %2573 = vmatprep.subr.bf16.mxu1 %v2784_v6 }
0x1255   :  { %v1734_v51 = vpop.f32.mrb[48].mxu1 }
0x1256   :  { %v1750_v59 = vadd.f32 %v1734_v51, %v3470_v55  ;;  %v2547_v52 = vpop.f32.mrb[49].mxu1  ;;  %v1741_v19 = vrot.slane %v1734_v51, 2 }
0x1257   :  { %v1737_v35 = vpop.f32.mrb[50].mxu1 }
0x1258   :  { %v1752_v36 = vrot.slane %v1750_v59, 2  ;;  %v2548_v54 = vpop.f32.mrb[51].mxu1  ;;  %v1743_v53 = vadd.f32 %v1741_v19, %v3489_v10 }
0x125a   :  { %1753 = vrot.lane.b32.xlu1 %v1752_v36, %s2786_s17  ;;  %v2213_v38 = vmul.f32 -1.442695, %v1743_v53 }
0x125c   :  { %2733 = vpow2.f32 %v2213_v38 }
0x1266   :  { %v2734_v21 = vpop.eup %2733 }
0x1267   :  { %v1747_v37 = vadd.f32 1.0, %v2734_v21 }
0x1269   :  { %2735 = vrcp.f32 %v1747_v37 }
0x1273   :  { %v2736_v39 = vpop.eup %2735 }
0x1274   :  { %v1763_v25 = vsub.f32 1.0, %v2736_v39  ;;  %v1772_v27 = vmul.f32 %v2736_v39, %v1770_v40 }
0x12cc   :  { %v1754_v22 = vpop.permute.xlu1 %1753 }
0x12cd   :  { %v1756_v3 = vmul.f32 %v2736_v39, %v1754_v22 }
0x12cf   :  { %1758 = vrot.lane.b32.xlu0 %v1756_v3, %s2786_s17 }
0x1341   :  { %v1759_v23 = vpop.permute.xlu0 %1758 }
0x1342   :  { %v1761_v41 = vadd.f32 %v1759_v23, %v3489_v10 }
0x1344   :  { %2737 = vtanh.f32 %v1761_v41 }
0x134e   :  { %v2738_v24 = vpop.eup %2737 }
0x134f   :  { %1765 = vrot.lane.b32.xlu1 %v2738_v24, %s2787_s6 }
0x13c1   :  { %v1766_v26 = vpop.permute.xlu1 %1765 }
0x13c2   :  { %v1768_v28 = vmul.f32 %v1766_v26, %v1763_v25 }
0x13c4   :  { %v1773_v29 = vadd.f32 %v1772_v27, %v1768_v28 }
0x13c6   :  { %v1774_v30 = vpack.c.bf16 %v1773_v29, %v1773_v29  ;;  %v1848_v58 = vrot.slane %v1773_v29, 6 }
0x13c8   :  { %v1776_v31 = vrot.slane %v1774_v30, 3 }
0x13ca   :  { %1777 = vrot.lane.b32.xlu0 %v1776_v31, %s2787_s6 }
0x143c   :  { %v1778_v32 = vpop.permute.xlu0 %1777 }
0x143d   :  { %2554 = vmatmul.mubr.msk.bf16.vlgmr.msra.gmra.mrb[40].mxu0 %vm1455_vm3, %v1778_v32 }
0x143e   :  { %2566 = vmatpush3.bf16.msra.mxu0 %v3415_v15  ;;  %2569 = vmatprep.mubr.msk.bf16.mxu0 %vm2785_vm0, %v2784_v6 }
0x143f   :  { %2567 = vmatprep.subr.bf16.mxu0 %v2784_v6 }
0x1442   :  { %2568 = vmatpush3.bf16.msra.mxu0 %v3420_v20 }
0x1510   :  { %v1816_v10 = vpop.f32.mrb[40].mxu0 }
0x1511   :  { %v1829_v33 = vadd.f32 %v1816_v10, %v3470_v55  ;;  %v2555_v34 = vpop.f32.mrb[41].mxu0  ;;  %v1822_v43 = vadd.f32 %v1816_v10, %v3491_v13 }
0x1512   :  { %v1819_v45 = vpop.f32.mrb[42].mxu0 }
0x1513   :  { %1831 = vrot.lane.b32.xlu1 %v1829_v33, %s2786_s17  ;;  %v2556_v56 = vpop.f32.mrb[43].mxu0  ;;  %v2215_v47 = vmul.f32 -1.442695, %v1822_v43 }
0x1515   :  { %2739 = vpow2.f32 %v2215_v47 }
0x151f   :  { %v2740_v60 = vpop.eup %2739 }
0x1520   :  { %v1826_v62 = vadd.f32 1.0, %v2740_v60 }
0x1522   :  { %2741 = vrcp.f32 %v1826_v62 }
0x152c   :  { %v2742_v63 = vpop.eup %2741 }
0x152d   :  { %v1841_v16 = vsub.f32 1.0, %v2742_v63  ;;  %v1850_v9 = vmul.f32 %v2742_v63, %v1848_v58 }
0x1585   :  { %v1832_v0 = vpop.permute.xlu1 %1831 }
0x1586   :  { %v1834_v1 = vmul.f32 %v2742_v63, %v1832_v0 }
0x1588   :  { %1836 = vrot.lane.b32.xlu0 %v1834_v1, %s2786_s17 }
0x15fa   :  { %v1837_v2 = vpop.permute.xlu0 %1836 }
0x15fb   :  { %v1839_v4 = vadd.f32 %v1837_v2, %v3491_v13 }
0x15fd   :  { %2743 = vtanh.f32 %v1839_v4 }
0x1607   :  { %v2744_v7 = vpop.eup %2743 }
0x1608   :  { %1843 = vrot.lane.b32.xlu1 %v2744_v7, %s2787_s6 }
0x167a   :  { %v1844_v8 = vpop.permute.xlu1 %1843 }
0x167b   :  { %v1846_v11 = vmul.f32 %v1844_v8, %v1841_v16 }
0x167d   :  { %v1851_v12 = vadd.f32 %v1850_v9, %v1846_v11 }
0x167f   :  { %v1852_v14 = vpack.c.bf16 %v1851_v12, %v1851_v12  ;;  %v1929_v36 = vrot.slane %v1851_v12, 6 }
0x1681   :  { %1854 = vrot.lane.b32.xlu0 %v1852_v14, %s2787_s6 }
0x16f3   :  { %v1855_v17 = vpop.permute.xlu0 %1854 }
0x16f4   :  { %2562 = vmatmul.mubr.msk.bf16.vlgmr.msra.gmra.mrb[52].mxu1 %vm1455_vm3, %v1855_v17 }
0x16f5   :  { %2574 = vmatpush3.bf16.msra.mxu1 %v3415_v15  ;;  %2577 = vmatprep.mubr.msk.bf16.mxu1 %vm2785_vm0, %v2784_v6 }
0x16f6   :  { %2575 = vmatprep.subr.bf16.mxu1 %v2784_v6 }
0x16f9   :  { %2576 = vmatpush3.bf16.msra.mxu1 %v3420_v20 }
0x17c7   :  { %v1893_v18 = vpop.f32.mrb[52].mxu1 }
0x17c8   :  { %v1909_v42 = vadd.f32 %v1893_v18, %v3470_v55  ;;  %v2563_v44 = vpop.f32.mrb[53].mxu1  ;;  %v1900_v49 = vrot.slane %v1893_v18, 6 }
0x17c9   :  { %v1896_v61 = vpop.f32.mrb[54].mxu1 }
0x17ca   :  { %v1911_v46 = vrot.slane %v1909_v42, 6  ;;  %v2564_v48 = vpop.f32.mrb[55].mxu1  ;;  %v1902_v5 = vadd.f32 %v1900_v49, %v3491_v13 }
0x17cc   :  { %1912 = vrot.lane.b32.xlu1 %v1911_v46, %s2786_s17  ;;  %v2217_v15 = vmul.f32 -1.442695, %v1902_v5 }
0x17ce   :  { %2745 = vpow2.f32 %v2217_v15 }
0x17d8   :  { %v2746_v57 = vpop.eup %2745 }
0x17d9   :  { %v1906_v50 = vadd.f32 1.0, %v2746_v57 }
0x17db   :  { %2747 = vrcp.f32 %v1906_v50 }
0x17e5   :  { %v2748_v6 = vpop.eup %2747 }
0x17e6   :  { %v1922_v54 = vsub.f32 1.0, %v2748_v6  ;;  %v1931_v53 = vmul.f32 %v2748_v6, %v1929_v36  ;;  %v2223_v36 = vld [vmem:[%s3607_s12] ss:$0 sm:$0xff] }
0x183e   :  { %v1913_v51 = vpop.permute.xlu1 %1912 }
0x183f   :  { %v1915_v20 = vmul.f32 %v2748_v6, %v1913_v51 }
0x1841   :  { %1917 = vrot.lane.b32.xlu0 %v1915_v20, %s2786_s17 }
0x18b3   :  { %v1918_v59 = vpop.permute.xlu0 %1917 }
0x18b4   :  { %v1920_v52 = vadd.f32 %v1918_v59, %v3491_v13 }
0x18b6   :  { %2749 = vtanh.f32 %v1920_v52 }
0x18c0   :  { %v2750_v35 = vpop.eup %2749 }
0x18c1   :  { %1924 = vrot.lane.b32.xlu1 %v2750_v35, %s2787_s6 }
0x1933   :  { %v1925_v19 = vpop.permute.xlu1 %1924 }
0x1934   :  { %v1927_v38 = vmul.f32 %v1925_v19, %v1922_v54 }
0x1936   :  { %v1932_v21 = vadd.f32 %v1931_v53, %v1927_v38  ;;  %v2222_v53 = vld [vmem:[%s3608_s11] ss:$0 sm:$0xff] }
0x1938   :  { %v1933_v37 = vpack.c.bf16 %v1932_v21, %v1932_v21  ;;  %v2011_v56 = vrot.slane %v1932_v21, 6 }
0x193a   :  { %v1935_v39 = vrot.slane %v1933_v37, 1 }
0x193c   :  { %1936 = vrot.lane.b32.xlu0 %v1935_v39, %s2787_s6 }
0x19ae   :  { %v1937_v22 = vpop.permute.xlu0 %1936 }
0x19af   :  { %2570 = vmatmul.mubr.msk.bf16.vlgmr.msra.gmra.mrb[44].mxu0 %vm1455_vm3, %v1937_v22 }
0x1a82   :  { %v1975_v3 = vpop.f32.mrb[44].mxu0 }
0x1a83   :  { %v1991_v23 = vadd.f32 %v1975_v3, %v3470_v55  ;;  %v2571_v41 = vpop.f32.mrb[45].mxu0  ;;  %v1982_v26 = vrot.slane %v1975_v3, 4 }
0x1a84   :  { %v1978_v24 = vpop.f32.mrb[46].mxu0 }
0x1a85   :  { %v1993_v40 = vrot.slane %v1991_v23, 4  ;;  %v2572_v25 = vpop.f32.mrb[47].mxu0  ;;  %v1984_v27 = vadd.f32 %v1982_v26, %v3491_v13 }
0x1a87   :  { %1994 = vrot.lane.b32.xlu1 %v1993_v40, %s2786_s17  ;;  %v2219_v28 = vmul.f32 -1.442695, %v1984_v27 }
0x1a89   :  { %2751 = vpow2.f32 %v2219_v28 }
0x1a93   :  { %v2752_v29 = vpop.eup %2751 }
0x1a94   :  { %v1988_v30 = vadd.f32 1.0, %v2752_v29 }
0x1a96   :  { %2753 = vrcp.f32 %v1988_v30 }
0x1aa0   :  { %v2754_v31 = vpop.eup %2753 }
0x1aa1   :  { %v2004_v43 = vsub.f32 1.0, %v2754_v31  ;;  %v2013_v60 = vmul.f32 %v2754_v31, %v2011_v56 }
0x1af9   :  { %v1995_v32 = vpop.permute.xlu1 %1994 }
0x1afa   :  { %v1997_v10 = vmul.f32 %v2754_v31, %v1995_v32 }
0x1afc   :  { %1999 = vrot.lane.b32.xlu0 %v1997_v10, %s2786_s17 }
0x1b6e   :  { %v2000_v33 = vpop.permute.xlu0 %1999 }
0x1b6f   :  { %v2002_v34 = vadd.f32 %v2000_v33, %v3491_v13 }
0x1b71   :  { %2755 = vtanh.f32 %v2002_v34 }
0x1b7b   :  { %v2756_v45 = vpop.eup %2755 }
0x1b7c   :  { %2006 = vrot.lane.b32.xlu1 %v2756_v45, %s2787_s6 }
0x1bee   :  { %v2007_v47 = vpop.permute.xlu1 %2006 }
0x1bef   :  { %v2009_v62 = vmul.f32 %v2007_v47, %v2004_v43 }
0x1bf1   :  { %v2014_v63 = vadd.f32 %v2013_v60, %v2009_v62 }
0x1bf3   :  { %v2015_v0 = vpack.c.bf16 %v2014_v63, %v2014_v63  ;;  %v2093_v49 = vrot.slane %v2014_v63, 6 }
0x1bf5   :  { %v2017_v1 = vrot.slane %v2015_v0, 2 }
0x1bf7   :  { %2018 = vrot.lane.b32.xlu0 %v2017_v1, %s2787_s6 }
0x1c69   :  { %v2019_v2 = vpop.permute.xlu0 %2018 }
0x1c6a   :  { %2578 = vmatmul.mubr.msk.bf16.vlgmr.msra.gmra.mrb[56].mxu1 %vm1455_vm3, %v2019_v2 }
0x1d3d   :  { %v2057_v4 = vpop.f32.mrb[56].mxu1 }
0x1d3e   :  { %v2073_v7 = vadd.f32 %v2057_v4, %v3470_v55  ;;  %v2579_v58 = vpop.f32.mrb[57].mxu1  ;;  %v2064_v11 = vrot.slane %v2057_v4, 2 }
0x1d3f   :  { %v2060_v16 = vpop.f32.mrb[58].mxu1 }
0x1d40   :  { %v2075_v8 = vrot.slane %v2073_v7, 2  ;;  %v2580_v9 = vpop.f32.mrb[59].mxu1  ;;  %v2066_v12 = vadd.f32 %v2064_v11, %v3491_v13 }
0x1d42   :  { %2076 = vrot.lane.b32.xlu1 %v2075_v8, %s2786_s17  ;;  %v2221_v14 = vmul.f32 -1.442695, %v2066_v12 }
0x1d44   :  { %2757 = vpow2.f32 %v2221_v14 }
0x1d4e   :  { %v2758_v17 = vpop.eup %2757 }
0x1d4f   :  { %v2070_v18 = vadd.f32 1.0, %v2758_v17 }
0x1d51   :  { %2759 = vrcp.f32 %v2070_v18 }
0x1d5b   :  { %v2760_v42 = vpop.eup %2759 }
0x1d5c   :  { %v2086_v5 = vsub.f32 1.0, %v2760_v42  ;;  %v2095_v57 = vmul.f32 %v2760_v42, %v2093_v49 }
0x1db4   :  { %v2077_v44 = vpop.permute.xlu1 %2076 }
0x1db5   :  { %v2079_v61 = vmul.f32 %v2760_v42, %v2077_v44 }
0x1db7   :  { %2081 = vrot.lane.b32.xlu0 %v2079_v61, %s2786_s17 }
0x1e29   :  { %v2082_v55 = vpop.permute.xlu0 %2081 }
0x1e2a   :  { %v2084_v46 = vadd.f32 %v2082_v55, %v3491_v13 }
0x1e2c   :  { %2761 = vtanh.f32 %v2084_v46 }
0x1e36   :  { %v2762_v48 = vpop.eup %2761 }
0x1e37   :  { %2088 = vrot.lane.b32.xlu1 %v2762_v48, %s2787_s6 }
0x1ea9   :  { %v2089_v15 = vpop.permute.xlu1 %2088 }
0x1eaa   :  { %v2091_v50 = vmul.f32 %v2089_v15, %v2086_v5 }
0x1eac   :  { %v2096_v6 = vadd.f32 %v2095_v57, %v2091_v50 }
0x1eae   :  { %2100 = vrot.lane.b32.xlu0 %v2096_v6, %s2787_s6 }
0x1f20   :  { %v2101_v51 = vpop.permute.xlu0 %2100 }
0x1f21   :  { %v2104_v20 = vsel %vm2103_vm4, %v2101_v51, 0.0 }
0x1f22   :  { %2105 = vadd.xlane.f32.xlu1 %v2104_v20 }
0x1f33   :  { %2136 = vrot.lane.b32.xlu1 %v2223_v36, %s2788_s21 }
0x1faf   :  { %v2106_v59 = vpop.xlane.xlu1 %2105 }
0x1fb0   :  { %v2108_v52 = vmul.f32 0.03125, %v2106_v59 }
0x1fb2   :  { %v2109_v13 = vsub.f32 %v2096_v6, %v2108_v52 }
0x1fb3   :  { %v2137_v23 = vpop.permute.xlu1 %2136 }
0x1fb4   :  { %v2110_v35 = vmul.f32 %v2109_v13, %v2109_v13 }
0x1fb6   :  { %2112 = vrot.lane.b32.xlu0 %v2110_v35, %s2787_s6 }
0x2028   :  { %v2113_v54 = vpop.permute.xlu0 %2112 }
0x2029   :  { %v2115_v19 = vsel %vm2103_vm4, %v2113_v54, 0.0 }
0x202a   :  { %2116 = vadd.xlane.f32.xlu0 %v2115_v19 }
0x2040   :  { %2127 = vrot.lane.b32.xlu0 %v2222_v53, %s2788_s21 }
0x20b7   :  { %v2117_v38 = vpop.xlane.xlu0 %2116 }
0x20b8   :  { %v2118_v21 = vmul.f32 0.03125, %v2117_v38 }
0x20ba   :  { %v2119_v37 = vadd.f32 1e-05, %v2118_v21 }
0x20bb   :  { %v2128_v22 = vpop.permute.xlu0 %2127 }
0x20bc   :  { %2763 = vrsqrt.f32 %v2119_v37 }
0x20c6   :  { %v2764_v39 = vpop.eup %2763 }
0x20c7   :  { %v2121_v3 = vmul.f32 %v2764_v39, %v2109_v13 }
0x20c9   :  { %v2130_v41 = vmul.f32 %v2128_v22, %v2121_v3 }
0x20cb   :  { %v2139_v24 = vadd.f32 %v2137_v23, %v2130_v41 }
0x20cd   :  { %2141 = vrot.lane.b32.xlu1 %v2139_v24, %s2787_s6 }
0x213f   :  { %v2142_v40 = vpop.permute.xlu1 %2141 }
0x2140   :  { %2144 = vst.msk [vmem:[%s3609_s13 - $0x6] sm:$0xc0] %vm2103_vm4, %v2142_v40 }

// kernel: stos_autoencoder_forward.3
= control target key start
LH: loop header
LB: loop body
LE: loop exit
PB: predicated region body
PF: predicated region fallthrough
CT: control target
= control target key end

     0   :  { %v3982_v0 = vmov 0.0   ;;  %vm3983_vm0 = vmmov 0   ;;  %s3984_s30 = smov 64   ;;  %vm100_vm1 = vcmask 261120   ;;  %v3985_v8 = vmov 0   ;;  %s4948_s1 = inlined_call_operand.vmem [shape: bf16[32,96], index: 1, kind: input, shape index: {}]   ;;  %s4949_s2 = inlined_call_operand.vmem [shape: bf16[32,96], index: 2, kind: input, shape index: {}]   ;;  %s4950_s0 = inlined_call_operand.vmem [shape: f32[2,32], index: 0, kind: input, shape index: {}]   ;;  %s4951_s4 = inlined_call_operand.vmem [shape: f32[1,32], index: 4, kind: input, shape index: {}]   ;;  %s4952_s3 = inlined_call_operand.vmem [shape: f32[1,96], index: 3, kind: input, shape index: {}]   ;;  %s4953_s6 = inlined_call_operand.vmem [shape: bf16[32,96], index: 6, kind: input, shape index: {}]   ;;  %s4954_s5 = inlined_call_operand.vmem [shape: bf16[32,96], index: 5, kind: input, shape index: {}]   ;;  %s4955_s8 = inlined_call_operand.vmem [shape: f32[1,32], index: 8, kind: input, shape index: {}]   ;;  %s4956_s7 = inlined_call_operand.vmem [shape: f32[1,96], index: 7, kind: input, shape index: {}]   ;;  %s4957_s12 = inlined_call_operand.vmem [shape: bf16[32,96], index: 12, kind: input, shape index: {}]   ;;  %s4958_s11 = inlined_call_operand.vmem [shape: bf16[32,96], index: 11, kind: input, shape index: {}]   ;;  %s4959_s14 = inlined_call_operand.vmem [shape: f32[1,32], index: 14, kind: input, shape index: {}]   ;;  %s4960_s9 = inlined_call_operand.vmem [shape: f32[1,32], index: 9, kind: input, shape index: {}]   ;;  %s4961_s10 = inlined_call_operand.vmem [shape: f32[1,32], index: 10, kind: input, shape index: {}]   ;;  %s4962_s13 = inlined_call_operand.vmem [shape: f32[1,96], index: 13, kind: input, shape index: {}]   ;;  %s4963_s16 = inlined_call_operand.vmem [shape: bf16[32,96], index: 16, kind: input, shape index: {}]   ;;  %s4964_s15 = inlined_call_operand.vmem [shape: bf16[32,96], index: 15, kind: input, shape index: {}]   ;;  %s4965_s18 = inlined_call_operand.vmem [shape: f32[1,32], index: 18, kind: input, shape index: {}]   ;;  %s4966_s17 = inlined_call_operand.vmem [shape: f32[1,96], index: 17, kind: input, shape index: {}]   ;;  %s4967_s21 = inlined_call_operand.vmem [shape: bf16[32,4], index: 21, kind: input, shape index: {}]   ;;  %s4968_s19 = inlined_call_operand.vmem [shape: f32[1,32], index: 19, kind: input, shape index: {}]   ;;  %s4969_s20 = inlined_call_operand.vmem [shape: f32[1,32], index: 20, kind: input, shape index: {}]   ;;  %s4970_s22 = inlined_call_operand.vmem [shape: f32[1,4], index: 22, kind: input, shape index: {}]   ;;  %s4971_s23 = inlined_call_operand.vmem [shape: f32[16,4], index: 23, kind: output, shape index: {}]  }
   0x1   :  { %4976 = sst [smem:[#allocation4_spill]] %s4948_s1  ;;  %3463 = vmatprep.subr.bf16.mxu0 %v3982_v0  ;;  %3471 = vmatprep.subr.bf16.mxu1 %v3982_v0  ;;  %vm243_vm2 = vcmask 254976   ;;  %vm1136_vm3 = vcmask 259076   ;;  %vm1049_vm4 = vcmask 257026   ;;  %vm1223_vm5 = vcmask 261126  }
   0x2   :  { %4977 = sst [smem:[#allocation5_spill]] %s4949_s2  ;;  %s4984_s24 = sld [smem:[#allocation4_spill]]  ;;  %3467 = vmatprep.mubr.msk.bf16.mxu0 %vm3983_vm0, %v3982_v0  ;;  %3475 = vmatprep.mubr.msk.bf16.mxu1 %vm3983_vm0, %v3982_v0  ;;  %vm3249_vm6 = vcmask 31744  }
   0x3   :  { %4978 = sst [smem:[#allocation6_spill]] %s4950_s0  ;;  %s4985_s2 = sld [smem:[#allocation5_spill]] }
   0x4   :  { %4979 = sst [smem:[#allocation7_spill]] %s4951_s4  ;;  %s4986_s29 = sld [smem:[#allocation6_spill]] }
   0x5   :  { %4980 = sst [smem:[#allocation8_spill]] %s4952_s3  ;;  %s4987_s3 = sld [smem:[#allocation7_spill]] }
   0x6   :  { %4981 = sst [smem:[#allocation9_spill]] %s4953_s6  ;;  %s4988_s6 = sld [smem:[#allocation8_spill]] }
   0x7   :  { %4982 = sst [smem:[#allocation10_spill]] %s4954_s5  ;;  %s4989_s5 = sld [smem:[#allocation9_spill]] }
   0x8   :  { %4983 = sst [smem:[#allocation11_spill]] %s4955_s8  ;;  %v3764_v1 = vld [vmem:[%s4984_s24] sm:$0xff]   ;;  %v3766_v3 = vld [vmem:[%s4984_s24 + $0x8] sm:$0xff]   ;;  %s4990_s4 = sld [smem:[#allocation10_spill]] }
   0x9   :  { %v4115_v2 = vld [vmem:[%s4985_s2] sm:$0xff]   ;;  %3464 = vmatpush3.bf16.msra.mxu0 %v3764_v1  ;;  %v4129_v4 = vld [vmem:[%s4985_s2 + $0x8] sm:$0xff]   ;;  %s3986_s2 = smov 96  }
   0xa   :  { %3472 = vmatpush3.bf16.msra.mxu1 %v4115_v2  ;;  %3465 = vmatprep.subr.bf16.mxu0 %v3982_v0  ;;  %v75_v5 = vld [vmem:[%s4986_s29] sm:$0x3] }
   0xb   :  { %3473 = vmatprep.subr.bf16.mxu1 %v3982_v0  ;;  %v3260_v6 = vld [vmem:[%s4987_s3] ss:$0 sm:$0xff]  ;;  %v76_v7 = vpack.c.bf16 %v75_v5, %v75_v5 }
   0xc   :  { %216 = vrot.lane.b32.xlu0 %v3260_v6, %s3984_s30  ;;  %v3256_v19 = vld [vmem:[%s4988_s6] ss:$0 sm:$0xff]  ;;  %s4991_s6 = sld [smem:[#allocation11_spill]] }
   0xd   :  { %3466 = vmatpush3.bf16.msra.mxu0 %v3766_v3 }
   0xe   :  { %3474 = vmatpush3.bf16.msra.mxu1 %v4129_v4  ;;  %3479 = vmatprep.subr.bf16.mxu0 %v3982_v0 }
   0xf   :  { %3487 = vmatprep.subr.bf16.mxu1 %v3982_v0 }
  0x10   :  { %3468 = vmatmul.mubr.msk.bf16.vlgmr.msra.gmra.mrb[0].mxu0 %vm100_vm1, %v76_v7 }
  0x11   :  { %3476 = vmatmul.mubr.bf16.vlgmr.msra.gmra.mrb[0].mxu1 %v3985_v8  ;;  %3480 = vmatpush3.bf16.msra.mxu0 %v4115_v2 }
  0x12   :  { %3481 = vmatprep.subr.bf16.mxu0 %v3982_v0  ;;  %3483 = vmatprep.mubr.msk.bf16.mxu0 %vm3983_vm0, %v3982_v0 }
  0x13   :  { %3488 = vmatpush3.bf16.msra.mxu1 %v4115_v2  ;;  %3491 = vmatprep.mubr.msk.bf16.mxu1 %vm3983_vm0, %v3982_v0 }
  0x14   :  { %3489 = vmatprep.subr.bf16.mxu1 %v3982_v0 }
  0x15   :  { %3482 = vmatpush3.bf16.msra.mxu0 %v4129_v4 }
  0x16   :  { %3495 = vmatprep.subr.bf16.mxu0 %v3982_v0 }
  0x17   :  { %3490 = vmatpush3.bf16.msra.mxu1 %v4129_v4 }
  0x18   :  { %3503 = vmatprep.subr.bf16.mxu1 %v3982_v0 }
  0x7e   :  { %v4156_v9 = vpop.permute.xlu0 %216 }
  0xe3   :  { %v138_v10 = vpop.f32.mrb[0].mxu0 }
  0xe4   :  { %v203_v11 = vpop.f32.mrb[0].mxu1  ;;  %v3469_v12 = vpop.f32.mrb[1].mxu0  ;;  %v4163_v20 = vadd.f32 %v3256_v19, %v138_v10 }
  0xe5   :  { %v219_v13 = vadd.f32 %v4156_v9, %v203_v11  ;;  %v3477_v14 = vpop.f32.mrb[1].mxu1  ;;  %v141_v15 = vpop.f32.mrb[2].mxu0 }
  0xe6   :  { %v206_v16 = vpop.f32.mrb[2].mxu1  ;;  %v3470_v17 = vpop.f32.mrb[3].mxu0  ;;  %v209_v21 = vadd.f32 %v203_v11, %v4163_v20 }
  0xe7   :  { %221 = vrot.lane.b32.xlu0 %v219_v13, %s3984_s30  ;;  %v3478_v18 = vpop.f32.mrb[3].mxu1 }
  0xe8   :  { %v3263_v22 = vmul.f32 -1.442695, %v209_v21 }
  0xea   :  { %3782 = vpow2.f32 %v3263_v22 }
  0xf4   :  { %v3783_v23 = vpop.eup %3782 }
  0xf5   :  { %v213_v24 = vadd.f32 1.0, %v3783_v23 }
  0xf7   :  { %3784 = vrcp.f32 %v213_v24 }
 0x101   :  { %v3785_v25 = vpop.eup %3784 }
 0x102   :  { %v231_v31 = vsub.f32 1.0, %v3785_v25  ;;  %v237_v33 = vmul.f32 0.0, %v3785_v25 }
 0x159   :  { %v222_v26 = vpop.permute.xlu0 %221 }
 0x15a   :  { %v224_v27 = vmul.f32 %v3785_v25, %v222_v26 }
 0x15c   :  { %226 = vrot.lane.b32.xlu1 %v224_v27, %s3984_s30 }
 0x1ce   :  { %v227_v28 = vpop.permute.xlu1 %226 }
 0x1cf   :  { %v229_v29 = vadd.f32 %v227_v28, %v4163_v20 }
 0x1d1   :  { %3786 = vtanh.f32 %v229_v29 }
 0x1db   :  { %v3787_v30 = vpop.eup %3786 }
 0x1dc   :  { %233 = vrot.lane.b32.xlu1 %v3787_v30, %s3986_s2 }
 0x24e   :  { %v234_v32 = vpop.permute.xlu1 %233 }
 0x24f   :  { %v236_v34 = vmul.f32 %v234_v32, %v231_v31 }
 0x251   :  { %v4169_v35 = vadd.f32 %v237_v33, %v236_v34 }
 0x253   :  { %v245_v36 = vpack.c.bf16 %v4169_v35, %v4169_v35 }
 0x255   :  { %247 = vrot.lane.b32.xlu0 %v245_v36, %s3986_s2 }
 0x2c7   :  { %v248_v37 = vpop.permute.xlu0 %247 }
 0x2c8   :  { %3484 = vmatmul.mubr.msk.bf16.vlgmr.msra.gmra.mrb[4].mxu0 %vm100_vm1, %v248_v37 }
 0x2c9   :  { %3496 = vmatpush3.bf16.msra.mxu0 %v4115_v2  ;;  %3499 = vmatprep.mubr.msk.bf16.mxu0 %vm3983_vm0, %v3982_v0 }
 0x2ca   :  { %3497 = vmatprep.subr.bf16.mxu0 %v3982_v0 }
 0x2cd   :  { %3498 = vmatpush3.bf16.msra.mxu0 %v4129_v4 }
 0x2ce   :  { %3511 = vmatprep.subr.bf16.mxu0 %v3982_v0 }
 0x39b   :  { %v286_v38 = vpop.f32.mrb[4].mxu0 }
 0x39c   :  { %v299_v39 = vadd.f32 %v286_v38, %v4156_v9  ;;  %v3485_v40 = vpop.f32.mrb[5].mxu0  ;;  %v292_v43 = vadd.f32 %v286_v38, %v4163_v20 }
 0x39d   :  { %v289_v41 = vpop.f32.mrb[6].mxu0 }
 0x39e   :  { %301 = vrot.lane.b32.xlu1 %v299_v39, %s3984_s30  ;;  %v3486_v42 = vpop.f32.mrb[7].mxu0  ;;  %v3265_v44 = vmul.f32 -1.442695, %v292_v43 }
 0x3a0   :  { %3788 = vpow2.f32 %v3265_v44 }
 0x3aa   :  { %v3789_v45 = vpop.eup %3788 }
 0x3ab   :  { %v296_v46 = vadd.f32 1.0, %v3789_v45 }
 0x3ad   :  { %3790 = vrcp.f32 %v296_v46 }
 0x3b7   :  { %v3791_v47 = vpop.eup %3790 }
 0x3b8   :  { %v311_v53 = vsub.f32 1.0, %v3791_v47  ;;  %v317_v55 = vmul.f32 %v3791_v47, %v4169_v35 }
 0x410   :  { %v302_v48 = vpop.permute.xlu1 %301 }
 0x411   :  { %v304_v49 = vmul.f32 %v3791_v47, %v302_v48 }
 0x413   :  { %306 = vrot.lane.b32.xlu0 %v304_v49, %s3984_s30 }
 0x485   :  { %v307_v50 = vpop.permute.xlu0 %306 }
 0x486   :  { %v309_v51 = vadd.f32 %v307_v50, %v4163_v20 }
 0x488   :  { %3792 = vtanh.f32 %v309_v51 }
 0x492   :  { %v3793_v52 = vpop.eup %3792 }
 0x493   :  { %313 = vrot.lane.b32.xlu1 %v3793_v52, %s3986_s2 }
 0x505   :  { %v314_v54 = vpop.permute.xlu1 %313 }
 0x506   :  { %v316_v56 = vmul.f32 %v314_v54, %v311_v53 }
 0x508   :  { %v4188_v57 = vadd.f32 %v317_v55, %v316_v56 }
 0x50a   :  { %v324_v58 = vpack.c.bf16 %v4188_v57, %v4188_v57 }
 0x50c   :  { %326 = vrot.lane.b32.xlu0 %v324_v58, %s3986_s2 }
 0x57e   :  { %v327_v59 = vpop.permute.xlu0 %326 }
 0x57f   :  { %3492 = vmatmul.mubr.msk.bf16.vlgmr.msra.gmra.mrb[4].mxu1 %vm100_vm1, %v327_v59 }
 0x580   :  { %3504 = vmatpush3.bf16.msra.mxu1 %v4115_v2  ;;  %3507 = vmatprep.mubr.msk.bf16.mxu1 %vm3983_vm0, %v3982_v0 }
 0x581   :  { %3505 = vmatprep.subr.bf16.mxu1 %v3982_v0 }
 0x584   :  { %3506 = vmatpush3.bf16.msra.mxu1 %v4129_v4 }
 0x585   :  { %3519 = vmatprep.subr.bf16.mxu1 %v3982_v0 }
 0x652   :  { %v365_v60 = vpop.f32.mrb[4].mxu1 }
 0x653   :  { %v378_v61 = vadd.f32 %v365_v60, %v4156_v9  ;;  %v3493_v62 = vpop.f32.mrb[5].mxu1  ;;  %v371_v3 = vadd.f32 %v365_v60, %v4163_v20 }
 0x654   :  { %v368_v63 = vpop.f32.mrb[6].mxu1 }
 0x655   :  { %380 = vrot.lane.b32.xlu1 %v378_v61, %s3984_s30  ;;  %v3494_v1 = vpop.f32.mrb[7].mxu1  ;;  %v3267_v5 = vmul.f32 -1.442695, %v371_v3 }
 0x657   :  { %3794 = vpow2.f32 %v3267_v5 }
 0x661   :  { %v3795_v6 = vpop.eup %3794 }
 0x662   :  { %v375_v7 = vadd.f32 1.0, %v3795_v6 }
 0x664   :  { %3796 = vrcp.f32 %v375_v7 }
 0x66e   :  { %v3797_v10 = vpop.eup %3796 }
 0x66f   :  { %v390_v16 = vsub.f32 1.0, %v3797_v10  ;;  %v396_v18 = vmul.f32 %v3797_v10, %v4188_v57 }
 0x6c7   :  { %v381_v11 = vpop.permute.xlu1 %380 }
 0x6c8   :  { %v383_v12 = vmul.f32 %v3797_v10, %v381_v11 }
 0x6ca   :  { %385 = vrot.lane.b32.xlu0 %v383_v12, %s3984_s30 }
 0x73c   :  { %v386_v13 = vpop.permute.xlu0 %385 }
 0x73d   :  { %v388_v14 = vadd.f32 %v386_v13, %v4163_v20 }
 0x73f   :  { %3798 = vtanh.f32 %v388_v14 }
 0x749   :  { %v3799_v15 = vpop.eup %3798 }
 0x74a   :  { %392 = vrot.lane.b32.xlu1 %v3799_v15, %s3986_s2 }
 0x7bc   :  { %v393_v17 = vpop.permute.xlu1 %392 }
 0x7bd   :  { %v395_v19 = vmul.f32 %v393_v17, %v390_v16 }
 0x7bf   :  { %v4207_v21 = vadd.f32 %v396_v18, %v395_v19 }
 0x7c1   :  { %v403_v22 = vpack.c.bf16 %v4207_v21, %v4207_v21 }
 0x7c3   :  { %405 = vrot.lane.b32.xlu0 %v403_v22, %s3986_s2 }
 0x835   :  { %v406_v23 = vpop.permute.xlu0 %405 }
 0x836   :  { %3500 = vmatmul.mubr.msk.bf16.vlgmr.msra.gmra.mrb[8].mxu0 %vm100_vm1, %v406_v23 }
 0x837   :  { %3512 = vmatpush3.bf16.msra.mxu0 %v4115_v2  ;;  %3515 = vmatprep.mubr.msk.bf16.mxu0 %vm3983_vm0, %v3982_v0 }
 0x838   :  { %3513 = vmatprep.subr.bf16.mxu0 %v3982_v0 }
 0x83b   :  { %3514 = vmatpush3.bf16.msra.mxu0 %v4129_v4 }
 0x83c   :  { %3527 = vmatprep.subr.bf16.mxu0 %v3982_v0 }
 0x909   :  { %v444_v24 = vpop.f32.mrb[8].mxu0 }
 0x90a   :  { %v457_v25 = vadd.f32 %v444_v24, %v4156_v9  ;;  %v3501_v26 = vpop.f32.mrb[9].mxu0  ;;  %v450_v29 = vadd.f32 %v444_v24, %v4163_v20 }
 0x90b   :  { %v447_v27 = vpop.f32.mrb[10].mxu0 }
 0x90c   :  { %459 = vrot.lane.b32.xlu1 %v457_v25, %s3984_s30  ;;  %v3502_v28 = vpop.f32.mrb[11].mxu0  ;;  %v3269_v30 = vmul.f32 -1.442695, %v450_v29 }
 0x90e   :  { %3800 = vpow2.f32 %v3269_v30 }
 0x918   :  { %v3801_v31 = vpop.eup %3800 }
 0x919   :  { %v454_v32 = vadd.f32 1.0, %v3801_v31 }
 0x91b   :  { %3802 = vrcp.f32 %v454_v32 }
 0x925   :  { %v3803_v33 = vpop.eup %3802 }
 0x926   :  { %v469_v40 = vsub.f32 1.0, %v3803_v33  ;;  %v475_v42 = vmul.f32 %v3803_v33, %v4207_v21 }
 0x97e   :  { %v460_v34 = vpop.permute.xlu1 %459 }
 0x97f   :  { %v462_v36 = vmul.f32 %v3803_v33, %v460_v34 }
 0x981   :  { %464 = vrot.lane.b32.xlu0 %v462_v36, %s3984_s30 }
 0x9f3   :  { %v465_v37 = vpop.permute.xlu0 %464 }
 0x9f4   :  { %v467_v38 = vadd.f32 %v465_v37, %v4163_v20 }
 0x9f6   :  { %3804 = vtanh.f32 %v467_v38 }
 0xa00   :  { %v3805_v39 = vpop.eup %3804 }
 0xa01   :  { %471 = vrot.lane.b32.xlu1 %v3805_v39, %s3986_s2 }
 0xa73   :  { %v472_v41 = vpop.permute.xlu1 %471 }
 0xa74   :  { %v474_v43 = vmul.f32 %v472_v41, %v469_v40 }
 0xa76   :  { %v4226_v44 = vadd.f32 %v475_v42, %v474_v43 }
 0xa78   :  { %v482_v45 = vpack.c.bf16 %v4226_v44, %v4226_v44 }
 0xa7a   :  { %484 = vrot.lane.b32.xlu0 %v482_v45, %s3986_s2 }
 0xaec   :  { %v485_v46 = vpop.permute.xlu0 %484 }
 0xaed   :  { %3508 = vmatmul.mubr.msk.bf16.vlgmr.msra.gmra.mrb[8].mxu1 %vm100_vm1, %v485_v46 }
 0xaee   :  { %3520 = vmatpush3.bf16.msra.mxu1 %v4115_v2  ;;  %3523 = vmatprep.mubr.msk.bf16.mxu1 %vm3983_vm0, %v3982_v0 }
 0xaef   :  { %3521 = vmatprep.subr.bf16.mxu1 %v3982_v0 }
 0xaf2   :  { %3522 = vmatpush3.bf16.msra.mxu1 %v4129_v4 }
 0xaf3   :  { %3535 = vmatprep.subr.bf16.mxu1 %v3982_v0 }
 0xbc0   :  { %v523_v47 = vpop.f32.mrb[8].mxu1 }
 0xbc1   :  { %v536_v48 = vadd.f32 %v523_v47, %v4156_v9  ;;  %v3509_v49 = vpop.f32.mrb[9].mxu1  ;;  %v529_v52 = vadd.f32 %v523_v47, %v4163_v20 }
 0xbc2   :  { %v526_v50 = vpop.f32.mrb[10].mxu1 }
 0xbc3   :  { %538 = vrot.lane.b32.xlu1 %v536_v48, %s3984_s30  ;;  %v3510_v51 = vpop.f32.mrb[11].mxu1  ;;  %v3271_v53 = vmul.f32 -1.442695, %v529_v52 }
 0xbc5   :  { %3806 = vpow2.f32 %v3271_v53 }
 0xbcf   :  { %v3807_v54 = vpop.eup %3806 }
 0xbd0   :  { %v533_v55 = vadd.f32 1.0, %v3807_v54 }
 0xbd2   :  { %3808 = vrcp.f32 %v533_v55 }
 0xbdc   :  { %v3809_v56 = vpop.eup %3808 }
 0xbdd   :  { %v548_v63 = vsub.f32 1.0, %v3809_v56  ;;  %v554_v3 = vmul.f32 %v3809_v56, %v4226_v44 }
 0xc35   :  { %v539_v58 = vpop.permute.xlu1 %538 }
 0xc36   :  { %v541_v59 = vmul.f32 %v3809_v56, %v539_v58 }
 0xc38   :  { %543 = vrot.lane.b32.xlu0 %v541_v59, %s3984_s30 }
 0xcaa   :  { %v544_v60 = vpop.permute.xlu0 %543 }
 0xcab   :  { %v546_v61 = vadd.f32 %v544_v60, %v4163_v20 }
 0xcad   :  { %3810 = vtanh.f32 %v546_v61 }
 0xcb7   :  { %v3811_v62 = vpop.eup %3810 }
 0xcb8   :  { %550 = vrot.lane.b32.xlu1 %v3811_v62, %s3986_s2 }
 0xd2a   :  { %v551_v1 = vpop.permute.xlu1 %550 }
 0xd2b   :  { %v553_v5 = vmul.f32 %v551_v1, %v548_v63 }
 0xd2d   :  { %v4245_v6 = vadd.f32 %v554_v3, %v553_v5 }
 0xd2f   :  { %v561_v7 = vpack.c.bf16 %v4245_v6, %v4245_v6 }
 0xd31   :  { %563 = vrot.lane.b32.xlu0 %v561_v7, %s3986_s2 }
 0xda3   :  { %v564_v10 = vpop.permute.xlu0 %563 }
 0xda4   :  { %3516 = vmatmul.mubr.msk.bf16.vlgmr.msra.gmra.mrb[12].mxu0 %vm100_vm1, %v564_v10 }
 0xda5   :  { %3528 = vmatpush3.bf16.msra.mxu0 %v4115_v2  ;;  %3531 = vmatprep.mubr.msk.bf16.mxu0 %vm3983_vm0, %v3982_v0 }
 0xda6   :  { %3529 = vmatprep.subr.bf16.mxu0 %v3982_v0 }
 0xda9   :  { %3530 = vmatpush3.bf16.msra.mxu0 %v4129_v4 }
 0xdaa   :  { %3543 = vmatprep.subr.bf16.mxu0 %v3982_v0 }
 0xe77   :  { %v602_v11 = vpop.f32.mrb[12].mxu0 }
 0xe78   :  { %v615_v12 = vadd.f32 %v602_v11, %v4156_v9  ;;  %v3517_v13 = vpop.f32.mrb[13].mxu0  ;;  %v608_v16 = vadd.f32 %v602_v11, %v4163_v20 }
 0xe79   :  { %v605_v14 = vpop.f32.mrb[14].mxu0 }
 0xe7a   :  { %617 = vrot.lane.b32.xlu1 %v615_v12, %s3984_s30  ;;  %v3518_v15 = vpop.f32.mrb[15].mxu0  ;;  %v3273_v2 = vmul.f32 -1.442695, %v608_v16 }
 0xe7c   :  { %3812 = vpow2.f32 %v3273_v2 }
 0xe86   :  { %v3813_v17 = vpop.eup %3812 }
 0xe87   :  { %v612_v18 = vadd.f32 1.0, %v3813_v17 }
 0xe89   :  { %3814 = vrcp.f32 %v612_v18 }
 0xe93   :  { %v3815_v19 = vpop.eup %3814 }
 0xe94   :  { %v627_v26 = vsub.f32 1.0, %v3815_v19  ;;  %v633_v28 = vmul.f32 %v3815_v19, %v4245_v6 }
 0xeec   :  { %v618_v22 = vpop.permute.xlu1 %617 }
 0xeed   :  { %v620_v4 = vmul.f32 %v3815_v19, %v618_v22  ;;  %v3282_v22 = vld [vmem:[%s4991_s6] ss:$0 sm:$0xff] }
 0xeef   :  { %622 = vrot.lane.b32.xlu0 %v620_v4, %s3984_s30 }
 0xf61   :  { %v623_v23 = vpop.permute.xlu0 %622 }
 0xf62   :  { %v625_v24 = vadd.f32 %v623_v23, %v4163_v20 }
 0xf64   :  { %3816 = vtanh.f32 %v625_v24 }
 0xf6e   :  { %v3817_v25 = vpop.eup %3816 }
 0xf6f   :  { %629 = vrot.lane.b32.xlu1 %v3817_v25, %s3986_s2 }
 0xfe1   :  { %v630_v27 = vpop.permute.xlu1 %629 }
 0xfe2   :  { %v632_v29 = vmul.f32 %v630_v27, %v627_v26 }
 0xfe4   :  { %v4264_v30 = vadd.f32 %v633_v28, %v632_v29 }
 0xfe6   :  { %v640_v31 = vpack.c.bf16 %v4264_v30, %v4264_v30 }
 0xfe8   :  { %642 = vrot.lane.b32.xlu0 %v640_v31, %s3986_s2 }
0x105a   :  { %v643_v32 = vpop.permute.xlu0 %642 }
0x105b   :  { %3524 = vmatmul.mubr.msk.bf16.vlgmr.msra.gmra.mrb[12].mxu1 %vm100_vm1, %v643_v32 }
0x105c   :  { %3539 = vmatprep.mubr.msk.bf16.mxu1 %vm3983_vm0, %v3982_v0 }
0x112e   :  { %v681_v33 = vpop.f32.mrb[12].mxu1 }
0x112f   :  { %v694_v34 = vadd.f32 %v681_v33, %v4156_v9  ;;  %v3525_v36 = vpop.f32.mrb[13].mxu1  ;;  %v687_v39 = vadd.f32 %v681_v33, %v4163_v20 }
0x1130   :  { %v684_v37 = vpop.f32.mrb[14].mxu1  ;;  %v3278_v36 = vld [vmem:[%s4956_s7] ss:$0 sm:$0xff] }
0x1131   :  { %696 = vrot.lane.b32.xlu1 %v694_v34, %s3984_s30  ;;  %v3526_v38 = vpop.f32.mrb[15].mxu1  ;;  %v3275_v40 = vmul.f32 -1.442695, %v687_v39 }
0x1133   :  { %3818 = vpow2.f32 %v3275_v40 }
0x113d   :  { %v3819_v41 = vpop.eup %3818 }
0x113e   :  { %v691_v42 = vadd.f32 1.0, %v3819_v41 }
0x1140   :  { %3820 = vrcp.f32 %v691_v42 }
0x114a   :  { %v3821_v43 = vpop.eup %3820 }
0x114b   :  { %v706_v50 = vsub.f32 1.0, %v3821_v43  ;;  %v712_v52 = vmul.f32 %v3821_v43, %v4264_v30 }
0x11a3   :  { %v697_v45 = vpop.permute.xlu1 %696 }
0x11a4   :  { %v699_v46 = vmul.f32 %v3821_v43, %v697_v45 }
0x11a6   :  { %701 = vrot.lane.b32.xlu0 %v699_v46, %s3984_s30 }
0x1218   :  { %v702_v47 = vpop.permute.xlu0 %701 }
0x1219   :  { %v704_v48 = vadd.f32 %v702_v47, %v4163_v20 }
0x121b   :  { %3822 = vtanh.f32 %v704_v48 }
0x1225   :  { %v3823_v49 = vpop.eup %3822 }
0x1226   :  { %708 = vrot.lane.b32.xlu1 %v3823_v49, %s3986_s2 }
0x1298   :  { %v709_v51 = vpop.permute.xlu1 %708 }
0x1299   :  { %v711_v53 = vmul.f32 %v709_v51, %v706_v50 }
0x129b   :  { %v4279_v54 = vadd.f32 %v712_v52, %v711_v53 }
0x129d   :  { %v719_v55 = vpack.c.bf16 %v4279_v54, %v4279_v54 }
0x129f   :  { %721 = vrot.lane.b32.xlu0 %v719_v55, %s3986_s2 }
0x1311   :  { %v722_v56 = vpop.permute.xlu0 %721 }
0x1312   :  { %3532 = vmatmul.mubr.msk.bf16.vlgmr.msra.gmra.mrb[16].mxu0 %vm100_vm1, %v722_v56 }
0x1313   :  { %3547 = vmatprep.mubr.msk.bf16.mxu0 %vm3983_vm0, %v3982_v0 }
0x13e5   :  { %v760_v58 = vpop.f32.mrb[16].mxu0 }
0x13e6   :  { %v773_v59 = vadd.f32 %v760_v58, %v4156_v9  ;;  %v3533_v60 = vpop.f32.mrb[17].mxu0  ;;  %v766_v63 = vadd.f32 %v760_v58, %v4163_v20 }
0x13e7   :  { %v763_v61 = vpop.f32.mrb[18].mxu0 }
0x13e8   :  { %775 = vrot.lane.b32.xlu1 %v773_v59, %s3984_s30  ;;  %v3534_v62 = vpop.f32.mrb[19].mxu0  ;;  %v3277_v1 = vmul.f32 -1.442695, %v766_v63 }
0x13ea   :  { %3824 = vpow2.f32 %v3277_v1 }
0x13f4   :  { %v3825_v3 = vpop.eup %3824 }
0x13f5   :  { %v770_v5 = vadd.f32 1.0, %v3825_v3 }
0x13f7   :  { %3826 = vrcp.f32 %v770_v5 }
0x1401   :  { %v3827_v7 = vpop.eup %3826 }
0x1402   :  { %v785_v16 = vsub.f32 1.0, %v3827_v7  ;;  %v791_v17 = vmul.f32 %v3827_v7, %v4279_v54 }
0x145a   :  { %v776_v10 = vpop.permute.xlu1 %775 }
0x145b   :  { %v778_v11 = vmul.f32 %v3827_v7, %v776_v10 }
0x145d   :  { %780 = vrot.lane.b32.xlu0 %v778_v11, %s3984_s30 }
0x1461   :  { %240 = vrot.lane.b32.xlu0 %v4169_v35, %s3986_s2 }
0x1465   :  { %399 = vrot.lane.b32.xlu0 %v4207_v21, %s3986_s2  ;;  %v4307_v21 = vld [vmem:[%s4989_s5] sm:$0xff]  }
0x1466   :  { %3544 = vmatpush3.bf16.msra.mxu0 %v4307_v21 }
0x1467   :  { %3545 = vmatprep.subr.bf16.mxu0 %v3982_v0 }
0x1469   :  { %557 = vrot.lane.b32.xlu0 %v4245_v6, %s3986_s2  ;;  %v4313_v6 = vld [vmem:[%s4989_s5 + $0x8] sm:$0xff]  }
0x146a   :  { %3546 = vmatpush3.bf16.msra.mxu0 %v4313_v6 }
0x146b   :  { %3559 = vmatprep.subr.bf16.mxu0 %v3982_v0 }
0x146d   :  { %715 = vrot.lane.b32.xlu0 %v4279_v54, %s3986_s2  ;;  %3548 = vmatmul.mubr.bf16.vlgmr.msra.gmra.mrb[20].mxu0 %v3985_v8 }
0x146e   :  { %3560 = vmatpush3.bf16.msra.mxu0 %v4307_v21  ;;  %3563 = vmatprep.mubr.msk.bf16.mxu0 %vm3983_vm0, %v3982_v0 }
0x146f   :  { %3561 = vmatprep.subr.bf16.mxu0 %v3982_v0 }
0x1471   :  { %937 = vrot.lane.b32.xlu0 %v3282_v22, %s3984_s30 }
0x1472   :  { %3562 = vmatpush3.bf16.msra.mxu0 %v4313_v6 }
0x1473   :  { %3575 = vmatprep.subr.bf16.mxu0 %v3982_v0 }
0x14cf   :  { %v781_v9 = vpop.permute.xlu0 %780 }
0x14d0   :  { %v783_v12 = vadd.f32 %v781_v9, %v4163_v20 }
0x14d2   :  { %3828 = vtanh.f32 %v783_v12 }
0x14d3   :  { %v241_v13 = vpop.permute.xlu0 %240 }
0x14d4   :  { %244 = vst.msk [vmem:[#allocation2] sm:$0x3] %vm243_vm2, %v241_v13 }
0x14d7   :  { %v400_v14 = vpop.permute.xlu0 %399 }
0x14d8   :  { %402 = vst.msk [vmem:[#allocation2 + $0x4] sm:$0x3] %vm243_vm2, %v400_v14 }
0x14db   :  { %v558_v35 = vpop.permute.xlu0 %557 }
0x14dc   :  { %v3829_v15 = vpop.eup %3828  ;;  %560 = vst.msk [vmem:[#allocation2 + $0x8] sm:$0x3] %vm243_vm2, %v558_v35 }
0x14dd   :  { %787 = vrot.lane.b32.xlu1 %v3829_v15, %s3986_s2 }
0x14df   :  { %v716_v20 = vpop.permute.xlu0 %715 }
0x14e0   :  { %718 = vst.msk [vmem:[#allocation2 + $0xc] sm:$0x3] %vm243_vm2, %v716_v20 }
0x14e1   :  { %320 = vrot.lane.b32.xlu1 %v4188_v57, %s3986_s2  ;;  %v3770_v57 = vld [vmem:[%s4990_s4] sm:$0xff]  }
0x14e2   :  { %3536 = vmatpush3.bf16.msra.mxu1 %v3770_v57 }
0x14e3   :  { %3537 = vmatprep.subr.bf16.mxu1 %v3982_v0  ;;  %v4349_v29 = vpop.permute.xlu0 %937 }
0x14e5   :  { %478 = vrot.lane.b32.xlu1 %v4226_v44, %s3986_s2  ;;  %v3771_v44 = vld [vmem:[%s4990_s4 + $0x8] sm:$0xff]  }
0x14e6   :  { %3538 = vmatpush3.bf16.msra.mxu1 %v3771_v44 }
0x14e7   :  { %3551 = vmatprep.subr.bf16.mxu1 %v3982_v0 }
0x14e9   :  { %636 = vrot.lane.b32.xlu1 %v4264_v30, %s3986_s2 }
0x1540   :  { %v924_v25 = vpop.f32.mrb[20].mxu0 }
0x1541   :  { %v3549_v26 = vpop.f32.mrb[21].mxu0  ;;  %v940_v31 = vadd.f32 %v4349_v29, %v924_v25 }
0x1542   :  { %v927_v27 = vpop.f32.mrb[22].mxu0 }
0x1543   :  { %v3550_v28 = vpop.f32.mrb[23].mxu0 }
0x154f   :  { %v788_v2 = vpop.permute.xlu1 %787 }
0x1550   :  { %v790_v18 = vmul.f32 %v788_v2, %v785_v16 }
0x1552   :  { %v792_v19 = vadd.f32 %v791_v17, %v790_v18 }
0x1553   :  { %v321_v4 = vpop.permute.xlu1 %320 }
0x1554   :  { %323 = vst.msk [vmem:[#allocation2 + $0x2] sm:$0x3] %vm243_vm2, %v321_v4  ;;  %794 = vrot.lane.b32.xlu1 %v792_v19, %s3986_s2 }
0x1557   :  { %v479_v23 = vpop.permute.xlu1 %478 }
0x1558   :  { %481 = vst.msk [vmem:[#allocation2 + $0x6] sm:$0x3] %vm243_vm2, %v479_v23  ;;  %942 = vrot.lane.b32.xlu1 %v940_v31, %s3984_s30 }
0x155b   :  { %v637_v24 = vpop.permute.xlu1 %636 }
0x155c   :  { %639 = vst.msk [vmem:[#allocation2 + $0xa] sm:$0x3] %vm243_vm2, %v637_v24 }
0x155f   :  { %v798_v32 = vld [vmem:[#allocation2] sm:$0xff] }
0x15c6   :  { %v795_v30 = vpop.permute.xlu1 %794 }
0x15c7   :  { %797 = vst.msk [vmem:[#allocation2 + $0xe] sm:$0x3] %vm243_vm2, %v795_v30 }
0x15ca   :  { %v943_v48 = vpop.permute.xlu1 %942 }
0x15ce   :  { %v799_v33 = vld [vmem:[#allocation2 + $0x8] sm:$0xff] }
0x15cf   :  { %v800_v34 = vpack.c.bf16 %v799_v33, %v798_v32 }
0x15d1   :  { %3540 = vmatmul.mubr.msk.bf16.vlgmr.msra.gmra.mrb[16].mxu1 %vm100_vm1, %v800_v34 }
0x15d2   :  { %3552 = vmatpush3.bf16.msra.mxu1 %v4307_v21  ;;  %3555 = vmatprep.mubr.msk.bf16.mxu1 %vm3983_vm0, %v3982_v0 }
0x15d3   :  { %3553 = vmatprep.subr.bf16.mxu1 %v3982_v0 }
0x15d6   :  { %3554 = vmatpush3.bf16.msra.mxu1 %v4313_v6 }
0x15d7   :  { %3567 = vmatprep.subr.bf16.mxu1 %v3982_v0 }
0x16a4   :  { %v861_v37 = vpop.f32.mrb[16].mxu1 }
0x16a5   :  { %v4364_v38 = vadd.f32 %v3278_v36, %v861_v37  ;;  %v3541_v39 = vpop.f32.mrb[17].mxu1 }
0x16a6   :  { %v864_v40 = vpop.f32.mrb[18].mxu1 }
0x16a7   :  { %v4366_v41 = vadd.f32 %v3278_v36, %v864_v40  ;;  %v3542_v42 = vpop.f32.mrb[19].mxu1  ;;  %v930_v43 = vadd.f32 %v924_v25, %v4364_v38 }
0x16a9   :  { %v3285_v45 = vmul.f32 -1.442695, %v930_v43 }
0x16ab   :  { %3830 = vpow2.f32 %v3285_v45 }
0x16b5   :  { %v3831_v46 = vpop.eup %3830 }
0x16b6   :  { %v934_v47 = vadd.f32 1.0, %v3831_v46 }
0x16b8   :  { %3832 = vrcp.f32 %v934_v47 }
0x16c2   :  { %v3833_v49 = vpop.eup %3832 }
0x16c3   :  { %v945_v50 = vmul.f32 %v3833_v49, %v943_v48  ;;  %v952_v54 = vsub.f32 1.0, %v3833_v49  ;;  %v958_v56 = vmul.f32 0.0, %v3833_v49 }
0x16c5   :  { %947 = vrot.lane.b32.xlu0 %v945_v50, %s3984_s30 }
0x1737   :  { %v948_v51 = vpop.permute.xlu0 %947 }
0x1738   :  { %v950_v52 = vadd.f32 %v948_v51, %v4364_v38 }
0x173a   :  { %3834 = vtanh.f32 %v950_v52 }
0x1744   :  { %v3835_v53 = vpop.eup %3834 }
0x1745   :  { %954 = vrot.lane.b32.xlu1 %v3835_v53, %s3986_s2 }
0x17b7   :  { %v955_v55 = vpop.permute.xlu1 %954 }
0x17b8   :  { %v957_v58 = vmul.f32 %v955_v55, %v952_v54 }
0x17ba   :  { %v4372_v59 = vadd.f32 %v958_v56, %v957_v58 }
0x17bc   :  { %v965_v60 = vpack.c.bf16 %v4372_v59, %v4372_v59  ;;  %v1041_v2 = vrot.slane %v4372_v59, 6 }
0x17be   :  { %967 = vrot.lane.b32.xlu0 %v965_v60, %s3986_s2 }
0x1830   :  { %v968_v61 = vpop.permute.xlu0 %967 }
0x1831   :  { %3556 = vmatmul.mubr.msk.bf16.vlgmr.msra.gmra.mrb[20].mxu1 %vm100_vm1, %v968_v61 }
0x1832   :  { %3568 = vmatpush3.bf16.msra.mxu1 %v4307_v21  ;;  %3571 = vmatprep.mubr.msk.bf16.mxu1 %vm3983_vm0, %v3982_v0 }
0x1833   :  { %3569 = vmatprep.subr.bf16.mxu1 %v3982_v0 }
0x1836   :  { %3570 = vmatpush3.bf16.msra.mxu1 %v4313_v6 }
0x1837   :  { %3583 = vmatprep.subr.bf16.mxu1 %v3982_v0 }
0x1904   :  { %v1006_v62 = vpop.f32.mrb[20].mxu1 }
0x1905   :  { %v1022_v63 = vadd.f32 %v1006_v62, %v4349_v29  ;;  %v3557_v1 = vpop.f32.mrb[21].mxu1  ;;  %v1013_v10 = vrot.slane %v1006_v62, 6 }
0x1906   :  { %v1009_v3 = vpop.f32.mrb[22].mxu1 }
0x1907   :  { %v1024_v5 = vrot.slane %v1022_v63, 6  ;;  %v3558_v7 = vpop.f32.mrb[23].mxu1  ;;  %v1015_v11 = vadd.f32 %v1013_v10, %v4364_v38 }
0x1909   :  { %1025 = vrot.lane.b32.xlu1 %v1024_v5, %s3984_s30  ;;  %v3287_v9 = vmul.f32 -1.442695, %v1015_v11 }
0x190b   :  { %3836 = vpow2.f32 %v3287_v9 }
0x1915   :  { %v3837_v12 = vpop.eup %3836 }
0x1916   :  { %v1019_v13 = vadd.f32 1.0, %v3837_v12 }
0x1918   :  { %3838 = vrcp.f32 %v1019_v13 }
0x1922   :  { %v3839_v14 = vpop.eup %3838 }
0x1923   :  { %v1035_v16 = vsub.f32 1.0, %v3839_v14  ;;  %v1043_v18 = vmul.f32 %v3839_v14, %v1041_v2 }
0x197b   :  { %v1026_v35 = vpop.permute.xlu1 %1025 }
0x197c   :  { %v1028_v15 = vmul.f32 %v3839_v14, %v1026_v35 }
0x197e   :  { %1030 = vrot.lane.b32.xlu0 %v1028_v15, %s3984_s30 }
0x19f0   :  { %v1031_v20 = vpop.permute.xlu0 %1030 }
0x19f1   :  { %v1033_v57 = vadd.f32 %v1031_v20, %v4364_v38 }
0x19f3   :  { %3840 = vtanh.f32 %v1033_v57 }
0x19fd   :  { %v3841_v44 = vpop.eup %3840 }
0x19fe   :  { %1037 = vrot.lane.b32.xlu1 %v3841_v44, %s3986_s2 }
0x1a70   :  { %v1038_v17 = vpop.permute.xlu1 %1037 }
0x1a71   :  { %v1040_v19 = vmul.f32 %v1038_v17, %v1035_v16 }
0x1a73   :  { %v4391_v22 = vadd.f32 %v1043_v18, %v1040_v19 }
0x1a75   :  { %v1051_v4 = vpack.c.bf16 %v4391_v22, %v4391_v22  ;;  %v1128_v48 = vrot.slane %v4391_v22, 6 }
0x1a77   :  { %v1053_v23 = vrot.slane %v1051_v4, 1 }
0x1a79   :  { %1054 = vrot.lane.b32.xlu0 %v1053_v23, %s3986_s2 }
0x1aeb   :  { %v1055_v24 = vpop.permute.xlu0 %1054 }
0x1aec   :  { %3564 = vmatmul.mubr.msk.bf16.vlgmr.msra.gmra.mrb[24].mxu0 %vm100_vm1, %v1055_v24 }
0x1aed   :  { %3576 = vmatpush3.bf16.msra.mxu0 %v4307_v21  ;;  %3579 = vmatprep.mubr.msk.bf16.mxu0 %vm3983_vm0, %v3982_v0 }
0x1aee   :  { %3577 = vmatprep.subr.bf16.mxu0 %v3982_v0 }
0x1af1   :  { %3578 = vmatpush3.bf16.msra.mxu0 %v4313_v6 }
0x1af2   :  { %3591 = vmatprep.subr.bf16.mxu0 %v3982_v0 }
0x1bbf   :  { %v1093_v25 = vpop.f32.mrb[24].mxu0 }
0x1bc0   :  { %v1109_v26 = vadd.f32 %v1093_v25, %v4349_v29  ;;  %v3565_v27 = vpop.f32.mrb[25].mxu0  ;;  %v1100_v32 = vrot.slane %v1093_v25, 4 }
0x1bc1   :  { %v1096_v28 = vpop.f32.mrb[26].mxu0 }
0x1bc2   :  { %v1111_v30 = vrot.slane %v1109_v26, 4  ;;  %v3566_v31 = vpop.f32.mrb[27].mxu0  ;;  %v1102_v33 = vadd.f32 %v1100_v32, %v4364_v38 }
0x1bc4   :  { %1112 = vrot.lane.b32.xlu1 %v1111_v30, %s3984_s30  ;;  %v3289_v34 = vmul.f32 -1.442695, %v1102_v33 }
0x1bc6   :  { %3842 = vpow2.f32 %v3289_v34 }
0x1bd0   :  { %v3843_v36 = vpop.eup %3842 }
0x1bd1   :  { %v1106_v37 = vadd.f32 1.0, %v3843_v36 }
0x1bd3   :  { %3844 = vrcp.f32 %v1106_v37 }
0x1bdd   :  { %v3845_v39 = vpop.eup %3844 }
0x1bde   :  { %v1122_v47 = vsub.f32 1.0, %v3845_v39  ;;  %v1130_v50 = vmul.f32 %v3845_v39, %v1128_v48 }
0x1c36   :  { %v1113_v40 = vpop.permute.xlu1 %1112 }
0x1c37   :  { %v1115_v42 = vmul.f32 %v3845_v39, %v1113_v40 }
0x1c39   :  { %1117 = vrot.lane.b32.xlu0 %v1115_v42, %s3984_s30 }
0x1cab   :  { %v1118_v43 = vpop.permute.xlu0 %1117 }
0x1cac   :  { %v1120_v45 = vadd.f32 %v1118_v43, %v4364_v38 }
0x1cae   :  { %3846 = vtanh.f32 %v1120_v45 }
0x1cb8   :  { %v3847_v46 = vpop.eup %3846 }
0x1cb9   :  { %1124 = vrot.lane.b32.xlu1 %v3847_v46, %s3986_s2 }
0x1d2b   :  { %v1125_v49 = vpop.permute.xlu1 %1124 }
0x1d2c   :  { %v1127_v51 = vmul.f32 %v1125_v49, %v1122_v47 }
0x1d2e   :  { %v4410_v52 = vadd.f32 %v1130_v50, %v1127_v51 }
0x1d30   :  { %v1138_v53 = vpack.c.bf16 %v4410_v52, %v4410_v52  ;;  %v1215_v20 = vrot.slane %v4410_v52, 6 }
0x1d32   :  { %v1140_v54 = vrot.slane %v1138_v53, 2 }
0x1d34   :  { %1141 = vrot.lane.b32.xlu0 %v1140_v54, %s3986_s2 }
0x1da6   :  { %v1142_v55 = vpop.permute.xlu0 %1141 }
0x1da7   :  { %3572 = vmatmul.mubr.msk.bf16.vlgmr.msra.gmra.mrb[24].mxu1 %vm100_vm1, %v1142_v55 }
0x1da8   :  { %3584 = vmatpush3.bf16.msra.mxu1 %v4307_v21  ;;  %3587 = vmatprep.mubr.msk.bf16.mxu1 %vm3983_vm0, %v3982_v0 }
0x1da9   :  { %3585 = vmatprep.subr.bf16.mxu1 %v3982_v0 }
0x1dac   :  { %3586 = vmatpush3.bf16.msra.mxu1 %v4313_v6 }
0x1dad   :  { %3599 = vmatprep.subr.bf16.mxu1 %v3982_v0 }
0x1e7a   :  { %v1180_v56 = vpop.f32.mrb[24].mxu1 }
0x1e7b   :  { %v1196_v58 = vadd.f32 %v1180_v56, %v4349_v29  ;;  %v3573_v60 = vpop.f32.mrb[25].mxu1  ;;  %v1187_v1 = vrot.slane %v1180_v56, 2 }
0x1e7c   :  { %v1183_v61 = vpop.f32.mrb[26].mxu1 }
0x1e7d   :  { %v1198_v62 = vrot.slane %v1196_v58, 2  ;;  %v3574_v63 = vpop.f32.mrb[27].mxu1  ;;  %v1189_v3 = vadd.f32 %v1187_v1, %v4364_v38 }
0x1e7f   :  { %1199 = vrot.lane.b32.xlu1 %v1198_v62, %s3984_s30  ;;  %v3291_v5 = vmul.f32 -1.442695, %v1189_v3 }
0x1e81   :  { %3848 = vpow2.f32 %v3291_v5 }
0x1e8b   :  { %v3849_v7 = vpop.eup %3848 }
0x1e8c   :  { %v1193_v10 = vadd.f32 1.0, %v3849_v7 }
0x1e8e   :  { %3850 = vrcp.f32 %v1193_v10 }
0x1e98   :  { %v3851_v11 = vpop.eup %3850 }
0x1e99   :  { %v1209_v15 = vsub.f32 1.0, %v3851_v11  ;;  %v1217_v44 = vmul.f32 %v3851_v11, %v1215_v20 }
0x1ef1   :  { %v1200_v9 = vpop.permute.xlu1 %1199 }
0x1ef2   :  { %v1202_v12 = vmul.f32 %v3851_v11, %v1200_v9 }
0x1ef4   :  { %1204 = vrot.lane.b32.xlu0 %v1202_v12, %s3984_s30 }
0x1f66   :  { %v1205_v13 = vpop.permute.xlu0 %1204 }
0x1f67   :  { %v1207_v14 = vadd.f32 %v1205_v13, %v4364_v38 }
0x1f69   :  { %3852 = vtanh.f32 %v1207_v14 }
0x1f73   :  { %v3853_v35 = vpop.eup %3852 }
0x1f74   :  { %1211 = vrot.lane.b32.xlu1 %v3853_v35, %s3986_s2 }
0x1fe6   :  { %v1212_v57 = vpop.permute.xlu1 %1211 }
0x1fe7   :  { %v1214_v16 = vmul.f32 %v1212_v57, %v1209_v15 }
0x1fe9   :  { %v4429_v2 = vadd.f32 %v1217_v44, %v1214_v16 }
0x1feb   :  { %v1225_v17 = vpack.c.bf16 %v4429_v2, %v4429_v2  ;;  %v1298_v40 = vrot.slane %v4429_v2, 6 }
0x1fed   :  { %v1227_v18 = vrot.slane %v1225_v17, 3 }
0x1fef   :  { %1228 = vrot.lane.b32.xlu0 %v1227_v18, %s3986_s2 }
0x2061   :  { %v1229_v19 = vpop.permute.xlu0 %1228 }
0x2062   :  { %3580 = vmatmul.mubr.msk.bf16.vlgmr.msra.gmra.mrb[28].mxu0 %vm100_vm1, %v1229_v19 }
0x2063   :  { %3592 = vmatpush3.bf16.msra.mxu0 %v4307_v21  ;;  %3595 = vmatprep.mubr.msk.bf16.mxu0 %vm3983_vm0, %v3982_v0 }
0x2064   :  { %3593 = vmatprep.subr.bf16.mxu0 %v3982_v0 }
0x2067   :  { %3594 = vmatpush3.bf16.msra.mxu0 %v4313_v6 }
0x2068   :  { %3607 = vmatprep.subr.bf16.mxu0 %v3982_v0 }
0x2135   :  { %v1267_v38 = vpop.f32.mrb[28].mxu0 }
0x2136   :  { %v1280_v4 = vadd.f32 %v1267_v38, %v4349_v29  ;;  %v3581_v23 = vpop.f32.mrb[29].mxu0  ;;  %v1273_v26 = vadd.f32 %v1267_v38, %v4366_v41 }
0x2137   :  { %v1270_v24 = vpop.f32.mrb[30].mxu0 }
0x2138   :  { %1282 = vrot.lane.b32.xlu1 %v1280_v4, %s3984_s30  ;;  %v3582_v25 = vpop.f32.mrb[31].mxu0  ;;  %v3293_v27 = vmul.f32 -1.442695, %v1273_v26 }
0x213a   :  { %3854 = vpow2.f32 %v3293_v27 }
0x2144   :  { %v3855_v28 = vpop.eup %3854 }
0x2145   :  { %v1277_v30 = vadd.f32 1.0, %v3855_v28 }
0x2147   :  { %3856 = vrcp.f32 %v1277_v30 }
0x2151   :  { %v3857_v31 = vpop.eup %3856 }
0x2152   :  { %v1292_v39 = vsub.f32 1.0, %v3857_v31  ;;  %v1300_v43 = vmul.f32 %v3857_v31, %v1298_v40 }
0x21aa   :  { %v1283_v32 = vpop.permute.xlu1 %1282 }
0x21ab   :  { %v1285_v33 = vmul.f32 %v3857_v31, %v1283_v32 }
0x21ad   :  { %1287 = vrot.lane.b32.xlu0 %v1285_v33, %s3984_s30 }
0x221f   :  { %v1288_v34 = vpop.permute.xlu0 %1287 }
0x2220   :  { %v1290_v36 = vadd.f32 %v1288_v34, %v4366_v41 }
0x2222   :  { %3858 = vtanh.f32 %v1290_v36 }
0x222c   :  { %v3859_v37 = vpop.eup %3858 }
0x222d   :  { %1294 = vrot.lane.b32.xlu1 %v3859_v37, %s3986_s2 }
0x229f   :  { %v1295_v42 = vpop.permute.xlu1 %1294 }
0x22a0   :  { %v1297_v45 = vmul.f32 %v1295_v42, %v1292_v39 }
0x22a2   :  { %v4448_v46 = vadd.f32 %v1300_v43, %v1297_v45 }
0x22a4   :  { %v1307_v47 = vpack.c.bf16 %v4448_v46, %v4448_v46  ;;  %v1383_v10 = vrot.slane %v4448_v46, 6 }
0x22a6   :  { %1309 = vrot.lane.b32.xlu0 %v1307_v47, %s3986_s2 }
0x2318   :  { %v1310_v48 = vpop.permute.xlu0 %1309 }
0x2319   :  { %3588 = vmatmul.mubr.msk.bf16.vlgmr.msra.gmra.mrb[28].mxu1 %vm100_vm1, %v1310_v48 }
0x231a   :  { %3600 = vmatpush3.bf16.msra.mxu1 %v4307_v21  ;;  %3603 = vmatprep.mubr.msk.bf16.mxu1 %vm3983_vm0, %v3982_v0 }
0x231b   :  { %3601 = vmatprep.subr.bf16.mxu1 %v3982_v0 }
0x231e   :  { %3602 = vmatpush3.bf16.msra.mxu1 %v4313_v6 }
0x231f   :  { %3615 = vmatprep.subr.bf16.mxu1 %v3982_v0 }
0x23ec   :  { %v1348_v49 = vpop.f32.mrb[28].mxu1 }
0x23ed   :  { %v1364_v50 = vadd.f32 %v1348_v49, %v4349_v29  ;;  %v3589_v51 = vpop.f32.mrb[29].mxu1  ;;  %v1355_v56 = vrot.slane %v1348_v49, 6 }
0x23ee   :  { %v1351_v53 = vpop.f32.mrb[30].mxu1 }
0x23ef   :  { %v1366_v54 = vrot.slane %v1364_v50, 6  ;;  %v3590_v55 = vpop.f32.mrb[31].mxu1  ;;  %v1357_v21 = vadd.f32 %v1355_v56, %v4366_v41 }
0x23f1   :  { %1367 = vrot.lane.b32.xlu1 %v1366_v54, %s3984_s30  ;;  %v3295_v58 = vmul.f32 -1.442695, %v1357_v21 }
0x23f3   :  { %3860 = vpow2.f32 %v3295_v58 }
0x23fd   :  { %v3861_v60 = vpop.eup %3860 }
0x23fe   :  { %v1361_v61 = vadd.f32 1.0, %v3861_v60 }
0x2400   :  { %3862 = vrcp.f32 %v1361_v61 }
0x240a   :  { %v3863_v6 = vpop.eup %3862 }
0x240b   :  { %v1377_v7 = vsub.f32 1.0, %v3863_v6  ;;  %v1385_v9 = vmul.f32 %v3863_v6, %v1383_v10 }
0x2463   :  { %v1368_v62 = vpop.permute.xlu1 %1367 }
0x2464   :  { %v1370_v63 = vmul.f32 %v3863_v6, %v1368_v62 }
0x2466   :  { %1372 = vrot.lane.b32.xlu0 %v1370_v63, %s3984_s30 }
0x24d8   :  { %v1373_v1 = vpop.permute.xlu0 %1372 }
0x24d9   :  { %v1375_v3 = vadd.f32 %v1373_v1, %v4366_v41 }
0x24db   :  { %3864 = vtanh.f32 %v1375_v3 }
0x24e5   :  { %v3865_v5 = vpop.eup %3864 }
0x24e6   :  { %1379 = vrot.lane.b32.xlu1 %v3865_v5, %s3986_s2 }
0x2558   :  { %v1380_v11 = vpop.permute.xlu1 %1379 }
0x2559   :  { %v1382_v12 = vmul.f32 %v1380_v11, %v1377_v7 }
0x255b   :  { %v4467_v13 = vadd.f32 %v1385_v9, %v1382_v12 }
0x255d   :  { %v1392_v14 = vpack.c.bf16 %v4467_v13, %v4467_v13  ;;  %v1469_v33 = vrot.slane %v4467_v13, 6 }
0x255f   :  { %v1394_v35 = vrot.slane %v1392_v14, 1 }
0x2561   :  { %1395 = vrot.lane.b32.xlu0 %v1394_v35, %s3986_s2 }
0x25d3   :  { %v1396_v15 = vpop.permute.xlu0 %1395 }
0x25d4   :  { %3596 = vmatmul.mubr.msk.bf16.vlgmr.msra.gmra.mrb[32].mxu0 %vm100_vm1, %v1396_v15 }
0x25d5   :  { %3611 = vmatprep.mubr.msk.bf16.mxu0 %vm3983_vm0, %v3982_v0 }
0x26a7   :  { %v1434_v20 = vpop.f32.mrb[32].mxu0 }
0x26a8   :  { %v1450_v57 = vadd.f32 %v1434_v20, %v4349_v29  ;;  %v3597_v44 = vpop.f32.mrb[33].mxu0  ;;  %v1441_v19 = vrot.slane %v1434_v20, 4 }
0x26a9   :  { %v1437_v16 = vpop.f32.mrb[34].mxu0 }
0x26aa   :  { %v1452_v17 = vrot.slane %v1450_v57, 4  ;;  %v3598_v18 = vpop.f32.mrb[35].mxu0  ;;  %v1443_v38 = vadd.f32 %v1441_v19, %v4366_v41 }
0x26ab   :  { %v4526_v18 = vld [vmem:[%s4957_s12 + $0x8] sm:$0xff]  }
0x26ac   :  { %1453 = vrot.lane.b32.xlu1 %v1452_v17, %s3984_s30  ;;  %v3297_v4 = vmul.f32 -1.442695, %v1443_v38  ;;  %v4520_v17 = vld [vmem:[%s4957_s12] sm:$0xff]  }
0x26ae   :  { %3866 = vpow2.f32 %v3297_v4 }
0x26b8   :  { %v3867_v23 = vpop.eup %3866 }
0x26b9   :  { %v1447_v24 = vadd.f32 1.0, %v3867_v23 }
0x26bb   :  { %3868 = vrcp.f32 %v1447_v24 }
0x26c5   :  { %v3869_v25 = vpop.eup %3868 }
0x26c6   :  { %v1463_v32 = vsub.f32 1.0, %v3869_v25  ;;  %v1471_v36 = vmul.f32 %v3869_v25, %v1469_v33 }
0x271e   :  { %v1454_v26 = vpop.permute.xlu1 %1453 }
0x271f   :  { %v1456_v27 = vmul.f32 %v3869_v25, %v1454_v26  ;;  %v3774_v25 = vld [vmem:[%s4958_s11] sm:$0xff]   ;;  %v3775_v26 = vld [vmem:[%s4958_s11 + $0x8] sm:$0xff]  }
0x2720   :  { %3608 = vmatpush3.bf16.msra.mxu0 %v3774_v25 }
0x2721   :  { %1458 = vrot.lane.b32.xlu0 %v1456_v27, %s3984_s30  ;;  %3609 = vmatprep.subr.bf16.mxu0 %v3982_v0  ;;  %v3306_v27 = vld [vmem:[%s4959_s14] ss:$0 sm:$0xff] }
0x2724   :  { %3610 = vmatpush3.bf16.msra.mxu0 %v3775_v26 }
0x2725   :  { %3623 = vmatprep.subr.bf16.mxu0 %v3982_v0 }
0x2793   :  { %v1459_v28 = vpop.permute.xlu0 %1458 }
0x2794   :  { %v1461_v30 = vadd.f32 %v1459_v28, %v4366_v41 }
0x2796   :  { %3870 = vtanh.f32 %v1461_v30 }
0x27a0   :  { %v3871_v31 = vpop.eup %3870 }
0x27a1   :  { %1465 = vrot.lane.b32.xlu1 %v3871_v31, %s3986_s2 }
0x2813   :  { %v1466_v34 = vpop.permute.xlu1 %1465 }
0x2814   :  { %v1468_v37 = vmul.f32 %v1466_v34, %v1463_v32 }
0x2816   :  { %v1472_v39 = vadd.f32 %v1471_v36, %v1468_v37 }
0x2818   :  { %v1478_v40 = vpack.c.bf16 %v1472_v39, %v1472_v39 }
0x281a   :  { %v1480_v42 = vrot.slane %v1478_v40, 2 }
0x281c   :  { %1481 = vrot.lane.b32.xlu0 %v1480_v42, %s3986_s2 }
0x288e   :  { %v1482_v43 = vpop.permute.xlu0 %1481 }
0x288f   :  { %3604 = vmatmul.mubr.msk.bf16.vlgmr.msra.gmra.mrb[32].mxu1 %vm100_vm1, %v1482_v43 }
0x2890   :  { %3619 = vmatprep.mubr.msk.bf16.mxu1 %vm3983_vm0, %v3982_v0  ;;  %3616 = vmatpush3.bf16.msra.mxu1 %v4520_v17 }
0x2891   :  { %3617 = vmatprep.subr.bf16.mxu1 %v3982_v0 }
0x2894   :  { %3618 = vmatpush3.bf16.msra.mxu1 %v4526_v18 }
0x2895   :  { %3631 = vmatprep.subr.bf16.mxu1 %v3982_v0 }
0x2897   :  { %3620 = vmatmul.mubr.bf16.vlgmr.msra.gmra.mrb[36].mxu1 %v3985_v8 }
0x2898   :  { %3632 = vmatpush3.bf16.msra.mxu1 %v4520_v17  ;;  %3635 = vmatprep.mubr.msk.bf16.mxu1 %vm3983_vm0, %v3982_v0 }
0x2899   :  { %3633 = vmatprep.subr.bf16.mxu1 %v3982_v0 }
0x289c   :  { %3634 = vmatpush3.bf16.msra.mxu1 %v4526_v18 }
0x289d   :  { %3647 = vmatprep.subr.bf16.mxu1 %v3982_v0 }
0x2962   :  { %v1520_v45 = vpop.f32.mrb[32].mxu1 }
0x2963   :  { %v1536_v47 = vadd.f32 %v1520_v45, %v4349_v29  ;;  %v3605_v48 = vpop.f32.mrb[33].mxu1  ;;  %v1527_v53 = vrot.slane %v1520_v45, 2 }
0x2964   :  { %v1523_v49 = vpop.f32.mrb[34].mxu1 }
0x2965   :  { %v1538_v50 = vrot.slane %v1536_v47, 2  ;;  %v3606_v51 = vpop.f32.mrb[35].mxu1  ;;  %v1529_v54 = vadd.f32 %v1527_v53, %v4366_v41  ;;  %v3300_v47 = vld [vmem:[%s4960_s9] ss:$0 sm:$0xff] }
0x2966   :  { %v3301_v53 = vld [vmem:[%s4961_s10] ss:$0 sm:$0xff] }
0x2967   :  { %1539 = vrot.lane.b32.xlu1 %v1538_v50, %s3984_s30  ;;  %v3299_v55 = vmul.f32 -1.442695, %v1529_v54 }
0x2969   :  { %3872 = vpow2.f32 %v3299_v55 }
0x296a   :  { %v1735_v33 = vpop.f32.mrb[36].mxu1 }
0x296b   :  { %v3621_v36 = vpop.f32.mrb[37].mxu1 }
0x296c   :  { %v1738_v37 = vpop.f32.mrb[38].mxu1 }
0x296d   :  { %v3622_v40 = vpop.f32.mrb[39].mxu1 }
0x2973   :  { %v3873_v56 = vpop.eup %3872 }
0x2974   :  { %v1533_v21 = vadd.f32 1.0, %v3873_v56 }
0x2976   :  { %3874 = vrcp.f32 %v1533_v21 }
0x2980   :  { %v3875_v58 = vpop.eup %3874 }
0x29d9   :  { %v1540_v60 = vpop.permute.xlu1 %1539 }
0x29da   :  { %v1542_v61 = vmul.f32 %v3875_v58, %v1540_v60 }
0x29dc   :  { %1544 = vrot.lane.b32.xlu0 %v1542_v61, %s3984_s30 }
0x29e0   :  { %961 = vrot.lane.b32.xlu0 %v4372_v59, %s3986_s2 }
0x29e4   :  { %1133 = vrot.lane.b32.xlu0 %v4410_v52, %s3986_s2 }
0x29e8   :  { %1303 = vrot.lane.b32.xlu0 %v4448_v46, %s3986_s2  ;;  %v1555_v46 = vrot.slane %v1472_v39, 6 }
0x29ea   :  { %v1557_v5 = vmul.f32 %v3875_v58, %v1555_v46 }
0x29ec   :  { %1474 = vrot.lane.b32.xlu0 %v1472_v39, %s3986_s2 }
0x2a4e   :  { %v1545_v29 = vpop.permute.xlu0 %1544 }
0x2a4f   :  { %v1547_v6 = vadd.f32 %v1545_v29, %v4366_v41  ;;  %v1549_v41 = vsub.f32 1.0, %v3875_v58  ;;  %v3302_v58 = vld [vmem:[%s4962_s13] ss:$0 sm:$0xff] }
0x2a51   :  { %3876 = vtanh.f32 %v1547_v6 }
0x2a52   :  { %v962_v62 = vpop.permute.xlu0 %961 }
0x2a53   :  { %964 = vst.msk [vmem:[#allocation3] sm:$0x3] %vm243_vm2, %v962_v62 }
0x2a56   :  { %v1134_v63 = vpop.permute.xlu0 %1133 }
0x2a57   :  { %1137 = vst.msk [vmem:[#allocation3] sm:$0x30] %vm1136_vm3, %v1134_v63 }
0x2a5a   :  { %v1304_v59 = vpop.permute.xlu0 %1303 }
0x2a5b   :  { %v3877_v1 = vpop.eup %3876  ;;  %1306 = vst.msk [vmem:[#allocation3 + $0x8] sm:$0x3] %vm243_vm2, %v1304_v59 }
0x2a5c   :  { %1551 = vrot.lane.b32.xlu1 %v3877_v1, %s3986_s2 }
0x2a5e   :  { %v1475_v52 = vpop.permute.xlu0 %1474 }
0x2a5f   :  { %1477 = vst.msk [vmem:[#allocation3 + $0x8] sm:$0x30] %vm1136_vm3, %v1475_v52 }
0x2a60   :  { %1046 = vrot.lane.b32.xlu1 %v4391_v22, %s3986_s2 }
0x2a64   :  { %1220 = vrot.lane.b32.xlu1 %v4429_v2, %s3986_s2 }
0x2a68   :  { %1388 = vrot.lane.b32.xlu1 %v4467_v13, %s3986_s2 }
0x2ace   :  { %v1552_v3 = vpop.permute.xlu1 %1551 }
0x2acf   :  { %v1554_v7 = vmul.f32 %v1552_v3, %v1549_v41 }
0x2ad1   :  { %v1558_v10 = vadd.f32 %v1557_v5, %v1554_v7 }
0x2ad2   :  { %v1047_v11 = vpop.permute.xlu1 %1046 }
0x2ad3   :  { %1050 = vst.msk [vmem:[#allocation3] sm:$0xc] %vm1049_vm4, %v1047_v11  ;;  %1560 = vrot.lane.b32.xlu1 %v1558_v10, %s3986_s2 }
0x2ad6   :  { %v1221_v22 = vpop.permute.xlu1 %1220 }
0x2ad7   :  { %1224 = vst.msk [vmem:[#allocation3] sm:$0xc0] %vm1223_vm5, %v1221_v22 }
0x2ada   :  { %v1389_v2 = vpop.permute.xlu1 %1388 }
0x2adb   :  { %1391 = vst.msk [vmem:[#allocation3 + $0x8] sm:$0xc] %vm1049_vm4, %v1389_v2 }
0x2ade   :  { %v1564_v9 = vld [vmem:[#allocation3] sm:$0xff] }
0x2adf   :  { %v1568_v12 = vsel %vm100_vm1, %v1564_v9, 0.0 }
0x2ae0   :  { %1569 = vadd.xlane.f32.xlu0 %v1568_v12 }
0x2b45   :  { %v1561_v13 = vpop.permute.xlu1 %1560 }
0x2b46   :  { %1563 = vst.msk [vmem:[#allocation3 + $0x8] sm:$0xc0] %vm1223_vm5, %v1561_v13 }
0x2b4d   :  { %v1565_v14 = vld [vmem:[#allocation3 + $0x8] sm:$0xff] }
0x2b4e   :  { %v1571_v35 = vsel %vm100_vm1, %v1565_v14, 0.0 }
0x2b4f   :  { %1572 = vadd.xlane.f32.xlu1 %v1571_v35 }
0x2b60   :  { %1748 = vrot.lane.b32.xlu1 %v3306_v27, %s3984_s30 }
0x2b6d   :  { %v1570_v15 = vpop.xlane.xlu0 %1569 }
0x2b6e   :  { %v1575_v20 = vmul.f32 0.03125, %v1570_v15 }
0x2b70   :  { %v1577_v57 = vsub.f32 %v1564_v9, %v1575_v20 }
0x2b72   :  { %v1579_v44 = vmul.f32 %v1577_v57, %v1577_v57 }
0x2b74   :  { %v1581_v16 = vsel %vm100_vm1, %v1579_v44, 0.0 }
0x2b75   :  { %1582 = vadd.xlane.f32.xlu0 %v1581_v16 }
0x2bdc   :  { %v1573_v19 = vpop.xlane.xlu1 %1572 }
0x2bdd   :  { %v1576_v38 = vmul.f32 0.03125, %v1573_v19 }
0x2bdf   :  { %v1578_v4 = vsub.f32 %v1565_v14, %v1576_v38 }
0x2be0   :  { %v4551_v45 = vpop.permute.xlu1 %1748 }
0x2be1   :  { %v1580_v23 = vmul.f32 %v1578_v4, %v1578_v4  ;;  %v1751_v48 = vadd.f32 %v4551_v45, %v1735_v33 }
0x2be3   :  { %v1584_v24 = vsel %vm100_vm1, %v1580_v23, 0.0 }
0x2be4   :  { %1585 = vadd.xlane.f32.xlu0 %v1584_v24 }
0x2bfa   :  { %1753 = vrot.lane.b32.xlu0 %v1751_v48, %s3984_s30 }
0x2c02   :  { %v1583_v28 = vpop.xlane.xlu0 %1582 }
0x2c03   :  { %v1587_v30 = vmul.f32 0.03125, %v1583_v28 }
0x2c05   :  { %v1589_v31 = vadd.f32 1e-05, %v1587_v30 }
0x2c07   :  { %3878 = vrsqrt.f32 %v1589_v31 }
0x2c11   :  { %v3879_v42 = vpop.eup %3878 }
0x2c12   :  { %v1593_v43 = vmul.f32 %v3879_v42, %v1577_v57 }
0x2c14   :  { %v1601_v50 = vmul.f32 %v3300_v47, %v1593_v43 }
0x2c16   :  { %v1609_v55 = vadd.f32 %v3301_v53, %v1601_v50 }
0x2c71   :  { %v1586_v32 = vpop.xlane.xlu0 %1585 }
0x2c72   :  { %v1588_v34 = vmul.f32 0.03125, %v1586_v32 }
0x2c74   :  { %v1590_v39 = vadd.f32 1e-05, %v1588_v34 }
0x2c75   :  { %v1754_v46 = vpop.permute.xlu0 %1753 }
0x2c76   :  { %3880 = vrsqrt.f32 %v1590_v39 }
0x2c80   :  { %v3881_v49 = vpop.eup %3880 }
0x2c81   :  { %v1594_v51 = vmul.f32 %v3881_v49, %v1578_v4 }
0x2c83   :  { %v1602_v54 = vmul.f32 %v3300_v47, %v1594_v51 }
0x2c85   :  { %v1610_v56 = vadd.f32 %v3301_v53, %v1602_v54 }
0x2c87   :  { %v1611_v21 = vpack.c.bf16 %v1610_v56, %v1609_v55 }
0x2c89   :  { %3612 = vmatmul.mubr.msk.bf16.vlgmr.msra.gmra.mrb[36].mxu0 %vm100_vm1, %v1611_v21 }
0x2c8a   :  { %3624 = vmatpush3.bf16.msra.mxu0 %v4520_v17  ;;  %3627 = vmatprep.mubr.msk.bf16.mxu0 %vm3983_vm0, %v3982_v0 }
0x2c8b   :  { %3625 = vmatprep.subr.bf16.mxu0 %v3982_v0 }
0x2c8e   :  { %3626 = vmatpush3.bf16.msra.mxu0 %v4526_v18 }
0x2c8f   :  { %3639 = vmatprep.subr.bf16.mxu0 %v3982_v0 }
0x2d5c   :  { %v1672_v60 = vpop.f32.mrb[36].mxu0 }
0x2d5d   :  { %v4571_v61 = vadd.f32 %v3302_v58, %v1672_v60  ;;  %v3613_v29 = vpop.f32.mrb[37].mxu0 }
0x2d5e   :  { %v1675_v6 = vpop.f32.mrb[38].mxu0 }
0x2d5f   :  { %v4573_v62 = vadd.f32 %v3302_v58, %v1675_v6  ;;  %v3614_v63 = vpop.f32.mrb[39].mxu0  ;;  %v1741_v59 = vadd.f32 %v1735_v33, %v4571_v61 }
0x2d61   :  { %v3309_v1 = vmul.f32 -1.442695, %v1741_v59 }
0x2d63   :  { %3882 = vpow2.f32 %v3309_v1 }
0x2d6d   :  { %v3883_v52 = vpop.eup %3882 }
0x2d6e   :  { %v1745_v41 = vadd.f32 1.0, %v3883_v52 }
0x2d70   :  { %3884 = vrcp.f32 %v1745_v41 }
0x2d7a   :  { %v3885_v3 = vpop.eup %3884 }
0x2d7b   :  { %v1756_v5 = vmul.f32 %v3885_v3, %v1754_v46  ;;  %v1763_v22 = vsub.f32 1.0, %v3885_v3  ;;  %v1769_v9 = vmul.f32 0.0, %v3885_v3 }
0x2d7d   :  { %1758 = vrot.lane.b32.xlu1 %v1756_v5, %s3984_s30 }
0x2def   :  { %v1759_v7 = vpop.permute.xlu1 %1758 }
0x2df0   :  { %v1761_v10 = vadd.f32 %v1759_v7, %v4571_v61 }
0x2df2   :  { %3886 = vtanh.f32 %v1761_v10 }
0x2dfc   :  { %v3887_v11 = vpop.eup %3886 }
0x2dfd   :  { %1765 = vrot.lane.b32.xlu1 %v3887_v11, %s3986_s2 }
0x2e6f   :  { %v1766_v2 = vpop.permute.xlu1 %1765 }
0x2e70   :  { %v1768_v12 = vmul.f32 %v1766_v2, %v1763_v22 }
0x2e72   :  { %v4579_v13 = vadd.f32 %v1769_v9, %v1768_v12 }
0x2e74   :  { %v1776_v14 = vpack.c.bf16 %v4579_v13, %v4579_v13  ;;  %v1852_v34 = vrot.slane %v4579_v13, 6 }
0x2e76   :  { %1778 = vrot.lane.b32.xlu0 %v1776_v14, %s3986_s2 }
0x2ee8   :  { %v1779_v35 = vpop.permute.xlu0 %1778 }
0x2ee9   :  { %3628 = vmatmul.mubr.msk.bf16.vlgmr.msra.gmra.mrb[40].mxu0 %vm100_vm1, %v1779_v35 }
0x2eea   :  { %3640 = vmatpush3.bf16.msra.mxu0 %v4520_v17  ;;  %3643 = vmatprep.mubr.msk.bf16.mxu0 %vm3983_vm0, %v3982_v0 }
0x2eeb   :  { %3641 = vmatprep.subr.bf16.mxu0 %v3982_v0 }
0x2eee   :  { %3642 = vmatpush3.bf16.msra.mxu0 %v4526_v18 }
0x2eef   :  { %3655 = vmatprep.subr.bf16.mxu0 %v3982_v0 }
0x2fbc   :  { %v1817_v15 = vpop.f32.mrb[40].mxu0 }
0x2fbd   :  { %v1833_v20 = vadd.f32 %v1817_v15, %v4551_v45  ;;  %v3629_v57 = vpop.f32.mrb[41].mxu0  ;;  %v1824_v38 = vrot.slane %v1817_v15, 6 }
0x2fbe   :  { %v1820_v44 = vpop.f32.mrb[42].mxu0 }
0x2fbf   :  { %v1835_v16 = vrot.slane %v1833_v20, 6  ;;  %v3630_v19 = vpop.f32.mrb[43].mxu0  ;;  %v1826_v4 = vadd.f32 %v1824_v38, %v4571_v61 }
0x2fc1   :  { %1836 = vrot.lane.b32.xlu1 %v1835_v16, %s3984_s30  ;;  %v3311_v23 = vmul.f32 -1.442695, %v1826_v4 }
0x2fc3   :  { %3888 = vpow2.f32 %v3311_v23 }
0x2fcd   :  { %v3889_v24 = vpop.eup %3888 }
0x2fce   :  { %v1830_v25 = vadd.f32 1.0, %v3889_v24 }
0x2fd0   :  { %3890 = vrcp.f32 %v1830_v25 }
0x2fda   :  { %v3891_v26 = vpop.eup %3890 }
0x2fdb   :  { %v1846_v33 = vsub.f32 1.0, %v3891_v26  ;;  %v1854_v37 = vmul.f32 %v3891_v26, %v1852_v34 }
0x3033   :  { %v1837_v27 = vpop.permute.xlu1 %1836 }
0x3034   :  { %v1839_v28 = vmul.f32 %v3891_v26, %v1837_v27 }
0x3036   :  { %1841 = vrot.lane.b32.xlu0 %v1839_v28, %s3984_s30 }
0x30a8   :  { %v1842_v30 = vpop.permute.xlu0 %1841 }
0x30a9   :  { %v1844_v31 = vadd.f32 %v1842_v30, %v4571_v61 }
0x30ab   :  { %3892 = vtanh.f32 %v1844_v31 }
0x30b5   :  { %v3893_v32 = vpop.eup %3892 }
0x30b6   :  { %1848 = vrot.lane.b32.xlu1 %v3893_v32, %s3986_s2 }
0x3128   :  { %v1849_v36 = vpop.permute.xlu1 %1848 }
0x3129   :  { %v1851_v39 = vmul.f32 %v1849_v36, %v1846_v33 }
0x312b   :  { %v4598_v40 = vadd.f32 %v1854_v37, %v1851_v39 }
0x312d   :  { %v1861_v42 = vpack.c.bf16 %v4598_v40, %v4598_v40  ;;  %v1938_v46 = vrot.slane %v4598_v40, 6 }
0x312f   :  { %v1863_v43 = vrot.slane %v1861_v42, 1 }
0x3131   :  { %1864 = vrot.lane.b32.xlu0 %v1863_v43, %s3986_s2 }
0x31a3   :  { %v1865_v47 = vpop.permute.xlu0 %1864 }
0x31a4   :  { %3636 = vmatmul.mubr.msk.bf16.vlgmr.msra.gmra.mrb[40].mxu1 %vm100_vm1, %v1865_v47 }
0x31a5   :  { %3648 = vmatpush3.bf16.msra.mxu1 %v4520_v17  ;;  %3651 = vmatprep.mubr.msk.bf16.mxu1 %vm3983_vm0, %v3982_v0 }
0x31a6   :  { %3649 = vmatprep.subr.bf16.mxu1 %v3982_v0 }
0x31a9   :  { %3650 = vmatpush3.bf16.msra.mxu1 %v4526_v18 }
0x31aa   :  { %3663 = vmatprep.subr.bf16.mxu1 %v3982_v0 }
0x3277   :  { %v1903_v48 = vpop.f32.mrb[40].mxu1 }
0x3278   :  { %v1919_v49 = vadd.f32 %v1903_v48, %v4551_v45  ;;  %v3637_v50 = vpop.f32.mrb[41].mxu1  ;;  %v1910_v55 = vrot.slane %v1903_v48, 4 }
0x3279   :  { %v1906_v51 = vpop.f32.mrb[42].mxu1 }
0x327a   :  { %v1921_v53 = vrot.slane %v1919_v49, 4  ;;  %v3638_v54 = vpop.f32.mrb[43].mxu1  ;;  %v1912_v56 = vadd.f32 %v1910_v55, %v4571_v61 }
0x327c   :  { %1922 = vrot.lane.b32.xlu1 %v1921_v53, %s3984_s30  ;;  %v3313_v21 = vmul.f32 -1.442695, %v1912_v56 }
0x327e   :  { %3894 = vpow2.f32 %v3313_v21 }
0x3288   :  { %v3895_v58 = vpop.eup %3894 }
0x3289   :  { %v1916_v60 = vadd.f32 1.0, %v3895_v58 }
0x328b   :  { %3896 = vrcp.f32 %v1916_v60 }
0x3295   :  { %v3897_v29 = vpop.eup %3896 }
0x3296   :  { %v1932_v41 = vsub.f32 1.0, %v3897_v29  ;;  %v1940_v5 = vmul.f32 %v3897_v29, %v1938_v46 }
0x32ee   :  { %v1923_v6 = vpop.permute.xlu1 %1922 }
0x32ef   :  { %v1925_v63 = vmul.f32 %v3897_v29, %v1923_v6 }
0x32f1   :  { %1927 = vrot.lane.b32.xlu0 %v1925_v63, %s3984_s30 }
0x3363   :  { %v1928_v59 = vpop.permute.xlu0 %1927 }
0x3364   :  { %v1930_v1 = vadd.f32 %v1928_v59, %v4571_v61 }
0x3366   :  { %3898 = vtanh.f32 %v1930_v1 }
0x3370   :  { %v3899_v52 = vpop.eup %3898 }
0x3371   :  { %1934 = vrot.lane.b32.xlu1 %v3899_v52, %s3986_s2 }
0x33e3   :  { %v1935_v3 = vpop.permute.xlu1 %1934 }
0x33e4   :  { %v1937_v7 = vmul.f32 %v1935_v3, %v1932_v41 }
0x33e6   :  { %v4617_v10 = vadd.f32 %v1940_v5, %v1937_v7 }
0x33e8   :  { %v1947_v11 = vpack.c.bf16 %v4617_v10, %v4617_v10  ;;  %v2024_v30 = vrot.slane %v4617_v10, 6 }
0x33ea   :  { %v1949_v22 = vrot.slane %v1947_v11, 2 }
0x33ec   :  { %1950 = vrot.lane.b32.xlu0 %v1949_v22, %s3986_s2 }
0x345e   :  { %v1951_v2 = vpop.permute.xlu0 %1950 }
0x345f   :  { %3644 = vmatmul.mubr.msk.bf16.vlgmr.msra.gmra.mrb[44].mxu0 %vm100_vm1, %v1951_v2 }
0x3460   :  { %3656 = vmatpush3.bf16.msra.mxu0 %v4520_v17  ;;  %3659 = vmatprep.mubr.msk.bf16.mxu0 %vm3983_vm0, %v3982_v0 }
0x3461   :  { %3657 = vmatprep.subr.bf16.mxu0 %v3982_v0 }
0x3464   :  { %3658 = vmatpush3.bf16.msra.mxu0 %v4526_v18 }
0x3465   :  { %3671 = vmatprep.subr.bf16.mxu0 %v3982_v0 }
0x3532   :  { %v1989_v9 = vpop.f32.mrb[44].mxu0 }
0x3533   :  { %v2005_v12 = vadd.f32 %v1989_v9, %v4551_v45  ;;  %v3645_v14 = vpop.f32.mrb[45].mxu0  ;;  %v1996_v57 = vrot.slane %v1989_v9, 2 }
0x3534   :  { %v1992_v35 = vpop.f32.mrb[46].mxu0 }
0x3535   :  { %v2007_v15 = vrot.slane %v2005_v12, 2  ;;  %v3646_v20 = vpop.f32.mrb[47].mxu0  ;;  %v1998_v44 = vadd.f32 %v1996_v57, %v4571_v61 }
0x3537   :  { %2008 = vrot.lane.b32.xlu1 %v2007_v15, %s3984_s30  ;;  %v3315_v16 = vmul.f32 -1.442695, %v1998_v44 }
0x3539   :  { %3900 = vpow2.f32 %v3315_v16 }
0x3543   :  { %v3901_v19 = vpop.eup %3900 }
0x3544   :  { %v2002_v38 = vadd.f32 1.0, %v3901_v19 }
0x3546   :  { %3902 = vrcp.f32 %v2002_v38 }
0x3550   :  { %v3903_v4 = vpop.eup %3902 }
0x3551   :  { %v2018_v28 = vsub.f32 1.0, %v3903_v4  ;;  %v2026_v32 = vmul.f32 %v3903_v4, %v2024_v30 }
0x35a9   :  { %v2009_v23 = vpop.permute.xlu1 %2008 }
0x35aa   :  { %v2011_v24 = vmul.f32 %v3903_v4, %v2009_v23 }
0x35ac   :  { %2013 = vrot.lane.b32.xlu0 %v2011_v24, %s3984_s30 }
0x361e   :  { %v2014_v25 = vpop.permute.xlu0 %2013 }
0x361f   :  { %v2016_v26 = vadd.f32 %v2014_v25, %v4571_v61 }
0x3621   :  { %3904 = vtanh.f32 %v2016_v26 }
0x362b   :  { %v3905_v27 = vpop.eup %3904 }
0x362c   :  { %2020 = vrot.lane.b32.xlu1 %v3905_v27, %s3986_s2 }
0x369e   :  { %v2021_v31 = vpop.permute.xlu1 %2020 }
0x369f   :  { %v2023_v33 = vmul.f32 %v2021_v31, %v2018_v28 }
0x36a1   :  { %v4636_v34 = vadd.f32 %v2026_v32, %v2023_v33 }
0x36a3   :  { %v2033_v36 = vpack.c.bf16 %v4636_v34, %v4636_v34  ;;  %v2106_v6 = vrot.slane %v4636_v34, 6 }
0x36a5   :  { %v2035_v37 = vrot.slane %v2033_v36, 3 }
0x36a7   :  { %2036 = vrot.lane.b32.xlu0 %v2035_v37, %s3986_s2 }
0x3719   :  { %v2037_v39 = vpop.permute.xlu0 %2036 }
0x371a   :  { %3652 = vmatmul.mubr.msk.bf16.vlgmr.msra.gmra.mrb[44].mxu1 %vm100_vm1, %v2037_v39 }
0x371b   :  { %3664 = vmatpush3.bf16.msra.mxu1 %v4520_v17  ;;  %3667 = vmatprep.mubr.msk.bf16.mxu1 %vm3983_vm0, %v3982_v0 }
0x371c   :  { %3665 = vmatprep.subr.bf16.mxu1 %v3982_v0 }
0x371f   :  { %3666 = vmatpush3.bf16.msra.mxu1 %v4526_v18 }
0x3720   :  { %3679 = vmatprep.subr.bf16.mxu1 %v3982_v0 }
0x37ed   :  { %v2075_v61 = vpop.f32.mrb[44].mxu1 }
0x37ee   :  { %v2088_v42 = vadd.f32 %v2075_v61, %v4551_v45  ;;  %v3653_v43 = vpop.f32.mrb[45].mxu1  ;;  %v2081_v49 = vadd.f32 %v2075_v61, %v4573_v62 }
0x37ef   :  { %v2078_v47 = vpop.f32.mrb[46].mxu1 }
0x37f0   :  { %2090 = vrot.lane.b32.xlu1 %v2088_v42, %s3984_s30  ;;  %v3654_v48 = vpop.f32.mrb[47].mxu1  ;;  %v3317_v50 = vmul.f32 -1.442695, %v2081_v49 }
0x37f2   :  { %3906 = vpow2.f32 %v3317_v50 }
0x37fc   :  { %v3907_v51 = vpop.eup %3906 }
0x37fd   :  { %v2085_v53 = vadd.f32 1.0, %v3907_v51 }
0x37ff   :  { %3908 = vrcp.f32 %v2085_v53 }
0x3809   :  { %v3909_v54 = vpop.eup %3908 }
0x380a   :  { %v2100_v29 = vsub.f32 1.0, %v3909_v54  ;;  %v2108_v59 = vmul.f32 %v3909_v54, %v2106_v6 }
0x3862   :  { %v2091_v55 = vpop.permute.xlu1 %2090 }
0x3863   :  { %v2093_v56 = vmul.f32 %v3909_v54, %v2091_v55 }
0x3865   :  { %2095 = vrot.lane.b32.xlu0 %v2093_v56, %s3984_s30 }
0x38d7   :  { %v2096_v21 = vpop.permute.xlu0 %2095 }
0x38d8   :  { %v2098_v58 = vadd.f32 %v2096_v21, %v4573_v62 }
0x38da   :  { %3910 = vtanh.f32 %v2098_v58 }
0x38e4   :  { %v3911_v60 = vpop.eup %3910 }
0x38e5   :  { %2102 = vrot.lane.b32.xlu1 %v3911_v60, %s3986_s2 }
0x3957   :  { %v2103_v63 = vpop.permute.xlu1 %2102 }
0x3958   :  { %v2105_v1 = vmul.f32 %v2103_v63, %v2100_v29 }
0x395a   :  { %v4655_v52 = vadd.f32 %v2108_v59, %v2105_v1 }
0x395c   :  { %v2115_v41 = vpack.c.bf16 %v4655_v52, %v4655_v52  ;;  %v2191_v38 = vrot.slane %v4655_v52, 6 }
0x395e   :  { %2117 = vrot.lane.b32.xlu0 %v2115_v41, %s3986_s2 }
0x39d0   :  { %v2118_v46 = vpop.permute.xlu0 %2117 }
0x39d1   :  { %3660 = vmatmul.mubr.msk.bf16.vlgmr.msra.gmra.mrb[48].mxu0 %vm100_vm1, %v2118_v46 }
0x39d2   :  { %3672 = vmatpush3.bf16.msra.mxu0 %v4520_v17  ;;  %3675 = vmatprep.mubr.msk.bf16.mxu0 %vm3983_vm0, %v3982_v0 }
0x39d3   :  { %3673 = vmatprep.subr.bf16.mxu0 %v3982_v0 }
0x39d6   :  { %3674 = vmatpush3.bf16.msra.mxu0 %v4526_v18 }
0x39d7   :  { %3687 = vmatprep.subr.bf16.mxu0 %v3982_v0 }
0x3aa4   :  { %v2156_v3 = vpop.f32.mrb[48].mxu0 }
0x3aa5   :  { %v2172_v5 = vadd.f32 %v2156_v3, %v4551_v45  ;;  %v3661_v7 = vpop.f32.mrb[49].mxu0  ;;  %v2163_v9 = vrot.slane %v2156_v3, 6 }
0x3aa6   :  { %v2159_v11 = vpop.f32.mrb[50].mxu0 }
0x3aa7   :  { %v2174_v22 = vrot.slane %v2172_v5, 6  ;;  %v3662_v2 = vpop.f32.mrb[51].mxu0  ;;  %v2165_v17 = vadd.f32 %v2163_v9, %v4573_v62 }
0x3aa9   :  { %2175 = vrot.lane.b32.xlu1 %v2174_v22, %s3984_s30  ;;  %v3319_v12 = vmul.f32 -1.442695, %v2165_v17 }
0x3aab   :  { %3912 = vpow2.f32 %v3319_v12 }
0x3ab5   :  { %v3913_v14 = vpop.eup %3912 }
0x3ab6   :  { %v2169_v35 = vadd.f32 1.0, %v3913_v14 }
0x3ab8   :  { %3914 = vrcp.f32 %v2169_v35 }
0x3ac2   :  { %v3915_v18 = vpop.eup %3914 }
0x3ac3   :  { %v2185_v19 = vsub.f32 1.0, %v3915_v18  ;;  %v2193_v23 = vmul.f32 %v3915_v18, %v2191_v38 }
0x3b1b   :  { %v2176_v15 = vpop.permute.xlu1 %2175 }
0x3b1c   :  { %v2178_v20 = vmul.f32 %v3915_v18, %v2176_v15 }
0x3b1e   :  { %2180 = vrot.lane.b32.xlu0 %v2178_v20, %s3984_s30 }
0x3b90   :  { %v2181_v57 = vpop.permute.xlu0 %2180 }
0x3b91   :  { %v2183_v44 = vadd.f32 %v2181_v57, %v4573_v62 }
0x3b93   :  { %3916 = vtanh.f32 %v2183_v44 }
0x3b9d   :  { %v3917_v16 = vpop.eup %3916 }
0x3b9e   :  { %2187 = vrot.lane.b32.xlu1 %v3917_v16, %s3986_s2 }
0x3c10   :  { %v2188_v4 = vpop.permute.xlu1 %2187 }
0x3c11   :  { %v2190_v24 = vmul.f32 %v2188_v4, %v2185_v19 }
0x3c13   :  { %v4674_v25 = vadd.f32 %v2193_v23, %v2190_v24  ;;  %v3328_v23 = vld [vmem:[%s4965_s18] ss:$0 sm:$0xff] }
0x3c15   :  { %v2200_v26 = vpack.c.bf16 %v4674_v25, %v4674_v25  ;;  %v2277_v56 = vrot.slane %v4674_v25, 6 }
0x3c17   :  { %v2202_v27 = vrot.slane %v2200_v26, 1 }
0x3c19   :  { %2203 = vrot.lane.b32.xlu0 %v2202_v27, %s3986_s2 }
0x3c8b   :  { %v2204_v28 = vpop.permute.xlu0 %2203 }
0x3c8c   :  { %3668 = vmatmul.mubr.msk.bf16.vlgmr.msra.gmra.mrb[48].mxu1 %vm100_vm1, %v2204_v28 }
0x3c8d   :  { %3683 = vmatprep.mubr.msk.bf16.mxu1 %vm3983_vm0, %v3982_v0 }
0x3d5f   :  { %v2242_v30 = vpop.f32.mrb[48].mxu1 }
0x3d60   :  { %v2258_v31 = vadd.f32 %v2242_v30, %v4551_v45  ;;  %v3669_v32 = vpop.f32.mrb[49].mxu1  ;;  %v2249_v39 = vrot.slane %v2242_v30, 4 }
0x3d61   :  { %v2245_v33 = vpop.f32.mrb[50].mxu1 }
0x3d62   :  { %v2260_v36 = vrot.slane %v2258_v31, 4  ;;  %v3670_v37 = vpop.f32.mrb[51].mxu1  ;;  %v2251_v61 = vadd.f32 %v2249_v39, %v4573_v62 }
0x3d64   :  { %2261 = vrot.lane.b32.xlu1 %v2260_v36, %s3984_s30  ;;  %v3321_v42 = vmul.f32 -1.442695, %v2251_v61 }
0x3d66   :  { %3918 = vpow2.f32 %v3321_v42  ;;  %v3324_v42 = vld [vmem:[%s4966_s17] ss:$0 sm:$0xff] }
0x3d70   :  { %v3919_v43 = vpop.eup %3918 }
0x3d71   :  { %v2255_v47 = vadd.f32 1.0, %v3919_v43 }
0x3d73   :  { %3920 = vrcp.f32 %v2255_v47 }
0x3d7d   :  { %v3921_v48 = vpop.eup %3920 }
0x3d7e   :  { %v2271_v55 = vsub.f32 1.0, %v3921_v48  ;;  %v2279_v58 = vmul.f32 %v3921_v48, %v2277_v56 }
0x3dd6   :  { %v2262_v49 = vpop.permute.xlu1 %2261 }
0x3dd7   :  { %v2264_v50 = vmul.f32 %v3921_v48, %v2262_v49 }
0x3dd9   :  { %2266 = vrot.lane.b32.xlu0 %v2264_v50, %s3984_s30 }
0x3e4b   :  { %v2267_v51 = vpop.permute.xlu0 %2266 }
0x3e4c   :  { %v2269_v53 = vadd.f32 %v2267_v51, %v4573_v62 }
0x3e4e   :  { %3922 = vtanh.f32 %v2269_v53 }
0x3e58   :  { %v3923_v54 = vpop.eup %3922 }
0x3e59   :  { %2273 = vrot.lane.b32.xlu1 %v3923_v54, %s3986_s2 }
0x3ecb   :  { %v2274_v21 = vpop.permute.xlu1 %2273 }
0x3ecc   :  { %v2276_v60 = vmul.f32 %v2274_v21, %v2271_v55 }
0x3ece   :  { %v4689_v29 = vadd.f32 %v2279_v58, %v2276_v60 }
0x3ed0   :  { %v2286_v6 = vpack.c.bf16 %v4689_v29, %v4689_v29  ;;  %v2363_v44 = vrot.slane %v4689_v29, 6 }
0x3ed2   :  { %v2288_v63 = vrot.slane %v2286_v6, 2 }
0x3ed4   :  { %2289 = vrot.lane.b32.xlu0 %v2288_v63, %s3986_s2 }
0x3f46   :  { %v2290_v59 = vpop.permute.xlu0 %2289 }
0x3f47   :  { %3676 = vmatmul.mubr.msk.bf16.vlgmr.msra.gmra.mrb[52].mxu0 %vm100_vm1, %v2290_v59 }
0x3f48   :  { %3691 = vmatprep.mubr.msk.bf16.mxu0 %vm3983_vm0, %v3982_v0 }
0x401a   :  { %v2328_v1 = vpop.f32.mrb[52].mxu0 }
0x401b   :  { %v2344_v41 = vadd.f32 %v2328_v1, %v4551_v45  ;;  %v3677_v46 = vpop.f32.mrb[53].mxu0  ;;  %v2335_v11 = vrot.slane %v2328_v1, 2 }
0x401c   :  { %v2331_v3 = vpop.f32.mrb[54].mxu0 }
0x401d   :  { %v2346_v5 = vrot.slane %v2344_v41, 2  ;;  %v3678_v7 = vpop.f32.mrb[55].mxu0  ;;  %v2337_v22 = vadd.f32 %v2335_v11, %v4573_v62 }
0x401f   :  { %2347 = vrot.lane.b32.xlu1 %v2346_v5, %s3984_s30  ;;  %v3323_v2 = vmul.f32 -1.442695, %v2337_v22 }
0x4021   :  { %3924 = vpow2.f32 %v3323_v2 }
0x402b   :  { %v3925_v9 = vpop.eup %3924 }
0x402c   :  { %v2341_v17 = vadd.f32 1.0, %v3925_v9 }
0x402e   :  { %3926 = vrcp.f32 %v2341_v17 }
0x4038   :  { %v3927_v12 = vpop.eup %3926 }
0x4039   :  { %v2365_v19 = vmul.f32 %v3927_v12, %v2363_v44 }
0x4091   :  { %v2348_v14 = vpop.permute.xlu1 %2347 }
0x4092   :  { %v2350_v35 = vmul.f32 %v3927_v12, %v2348_v14 }
0x4094   :  { %2352 = vrot.lane.b32.xlu0 %v2350_v35, %s3984_s30 }
0x4098   :  { %1772 = vrot.lane.b32.xlu0 %v4579_v13, %s3986_s2 }
0x409c   :  { %1943 = vrot.lane.b32.xlu0 %v4617_v10, %s3986_s2  ;;  %v4717_v10 = vld [vmem:[%s4963_s16] sm:$0xff]  }
0x409d   :  { %3688 = vmatpush3.bf16.msra.mxu0 %v4717_v10 }
0x409e   :  { %3689 = vmatprep.subr.bf16.mxu0 %v3982_v0 }
0x40a0   :  { %2111 = vrot.lane.b32.xlu0 %v4655_v52, %s3986_s2 }
0x40a4   :  { %2282 = vrot.lane.b32.xlu0 %v4689_v29, %s3986_s2 }
0x40a8   :  { %2511 = vrot.lane.b32.xlu0 %v3328_v23, %s3984_s30 }
0x4106   :  { %v2353_v45 = vpop.permute.xlu0 %2352 }
0x4107   :  { %v2355_v18 = vadd.f32 %v2353_v45, %v4573_v62  ;;  %v4723_v62 = vld [vmem:[%s4963_s16 + $0x8] sm:$0xff]  }
0x4108   :  { %3690 = vmatpush3.bf16.msra.mxu0 %v4723_v62 }
0x4109   :  { %3928 = vtanh.f32 %v2355_v18  ;;  %3703 = vmatprep.subr.bf16.mxu0 %v3982_v0 }
0x410a   :  { %v1773_v15 = vpop.permute.xlu0 %1772 }
0x410b   :  { %1775 = vst.msk [vmem:[#allocation2] sm:$0x3] %vm243_vm2, %v1773_v15  ;;  %3692 = vmatmul.mubr.bf16.vlgmr.msra.gmra.mrb[56].mxu0 %v3985_v8  ;;  %v3779_v8 = vld [vmem:[%s4964_s15 + $0x8] sm:$0xff]  }
0x410c   :  { %3704 = vmatpush3.bf16.msra.mxu0 %v4717_v10  ;;  %3707 = vmatprep.mubr.msk.bf16.mxu0 %vm3983_vm0, %v3982_v0 }
0x410d   :  { %3705 = vmatprep.subr.bf16.mxu0 %v3982_v0 }
0x410e   :  { %v1944_v20 = vpop.permute.xlu0 %1943 }
0x410f   :  { %1946 = vst.msk [vmem:[#allocation2] sm:$0x30] %vm1136_vm3, %v1944_v20 }
0x4110   :  { %3706 = vmatpush3.bf16.msra.mxu0 %v4723_v62 }
0x4111   :  { %3719 = vmatprep.subr.bf16.mxu0 %v3982_v0 }
0x4112   :  { %v2112_v13 = vpop.permute.xlu0 %2111 }
0x4113   :  { %v3929_v57 = vpop.eup %3928  ;;  %2114 = vst.msk [vmem:[#allocation2 + $0x8] sm:$0x3] %vm243_vm2, %v2112_v13 }
0x4114   :  { %2359 = vrot.lane.b32.xlu1 %v3929_v57, %s3986_s2 }
0x4116   :  { %v2283_v52 = vpop.permute.xlu0 %2282 }
0x4117   :  { %2285 = vst.msk [vmem:[#allocation2 + $0x8] sm:$0x30] %vm1136_vm3, %v2283_v52 }
0x4118   :  { %1857 = vrot.lane.b32.xlu1 %v4598_v40, %s3986_s2  ;;  %v3778_v40 = vld [vmem:[%s4964_s15] sm:$0xff]  }
0x4119   :  { %3680 = vmatpush3.bf16.msra.mxu1 %v3778_v40 }
0x411a   :  { %3681 = vmatprep.subr.bf16.mxu1 %v3982_v0  ;;  %v4759_v32 = vpop.permute.xlu0 %2511 }
0x411c   :  { %2029 = vrot.lane.b32.xlu1 %v4636_v34, %s3986_s2  ;;  %v2357_v34 = vsub.f32 1.0, %v3927_v12 }
0x411d   :  { %3682 = vmatpush3.bf16.msra.mxu1 %v3779_v8 }
0x411e   :  { %3695 = vmatprep.subr.bf16.mxu1 %v3982_v0 }
0x4120   :  { %2196 = vrot.lane.b32.xlu1 %v4674_v25, %s3986_s2 }
0x4186   :  { %v2360_v16 = vpop.permute.xlu1 %2359 }
0x4187   :  { %v2362_v38 = vmul.f32 %v2360_v16, %v2357_v34 }
0x4189   :  { %v2366_v4 = vadd.f32 %v2365_v19, %v2362_v38 }
0x418a   :  { %v1858_v24 = vpop.permute.xlu1 %1857 }
0x418b   :  { %1860 = vst.msk [vmem:[#allocation2] sm:$0xc] %vm1049_vm4, %v1858_v24  ;;  %2368 = vrot.lane.b32.xlu1 %v2366_v4, %s3986_s2 }
0x418e   :  { %v2030_v25 = vpop.permute.xlu1 %2029 }
0x418f   :  { %2032 = vst.msk [vmem:[#allocation2] sm:$0xc0] %vm1223_vm5, %v2030_v25 }
0x4192   :  { %v2197_v26 = vpop.permute.xlu1 %2196 }
0x4193   :  { %2199 = vst.msk [vmem:[#allocation2 + $0x8] sm:$0xc] %vm1049_vm4, %v2197_v26 }
0x4196   :  { %v2372_v37 = vld [vmem:[#allocation2] sm:$0xff] }
0x41de   :  { %v2498_v27 = vpop.f32.mrb[56].mxu0 }
0x41df   :  { %v3693_v28 = vpop.f32.mrb[57].mxu0  ;;  %v2514_v36 = vadd.f32 %v4759_v32, %v2498_v27 }
0x41e0   :  { %v2501_v30 = vpop.f32.mrb[58].mxu0 }
0x41e1   :  { %v3694_v31 = vpop.f32.mrb[59].mxu0  ;;  %2516 = vrot.lane.b32.xlu1 %v2514_v36, %s3984_s30 }
0x41fd   :  { %v2369_v33 = vpop.permute.xlu1 %2368 }
0x41fe   :  { %2371 = vst.msk [vmem:[#allocation2 + $0x8] sm:$0xc0] %vm1223_vm5, %v2369_v33 }
0x4205   :  { %v2373_v39 = vld [vmem:[#allocation2 + $0x8] sm:$0xff] }
0x4206   :  { %v2374_v61 = vpack.c.bf16 %v2373_v39, %v2372_v37 }
0x4208   :  { %3684 = vmatmul.mubr.msk.bf16.vlgmr.msra.gmra.mrb[52].mxu1 %vm100_vm1, %v2374_v61 }
0x4209   :  { %3696 = vmatpush3.bf16.msra.mxu1 %v4717_v10  ;;  %3699 = vmatprep.mubr.msk.bf16.mxu1 %vm3983_vm0, %v3982_v0 }
0x420a   :  { %3697 = vmatprep.subr.bf16.mxu1 %v3982_v0 }
0x420d   :  { %3698 = vmatpush3.bf16.msra.mxu1 %v4723_v62 }
0x420e   :  { %3711 = vmatprep.subr.bf16.mxu1 %v3982_v0 }
0x4253   :  { %v2517_v21 = vpop.permute.xlu1 %2516 }
0x42db   :  { %v2435_v43 = vpop.f32.mrb[52].mxu1 }
0x42dc   :  { %v4774_v47 = vadd.f32 %v3324_v42, %v2435_v43  ;;  %v3685_v48 = vpop.f32.mrb[53].mxu1 }
0x42dd   :  { %v2438_v49 = vpop.f32.mrb[54].mxu1 }
0x42de   :  { %v4776_v50 = vadd.f32 %v3324_v42, %v2438_v49  ;;  %v3686_v51 = vpop.f32.mrb[55].mxu1  ;;  %v2504_v53 = vadd.f32 %v2498_v27, %v4774_v47 }
0x42e0   :  { %v3331_v54 = vmul.f32 -1.442695, %v2504_v53 }
0x42e2   :  { %3930 = vpow2.f32 %v3331_v54 }
0x42ec   :  { %v3931_v55 = vpop.eup %3930 }
0x42ed   :  { %v2508_v56 = vadd.f32 1.0, %v3931_v55 }
0x42ef   :  { %3932 = vrcp.f32 %v2508_v56 }
0x42f9   :  { %v3933_v58 = vpop.eup %3932 }
0x42fa   :  { %v2519_v60 = vmul.f32 %v3933_v58, %v2517_v21  ;;  %v2526_v59 = vsub.f32 1.0, %v3933_v58  ;;  %v2532_v41 = vmul.f32 0.0, %v3933_v58 }
0x42fc   :  { %2521 = vrot.lane.b32.xlu0 %v2519_v60, %s3984_s30 }
0x436e   :  { %v2522_v29 = vpop.permute.xlu0 %2521 }
0x436f   :  { %v2524_v6 = vadd.f32 %v2522_v29, %v4774_v47 }
0x4371   :  { %3934 = vtanh.f32 %v2524_v6 }
0x437b   :  { %v3935_v63 = vpop.eup %3934 }
0x437c   :  { %2528 = vrot.lane.b32.xlu1 %v3935_v63, %s3986_s2 }
0x43ee   :  { %v2529_v1 = vpop.permute.xlu1 %2528 }
0x43ef   :  { %v2531_v46 = vmul.f32 %v2529_v1, %v2526_v59 }
0x43f1   :  { %v4782_v3 = vadd.f32 %v2532_v41, %v2531_v46 }
0x43f3   :  { %v2539_v5 = vpack.c.bf16 %v4782_v3, %v4782_v3  ;;  %v2615_v44 = vrot.slane %v4782_v3, 6 }
0x43f5   :  { %2541 = vrot.lane.b32.xlu0 %v2539_v5, %s3986_s2 }
0x4467   :  { %v2542_v7 = vpop.permute.xlu0 %2541 }
0x4468   :  { %3700 = vmatmul.mubr.msk.bf16.vlgmr.msra.gmra.mrb[56].mxu1 %vm100_vm1, %v2542_v7 }
0x4469   :  { %3712 = vmatpush3.bf16.msra.mxu1 %v4717_v10  ;;  %3715 = vmatprep.mubr.msk.bf16.mxu1 %vm3983_vm0, %v3982_v0 }
0x446a   :  { %3713 = vmatprep.subr.bf16.mxu1 %v3982_v0 }
0x446d   :  { %3714 = vmatpush3.bf16.msra.mxu1 %v4723_v62 }
0x446e   :  { %3727 = vmatprep.subr.bf16.mxu1 %v3982_v0 }
0x453b   :  { %v2580_v11 = vpop.f32.mrb[56].mxu1 }
0x453c   :  { %v2596_v22 = vadd.f32 %v2580_v11, %v4759_v32  ;;  %v3701_v2 = vpop.f32.mrb[57].mxu1  ;;  %v2587_v14 = vrot.slane %v2580_v11, 6 }
0x453d   :  { %v2583_v9 = vpop.f32.mrb[58].mxu1 }
0x453e   :  { %v2598_v17 = vrot.slane %v2596_v22, 6  ;;  %v3702_v12 = vpop.f32.mrb[59].mxu1  ;;  %v2589_v35 = vadd.f32 %v2587_v14, %v4774_v47 }
0x4540   :  { %2599 = vrot.lane.b32.xlu1 %v2598_v17, %s3984_s30  ;;  %v3333_v45 = vmul.f32 -1.442695, %v2589_v35 }
0x4542   :  { %3936 = vpow2.f32 %v3333_v45 }
0x454c   :  { %v3937_v18 = vpop.eup %3936 }
0x454d   :  { %v2593_v15 = vadd.f32 1.0, %v3937_v18 }
0x454f   :  { %3938 = vrcp.f32 %v2593_v15 }
0x4559   :  { %v3939_v20 = vpop.eup %3938 }
0x455a   :  { %v2609_v34 = vsub.f32 1.0, %v3939_v20  ;;  %v2617_v19 = vmul.f32 %v3939_v20, %v2615_v44 }
0x45b2   :  { %v2600_v13 = vpop.permute.xlu1 %2599 }
0x45b3   :  { %v2602_v57 = vmul.f32 %v3939_v20, %v2600_v13 }
0x45b5   :  { %2604 = vrot.lane.b32.xlu0 %v2602_v57, %s3984_s30 }
0x4627   :  { %v2605_v52 = vpop.permute.xlu0 %2604 }
0x4628   :  { %v2607_v40 = vadd.f32 %v2605_v52, %v4774_v47 }
0x462a   :  { %3940 = vtanh.f32 %v2607_v40 }
0x4634   :  { %v3941_v8 = vpop.eup %3940 }
0x4635   :  { %2611 = vrot.lane.b32.xlu1 %v3941_v8, %s3986_s2 }
0x46a7   :  { %v2612_v16 = vpop.permute.xlu1 %2611 }
0x46a8   :  { %v2614_v38 = vmul.f32 %v2612_v16, %v2609_v34 }
0x46aa   :  { %v4801_v4 = vadd.f32 %v2617_v19, %v2614_v38 }
0x46ac   :  { %v2624_v23 = vpack.c.bf16 %v4801_v4, %v4801_v4  ;;  %v2701_v56 = vrot.slane %v4801_v4, 6 }
0x46ae   :  { %v2626_v24 = vrot.slane %v2624_v23, 1 }
0x46b0   :  { %2627 = vrot.lane.b32.xlu0 %v2626_v24, %s3986_s2 }
0x4722   :  { %v2628_v25 = vpop.permute.xlu0 %2627 }
0x4723   :  { %3708 = vmatmul.mubr.msk.bf16.vlgmr.msra.gmra.mrb[60].mxu0 %vm100_vm1, %v2628_v25 }
0x4724   :  { %3720 = vmatpush3.bf16.msra.mxu0 %v4717_v10  ;;  %3723 = vmatprep.mubr.msk.bf16.mxu0 %vm3983_vm0, %v3982_v0 }
0x4725   :  { %3721 = vmatprep.subr.bf16.mxu0 %v3982_v0 }
0x4728   :  { %3722 = vmatpush3.bf16.msra.mxu0 %v4723_v62 }
0x4729   :  { %3735 = vmatprep.subr.bf16.mxu0 %v3982_v0 }
0x47f6   :  { %v2666_v26 = vpop.f32.mrb[60].mxu0 }
0x47f7   :  { %v2682_v27 = vadd.f32 %v2666_v26, %v4759_v32  ;;  %v3709_v28 = vpop.f32.mrb[61].mxu0  ;;  %v2673_v36 = vrot.slane %v2666_v26, 4 }
0x47f8   :  { %v2669_v30 = vpop.f32.mrb[62].mxu0 }
0x47f9   :  { %v2684_v31 = vrot.slane %v2682_v27, 4  ;;  %v3710_v33 = vpop.f32.mrb[63].mxu0  ;;  %v2675_v37 = vadd.f32 %v2673_v36, %v4774_v47 }
0x47fb   :  { %2685 = vrot.lane.b32.xlu1 %v2684_v31, %s3984_s30  ;;  %v3335_v39 = vmul.f32 -1.442695, %v2675_v37 }
0x47fd   :  { %3942 = vpow2.f32 %v3335_v39 }
0x4807   :  { %v3943_v61 = vpop.eup %3942 }
0x4808   :  { %v2679_v42 = vadd.f32 1.0, %v3943_v61 }
0x480a   :  { %3944 = vrcp.f32 %v2679_v42 }
0x4814   :  { %v3945_v43 = vpop.eup %3944 }
0x4815   :  { %v2695_v55 = vsub.f32 1.0, %v3945_v43  ;;  %v2703_v58 = vmul.f32 %v3945_v43, %v2701_v56 }
0x486d   :  { %v2686_v48 = vpop.permute.xlu1 %2685 }
0x486e   :  { %v2688_v49 = vmul.f32 %v3945_v43, %v2686_v48 }
0x4870   :  { %2690 = vrot.lane.b32.xlu0 %v2688_v49, %s3984_s30 }
0x48e2   :  { %v2691_v51 = vpop.permute.xlu0 %2690 }
0x48e3   :  { %v2693_v53 = vadd.f32 %v2691_v51, %v4774_v47 }
0x48e5   :  { %3946 = vtanh.f32 %v2693_v53 }
0x48ef   :  { %v3947_v54 = vpop.eup %3946 }
0x48f0   :  { %2697 = vrot.lane.b32.xlu1 %v3947_v54, %s3986_s2 }
0x4962   :  { %v2698_v21 = vpop.permute.xlu1 %2697 }
0x4963   :  { %v2700_v60 = vmul.f32 %v2698_v21, %v2695_v55 }
0x4965   :  { %v4820_v29 = vadd.f32 %v2703_v58, %v2700_v60 }
0x4967   :  { %v2710_v6 = vpack.c.bf16 %v4820_v29, %v4820_v29  ;;  %v2787_v57 = vrot.slane %v4820_v29, 6 }
0x4969   :  { %v2712_v63 = vrot.slane %v2710_v6, 2 }
0x496b   :  { %2713 = vrot.lane.b32.xlu0 %v2712_v63, %s3986_s2 }
0x49dd   :  { %v2714_v59 = vpop.permute.xlu0 %2713 }
0x49de   :  { %3716 = vmatmul.mubr.msk.bf16.vlgmr.msra.gmra.mrb[60].mxu1 %vm100_vm1, %v2714_v59 }
0x49df   :  { %3728 = vmatpush3.bf16.msra.mxu1 %v4717_v10  ;;  %3731 = vmatprep.mubr.msk.bf16.mxu1 %vm3983_vm0, %v3982_v0 }
0x49e0   :  { %3729 = vmatprep.subr.bf16.mxu1 %v3982_v0 }
0x49e3   :  { %3730 = vmatpush3.bf16.msra.mxu1 %v4723_v62 }
0x49e4   :  { %3743 = vmatprep.subr.bf16.mxu1 %v3982_v0 }
0x4ab1   :  { %v2752_v1 = vpop.f32.mrb[60].mxu1 }
0x4ab2   :  { %v2768_v41 = vadd.f32 %v2752_v1, %v4759_v32  ;;  %v3717_v46 = vpop.f32.mrb[61].mxu1  ;;  %v2759_v22 = vrot.slane %v2752_v1, 2 }
0x4ab3   :  { %v2755_v5 = vpop.f32.mrb[62].mxu1 }
0x4ab4   :  { %v2770_v7 = vrot.slane %v2768_v41, 2  ;;  %v3718_v11 = vpop.f32.mrb[63].mxu1  ;;  %v2761_v2 = vadd.f32 %v2759_v22, %v4774_v47 }
0x4ab6   :  { %2771 = vrot.lane.b32.xlu1 %v2770_v7, %s3984_s30  ;;  %v3337_v9 = vmul.f32 -1.442695, %v2761_v2 }
0x4ab8   :  { %3948 = vpow2.f32 %v3337_v9 }
0x4ac2   :  { %v3949_v17 = vpop.eup %3948 }
0x4ac3   :  { %v2765_v12 = vadd.f32 1.0, %v3949_v17 }
0x4ac5   :  { %3950 = vrcp.f32 %v2765_v12 }
0x4acf   :  { %v3951_v14 = vpop.eup %3950 }
0x4ad0   :  { %v2781_v13 = vsub.f32 1.0, %v3951_v14  ;;  %v2789_v40 = vmul.f32 %v3951_v14, %v2787_v57 }
0x4b28   :  { %v2772_v35 = vpop.permute.xlu1 %2771 }
0x4b29   :  { %v2774_v45 = vmul.f32 %v3951_v14, %v2772_v35 }
0x4b2b   :  { %2776 = vrot.lane.b32.xlu0 %v2774_v45, %s3984_s30 }
0x4b9d   :  { %v2777_v18 = vpop.permute.xlu0 %2776 }
0x4b9e   :  { %v2779_v15 = vadd.f32 %v2777_v18, %v4774_v47 }
0x4ba0   :  { %3952 = vtanh.f32 %v2779_v15 }
0x4baa   :  { %v3953_v20 = vpop.eup %3952 }
0x4bab   :  { %2783 = vrot.lane.b32.xlu1 %v3953_v20, %s3986_s2 }
0x4c1d   :  { %v2784_v52 = vpop.permute.xlu1 %2783 }
0x4c1e   :  { %v2786_v8 = vmul.f32 %v2784_v52, %v2781_v13 }
0x4c20   :  { %v4839_v34 = vadd.f32 %v2789_v40, %v2786_v8 }
0x4c22   :  { %v2796_v44 = vpack.c.bf16 %v4839_v34, %v4839_v34  ;;  %v2869_v43 = vrot.slane %v4839_v34, 6 }
0x4c24   :  { %v2798_v16 = vrot.slane %v2796_v44, 3 }
0x4c26   :  { %2799 = vrot.lane.b32.xlu0 %v2798_v16, %s3986_s2 }
0x4c98   :  { %v2800_v19 = vpop.permute.xlu0 %2799 }
0x4c99   :  { %3724 = vmatmul.mubr.msk.bf16.vlgmr.msra.gmra.mrb[64].mxu0 %vm100_vm1, %v2800_v19 }
0x4c9a   :  { %3736 = vmatpush3.bf16.msra.mxu0 %v4717_v10  ;;  %3739 = vmatprep.mubr.msk.bf16.mxu0 %vm3983_vm0, %v3982_v0 }
0x4c9b   :  { %3737 = vmatprep.subr.bf16.mxu0 %v3982_v0 }
0x4c9e   :  { %3738 = vmatpush3.bf16.msra.mxu0 %v4723_v62 }
0x4c9f   :  { %3751 = vmatprep.subr.bf16.mxu0 %v3982_v0 }
0x4d6c   :  { %v2838_v47 = vpop.f32.mrb[64].mxu0 }
0x4d6d   :  { %v2851_v38 = vadd.f32 %v2838_v47, %v4759_v32  ;;  %v3725_v23 = vpop.f32.mrb[65].mxu0  ;;  %v2844_v26 = vadd.f32 %v2838_v47, %v4776_v50 }
0x4d6e   :  { %v2841_v24 = vpop.f32.mrb[66].mxu0 }
0x4d6f   :  { %2853 = vrot.lane.b32.xlu1 %v2851_v38, %s3984_s30  ;;  %v3726_v25 = vpop.f32.mrb[67].mxu0  ;;  %v3339_v27 = vmul.f32 -1.442695, %v2844_v26 }
0x4d71   :  { %3954 = vpow2.f32 %v3339_v27 }
0x4d7b   :  { %v3955_v28 = vpop.eup %3954 }
0x4d7c   :  { %v2848_v30 = vadd.f32 1.0, %v3955_v28 }
0x4d7e   :  { %3956 = vrcp.f32 %v2848_v30 }
0x4d88   :  { %v3957_v31 = vpop.eup %3956 }
0x4d89   :  { %v2863_v42 = vsub.f32 1.0, %v3957_v31  ;;  %v2871_v49 = vmul.f32 %v3957_v31, %v2869_v43 }
0x4de1   :  { %v2854_v33 = vpop.permute.xlu1 %2853 }
0x4de2   :  { %v2856_v36 = vmul.f32 %v3957_v31, %v2854_v33 }
0x4de4   :  { %2858 = vrot.lane.b32.xlu0 %v2856_v36, %s3984_s30 }
0x4e56   :  { %v2859_v37 = vpop.permute.xlu0 %2858 }
0x4e57   :  { %v2861_v39 = vadd.f32 %v2859_v37, %v4776_v50 }
0x4e59   :  { %3958 = vtanh.f32 %v2861_v39 }
0x4e63   :  { %v3959_v61 = vpop.eup %3958 }
0x4e64   :  { %2865 = vrot.lane.b32.xlu1 %v3959_v61, %s3986_s2 }
0x4ed6   :  { %v2866_v48 = vpop.permute.xlu1 %2865 }
0x4ed7   :  { %v2868_v51 = vmul.f32 %v2866_v48, %v2863_v42 }
0x4ed9   :  { %v4858_v53 = vadd.f32 %v2871_v49, %v2868_v51 }
0x4edb   :  { %v2878_v54 = vpack.c.bf16 %v4858_v53, %v4858_v53  ;;  %v2954_v17 = vrot.slane %v4858_v53, 6 }
0x4edd   :  { %2880 = vrot.lane.b32.xlu0 %v2878_v54, %s3986_s2 }
0x4f4f   :  { %v2881_v55 = vpop.permute.xlu0 %2880 }
0x4f50   :  { %3732 = vmatmul.mubr.msk.bf16.vlgmr.msra.gmra.mrb[64].mxu1 %vm100_vm1, %v2881_v55 }
0x4f51   :  { %3744 = vmatpush3.bf16.msra.mxu1 %v4717_v10  ;;  %3747 = vmatprep.mubr.msk.bf16.mxu1 %vm3983_vm0, %v3982_v0 }
0x4f52   :  { %3745 = vmatprep.subr.bf16.mxu1 %v3982_v0 }
0x4f55   :  { %3746 = vmatpush3.bf16.msra.mxu1 %v4723_v62 }
0x5023   :  { %v2919_v56 = vpop.f32.mrb[64].mxu1 }
0x5024   :  { %v2935_v21 = vadd.f32 %v2919_v56, %v4759_v32  ;;  %v3733_v58 = vpop.f32.mrb[65].mxu1  ;;  %v2926_v59 = vrot.slane %v2919_v56, 6 }
0x5025   :  { %v2922_v60 = vpop.f32.mrb[66].mxu1 }
0x5026   :  { %v2937_v6 = vrot.slane %v2935_v21, 6  ;;  %v3734_v63 = vpop.f32.mrb[67].mxu1  ;;  %v2928_v1 = vadd.f32 %v2926_v59, %v4776_v50 }
0x5028   :  { %2938 = vrot.lane.b32.xlu1 %v2937_v6, %s3984_s30  ;;  %v3341_v10 = vmul.f32 -1.442695, %v2928_v1 }
0x502a   :  { %3960 = vpow2.f32 %v3341_v10 }
0x5034   :  { %v3961_v41 = vpop.eup %3960 }
0x5035   :  { %v2932_v46 = vadd.f32 1.0, %v3961_v41 }
0x5037   :  { %3962 = vrcp.f32 %v2932_v46 }
0x5041   :  { %v3963_v5 = vpop.eup %3962 }
0x5042   :  { %v2948_v9 = vsub.f32 1.0, %v3963_v5  ;;  %v2956_v14 = vmul.f32 %v3963_v5, %v2954_v17 }
0x509a   :  { %v2939_v7 = vpop.permute.xlu1 %2938 }
0x509b   :  { %v2941_v62 = vmul.f32 %v3963_v5, %v2939_v7 }
0x509d   :  { %2943 = vrot.lane.b32.xlu0 %v2941_v62, %s3984_s30 }
0x510f   :  { %v2944_v11 = vpop.permute.xlu0 %2943 }
0x5110   :  { %v2946_v22 = vadd.f32 %v2944_v11, %v4776_v50 }
0x5112   :  { %3964 = vtanh.f32 %v2946_v22 }
0x511c   :  { %v3965_v2 = vpop.eup %3964 }
0x511d   :  { %2950 = vrot.lane.b32.xlu1 %v3965_v2, %s3986_s2 }
0x518f   :  { %v2951_v12 = vpop.permute.xlu1 %2950 }
0x5190   :  { %v2953_v35 = vmul.f32 %v2951_v12, %v2948_v9 }
0x5192   :  { %v4876_v45 = vadd.f32 %v2956_v14, %v2953_v35 }
0x5194   :  { %v2963_v18 = vpack.c.bf16 %v4876_v45, %v4876_v45  ;;  %v3040_v33 = vrot.slane %v4876_v45, 6 }
0x5196   :  { %v2965_v15 = vrot.slane %v2963_v18, 1 }
0x5198   :  { %2966 = vrot.lane.b32.xlu0 %v2965_v15, %s3986_s2 }
0x520a   :  { %v2967_v20 = vpop.permute.xlu0 %2966 }
0x520b   :  { %3740 = vmatmul.mubr.msk.bf16.vlgmr.msra.gmra.mrb[68].mxu0 %vm100_vm1, %v2967_v20 }
0x520c   :  { %3755 = vmatprep.mubr.msk.bf16.mxu0 %vm3983_vm0, %v3982_v0 }
0x52de   :  { %v3005_v13 = vpop.f32.mrb[68].mxu0 }
0x52df   :  { %v3021_v57 = vadd.f32 %v3005_v13, %v4759_v32  ;;  %v3741_v52 = vpop.f32.mrb[69].mxu0  ;;  %v3012_v16 = vrot.slane %v3005_v13, 4 }
0x52e0   :  { %v3008_v40 = vpop.f32.mrb[70].mxu0 }
0x52e1   :  { %v3023_v8 = vrot.slane %v3021_v57, 4  ;;  %v3742_v44 = vpop.f32.mrb[71].mxu0  ;;  %v3014_v19 = vadd.f32 %v3012_v16, %v4776_v50 }
0x52e3   :  { %3024 = vrot.lane.b32.xlu1 %v3023_v8, %s3984_s30  ;;  %v3343_v47 = vmul.f32 -1.442695, %v3014_v19 }
0x52e5   :  { %3966 = vpow2.f32 %v3343_v47  ;;  %v3780_v47 = vld [vmem:[%s4967_s21] sm:$0xff]  }
0x52e6   :  { %3752 = vmatpush3.bf16.msra.mxu0 %v3780_v47 }
0x52e7   :  { %3753 = vmatprep.subr.bf16.mxu0 %v3982_v0 }
0x52ef   :  { %v3967_v38 = vpop.eup %3966 }
0x52f0   :  { %v3018_v23 = vadd.f32 1.0, %v3967_v38  ;;  %v3781_v38 = vld [vmem:[%s4967_s21 + $0x8] sm:$0xff]  }
0x52f1   :  { %3754 = vmatpush3.bf16.msra.mxu0 %v3781_v38 }
0x52f2   :  { %3968 = vrcp.f32 %v3018_v23 }
0x52fc   :  { %v3969_v24 = vpop.eup %3968 }
0x52fd   :  { %v3034_v31 = vsub.f32 1.0, %v3969_v24  ;;  %v3042_v37 = vmul.f32 %v3969_v24, %v3040_v33  ;;  %v3346_v33 = vld [vmem:[%s4968_s19] ss:$0 sm:$0xff] }
0x5355   :  { %v3025_v25 = vpop.permute.xlu1 %3024 }
0x5356   :  { %v3027_v26 = vmul.f32 %v3969_v24, %v3025_v25 }
0x5358   :  { %3029 = vrot.lane.b32.xlu0 %v3027_v26, %s3984_s30 }
0x53ca   :  { %v3030_v27 = vpop.permute.xlu0 %3029 }
0x53cb   :  { %v3032_v28 = vadd.f32 %v3030_v27, %v4776_v50 }
0x53cd   :  { %3970 = vtanh.f32 %v3032_v28 }
0x53d7   :  { %v3971_v30 = vpop.eup %3970 }
0x53d8   :  { %3036 = vrot.lane.b32.xlu1 %v3971_v30, %s3986_s2 }
0x544a   :  { %v3037_v36 = vpop.permute.xlu1 %3036 }
0x544b   :  { %v3039_v39 = vmul.f32 %v3037_v36, %v3034_v31 }
0x544d   :  { %v3043_v61 = vadd.f32 %v3042_v37, %v3039_v39  ;;  %v3347_v39 = vld [vmem:[%s4969_s20] ss:$0 sm:$0xff] }
0x544f   :  { %v3049_v42 = vpack.c.bf16 %v3043_v61, %v3043_v61 }
0x5451   :  { %v3051_v43 = vrot.slane %v3049_v42, 2 }
0x5453   :  { %3052 = vrot.lane.b32.xlu0 %v3051_v43, %s3986_s2 }
0x54c5   :  { %v3053_v48 = vpop.permute.xlu0 %3052 }
0x54c6   :  { %3748 = vmatmul.mubr.msk.bf16.vlgmr.msra.gmra.mrb[68].mxu1 %vm100_vm1, %v3053_v48 }
0x5599   :  { %v3091_v49 = vpop.f32.mrb[68].mxu1 }
0x559a   :  { %v3107_v51 = vadd.f32 %v3091_v49, %v4759_v32  ;;  %v3749_v54 = vpop.f32.mrb[69].mxu1  ;;  %v3098_v58 = vrot.slane %v3091_v49, 2  ;;  %v3348_v49 = vld [vmem:[%s4970_s22] ss:$0 sm:$0xff] }
0x559b   :  { %v3094_v55 = vpop.f32.mrb[70].mxu1 }
0x559c   :  { %v3109_v56 = vrot.slane %v3107_v51, 2  ;;  %v3750_v21 = vpop.f32.mrb[71].mxu1  ;;  %v3100_v60 = vadd.f32 %v3098_v58, %v4776_v50 }
0x559e   :  { %3110 = vrot.lane.b32.xlu1 %v3109_v56, %s3984_s30  ;;  %v3345_v6 = vmul.f32 -1.442695, %v3100_v60 }
0x55a0   :  { %3972 = vpow2.f32 %v3345_v6 }
0x55aa   :  { %v3973_v63 = vpop.eup %3972 }
0x55ab   :  { %v3104_v59 = vadd.f32 1.0, %v3973_v63 }
0x55ad   :  { %3974 = vrcp.f32 %v3104_v59 }
0x55b7   :  { %v3975_v1 = vpop.eup %3974 }
0x5610   :  { %v3111_v10 = vpop.permute.xlu1 %3110 }
0x5611   :  { %v3113_v41 = vmul.f32 %v3975_v1, %v3111_v10 }
0x5613   :  { %3115 = vrot.lane.b32.xlu0 %v3113_v41, %s3984_s30 }
0x5617   :  { %2535 = vrot.lane.b32.xlu0 %v4782_v3, %s3986_s2 }
0x561b   :  { %2706 = vrot.lane.b32.xlu0 %v4820_v29, %s3986_s2 }
0x561f   :  { %2874 = vrot.lane.b32.xlu0 %v4858_v53, %s3986_s2  ;;  %v3126_v53 = vrot.slane %v3043_v61, 6 }
0x5621   :  { %v3128_v22 = vmul.f32 %v3975_v1, %v3126_v53 }
0x5623   :  { %3045 = vrot.lane.b32.xlu0 %v3043_v61, %s3986_s2 }
0x5685   :  { %v3116_v32 = vpop.permute.xlu0 %3115 }
0x5686   :  { %v3118_v46 = vadd.f32 %v3116_v32, %v4776_v50  ;;  %v3120_v50 = vsub.f32 1.0, %v3975_v1 }
0x5688   :  { %3976 = vtanh.f32 %v3118_v46 }
0x5689   :  { %v2536_v5 = vpop.permute.xlu0 %2535 }
0x568a   :  { %2538 = vst.msk [vmem:[#allocation3] sm:$0x3] %vm243_vm2, %v2536_v5 }
0x568d   :  { %v2707_v7 = vpop.permute.xlu0 %2706 }
0x568e   :  { %2709 = vst.msk [vmem:[#allocation3] sm:$0x30] %vm1136_vm3, %v2707_v7 }
0x5691   :  { %v2875_v62 = vpop.permute.xlu0 %2874 }
0x5692   :  { %v3977_v3 = vpop.eup %3976  ;;  %2877 = vst.msk [vmem:[#allocation3 + $0x8] sm:$0x3] %vm243_vm2, %v2875_v62 }
0x5693   :  { %3122 = vrot.lane.b32.xlu1 %v3977_v3, %s3986_s2 }
0x5695   :  { %v3046_v29 = vpop.permute.xlu0 %3045 }
0x5696   :  { %3048 = vst.msk [vmem:[#allocation3 + $0x8] sm:$0x30] %vm1136_vm3, %v3046_v29 }
0x5697   :  { %2620 = vrot.lane.b32.xlu1 %v4801_v4, %s3986_s2 }
0x569b   :  { %2792 = vrot.lane.b32.xlu1 %v4839_v34, %s3986_s2 }
0x569f   :  { %2959 = vrot.lane.b32.xlu1 %v4876_v45, %s3986_s2 }
0x5705   :  { %v3123_v11 = vpop.permute.xlu1 %3122 }
0x5706   :  { %v3125_v2 = vmul.f32 %v3123_v11, %v3120_v50 }
0x5708   :  { %v3129_v9 = vadd.f32 %v3128_v22, %v3125_v2 }
0x5709   :  { %v2621_v17 = vpop.permute.xlu1 %2620 }
0x570a   :  { %2623 = vst.msk [vmem:[#allocation3] sm:$0xc] %vm1049_vm4, %v2621_v17  ;;  %3131 = vrot.lane.b32.xlu1 %v3129_v9, %s3986_s2 }
0x570d   :  { %v2793_v12 = vpop.permute.xlu1 %2792 }
0x570e   :  { %2795 = vst.msk [vmem:[#allocation3] sm:$0xc0] %vm1223_vm5, %v2793_v12 }
0x5711   :  { %v2960_v4 = vpop.permute.xlu1 %2959 }
0x5712   :  { %2962 = vst.msk [vmem:[#allocation3 + $0x8] sm:$0xc] %vm1049_vm4, %v2960_v4 }
0x5715   :  { %v3135_v34 = vld [vmem:[#allocation3] sm:$0xff] }
0x5716   :  { %v3139_v14 = vsel %vm100_vm1, %v3135_v34, 0.0 }
0x5717   :  { %3140 = vadd.xlane.f32.xlu0 %v3139_v14 }
0x577c   :  { %v3132_v35 = vpop.permute.xlu1 %3131 }
0x577d   :  { %3134 = vst.msk [vmem:[#allocation3 + $0x8] sm:$0xc0] %vm1223_vm5, %v3132_v35 }
0x5784   :  { %v3136_v45 = vld [vmem:[#allocation3 + $0x8] sm:$0xff] }
0x5785   :  { %v3142_v18 = vsel %vm100_vm1, %v3136_v45, 0.0 }
0x5786   :  { %3143 = vadd.xlane.f32.xlu1 %v3142_v18 }
0x57a4   :  { %v3141_v15 = vpop.xlane.xlu0 %3140 }
0x57a5   :  { %v3145_v20 = vmul.f32 0.03125, %v3141_v15 }
0x57a7   :  { %v3147_v13 = vsub.f32 %v3135_v34, %v3145_v20 }
0x57a9   :  { %v3149_v57 = vmul.f32 %v3147_v13, %v3147_v13 }
0x57ab   :  { %v3151_v52 = vsel %vm100_vm1, %v3149_v57, 0.0 }
0x57ac   :  { %3152 = vadd.xlane.f32.xlu0 %v3151_v52 }
0x5813   :  { %v3144_v40 = vpop.xlane.xlu1 %3143 }
0x5814   :  { %v3146_v8 = vmul.f32 0.03125, %v3144_v40 }
0x5816   :  { %v3148_v44 = vsub.f32 %v3136_v45, %v3146_v8 }
0x5818   :  { %v3150_v16 = vmul.f32 %v3148_v44, %v3148_v44 }
0x581a   :  { %v3154_v19 = vsel %vm100_vm1, %v3150_v16, 0.0 }
0x581b   :  { %3155 = vadd.xlane.f32.xlu0 %v3154_v19 }
0x5839   :  { %v3153_v23 = vpop.xlane.xlu0 %3152 }
0x583a   :  { %v3157_v24 = vmul.f32 0.03125, %v3153_v23 }
0x583c   :  { %v3159_v25 = vadd.f32 1e-05, %v3157_v24 }
0x583e   :  { %3978 = vrsqrt.f32 %v3159_v25 }
0x5848   :  { %v3979_v30 = vpop.eup %3978 }
0x5849   :  { %v3163_v31 = vmul.f32 %v3979_v30, %v3147_v13 }
0x584b   :  { %v3171_v36 = vmul.f32 %v3346_v33, %v3163_v31 }
0x584d   :  { %v3179_v42 = vadd.f32 %v3347_v39, %v3171_v36 }
0x58a8   :  { %v3156_v26 = vpop.xlane.xlu0 %3155 }
0x58a9   :  { %v3158_v27 = vmul.f32 0.03125, %v3156_v26 }
0x58ab   :  { %v3160_v28 = vadd.f32 1e-05, %v3158_v27 }
0x58ad   :  { %3980 = vrsqrt.f32 %v3160_v28 }
0x58b7   :  { %v3981_v0 = vpop.eup %3980 }
0x58b8   :  { %v3164_v37 = vmul.f32 %v3981_v0, %v3148_v44 }
0x58ba   :  { %v3172_v61 = vmul.f32 %v3346_v33, %v3164_v37 }
0x58bc   :  { %v3180_v43 = vadd.f32 %v3347_v39, %v3172_v61 }
0x58be   :  { %v3181_v48 = vpack.c.bf16 %v3180_v43, %v3179_v42 }
0x58c0   :  { %3756 = vmatmul.mubr.msk.bf16.vlgmr.msra.gmra.mrb[72].mxu0 %vm100_vm1, %v3181_v48 }
0x5993   :  { %v3242_v51 = vpop.f32.mrb[72].mxu0 }
0x5994   :  { %v3243_v54 = vadd.f32 %v3348_v49, %v3242_v51  ;;  %v3757_v55 = vpop.f32.mrb[73].mxu0 }
0x5995   :  { %v3245_v56 = vpop.f32.mrb[74].mxu0 }
0x5996   :  { %3250 = vst.msk [vmem:[%s4971_s23] sm:$0xff] %vm3249_vm6, %v3243_v54  ;;  %v3246_v21 = vadd.f32 %v3348_v49, %v3245_v56  ;;  %v3758_v58 = vpop.f32.mrb[75].mxu0 }
0x5998   :  { %3251 = vst.msk [vmem:[%s4971_s23 + $0x8] sm:$0xff] %vm3249_vm6, %v3246_v21 }

</bundles_post_ra>
